<compile_context>
chip_gen: v5e
topology: v5e:2x2
jax: 0.10.0
libtpu: 0.0.40
codegen_flags: <defaults>
</compile_context>

<pallas_src>
import functools

import jax
import jax.numpy as jnp
from jax.experimental import pallas as pl
from jax.experimental.pallas import tpu as pltpu

# ---- SNN hyper-parameters (from the module: self.k = 0.2, 5 timesteps) ----
TIMESTAMP = 5
DECAY = 0.2            # self.k
V_TH = 0.5             # spiking threshold
FEAT_CH = 576          # classifier input channels (SNN_2d_fc(576, 10, ...))
NUM_CLASSES = 10
CLASS_PAD = 128        # lane-dense classifier width; real classes live in [:10]


def _make_kernel(HW):
    """Per-batch-block fused SNN kernel, closed over the static HW."""
    inv_hw = 1.0 / float(HW)

    def kernel(patches_ref, wconv_ref, bconv_ref, wfc_ref, bfc_ref, out_ref):
        # Time-invariant conv pre-activation (same input & weights every
        # timestep) -> computed once per block, reused for all 5 steps.
        pre = jnp.dot(patches_ref[...], wconv_ref[...],
                      preferred_element_type=jnp.float32) + bconv_ref[...]

        mem_f = jnp.zeros_like(pre)                         # [HW, 576] f32
        pooled_rows = []
        # TODO(synk): reference surrogate may use >= and/or soft reset
        # (mem - v_th); hard reset with '>' is assumed here.
        for _ in range(TIMESTAMP):                          # static 5-step unroll
            # --- LIF membrane update + spike + fused hard reset -------------
            mem_f = mem_f * DECAY + pre
            fired = mem_f > V_TH
            mem_f = jnp.where(fired, 0.0, mem_f)
            # --- global adaptive avg-pool(1): column sum of the spike mask.
            # bf16 reduce input with f32 accumulation; no f32 spike tensor.
            spike = fired.astype(jnp.bfloat16)
            pooled_rows.append(
                jnp.sum(spike, axis=0, keepdims=True, dtype=jnp.float32))

        pooled = jnp.concatenate(pooled_rows, axis=0) * inv_hw    # [T, 576] f32

        # --- ONE batched classifier matmul for all timesteps; bias added once.
        fc = jnp.dot(pooled.astype(jnp.bfloat16), wfc_ref[...],
                     preferred_element_type=jnp.float32) + bfc_ref[...]  # [T,128]

        # --- classifier LIF membrane prefix-scan (tiny, [1,128] per step) ---
        mem_c = jnp.zeros((1, CLASS_PAD), jnp.float32)
        rows = []
        for t in range(TIMESTAMP):
            mem_c = mem_c * DECAY + fc[t:t + 1, :]
            rows.append(mem_c)

        # Single lane-dense [T, 128] store for this batch sample.
        out_ref[...] = jnp.concatenate(rows, axis=0)

    return kernel


@functools.partial(jax.jit, static_argnames=("B", "H", "W", "C_in"))
def lea_stereo_forward(x_nchw, wconv, bconv, wfc, bfc, *, B, H, W, C_in):
    """Returns (test, logits, aux_stack, aux, pruned_num, add_MB, bit_synops)."""
    HW = H * W
    N = B * HW
    K = 9 * C_in
    K_pad = -(-K // 32) * 32            # pad contraction dim (27 -> 32)

    # Keep batch blocks 8-sublane aligned (free slab views, no relayout copies).
    assert HW % 8 == 0, "HW must be a multiple of 8 sublanes (pad spatially)"

    # ---- glue: NCHW -> NHWC bf16, im2col (3x3, stride 1, pad 1) ------------
    # TODO(synk): for production LEAStereo resolutions, drop this 9x im2col
    # HBM inflation: pass the padded activation once and do 9 shifted
    # [tileN, C_in] x [C_in, 576] accumulations in-kernel, grid the HW axis
    # per batch with pooled partial sums in scratch (tile ~2-4k rows for v7x's
    # 64 MiB VMEM, ~2x that on v5e/v6e), and set vmem_limit_bytes accordingly.
    x = jnp.transpose(x_nchw, (0, 2, 3, 1)).astype(jnp.bfloat16)   # NHWC bf16
    xp = jnp.pad(x, ((0, 0), (1, 1), (1, 1), (0, 0)))
    cols = [xp[:, dy:dy + H, dx:dx + W, :]
            for dy in range(3) for dx in range(3)]
    patches = jnp.concatenate(cols, axis=-1).reshape(N, K)
    patches = jnp.pad(patches, ((0, 0), (0, K_pad - K)))           # [N, K_pad]

    wconv_bf = jnp.pad(wconv, ((0, K_pad - K), (0, 0))).astype(jnp.bfloat16)
    bconv2 = bconv.reshape(1, FEAT_CH).astype(jnp.float32)         # [1, 576]
    wfc_pad = jnp.pad(
        wfc, ((0, 0), (0, CLASS_PAD - NUM_CLASSES))).astype(jnp.bfloat16)
    bfc_pad = jnp.pad(
        bfc.reshape(1, NUM_CLASSES),
        ((0, 0), (0, CLASS_PAD - NUM_CLASSES))).astype(jnp.float32)

    kernel = _make_kernel(HW)

    out = pl.pallas_call(
        kernel,
        out_shape=jax.ShapeDtypeStruct((B, TIMESTAMP, CLASS_PAD), jnp.float32),
        grid=(B,),
        in_specs=[
            pl.BlockSpec((HW, K_pad), lambda b: (b, 0)),           # patches
            pl.BlockSpec((K_pad, FEAT_CH), lambda b: (0, 0)),      # conv weight
            pl.BlockSpec((1, FEAT_CH), lambda b: (0, 0)),          # conv bias
            pl.BlockSpec((FEAT_CH, CLASS_PAD), lambda b: (0, 0)),  # fc weight
            pl.BlockSpec((1, CLASS_PAD), lambda b: (0, 0)),        # fc bias
        ],
        out_specs=pl.BlockSpec((None, TIMESTAMP, CLASS_PAD),
                               lambda b: (b, 0, 0)),
        compiler_params=pltpu.CompilerParams(
            dimension_semantics=("parallel",)),
    )(patches, wconv_bf, bconv2, wfc_pad, bfc_pad)

    test = jnp.transpose(out[:, :, :NUM_CLASSES], (1, 0, 2))       # [T, B, 10]
    logits = jnp.sum(test, axis=0) / TIMESTAMP                     # [B, 10]

    # eval path: aux logits are None; pruning / synops counters not modeled.
    model_pruned_num = jnp.int32(0)
    model_add_MB = jnp.float32(0.0)
    model_bit_synops = jnp.float32(0.0)
    return (test, logits, None, None,
            model_pruned_num, model_add_MB, model_bit_synops)


if __name__ == "__main__":
    B, C_in, H, W = 2, 3, 16, 16

    key = jax.random.PRNGKey(0)
    kx, kw1, kb1, kw2, kb2 = jax.random.split(key, 5)

    x = jax.random.normal(kx, (B, C_in, H, W), jnp.float32)            # NCHW
    wconv = jax.random.normal(kw1, (9 * C_in, FEAT_CH), jnp.float32) * 0.1
    bconv = jax.random.normal(kb1, (FEAT_CH,), jnp.float32) * 0.01
    wfc = jax.random.normal(kw2, (FEAT_CH, NUM_CLASSES), jnp.float32) * 0.05
    bfc = jax.random.normal(kb2, (NUM_CLASSES,), jnp.float32) * 0.01

    out = lea_stereo_forward(x, wconv, bconv, wfc, bfc,
                             B=B, H=H, W=W, C_in=C_in)
    test, logits = out[0], out[1]
    jax.block_until_ready(test)
    jax.block_until_ready(logits)

    assert test.shape == (TIMESTAMP, B, NUM_CLASSES)
    assert logits.shape == (B, NUM_CLASSES)
    print("KERNEL_OK")
</pallas_src>

<mosaic_0001>
module attributes {stable_mosaic.version = 11 : i64} {
  func.func @kernel(%arg0: i32, %arg1: memref<256x32xbf16, #tpu.memory_space<vmem>>, %arg2: memref<32x576xbf16, #tpu.memory_space<vmem>>, %arg3: memref<1x576xf32, #tpu.memory_space<vmem>>, %arg4: memref<576x128xbf16, #tpu.memory_space<vmem>>, %arg5: memref<1x128xf32, #tpu.memory_space<vmem>>, %arg6: memref<1x5x128xf32, #tpu.memory_space<vmem>>) attributes {dimension_semantics = [#tpu.dimension_semantics<parallel>], iteration_bounds = array<i64: 2>, scalar_prefetch = 0 : i64, scratch_operands = 0 : i64, tpu.core_type = #tpu.core_type<tc>, window_params = [{transform_indices = @transform_0, window_bounds = array<i64: 256, 32>}, {pipeline_mode = #tpu.pipeline_mode<synchronous>, transform_indices = @transform_1, window_bounds = array<i64: 32, 576>}, {pipeline_mode = #tpu.pipeline_mode<synchronous>, transform_indices = @transform_2, window_bounds = array<i64: 1, 576>}, {pipeline_mode = #tpu.pipeline_mode<synchronous>, transform_indices = @transform_3, window_bounds = array<i64: 576, 128>}, {pipeline_mode = #tpu.pipeline_mode<synchronous>, transform_indices = @transform_4, window_bounds = array<i64: 1, 128>}, {transform_indices = @transform_5, window_bounds = array<i64: 1, 5, 128>}]} {
    %c0 = arith.constant 0 : index
    %c0_0 = arith.constant 0 : index
    %0 = vector.load %arg1[%c0, %c0_0] : memref<256x32xbf16, #tpu.memory_space<vmem>>, vector<256x32xbf16>
    %c0_1 = arith.constant 0 : index
    %c0_2 = arith.constant 0 : index
    %1 = vector.load %arg2[%c0_1, %c0_2] : memref<32x576xbf16, #tpu.memory_space<vmem>>, vector<32x576xbf16>
    %cst = arith.constant dense<0.000000e+00> : vector<256x576xf32>
    %2 = tpu.matmul %0, %1, %cst {dimension_numbers = #tpu.dot_dimension_numbers<[1], [0], [0], [1], [0, 0, 1, 1], [], []>} : vector<256x32xbf16>, vector<32x576xbf16>, vector<256x576xf32> -> vector<256x576xf32>
    %c0_3 = arith.constant 0 : index
    %c0_4 = arith.constant 0 : index
    %3 = vector.load %arg3[%c0_3, %c0_4] : memref<1x576xf32, #tpu.memory_space<vmem>>, vector<1x576xf32>
    %4 = vector.broadcast %3 : vector<1x576xf32> to vector<256x576xf32>
    %5 = arith.addf %2, %4 : vector<256x576xf32>
    %cst_5 = arith.constant 0.000000e+00 : f32
    %6 = vector.broadcast %cst_5 : f32 to vector<256x576xf32>
    %cst_6 = arith.constant 2.000000e-01 : f32
    %7 = vector.broadcast %cst_6 : f32 to vector<256x576xf32>
    %8 = arith.mulf %6, %7 : vector<256x576xf32>
    %9 = arith.addf %8, %5 : vector<256x576xf32>
    %cst_7 = arith.constant 5.000000e-01 : f32
    %10 = vector.broadcast %cst_7 : f32 to vector<256x576xf32>
    %11 = arith.cmpf ogt, %9, %10 : vector<256x576xf32>
    %cst_8 = arith.constant 0.000000e+00 : f32
    %12 = vector.broadcast %cst_8 : f32 to vector<256x576xf32>
    %13 = arith.select %11, %12, %9 : vector<256x576xi1>, vector<256x576xf32>
    %14 = arith.extui %11 : vector<256x576xi1> to vector<256x576xi32>
    %15 = arith.sitofp %14 : vector<256x576xi32> to vector<256x576xf32>
    %16 = arith.truncf %15 : vector<256x576xf32> to vector<256x576xbf16>
    %17 = arith.extf %16 : vector<256x576xbf16> to vector<256x576xf32>
    %cst_9 = arith.constant dense<0.000000e+00> : vector<576xf32>
    %18 = vector.multi_reduction <add>, %17, %cst_9 [0] : vector<256x576xf32> to vector<576xf32>
    %19 = vector.shape_cast %18 : vector<576xf32> to vector<1x576xf32>
    %cst_10 = arith.constant 2.000000e-01 : f32
    %20 = vector.broadcast %cst_10 : f32 to vector<256x576xf32>
    %21 = arith.mulf %13, %20 : vector<256x576xf32>
    %22 = arith.addf %21, %5 : vector<256x576xf32>
    %cst_11 = arith.constant 5.000000e-01 : f32
    %23 = vector.broadcast %cst_11 : f32 to vector<256x576xf32>
    %24 = arith.cmpf ogt, %22, %23 : vector<256x576xf32>
    %cst_12 = arith.constant 0.000000e+00 : f32
    %25 = vector.broadcast %cst_12 : f32 to vector<256x576xf32>
    %26 = arith.select %24, %25, %22 : vector<256x576xi1>, vector<256x576xf32>
    %27 = arith.extui %24 : vector<256x576xi1> to vector<256x576xi32>
    %28 = arith.sitofp %27 : vector<256x576xi32> to vector<256x576xf32>
    %29 = arith.truncf %28 : vector<256x576xf32> to vector<256x576xbf16>
    %30 = arith.extf %29 : vector<256x576xbf16> to vector<256x576xf32>
    %cst_13 = arith.constant dense<0.000000e+00> : vector<576xf32>
    %31 = vector.multi_reduction <add>, %30, %cst_13 [0] : vector<256x576xf32> to vector<576xf32>
    %32 = vector.shape_cast %31 : vector<576xf32> to vector<1x576xf32>
    %cst_14 = arith.constant 2.000000e-01 : f32
    %33 = vector.broadcast %cst_14 : f32 to vector<256x576xf32>
    %34 = arith.mulf %26, %33 : vector<256x576xf32>
    %35 = arith.addf %34, %5 : vector<256x576xf32>
    %cst_15 = arith.constant 5.000000e-01 : f32
    %36 = vector.broadcast %cst_15 : f32 to vector<256x576xf32>
    %37 = arith.cmpf ogt, %35, %36 : vector<256x576xf32>
    %cst_16 = arith.constant 0.000000e+00 : f32
    %38 = vector.broadcast %cst_16 : f32 to vector<256x576xf32>
    %39 = arith.select %37, %38, %35 : vector<256x576xi1>, vector<256x576xf32>
    %40 = arith.extui %37 : vector<256x576xi1> to vector<256x576xi32>
    %41 = arith.sitofp %40 : vector<256x576xi32> to vector<256x576xf32>
    %42 = arith.truncf %41 : vector<256x576xf32> to vector<256x576xbf16>
    %43 = arith.extf %42 : vector<256x576xbf16> to vector<256x576xf32>
    %cst_17 = arith.constant dense<0.000000e+00> : vector<576xf32>
    %44 = vector.multi_reduction <add>, %43, %cst_17 [0] : vector<256x576xf32> to vector<576xf32>
    %45 = vector.shape_cast %44 : vector<576xf32> to vector<1x576xf32>
    %cst_18 = arith.constant 2.000000e-01 : f32
    %46 = vector.broadcast %cst_18 : f32 to vector<256x576xf32>
    %47 = arith.mulf %39, %46 : vector<256x576xf32>
    %48 = arith.addf %47, %5 : vector<256x576xf32>
    %cst_19 = arith.constant 5.000000e-01 : f32
    %49 = vector.broadcast %cst_19 : f32 to vector<256x576xf32>
    %50 = arith.cmpf ogt, %48, %49 : vector<256x576xf32>
    %cst_20 = arith.constant 0.000000e+00 : f32
    %51 = vector.broadcast %cst_20 : f32 to vector<256x576xf32>
    %52 = arith.select %50, %51, %48 : vector<256x576xi1>, vector<256x576xf32>
    %53 = arith.extui %50 : vector<256x576xi1> to vector<256x576xi32>
    %54 = arith.sitofp %53 : vector<256x576xi32> to vector<256x576xf32>
    %55 = arith.truncf %54 : vector<256x576xf32> to vector<256x576xbf16>
    %56 = arith.extf %55 : vector<256x576xbf16> to vector<256x576xf32>
    %cst_21 = arith.constant dense<0.000000e+00> : vector<576xf32>
    %57 = vector.multi_reduction <add>, %56, %cst_21 [0] : vector<256x576xf32> to vector<576xf32>
    %58 = vector.shape_cast %57 : vector<576xf32> to vector<1x576xf32>
    %cst_22 = arith.constant 2.000000e-01 : f32
    %59 = vector.broadcast %cst_22 : f32 to vector<256x576xf32>
    %60 = arith.mulf %52, %59 : vector<256x576xf32>
    %61 = arith.addf %60, %5 : vector<256x576xf32>
    %cst_23 = arith.constant 5.000000e-01 : f32
    %62 = vector.broadcast %cst_23 : f32 to vector<256x576xf32>
    %63 = arith.cmpf ogt, %61, %62 : vector<256x576xf32>
    %64 = arith.extui %63 : vector<256x576xi1> to vector<256x576xi32>
    %65 = arith.sitofp %64 : vector<256x576xi32> to vector<256x576xf32>
    %66 = arith.truncf %65 : vector<256x576xf32> to vector<256x576xbf16>
    %67 = arith.extf %66 : vector<256x576xbf16> to vector<256x576xf32>
    %cst_24 = arith.constant dense<0.000000e+00> : vector<576xf32>
    %68 = vector.multi_reduction <add>, %67, %cst_24 [0] : vector<256x576xf32> to vector<576xf32>
    %69 = vector.shape_cast %68 : vector<576xf32> to vector<1x576xf32>
    %70 = tpu.concatenate %19, %32, %45, %58, %69 in 0 : vector<1x576xf32>, vector<1x576xf32>, vector<1x576xf32>, vector<1x576xf32>, vector<1x576xf32> -> vector<5x576xf32>
    %cst_25 = arith.constant 3.906250e-03 : f32
    %71 = vector.broadcast %cst_25 : f32 to vector<5x576xf32>
    %72 = arith.mulf %70, %71 : vector<5x576xf32>
    %73 = arith.truncf %72 : vector<5x576xf32> to vector<5x576xbf16>
    %c0_26 = arith.constant 0 : index
    %c0_27 = arith.constant 0 : index
    %74 = vector.load %arg4[%c0_26, %c0_27] : memref<576x128xbf16, #tpu.memory_space<vmem>>, vector<576x128xbf16>
    %cst_28 = arith.constant dense<0.000000e+00> : vector<5x128xf32>
    %75 = tpu.matmul %73, %74, %cst_28 {dimension_numbers = #tpu.dot_dimension_numbers<[1], [0], [0], [1], [0, 0, 1, 1], [], []>} : vector<5x576xbf16>, vector<576x128xbf16>, vector<5x128xf32> -> vector<5x128xf32>
    %c0_29 = arith.constant 0 : index
    %c0_30 = arith.constant 0 : index
    %76 = vector.load %arg5[%c0_29, %c0_30] : memref<1x128xf32, #tpu.memory_space<vmem>>, vector<1x128xf32>
    %77 = vector.broadcast %76 : vector<1x128xf32> to vector<5x128xf32>
    %78 = arith.addf %75, %77 : vector<5x128xf32>
    %cst_31 = arith.constant 0.000000e+00 : f32
    %79 = vector.broadcast %cst_31 : f32 to vector<1x128xf32>
    %cst_32 = arith.constant 2.000000e-01 : f32
    %80 = vector.broadcast %cst_32 : f32 to vector<1x128xf32>
    %81 = arith.mulf %79, %80 : vector<1x128xf32>
    %82 = vector.extract_strided_slice %78 {offsets = [0, 0], sizes = [1, 128], strides = [1, 1]} : vector<5x128xf32> to vector<1x128xf32>
    %83 = arith.addf %81, %82 : vector<1x128xf32>
    %cst_33 = arith.constant 2.000000e-01 : f32
    %84 = vector.broadcast %cst_33 : f32 to vector<1x128xf32>
    %85 = arith.mulf %83, %84 : vector<1x128xf32>
    %86 = vector.extract_strided_slice %78 {offsets = [1, 0], sizes = [1, 128], strides = [1, 1]} : vector<5x128xf32> to vector<1x128xf32>
    %87 = arith.addf %85, %86 : vector<1x128xf32>
    %cst_34 = arith.constant 2.000000e-01 : f32
    %88 = vector.broadcast %cst_34 : f32 to vector<1x128xf32>
    %89 = arith.mulf %87, %88 : vector<1x128xf32>
    %90 = vector.extract_strided_slice %78 {offsets = [2, 0], sizes = [1, 128], strides = [1, 1]} : vector<5x128xf32> to vector<1x128xf32>
    %91 = arith.addf %89, %90 : vector<1x128xf32>
    %cst_35 = arith.constant 2.000000e-01 : f32
    %92 = vector.broadcast %cst_35 : f32 to vector<1x128xf32>
    %93 = arith.mulf %91, %92 : vector<1x128xf32>
    %94 = vector.extract_strided_slice %78 {offsets = [3, 0], sizes = [1, 128], strides = [1, 1]} : vector<5x128xf32> to vector<1x128xf32>
    %95 = arith.addf %93, %94 : vector<1x128xf32>
    %cst_36 = arith.constant 2.000000e-01 : f32
    %96 = vector.broadcast %cst_36 : f32 to vector<1x128xf32>
    %97 = arith.mulf %95, %96 : vector<1x128xf32>
    %98 = vector.extract_strided_slice %78 {offsets = [4, 0], sizes = [1, 128], strides = [1, 1]} : vector<5x128xf32> to vector<1x128xf32>
    %99 = arith.addf %97, %98 : vector<1x128xf32>
    %100 = tpu.concatenate %83, %87, %91, %95, %99 in 0 : vector<1x128xf32>, vector<1x128xf32>, vector<1x128xf32>, vector<1x128xf32>, vector<1x128xf32> -> vector<5x128xf32>
    %c0_37 = arith.constant 0 : index
    %c0_38 = arith.constant 0 : index
    %c0_39 = arith.constant 0 : index
    %101 = vector.load %arg6[%c0_37, %c0_38, %c0_39] : memref<1x5x128xf32, #tpu.memory_space<vmem>>, vector<1x5x128xf32>
    %102 = vector.shape_cast %101 : vector<1x5x128xf32> to vector<5x128xf32>
    %103 = vector.shape_cast %100 : vector<5x128xf32> to vector<1x5x128xf32>
    tpu.vector_store %arg6[%c0_37, %c0_38, %c0_39], %103 {strides = array<i32>} : memref<1x5x128xf32, #tpu.memory_space<vmem>>, vector<1x5x128xf32>,
    return
  }
  func.func @transform_0(%arg0: i32) -> (i32, i32) {
    %c0_i32 = arith.constant 0 : i32
    %c0_i32_0 = arith.constant 0 : i32
    return %arg0, %c0_i32 : i32, i32
  }
  func.func @transform_1(%arg0: i32) -> (i32, i32) {
    %c0_i32 = arith.constant 0 : i32
    %c0_i32_0 = arith.constant 0 : i32
    %c0_i32_1 = arith.constant 0 : i32
    return %c0_i32, %c0_i32_0 : i32, i32
  }
  func.func @transform_2(%arg0: i32) -> (i32, i32) {
    %c0_i32 = arith.constant 0 : i32
    %c0_i32_0 = arith.constant 0 : i32
    %c0_i32_1 = arith.constant 0 : i32
    return %c0_i32, %c0_i32_0 : i32, i32
  }
  func.func @transform_3(%arg0: i32) -> (i32, i32) {
    %c0_i32 = arith.constant 0 : i32
    %c0_i32_0 = arith.constant 0 : i32
    %c0_i32_1 = arith.constant 0 : i32
    return %c0_i32, %c0_i32_0 : i32, i32
  }
  func.func @transform_4(%arg0: i32) -> (i32, i32) {
    %c0_i32 = arith.constant 0 : i32
    %c0_i32_0 = arith.constant 0 : i32
    %c0_i32_1 = arith.constant 0 : i32
    return %c0_i32, %c0_i32_0 : i32, i32
  }
  func.func @transform_5(%arg0: i32) -> (i32, i32, i32) {
    %c0_i32 = arith.constant 0 : i32
    %c0_i32_0 = arith.constant 0 : i32
    %c0_i32_1 = arith.constant 0 : i32
    return %arg0, %c0_i32, %c0_i32_0 : i32, i32, i32
  }
}

</mosaic_0001>

<bundles_post_ra>
// kernel: lea_stereo_forward.1
= control target key start
LH: loop header
LB: loop body
LE: loop exit
PB: predicated region body
PF: predicated region fallthrough
CT: control target
= control target key end

     0   :  { %s9422_s18 = smov 0   ;;  %s15320_s0 = inlined_call_operand.vmem [shape: bf16[512,32], index: 0, kind: input, shape index: {}]   ;;  %s15321_s1 = inlined_call_operand.vmem [shape: bf16[32,576], index: 1, kind: input, shape index: {}]   ;;  %s15322_s2 = inlined_call_operand.vmem [shape: f32[1,576], index: 2, kind: input, shape index: {}]   ;;  %s15323_s3 = inlined_call_operand.vmem [shape: bf16[576,128], index: 3, kind: input, shape index: {}]   ;;  %s15324_s4 = inlined_call_operand.vmem [shape: f32[1,128], index: 4, kind: input, shape index: {}]   ;;  %s15325_s5 = inlined_call_operand.vmem [shape: f32[2,5,128], index: 5, kind: output, shape index: {}]  }
   0x1 LB: > { %s9428_s19 = sadd.s32 4294967295, %s9389_s18   ;;  %p8160_p0 = scmp.ge.s32.totalorder %s9389_s18, 1  ;;  %s9389_s18 = sphi %s9422_s18, %s15_s18  }
   0x2   : > { %p188_p1 = scmp.lt.s32.totalorder %s9389_s18, 3 }
   0x4   : > { %p189_p2 = pnand %p8160_p0, %p188_p1 }
   0x6   : > { %192 = sbr.rel (%p189_p2) target bundleno = 1518 (0x5ee), region = 40 }
   0xb   : > { %v8250_v0 = vld [vmem:[%s15321_s1 + $0x28] sm:$0xf]  ;;  %v9318_v1 = vld [vmem:[%s15321_s1 + $0x38] sm:$0xf0]  ;;  %v8230_v2 = vld [vmem:[%s15321_s1] sm:$0xf] }
   0xc   : > { %v8251_v3 = vor.u32 %v9318_v1, %v8250_v0  ;;  %v9313_v4 = vld [vmem:[%s15321_s1 + $0x10] sm:$0xf0]  ;;  %s8161_s28 = sshll.u32 %s9428_s19, 5  ;;  %v8266_v5 = vld [vmem:[%s15321_s1 + $0x38] sm:$0xf]  ;;  %vm414_vm0 = vcmask 261120  }
   0xd   : > { %p216_p3 = scmp.lt.s32.totalorder %s8161_s28, 63  ;;  %v9320_v6 = vld [vmem:[%s15321_s1 + $0x48] sm:$0xf0]  ;;  %v8231_v8 = vor.u32 %v9313_v4, %v8230_v2  ;;  %v8252_v9 = vld [vmem:[%s15321_s1 + $0x3c] sm:$0xf0]  ;;  %p221_p4 = scmp.lt.s32.totalorder %s9428_s19, 1 }
   0xe   : > { %v9316_v7 = vld [vmem:[%s15321_s1 + $0x2c] sm:$0xf]  ;;  %469 = vmatpush.bf16.msra.mxu0 %v8251_v3  ;;  %9357 = vmatpush.bf16.msra.mxu1 %v8251_v3  ;;  %v9317_v10 = vld [vmem:[%s15321_s1 + $0x34] sm:$0xf]  ;;  %v8260_v11 = vld [vmem:[%s15321_s1 + $0x44] sm:$0xf0]  ;;  %v8267_v12 = vor.u32 %v9320_v6, %v8266_v5 }
   0xf   : > { %9358 = vmatpush.bf16.msra.mxu2 %v8251_v3  ;;  %9359 = vmatpush.bf16.msra.mxu3 %v8251_v3  ;;  %s15491_s28 = smov (!%p216_p3, %s8161_s28), 63  ;;  %v8255_v13 = vor.u32 %v9316_v7, %v8252_v9  ;;  %v8258_v14 = vld [vmem:[%s15321_s1 + $0x30] sm:$0xf]  ;;  %v9319_v15 = vld [vmem:[%s15321_s1 + $0x40] sm:$0xf0]  ;;  %v8263_v21 = vor.u32 %v9317_v10, %v8260_v11  ;;  %v9391_v10 = vmov 0.0  }
  0x10   : > { %s8162_s22 = sshll.u32 %s15491_s28, 2  ;;  %v9311_v16 = vld [vmem:[%s15321_s1 + $0x4] sm:$0xf]  ;;  %v8232_v17 = vld [vmem:[%s15321_s1 + $0x14] sm:$0xf0]  ;;  %v8259_v22 = vor.u32 %v9319_v15, %v8258_v14  ;;  %s15493_s19 = smov (!%p221_p4, %s9428_s19), 1 }
  0x11   : > { %s9478_s30 = scalar_lea.vmem %s15320_s0, %s8162_s22  ;;  %v8235_v24 = vor.u32 %v9311_v16, %v8232_v17  ;;  %v8246_v28 = vld [vmem:[%s15321_s1 + $0x10] sm:$0xf]  ;;  %v9315_v29 = vld [vmem:[%s15321_s1 + $0x20] sm:$0xf0]  ;;  %v8238_v30 = vld [vmem:[%s15321_s1 + $0x8] sm:$0xf] }
  0x12   : > { %470 = vmatpush.bf16.msra.mxu0 %v8231_v8  ;;  %9360 = vmatpush.bf16.msra.mxu1 %v8231_v8  ;;  %v9295_v18 = vld [vmem:[%s9478_s30] sm:$0xff]  ;;  %v9482_v19 = vld [vmem:[%s9478_s30 + $0x30] sm:$0xff]  ;;  %v9485_v20 = vld [vmem:[%s9478_s30 + $0x38] sm:$0xff]  ;;  %v8247_v31 = vor.u32 %v9315_v29, %v8246_v28  ;;  %s8163_s29 = sshll.u32 %s15493_s19, 3 }
  0x13   : > { %9361 = vmatpush.bf16.msra.mxu2 %v8231_v8  ;;  %9362 = vmatpush.bf16.msra.mxu3 %v8231_v8  ;;  %v9488_v23 = vld [vmem:[%s9478_s30 + $0x58] sm:$0xff]  ;;  %v9296_v25 = vld [vmem:[%s9478_s30 + $0x8] sm:$0xff]  ;;  %v9499_v26 = vld [vmem:[%s9478_s30 + $0x40] sm:$0xff]  ;;  %s224_s6 = scalar_lea.vmem %s15325_s5, %s8163_s29 }
  0x14   : > { %v9502_v27 = vld [vmem:[%s9478_s30 + $0x60] sm:$0xff]  ;;  %v9314_v32 = vld [vmem:[%s15321_s1 + $0x18] sm:$0xf0]  ;;  %v9312_v33 = vld [vmem:[%s15321_s1 + $0xc] sm:$0xf] }
  0x15   : > { %8268 = vmatmul.msk.bf16.vlgmr.msra.gmra.mxu0 %vm414_vm0, %v9295_v18  ;;  %8274 = vmatmul.msk.bf16.vlgmr.msra.gmra.mxu1 %vm414_vm0, %v9482_v19  ;;  %v8240_v34 = vld [vmem:[%s15321_s1 + $0x1c] sm:$0xf0]  ;;  %v8239_v35 = vor.u32 %v9314_v32, %v8238_v30  ;;  %v9297_v37 = vld [vmem:[%s9478_s30 + $0x10] sm:$0xff]  ;;  %v9530_v38 = vld [vmem:[%s9478_s30 + $0x48] sm:$0xff] }
  0x16   : > { %825 = vmatpush.bf16.msrb.mxu0 %v8267_v12  ;;  %558 = vmatpush.bf16.msrb.mxu1 %v8255_v13  ;;  %v8243_v36 = vor.u32 %v9312_v33, %v8240_v34  ;;  %v9533_v39 = vld [vmem:[%s9478_s30 + $0x68] sm:$0xff]  ;;  %v9542_v40 = vld [vmem:[%s9478_s30 + $0x18] sm:$0xff]  ;;  %v9545_v41 = vld [vmem:[%s9478_s30 + $0x50] sm:$0xff] }
  0x17   : > { %8275 = vmatmul.msk.bf16.vlgmr.msra.gmra.mxu2 %vm414_vm0, %v9485_v20  ;;  %8279 = vmatmul.msk.bf16.vlgmr.msra.gmra.mxu3 %vm414_vm0, %v9488_v23  ;;  %v9309_v42 = vld [vmem:[%s9478_s30 + $0x70] sm:$0xff]  ;;  %v9555_v43 = vld [vmem:[%s9478_s30 + $0x20] sm:$0xff]  ;;  %v9310_v44 = vld [vmem:[%s9478_s30 + $0x78] sm:$0xff] }
  0x18   : > { %736 = vmatpush.bf16.msrb.mxu3 %v8263_v21  ;;  %647 = vmatpush.bf16.msrb.mxu2 %v8259_v22  ;;  %v9565_v45 = vld [vmem:[%s9478_s30 + $0x28] sm:$0xff]  ;;  %v9587_v46 = vld [vmem:[%s15322_s2] sm:$0x1f] }
  0x19   : > { %v9590_v47 = vperm.slane %v9587_v46, 0 }
  0x1a   : > { %559 = vmatpush.bf16.msrb.mxu1 %v8235_v24  ;;  %826 = vmatpush.bf16.msrb.mxu0 %v8247_v31 }
  0x1c   : > { %648 = vmatpush.bf16.msrb.mxu2 %v8239_v35  ;;  %737 = vmatpush.bf16.msrb.mxu3 %v8243_v36 }
  0x25   : > { %8269 = vmatmul.msk.bf16.gmra.mxu0 %vm414_vm0, %v9296_v25  ;;  %8284 = vmatmul.msk.bf16.vlgmr.msrb.gmra.mxu1 %vm414_vm0, %v9295_v18 }
  0x27   : > { %8276 = vmatmul.msk.bf16.gmra.mxu2 %vm414_vm0, %v9499_v26  ;;  %8280 = vmatmul.msk.bf16.gmra.mxu3 %vm414_vm0, %v9502_v27 }
  0x35   : > { %8270 = vmatmul.msk.bf16.gmra.mxu0 %vm414_vm0, %v9297_v37  ;;  %8285 = vmatmul.msk.bf16.gmra.mxu1 %vm414_vm0, %v9296_v25 }
  0x37   : > { %8277 = vmatmul.msk.bf16.gmra.mxu2 %vm414_vm0, %v9530_v38  ;;  %8281 = vmatmul.msk.bf16.gmra.mxu3 %vm414_vm0, %v9533_v39 }
  0x45   : > { %8271 = vmatmul.msk.bf16.gmra.mxu0 %vm414_vm0, %v9542_v40  ;;  %8286 = vmatmul.msk.bf16.gmra.mxu1 %vm414_vm0, %v9297_v37 }
  0x47   : > { %8278 = vmatmul.msk.bf16.gmra.mxu2 %vm414_vm0, %v9545_v41  ;;  %8282 = vmatmul.msk.bf16.gmra.mxu3 %vm414_vm0, %v9309_v42 }
  0x55   : > { %8272 = vmatmul.msk.bf16.gmra.mxu0 %vm414_vm0, %v9555_v43  ;;  %8287 = vmatmul.msk.bf16.gmra.mxu1 %vm414_vm0, %v9542_v40 }
  0x57   : > { %8283 = vmatmul.msk.bf16.gmra.mxu3 %vm414_vm0, %v9310_v44  ;;  %8300 = vmatmul.msk.bf16.vlgmr.msrb.gmra.mxu2 %vm414_vm0, %v9295_v18 }
  0x65   : > { %8273 = vmatmul.msk.bf16.gmra.mxu0 %vm414_vm0, %v9565_v45  ;;  %8288 = vmatmul.msk.bf16.gmra.mxu1 %vm414_vm0, %v9555_v43 }
  0x67   : > { %8301 = vmatmul.msk.bf16.gmra.mxu2 %vm414_vm0, %v9296_v25  ;;  %8316 = vmatmul.msk.bf16.vlgmr.msrb.gmra.mxu3 %vm414_vm0, %v9295_v18 }
  0x75   : > { %8289 = vmatmul.msk.bf16.gmra.mxu1 %vm414_vm0, %v9565_v45  ;;  %8332 = vmatmul.msk.bf16.vlgmr.msrb.gmra.mxu0 %vm414_vm0, %v9295_v18 }
  0x77   : > { %8302 = vmatmul.msk.bf16.gmra.mxu2 %vm414_vm0, %v9297_v37  ;;  %8317 = vmatmul.msk.bf16.gmra.mxu3 %vm414_vm0, %v9296_v25 }
  0x85   : > { %8290 = vmatmul.msk.bf16.gmra.mxu1 %vm414_vm0, %v9482_v19  ;;  %8333 = vmatmul.msk.bf16.gmra.mxu0 %vm414_vm0, %v9296_v25 }
  0x87   : > { %8303 = vmatmul.msk.bf16.gmra.mxu2 %vm414_vm0, %v9542_v40  ;;  %8318 = vmatmul.msk.bf16.gmra.mxu3 %vm414_vm0, %v9297_v37 }
  0x92   : > { %v472_v48 = vpop.f32.mrf.mxu0  ;;  %v502_v49 = vpop.f32.mrf.mxu1 }
  0x93   : > { %v9593_v50 = vadd.f32 %v472_v48, %v9590_v47  ;;  %v9596_v51 = vadd.f32 %v502_v49, %v9590_v47 }
  0x95   : > { %vm1068_vm1 = vcmp.gt.f32.partialorder %v9593_v50, 0.5  ;;  %vm1128_vm2 = vcmp.gt.f32.partialorder %v9596_v51, 0.5  ;;  %8291 = vmatmul.msk.bf16.gmra.mxu1 %vm414_vm0, %v9485_v20  ;;  %8334 = vmatmul.msk.bf16.gmra.mxu0 %vm414_vm0, %v9297_v37 }
  0x96   : > { %v1228_v52 = vsel %vm1068_vm1, 0.0, %v9593_v50  ;;  %v1288_v53 = vsel %vm1128_vm2, 0.0, %v9596_v51  ;;  %v8348_v11 = vsel %vm1068_vm1, 1.0, %v9391_v10  ;;  %v9646_v13 = vsel %vm1128_vm2, 1.0, %v9391_v10 }
  0x97   : > { %8304 = vmatmul.msk.bf16.gmra.mxu2 %vm414_vm0, %v9555_v43  ;;  %8319 = vmatmul.msk.bf16.gmra.mxu3 %vm414_vm0, %v9542_v40  ;;  %v2166_v54 = vmul.f32 0.2, %v1228_v52  ;;  %v2226_v55 = vmul.f32 0.2, %v1288_v53 }
  0x99   : > { %v2326_v56 = vadd.f32 %v2166_v54, %v9593_v50  ;;  %v2386_v57 = vadd.f32 %v2226_v55, %v9596_v51 }
  0x9a   : > { %v507_v58 = vpop.f32.mrf.mxu2  ;;  %v527_v59 = vpop.f32.mrf.mxu3 }
  0x9b   : > { %v9616_v60 = vadd.f32 %v507_v58, %v9590_v47  ;;  %v9619_v61 = vadd.f32 %v527_v59, %v9590_v47  ;;  %vm2486_vm3 = vcmp.gt.f32.partialorder %v2326_v56, 0.5  ;;  %vm2546_vm4 = vcmp.gt.f32.partialorder %v2386_v57, 0.5  ;;  %v474_v62 = vpop.f32.mrf.mxu0  ;;  %v504_v44 = vpop.f32.mrf.mxu1 }
  0x9c   : > { %v2646_v63 = vsel %vm2486_vm3, 0.0, %v2326_v56  ;;  %v2706_v0 = vsel %vm2546_vm4, 0.0, %v2386_v57  ;;  %v9632_v5 = vadd.f32 %v474_v62, %v9590_v47  ;;  %v9641_v12 = vsel %vm2486_vm3, 1.0, %v9391_v10 }
  0x9d   : > { %v3583_v1 = vmul.f32 0.2, %v2646_v63  ;;  %v3643_v2 = vmul.f32 0.2, %v2706_v0  ;;  %vm1138_vm5 = vcmp.gt.f32.partialorder %v9616_v60, 0.5  ;;  %vm1178_vm6 = vcmp.gt.f32.partialorder %v9619_v61, 0.5 }
  0x9e   : > { %v1298_v3 = vsel %vm1138_vm5, 0.0, %v9616_v60  ;;  %v1338_v4 = vsel %vm1178_vm6, 0.0, %v9619_v61  ;;  %v9653_v17 = vsel %vm2546_vm4, 1.0, %v9391_v10  ;;  %vm1073_vm9 = vcmp.gt.f32.partialorder %v9632_v5, 0.5 }
  0x9f   : > { %v3743_v6 = vadd.f32 %v3583_v1, %v9593_v50  ;;  %v3803_v7 = vadd.f32 %v3643_v2, %v9596_v51  ;;  %v2236_v8 = vmul.f32 0.2, %v1298_v3  ;;  %v2276_v9 = vmul.f32 0.2, %v1338_v4 }
  0xa0   : > { %v9660_v24 = vsel %vm1138_vm5, 1.0, %v9391_v10  ;;  %v9665_v28 = vsel %vm1178_vm6, 1.0, %v9391_v10  ;;  %v1233_v37 = vsel %vm1073_vm9, 0.0, %v9632_v5  ;;  %v8353_v53 = vsel %vm1073_vm9, 1.0, %v9391_v10 }
  0xa1   : > { %vm3903_vm7 = vcmp.gt.f32.partialorder %v3743_v6, 0.5  ;;  %vm3963_vm8 = vcmp.gt.f32.partialorder %v3803_v7, 0.5  ;;  %v2396_v14 = vadd.f32 %v2236_v8, %v9616_v60  ;;  %v2436_v15 = vadd.f32 %v2276_v9, %v9619_v61  ;;  %15328 = vst [vmem:[#allocation2_spill] sm:$0xff] %v9665_v28 }
  0xa2   : > { %v4063_v16 = vsel %vm3903_vm7, 0.0, %v3743_v6  ;;  %v4123_v18 = vsel %vm3963_vm8, 0.0, %v3803_v7  ;;  %v9676_v34 = vsel %vm3903_vm7, 1.0, %v9391_v10  ;;  %v9680_v35 = vsel %vm3963_vm8, 1.0, %v9391_v10  ;;  %v509_v48 = vpop.f32.mrf.mxu2 }
  0xa3   : > { %v5000_v21 = vmul.f32 0.2, %v4063_v16  ;;  %v5060_v22 = vmul.f32 0.2, %v4123_v18  ;;  %vm2556_vm10 = vcmp.gt.f32.partialorder %v2396_v14, 0.5  ;;  %vm2596_vm11 = vcmp.gt.f32.partialorder %v2436_v15, 0.5 }
  0xa4   : > { %v2716_v25 = vsel %vm2556_vm10, 0.0, %v2396_v14  ;;  %v2756_v29 = vsel %vm2596_vm11, 0.0, %v2436_v15  ;;  %v9683_v36 = vsel %vm2556_vm10, 1.0, %v9391_v10  ;;  %v9700_v54 = vadd.f32 %v504_v44, %v9590_v47 }
  0xa5   : > { %v5160_v30 = vadd.f32 %v5000_v21, %v9593_v50  ;;  %v5220_v31 = vadd.f32 %v5060_v22, %v9596_v51  ;;  %v3653_v32 = vmul.f32 0.2, %v2716_v25  ;;  %v3693_v33 = vmul.f32 0.2, %v2756_v29  ;;  %8292 = vmatmul.msk.bf16.gmra.mxu1 %vm414_vm0, %v9499_v26  ;;  %8335 = vmatmul.msk.bf16.gmra.mxu0 %vm414_vm0, %v9542_v40 }
  0xa6   : > { %v9705_v58 = vsel %vm2596_vm11, 1.0, %v9391_v10  ;;  %v9709_v62 = vadd.f32 %v509_v48, %v9590_v47  ;;  %v9717_v4 = vadd.f32 %v8353_v53, %v8348_v11  ;;  %v2171_v6 = vmul.f32 0.2, %v1233_v37 }
  0xa7   : > { %8305 = vmatmul.msk.bf16.gmra.mxu2 %vm414_vm0, %v9565_v45  ;;  %8320 = vmatmul.msk.bf16.gmra.mxu3 %vm414_vm0, %v9555_v43  ;;  %vm5320_vm12 = vcmp.gt.f32.partialorder %v5160_v30, 0.5  ;;  %vm5380_vm13 = vcmp.gt.f32.partialorder %v5220_v31, 0.5  ;;  %v3813_v40 = vadd.f32 %v3653_v32, %v9616_v60  ;;  %v3853_v42 = vadd.f32 %v3693_v33, %v9619_v61  ;;  %15329 = vst [vmem:[#allocation3_spill] sm:$0xff] %v9705_v58 }
  0xa8   : > { %v5480_v49 = vsel %vm5320_vm12, 0.0, %v5160_v30  ;;  %v5540_v52 = vsel %vm5380_vm13, 0.0, %v5220_v31  ;;  %v9715_v3 = vsel %vm5320_vm12, 1.0, %v9391_v10  ;;  %vm1133_vm1 = vcmp.gt.f32.partialorder %v9700_v54, 0.5  ;;  %v529_v30 = vpop.f32.mrf.mxu3 }
  0xa9   : > { %v6417_v55 = vmul.f32 0.2, %v5480_v49  ;;  %v6477_v56 = vmul.f32 0.2, %v5540_v52  ;;  %vm3973_vm14 = vcmp.gt.f32.partialorder %v3813_v40, 0.5  ;;  %vm4013_vm15 = vcmp.gt.f32.partialorder %v3853_v42, 0.5 }
  0xaa   : > { %v4133_v57 = vsel %vm3973_vm14, 0.0, %v3813_v40  ;;  %v4173_v59 = vsel %vm4013_vm15, 0.0, %v3853_v42  ;;  %v9722_v7 = vsel %vm5380_vm13, 1.0, %v9391_v10  ;;  %v9728_v8 = vsel %vm3973_vm14, 1.0, %v9391_v10  ;;  %v477_v40 = vpop.f32.mrf.mxu0 }
  0xab   : > { %v6577_v63 = vadd.f32 %v6417_v55, %v9593_v50  ;;  %v6637_v0 = vadd.f32 %v6477_v56, %v9596_v51  ;;  %v5070_v1 = vmul.f32 0.2, %v4133_v57  ;;  %v5110_v2 = vmul.f32 0.2, %v4173_v59  ;;  %15330 = vst [vmem:[#allocation4_spill] sm:$0xff] %v9722_v7 }
  0xac   : > { %v2331_v9 = vadd.f32 %v2171_v6, %v9632_v5  ;;  %v1293_v11 = vsel %vm1133_vm1, 0.0, %v9700_v54  ;;  %vm1143_vm3 = vcmp.gt.f32.partialorder %v9709_v62, 0.5  ;;  %v9741_v18 = vsel %vm4013_vm15, 1.0, %v9391_v10 }
  0xad   : > { %vm6737_vm2 = vcmp.gt.f32.partialorder %v6577_v63, 0.5  ;;  %v5230_v50 = vadd.f32 %v5070_v1, %v9616_v60  ;;  %v5270_v51 = vadd.f32 %v5110_v2, %v9619_v61  ;;  %vm6797_vm4 = vcmp.gt.f32.partialorder %v6637_v0, 0.5  ;;  %15331 = vst [vmem:[#allocation5_spill] sm:$0xff] %v9741_v18 }
  0xae   : > { %v2231_v14 = vmul.f32 0.2, %v1293_v11  ;;  %v9736_v15 = vsel %vm6737_vm2, 1.0, %v9391_v10  ;;  %vm2491_vm7 = vcmp.gt.f32.partialorder %v2331_v9, 0.5  ;;  %v9748_v31 = vsel %vm6797_vm4, 1.0, %v9391_v10 }
  0xaf   : > { %vm5390_vm5 = vcmp.gt.f32.partialorder %v5230_v50, 0.5  ;;  %vm5430_vm6 = vcmp.gt.f32.partialorder %v5270_v51, 0.5  ;;  %15332 = vst [vmem:[#allocation6_spill] sm:$0xff] %v9748_v31  ;;  %v2651_v32 = vsel %vm2491_vm7, 0.0, %v2331_v9  ;;  %v8513_v33 = vsel %vm2491_vm7, 1.0, %v9391_v10 }
  0xb0   : > { %v5550_v16 = vsel %vm5390_vm5, 0.0, %v5230_v50  ;;  %v5590_v21 = vsel %vm5430_vm6, 0.0, %v5270_v51  ;;  %v9745_v29 = vadd.f32 %v2231_v14, %v9700_v54  ;;  %v1303_v37 = vsel %vm1143_vm3, 0.0, %v9709_v62 }
  0xb1   : > { %v6487_v22 = vmul.f32 0.2, %v5550_v16  ;;  %v6527_v25 = vmul.f32 0.2, %v5590_v21  ;;  %v9757_v48 = vadd.f32 %v8513_v33, %v9641_v12  ;;  %v3588_v49 = vmul.f32 0.2, %v2651_v32 }
  0xb2   : > { %v9762_v52 = vsel %vm1133_vm1, 1.0, %v9391_v10  ;;  %vm2551_vm8 = vcmp.gt.f32.partialorder %v9745_v29, 0.5  ;;  %v2241_v53 = vmul.f32 0.2, %v1303_v37  ;;  %v9766_v55 = vadd.f32 %v529_v30, %v9590_v47 }
  0xb3   : > { %v6647_v42 = vadd.f32 %v6487_v22, %v9616_v60  ;;  %v6687_v44 = vadd.f32 %v6527_v25, %v9619_v61  ;;  %v9770_v60 = vsel %vm5390_vm5, 1.0, %v9391_v10  ;;  %v3748_v61 = vadd.f32 %v3588_v49, %v9632_v5 }
  0xb4   : > { %15333 = vst [vmem:[#allocation7_spill] sm:$0xff] %v9770_v60  ;;  %v2711_v12 = vsel %vm2551_vm8, 0.0, %v9745_v29  ;;  %v9777_v56 = vadd.f32 %v477_v40, %v9590_v47  ;;  %v9785_v57 = vsel %vm5430_vm6, 1.0, %v9391_v10  ;;  %v9790_v63 = vsel %vm1143_vm3, 1.0, %v9391_v10 }
  0xb5   : > { %8293 = vmatmul.msk.bf16.gmra.mxu1 %vm414_vm0, %v9530_v38  ;;  %8336 = vmatmul.msk.bf16.gmra.mxu0 %vm414_vm0, %v9555_v43  ;;  %vm6807_vm9 = vcmp.gt.f32.partialorder %v6647_v42, 0.5  ;;  %15334 = vst [vmem:[#allocation8_spill] sm:$0xff] %v9785_v57  ;;  %v3648_v59 = vmul.f32 0.2, %v2711_v12  ;;  %vm6847_vm10 = vcmp.gt.f32.partialorder %v6687_v44, 0.5  ;;  %vm3908_vm11 = vcmp.gt.f32.partialorder %v3748_v61, 0.5 }
  0xb6   : > { %v2401_v43 = vadd.f32 %v2241_v53, %v9709_v62  ;;  %vm1183_vm12 = vcmp.gt.f32.partialorder %v9766_v55, 0.5  ;;  %v4068_v0 = vsel %vm3908_vm11, 0.0, %v3748_v61  ;;  %v8673_v1 = vsel %vm3908_vm11, 1.0, %v9391_v10 }
  0xb7   : > { %8306 = vmatmul.msk.bf16.gmra.mxu2 %vm414_vm0, %v9482_v19  ;;  %8321 = vmatmul.msk.bf16.gmra.mxu3 %vm414_vm0, %v9565_v45  ;;  %v3808_v2 = vadd.f32 %v3648_v59, %v9700_v54  ;;  %v1343_v6 = vsel %vm1183_vm12, 0.0, %v9766_v55  ;;  %v9804_v50 = vadd.f32 %v8673_v1, %v9676_v34  ;;  %v5005_v51 = vmul.f32 0.2, %v4068_v0 }
  0xb8   : > { %vm2561_vm13 = vcmp.gt.f32.partialorder %v2401_v43, 0.5  ;;  %vm1078_vm14 = vcmp.gt.f32.partialorder %v9777_v56, 0.5  ;;  %v9809_v9 = vsel %vm6807_vm9, 1.0, %v9391_v10  ;;  %v2281_v14 = vmul.f32 0.2, %v1343_v6  ;;  %v512_v6 = vpop.f32.mrf.mxu2 }
  0xb9   : > { %15335 = vst [vmem:[#allocation9_spill] sm:$0xff] %v9809_v9  ;;  %vm3968_vm15 = vcmp.gt.f32.partialorder %v3808_v2, 0.5  ;;  %v2721_v11 = vsel %vm2561_vm13, 0.0, %v2401_v43  ;;  %v9814_v16 = vsel %vm6847_vm10, 1.0, %v9391_v10  ;;  %v5165_v21 = vadd.f32 %v5005_v51, %v9632_v5 }
  0xba   : > { %15336 = vst [vmem:[#allocation10_spill] sm:$0xff] %v9814_v16  ;;  %v4128_v34 = vsel %vm3968_vm15, 0.0, %v3808_v2  ;;  %v3658_v22 = vmul.f32 0.2, %v2721_v11  ;;  %v2441_v30 = vadd.f32 %v2281_v14, %v9766_v55  ;;  %v1238_v32 = vsel %vm1078_vm14, 0.0, %v9777_v56 }
  0xbb   : > { %v5065_v25 = vmul.f32 0.2, %v4128_v34  ;;  %v8358_v33 = vsel %vm1078_vm14, 1.0, %v9391_v10  ;;  %vm5325_vm1 = vcmp.gt.f32.partialorder %v5165_v21, 0.5  ;;  %v2176_v42 = vmul.f32 0.2, %v1238_v32 }
  0xbc   : > { %v3818_v37 = vadd.f32 %v3658_v22, %v9709_v62  ;;  %v9823_v40 = vadd.f32 %v8358_v33, %v9717_v4  ;;  %v5485_v44 = vsel %vm5325_vm1, 0.0, %v5165_v21  ;;  %v8833_v49 = vsel %vm5325_vm1, 1.0, %v9391_v10 }
  0xbd   : > { %v5225_v53 = vadd.f32 %v5065_v25, %v9700_v54  ;;  %vm2601_vm2 = vcmp.gt.f32.partialorder %v2441_v30, 0.5  ;;  %v9828_v61 = vadd.f32 %v8833_v49, %v9715_v3  ;;  %v6422_v12 = vmul.f32 0.2, %v5485_v44  ;;  %v532_v44 = vpop.f32.mrf.mxu3 }
  0xbe   : > { %vm3978_vm3 = vcmp.gt.f32.partialorder %v3818_v37, 0.5  ;;  %v2761_v59 = vsel %vm2601_vm2, 0.0, %v2441_v30  ;;  %v9834_v0 = vsel %vm2551_vm8, 1.0, %v9391_v10  ;;  %v9840_v1 = vsel %vm1183_vm12, 1.0, %v9391_v10 }
  0xbf   : > { %vm5385_vm4 = vcmp.gt.f32.partialorder %v5225_v53, 0.5  ;;  %v4138_v4 = vsel %vm3978_vm3, 0.0, %v3818_v37  ;;  %15337 = vst [vmem:[#allocation11_spill] sm:$0xff] %v9840_v1  ;;  %v6582_v3 = vadd.f32 %v6422_v12, %v9632_v5  ;;  %v9846_v11 = vsel %vm2561_vm13, 1.0, %v9391_v10  ;;  %v561_v37 = vpop.f32.mrf.mxu1  ;;  %v10479_v1 = vld [vmem:[%s9478_s30 + $0x50] sm:$0xff] }
  0xc0   : > { %v5545_v51 = vsel %vm5385_vm4, 0.0, %v5225_v53  ;;  %v5075_v29 = vmul.f32 0.2, %v4138_v4  ;;  %v9850_v14 = vsel %vm3968_vm15, 1.0, %v9391_v10  ;;  %v3698_v34 = vmul.f32 0.2, %v2761_v59 }
  0xc1   : > { %v6482_v21 = vmul.f32 0.2, %v5545_v51  ;;  %v2336_v22 = vadd.f32 %v2176_v42, %v9777_v56  ;;  %vm6742_vm5 = vcmp.gt.f32.partialorder %v6582_v3, 0.5  ;;  %v9855_v5 = vperm.slane %v9587_v46, 1 }
  0xc2   : > { %v5235_v25 = vadd.f32 %v5075_v29, %v9709_v62  ;;  %v9858_v32 = vadd.f32 %v512_v6, %v9590_v47  ;;  %v8993_v43 = vsel %vm6742_vm5, 1.0, %v9391_v10  ;;  %v3858_v2 = vadd.f32 %v3698_v34, %v9766_v55  ;;  %v479_v29 = vpop.f32.mrf.mxu0 }
  0xc3   : > { %v6642_v33 = vadd.f32 %v6482_v21, %v9700_v54  ;;  %vm2496_vm6 = vcmp.gt.f32.partialorder %v2336_v22, 0.5  ;;  %v9864_v49 = vadd.f32 %v8993_v43, %v9736_v15  ;;  %v9873_v46 = vsel %vm3978_vm3, 1.0, %v9391_v10 }
  0xc4   : > { %vm5395_vm7 = vcmp.gt.f32.partialorder %v5235_v25, 0.5  ;;  %v2656_v42 = vsel %vm2496_vm6, 0.0, %v2336_v22  ;;  %v8518_v12 = vsel %vm2496_vm6, 1.0, %v9391_v10  ;;  %15338 = vst [vmem:[#allocation12_spill] sm:$0xff] %v9873_v46  ;;  %v9878_v15 = vsel %vm2601_vm2, 1.0, %v9391_v10 }
  0xc5   : > { %8294 = vmatmul.msk.bf16.gmra.mxu1 %vm414_vm0, %v9545_v41  ;;  %8337 = vmatmul.msk.bf16.gmra.mxu0 %vm414_vm0, %v9565_v45  ;;  %v5555_v54 = vsel %vm5395_vm7, 0.0, %v5235_v25  ;;  %15339 = vst [vmem:[#allocation13_spill] sm:$0xff] %v9878_v15  ;;  %vm4018_vm8 = vcmp.gt.f32.partialorder %v3858_v2, 0.5  ;;  %vm6802_vm9 = vcmp.gt.f32.partialorder %v6642_v33, 0.5  ;;  %v9886_v4 = vadd.f32 %v532_v44, %v9590_v47 }
  0xc6   : > { %v6492_v59 = vmul.f32 0.2, %v5555_v54  ;;  %v4178_v45 = vsel %vm4018_vm8, 0.0, %v3858_v2  ;;  %v9889_v30 = vadd.f32 %v8518_v12, %v9757_v48  ;;  %v3593_v3 = vmul.f32 0.2, %v2656_v42 }
  0xc7   : > { %8307 = vmatmul.msk.bf16.gmra.mxu2 %vm414_vm0, %v9485_v20  ;;  %8322 = vmatmul.msk.bf16.gmra.mxu3 %vm414_vm0, %v9482_v19  ;;  %v5115_v6 = vmul.f32 0.2, %v4178_v45  ;;  %v9892_v51 = vadd.f32 %v561_v37, %v9855_v5  ;;  %v9896_v21 = vsel %vm5385_vm4, 1.0, %v9391_v10  ;;  %v9900_v34 = vsel %vm5395_vm7, 1.0, %v9391_v10 }
  0xc8   : > { %15340 = vst [vmem:[#allocation14_spill] sm:$0xff] %v9896_v21  ;;  %v6652_v22 = vadd.f32 %v6492_v59, %v9709_v62  ;;  %vm1148_vm10 = vcmp.gt.f32.partialorder %v9858_v32, 0.5  ;;  %v9905_v48 = vsel %vm6802_vm9, 1.0, %v9391_v10  ;;  %v3753_v33 = vadd.f32 %v3593_v3, %v9777_v56 }
  0xc9   : > { %15341 = vst [vmem:[#allocation15_spill] sm:$0xff] %v9900_v34  ;;  %v5275_v43 = vadd.f32 %v5115_v6, %v9766_v55  ;;  %vm1069_vm11 = vcmp.gt.f32.partialorder %v9892_v51, 0.5  ;;  %v9912_v53 = vsel %vm4018_vm8, 1.0, %v9391_v10  ;;  %vm1188_vm12 = vcmp.gt.f32.partialorder %v9886_v4, 0.5 }
  0xca   : > { %15342 = vst [vmem:[#allocation16_spill] sm:$0xff] %v9905_v48  ;;  %v1229_v25 = vsel %vm1069_vm11, 0.0, %v9892_v51  ;;  %v9917_v62 = vadd.f32 %v479_v29, %v9590_v47  ;;  %vm3913_vm14 = vcmp.gt.f32.partialorder %v3753_v33, 0.5  ;;  %v1308_v42 = vsel %vm1148_vm10, 0.0, %v9858_v32 }
  0xcb   : > { %15343 = vst [vmem:[#allocation17_spill] sm:$0xff] %v9912_v53  ;;  %vm5435_vm13 = vcmp.gt.f32.partialorder %v5275_v43, 0.5  ;;  %v2167_v44 = vmul.f32 0.2, %v1229_v25  ;;  %vm6812_vm15 = vcmp.gt.f32.partialorder %v6652_v22, 0.5  ;;  %v4073_v2 = vsel %vm3913_vm14, 0.0, %v3753_v33 }
  0xcc   : > { %v5595_v12 = vsel %vm5435_vm13, 0.0, %v5275_v43  ;;  %v8678_v54 = vsel %vm3913_vm14, 1.0, %v9391_v10  ;;  %v5010_v45 = vmul.f32 0.2, %v4073_v2  ;;  %v9928_v37 = vsel %vm1069_vm11, 1.0, %v9391_v10 }
  0xcd   : > { %v9925_v59 = vadd.f32 %v8678_v54, %v9804_v50  ;;  %v2327_v6 = vadd.f32 %v2167_v44, %v9892_v51  ;;  %v6532_v3 = vmul.f32 0.2, %v5595_v12  ;;  %v9934_v29 = vsel %vm1148_vm10, 1.0, %v9391_v10 }
  0xce   : > { %v2246_v22 = vmul.f32 0.2, %v1308_v42  ;;  %v1348_v33 = vsel %vm1188_vm12, 0.0, %v9886_v4  ;;  %v9940_v50 = vsel %vm6812_vm15, 1.0, %v9391_v10  ;;  %v5170_v25 = vadd.f32 %v5010_v45, %v9777_v56 }
  0xcf   : > { %15344 = vst [vmem:[#allocation18_spill] sm:$0xff] %v9940_v50  ;;  %vm2487_vm1 = vcmp.gt.f32.partialorder %v2327_v6, 0.5  ;;  %v2286_v2 = vmul.f32 0.2, %v1348_v33  ;;  %v9945_v44 = vsel %vm5435_vm13, 1.0, %v9391_v10  ;;  %v9952_v42 = vsel %vm1188_vm12, 1.0, %v9391_v10 }
  0xd0   : > { %15345 = vst [vmem:[#allocation19_spill] sm:$0xff] %v9945_v44  ;;  %v2647_v12 = vsel %vm2487_vm1, 0.0, %v2327_v6  ;;  %v2406_v54 = vadd.f32 %v2246_v22, %v9858_v32  ;;  %vm5330_vm2 = vcmp.gt.f32.partialorder %v5170_v25, 0.5  ;;  %vm1083_vm3 = vcmp.gt.f32.partialorder %v9917_v62, 0.5 }
  0xd1   : > { %15346 = vst [vmem:[#allocation20_spill] sm:$0xff] %v9952_v42  ;;  %v3584_v16 = vmul.f32 0.2, %v2647_v12  ;;  %v2446_v57 = vadd.f32 %v2286_v2, %v9886_v4  ;;  %v6692_v45 = vadd.f32 %v6532_v3, %v9766_v55  ;;  %v5490_v43 = vsel %vm5330_vm2, 0.0, %v5170_v25  ;;  %v563_v25 = vpop.f32.mrf.mxu1 }
  0xd2   : > { %v8838_v33 = vsel %vm5330_vm2, 1.0, %v9391_v10  ;;  %vm2566_vm4 = vcmp.gt.f32.partialorder %v2406_v54, 0.5  ;;  %v6427_v22 = vmul.f32 0.2, %v5490_v43  ;;  %v1243_v2 = vsel %vm1083_vm3, 0.0, %v9917_v62 }
  0xd3   : > { %v9959_v44 = vadd.f32 %v8838_v33, %v9828_v61  ;;  %v3744_v53 = vadd.f32 %v3584_v16, %v9892_v51  ;;  %v2726_v18 = vsel %vm2566_vm4, 0.0, %v2406_v54  ;;  %vm2606_vm5 = vcmp.gt.f32.partialorder %v2446_v57, 0.5 }
  0xd4   : > { %v3663_v15 = vmul.f32 0.2, %v2726_v18  ;;  %v8363_v12 = vsel %vm1083_vm3, 1.0, %v9391_v10  ;;  %v6587_v55 = vadd.f32 %v6427_v22, %v9777_v56  ;;  %v9972_v61 = vsel %vm2487_vm1, 1.0, %v9391_v10 }
  0xd5   : > { %8295 = vmatmul.msk.bf16.gmra.mxu1 %vm414_vm0, %v9488_v23  ;;  %8338 = vmatmul.msk.bf16.gmra.mxu0 %vm414_vm0, %v9482_v19  ;;  %vm3904_vm6 = vcmp.gt.f32.partialorder %v3744_v53, 0.5  ;;  %v2766_v18 = vsel %vm2606_vm5, 0.0, %v2446_v57  ;;  %vm6852_vm7 = vcmp.gt.f32.partialorder %v6692_v45, 0.5  ;;  %v9982_v6 = vadd.f32 %v8363_v12, %v9823_v40 }
  0xd6   : > { %v4064_v23 = vsel %vm3904_vm6, 0.0, %v3744_v53  ;;  %v3823_v19 = vadd.f32 %v3663_v15, %v9858_v32  ;;  %v3703_v16 = vmul.f32 0.2, %v2766_v18  ;;  %vm6747_vm8 = vcmp.gt.f32.partialorder %v6587_v55, 0.5 }
  0xd7   : > { %8308 = vmatmul.msk.bf16.gmra.mxu2 %vm414_vm0, %v9499_v26  ;;  %8323 = vmatmul.msk.bf16.gmra.mxu3 %vm414_vm0, %v9485_v20  ;;  %v5001_v56 = vmul.f32 0.2, %v4064_v23  ;;  %v2181_v3 = vmul.f32 0.2, %v1243_v2  ;;  %v8998_v43 = vsel %vm6747_vm8, 1.0, %v9391_v10  ;;  %v9987_v22 = vadd.f32 %v563_v25, %v9855_v5 }
  0xd8   : > { %vm3983_vm9 = vcmp.gt.f32.partialorder %v3823_v19, 0.5  ;;  %v3863_v33 = vadd.f32 %v3703_v16, %v9886_v4  ;;  %v9990_v45 = vsel %vm6852_vm7, 1.0, %v9391_v10  ;;  %v9993_v15 = vadd.f32 %v8998_v43, %v9864_v49 }
  0xd9   : > { %15347 = vst [vmem:[#allocation21_spill] sm:$0xff] %v9990_v45  ;;  %v5161_v55 = vadd.f32 %v5001_v56, %v9892_v51  ;;  %v4143_v40 = vsel %vm3983_vm9, 0.0, %v3823_v19  ;;  %v2341_v12 = vadd.f32 %v2181_v3, %v9917_v62  ;;  %vm1074_vm11 = vcmp.gt.f32.partialorder %v9987_v22, 0.5  ;;  %v482_v19 = vpop.f32.mrf.mxu0 }
  0xda   : > { %v5080_v2 = vmul.f32 0.2, %v4143_v40  ;;  %vm4023_vm10 = vcmp.gt.f32.partialorder %v3863_v33, 0.5  ;;  %v10001_v18 = vsel %vm2566_vm4, 1.0, %v9391_v10  ;;  %v1234_v49 = vsel %vm1074_vm11, 0.0, %v9987_v22 }
  0xdb   : > { %vm5321_vm12 = vcmp.gt.f32.partialorder %v5161_v55, 0.5  ;;  %v4183_v23 = vsel %vm4023_vm10, 0.0, %v3863_v33  ;;  %v10009_v25 = vsel %vm2606_vm5, 1.0, %v9391_v10  ;;  %vm2501_vm13 = vcmp.gt.f32.partialorder %v2341_v12, 0.5 }
  0xdc   : > { %v5481_v16 = vsel %vm5321_vm12, 0.0, %v5161_v55  ;;  %v5240_v56 = vadd.f32 %v5080_v2, %v9858_v32  ;;  %15348 = vst [vmem:[#allocation22_spill] sm:$0xff] %v10009_v25  ;;  %v5120_v3 = vmul.f32 0.2, %v4183_v23  ;;  %v8354_v40 = vsel %vm1074_vm11, 1.0, %v9391_v10 }
  0xdd   : > { %v6418_v43 = vmul.f32 0.2, %v5481_v16  ;;  %v2172_v54 = vmul.f32 0.2, %v1234_v49  ;;  %v2661_v42 = vsel %vm2501_vm13, 0.0, %v2341_v12  ;;  %v8523_v50 = vsel %vm2501_vm13, 1.0, %v9391_v10  ;;  %v514_v12 = vpop.f32.mrf.mxu2 }
  0xde   : > { %vm5400_vm14 = vcmp.gt.f32.partialorder %v5240_v56, 0.5  ;;  %v5280_v45 = vadd.f32 %v5120_v3, %v9886_v4  ;;  %v10016_v9 = vsel %vm3904_vm6, 1.0, %v9391_v10  ;;  %v10021_v23 = vadd.f32 %v8523_v50, %v9889_v30  ;;  %v534_v3 = vpop.f32.mrf.mxu3 }
  0xdf   : > { %v6578_v57 = vadd.f32 %v6418_v43, %v9892_v51  ;;  %v5560_v2 = vsel %vm5400_vm14, 0.0, %v5240_v56  ;;  %v3598_v49 = vmul.f32 0.2, %v2661_v42  ;;  %v10024_v25 = vadd.f32 %v8354_v40, %v9928_v37 }
  0xe0   : > { %v6497_v16 = vmul.f32 0.2, %v5560_v2  ;;  %vm5440_vm15 = vcmp.gt.f32.partialorder %v5280_v45, 0.5  ;;  %v10028_v53 = vsel %vm3983_vm9, 1.0, %v9391_v10  ;;  %v10032_v51 = vsel %vm4023_vm10, 1.0, %v9391_v10 }
  0xe1   : > { %15349 = vst [vmem:[#allocation23_spill] sm:$0xff] %v10028_v53  ;;  %v5600_v43 = vsel %vm5440_vm15, 0.0, %v5280_v45  ;;  %v2332_v30 = vadd.f32 %v2172_v54, %v9987_v22  ;;  %v10038_v50 = vsel %vm5321_vm12, 1.0, %v9391_v10  ;;  %v3758_v40 = vadd.f32 %v3598_v49, %v9917_v62 }
  0xe2   : > { %15350 = vst [vmem:[#allocation24_spill] sm:$0xff] %v10032_v51  ;;  %v6657_v37 = vadd.f32 %v6497_v16, %v9858_v32  ;;  %v6537_v42 = vmul.f32 0.2, %v5600_v43  ;;  %v10044_v2 = vsel %vm5400_vm14, 1.0, %v9391_v10  ;;  %v10047_v33 = vadd.f32 %v514_v12, %v9590_v47 }
  0xe3   : > { %15351 = vst [vmem:[#allocation25_spill] sm:$0xff] %v10044_v2  ;;  %vm2492_vm1 = vcmp.gt.f32.partialorder %v2332_v30, 0.5  ;;  %v10050_v54 = vadd.f32 %v534_v3, %v9590_v47  ;;  %vm6738_vm2 = vcmp.gt.f32.partialorder %v6578_v57, 0.5  ;;  %vm3918_vm3 = vcmp.gt.f32.partialorder %v3758_v40, 0.5 }
  0xe4   : > { %v6697_v55 = vadd.f32 %v6537_v42, %v9886_v4  ;;  %v2652_v32 = vsel %vm2492_vm1, 0.0, %v2332_v30  ;;  %v4078_v56 = vsel %vm3918_vm3, 0.0, %v3758_v40  ;;  %v8683_v16 = vsel %vm3918_vm3, 1.0, %v9391_v10 }
  0xe5   : > { %8296 = vmatmul.msk.bf16.gmra.mxu1 %vm414_vm0, %v9502_v27  ;;  %8339 = vmatmul.msk.bf16.gmra.mxu0 %vm414_vm0, %v9485_v20  ;;  %v8514_v49 = vsel %vm2492_vm1, 1.0, %v9391_v10  ;;  %v10060_v12 = vadd.f32 %v482_v19, %v9590_v47  ;;  %vm6817_vm4 = vcmp.gt.f32.partialorder %v6657_v37, 0.5  ;;  %v10067_v27 = vadd.f32 %v8683_v16, %v9925_v59 }
  0xe6   : > { %v5015_v4 = vmul.f32 0.2, %v4078_v56  ;;  %v10070_v20 = vadd.f32 %v8514_v49, %v9972_v61  ;;  %vm6857_vm5 = vcmp.gt.f32.partialorder %v6697_v55, 0.5  ;;  %v3589_v3 = vmul.f32 0.2, %v2652_v32  ;;  %v566_v56 = vpop.f32.mrf.mxu1 }
  0xe7   : > { %8309 = vmatmul.msk.bf16.gmra.mxu2 %vm414_vm0, %v9530_v38  ;;  %8324 = vmatmul.msk.bf16.gmra.mxu3 %vm414_vm0, %v9499_v26  ;;  %vm1153_vm6 = vcmp.gt.f32.partialorder %v10047_v33, 0.5  ;;  %vm1193_vm7 = vcmp.gt.f32.partialorder %v10050_v54, 0.5  ;;  %v10076_v43 = vsel %vm5440_vm15, 1.0, %v9391_v10  ;;  %v10087_v42 = vsel %vm6738_vm2, 1.0, %v9391_v10 }
  0xe8   : > { %15352 = vst [vmem:[#allocation26_spill] sm:$0xff] %v10076_v43  ;;  %v5175_v30 = vadd.f32 %v5015_v4, %v9917_v62  ;;  %v1313_v59 = vsel %vm1153_vm6, 0.0, %v10047_v33  ;;  %v1353_v61 = vsel %vm1193_vm7, 0.0, %v10050_v54  ;;  %v3749_v40 = vadd.f32 %v3589_v3, %v9987_v22  ;;  %v517_v4 = vpop.f32.mrf.mxu2 }
  0xe9   : > { %v2251_v19 = vmul.f32 0.2, %v1313_v59  ;;  %v2291_v45 = vmul.f32 0.2, %v1353_v61  ;;  %v10092_v55 = vsel %vm6817_vm4, 1.0, %v9391_v10  ;;  %v10095_v32 = vsel %vm6857_vm5, 1.0, %v9391_v10 }
  0xea   : > { %15353 = vst [vmem:[#allocation27_spill] sm:$0xff] %v10092_v55  ;;  %vm5335_vm8 = vcmp.gt.f32.partialorder %v5175_v30, 0.5  ;;  %vm1088_vm9 = vcmp.gt.f32.partialorder %v10060_v12, 0.5  ;;  %vm3909_vm10 = vcmp.gt.f32.partialorder %v3749_v40, 0.5 }
  0xeb   : > { %15354 = vst [vmem:[#allocation28_spill] sm:$0xff] %v10095_v32  ;;  %v5495_v16 = vsel %vm5335_vm8, 0.0, %v5175_v30  ;;  %v8843_v57 = vsel %vm5335_vm8, 1.0, %v9391_v10  ;;  %v10100_v49 = vadd.f32 %v2251_v19, %v10047_v33  ;;  %v4069_v59 = vsel %vm3909_vm10, 0.0, %v3749_v40  ;;  %v10106_v32 = vpop.f32.mrf.mxu3 }
  0xec   : > { %v10103_v3 = vadd.f32 %v8843_v57, %v9959_v44  ;;  %v6432_v37 = vmul.f32 0.2, %v5495_v16  ;;  %v8674_v61 = vsel %vm3909_vm10, 1.0, %v9391_v10  ;;  %v5006_v30 = vmul.f32 0.2, %v4069_v59 }
  0xed   : > { %v10109_v43 = vadd.f32 %v8674_v61, %v10016_v9  ;;  %vm2571_vm11 = vcmp.gt.f32.partialorder %v10100_v49, 0.5  ;;  %v10113_v51 = vadd.f32 %v2291_v45, %v10050_v54  ;;  %v10119_v44 = vsel %vm1153_vm6, 1.0, %v9391_v10 }
  0xee   : > { %v6592_v19 = vadd.f32 %v6432_v37, %v9917_v62  ;;  %v2731_v40 = vsel %vm2571_vm11, 0.0, %v10100_v49  ;;  %v1248_v9 = vsel %vm1088_vm9, 0.0, %v10060_v12  ;;  %v5166_v16 = vadd.f32 %v5006_v30, %v9987_v22 }
  0xef   : > { %v3668_v57 = vmul.f32 0.2, %v2731_v40  ;;  %vm2611_vm12 = vcmp.gt.f32.partialorder %v10113_v51, 0.5  ;;  %v8368_v62 = vsel %vm1088_vm9, 1.0, %v9391_v10  ;;  %v10139_v59 = vadd.f32 %v566_v56, %v9855_v5 }
  0xf0   : > { %vm6752_vm13 = vcmp.gt.f32.partialorder %v6592_v19, 0.5  ;;  %v2771_v45 = vsel %vm2611_vm12, 0.0, %v10113_v51  ;;  %v10136_v37 = vadd.f32 %v8368_v62, %v9982_v6  ;;  %vm5326_vm14 = vcmp.gt.f32.partialorder %v5166_v16, 0.5 }
  0xf1   : > { %v9003_v61 = vsel %vm6752_vm13, 1.0, %v9391_v10  ;;  %v10143_v30 = vadd.f32 %v3668_v57, %v10047_v33  ;;  %v3708_v40 = vmul.f32 0.2, %v2771_v45  ;;  %v5486_v19 = vsel %vm5326_vm14, 0.0, %v5166_v16 }
  0xf2   : > { %v10146_v55 = vadd.f32 %v9003_v61, %v9993_v15  ;;  %v8834_v48 = vsel %vm5326_vm14, 1.0, %v9391_v10  ;;  %v2186_v2 = vmul.f32 0.2, %v1248_v9  ;;  %v6423_v62 = vmul.f32 0.2, %v5486_v19 }
  0xf3   : > { %v10150_v6 = vadd.f32 %v8834_v48, %v10038_v50  ;;  %vm3988_vm15 = vcmp.gt.f32.partialorder %v10143_v30, 0.5  ;;  %v3868_v56 = vadd.f32 %v3708_v40, %v10050_v54  ;;  %v10160_v15 = vsel %vm1193_vm7, 1.0, %v9391_v10  ;;  %v10164_v48 = vpop.f32.mrf.mxu0  ;;  %v10166_v50 = vpop.f32.mrf.mxu1 }
  0xf4   : > { %v4148_v57 = vsel %vm3988_vm15, 0.0, %v10143_v30  ;;  %15355 = vst [vmem:[#allocation29_spill] sm:$0xff] %v10160_v15  ;;  %v2346_v16 = vadd.f32 %v2186_v2, %v10060_v12  ;;  %vm1079_vm1 = vcmp.gt.f32.partialorder %v10139_v59, 0.5  ;;  %v6583_v9 = vadd.f32 %v6423_v62, %v9987_v22  ;;  %v10176_v2 = vpop.f32.mrf.mxu2 }
  0xf5   : > { %8297 = vmatmul.msk.bf16.gmra.mxu1 %vm414_vm0, %v9533_v39  ;;  %8340 = vmatmul.msk.bf16.gmra.mxu0 %vm414_vm0, %v9499_v26  ;;  %v5085_v45 = vmul.f32 0.2, %v4148_v57  ;;  %vm4028_vm2 = vcmp.gt.f32.partialorder %v3868_v56, 0.5  ;;  %v10174_v61 = vadd.f32 %v517_v4, %v9590_v47  ;;  %v1239_v39 = vsel %vm1079_vm1, 0.0, %v10139_v59  ;;  %v10183_v26 = vpop.f32.mrf.mxu3 }
  0xf6   : > { %v4188_v40 = vsel %vm4028_vm2, 0.0, %v3868_v56  ;;  %vm2506_vm3 = vcmp.gt.f32.partialorder %v2346_v16, 0.5  ;;  %v8359_v19 = vsel %vm1079_vm1, 1.0, %v9391_v10  ;;  %vm6743_vm4 = vcmp.gt.f32.partialorder %v6583_v9, 0.5 }
  0xf7   : > { %8310 = vmatmul.msk.bf16.gmra.mxu2 %vm414_vm0, %v9545_v41  ;;  %8325 = vmatmul.msk.bf16.gmra.mxu3 %vm414_vm0, %v9530_v38  ;;  %v5245_v22 = vadd.f32 %v5085_v45, %v10047_v33  ;;  %v5125_v4 = vmul.f32 0.2, %v4188_v40  ;;  %v2666_v62 = vsel %vm2506_vm3, 0.0, %v2346_v16  ;;  %v8994_v57 = vsel %vm6743_vm4, 1.0, %v9391_v10 }
  0xf8   : > { %v8528_v41 = vsel %vm2506_vm3, 1.0, %v9391_v10  ;;  %v3603_v15 = vmul.f32 0.2, %v2666_v62  ;;  %v10191_v58 = vadd.f32 %v8359_v19, %v10024_v25  ;;  %v10194_v31 = vadd.f32 %v8994_v57, %v10087_v42 }
  0xf9   : > { %vm5405_vm5 = vcmp.gt.f32.partialorder %v5245_v22, 0.5  ;;  %v5285_v34 = vadd.f32 %v5125_v4, %v10050_v54  ;;  %v10198_v38 = vadd.f32 %v8528_v41, %v10021_v23  ;;  %v10203_v16 = vsel %vm2571_vm11, 1.0, %v9391_v10 }
  0xfa   : > { %v5565_v9 = vsel %vm5405_vm5, 0.0, %v5245_v22  ;;  %v3763_v45 = vadd.f32 %v3603_v15, %v10060_v12  ;;  %v2177_v25 = vmul.f32 0.2, %v1239_v39  ;;  %v10210_v42 = vsel %vm2611_vm12, 1.0, %v9391_v10 }
  0xfb   : > { %v6502_v40 = vmul.f32 0.2, %v5565_v9  ;;  %15356 = vst [vmem:[#allocation30_spill] sm:$0xff] %v10210_v42  ;;  %vm5445_vm6 = vcmp.gt.f32.partialorder %v5285_v34, 0.5  ;;  %vm1158_vm7 = vcmp.gt.f32.partialorder %v10174_v61, 0.5  ;;  %v10217_v19 = vadd.f32 %v10106_v32, %v9590_v47 }
  0xfc   : > { %v5605_v23 = vsel %vm5445_vm6, 0.0, %v5285_v34  ;;  %vm3923_vm8 = vcmp.gt.f32.partialorder %v3763_v45, 0.5  ;;  %v2337_v49 = vadd.f32 %v2177_v25, %v10139_v59  ;;  %v1318_v41 = vsel %vm1158_vm7, 0.0, %v10174_v61 }
  0xfd   : > { %v6662_v15 = vadd.f32 %v6502_v40, %v10047_v33  ;;  %v6542_v39 = vmul.f32 0.2, %v5605_v23  ;;  %v4083_v4 = vsel %vm3923_vm8, 0.0, %v3763_v45  ;;  %v8688_v51 = vsel %vm3923_vm8, 1.0, %v9391_v10 }
  0xfe   : > { %v10222_v62 = vadd.f32 %v8688_v51, %v10067_v27  ;;  %v5020_v57 = vmul.f32 0.2, %v4083_v4  ;;  %vm2497_vm9 = vcmp.gt.f32.partialorder %v2337_v49, 0.5  ;;  %v10230_v32 = vsel %vm3988_vm15, 1.0, %v9391_v10 }
  0xff   : > { %15357 = vst [vmem:[#allocation31_spill] sm:$0xff] %v10230_v32  ;;  %v10234_v33 = vsel %vm4028_vm2, 1.0, %v9391_v10  ;;  %v2657_v9 = vsel %vm2497_vm9, 0.0, %v2337_v49  ;;  %v8519_v45 = vsel %vm2497_vm9, 1.0, %v9391_v10  ;;  %vm6822_vm10 = vcmp.gt.f32.partialorder %v6662_v15, 0.5 }
 0x100   : > { %15358 = vst [vmem:[#allocation32_spill] sm:$0xff] %v10234_v33  ;;  %v5180_v27 = vadd.f32 %v5020_v57, %v10060_v12  ;;  %v10239_v25 = vadd.f32 %v8519_v45, %v10070_v20  ;;  %v3594_v40 = vmul.f32 0.2, %v2657_v9  ;;  %v10243_v23 = vsel %vm5405_vm5, 1.0, %v9391_v10 }
 0x101   : > { %15359 = vst [vmem:[#allocation33_spill] sm:$0xff] %v10243_v23  ;;  %v10247_v30 = vsel %vm5445_vm6, 1.0, %v9391_v10  ;;  %v2256_v56 = vmul.f32 0.2, %v1318_v41  ;;  %vm1198_vm11 = vcmp.gt.f32.partialorder %v10217_v19, 0.5  ;;  %v6702_v49 = vadd.f32 %v6542_v39, %v10050_v54 }
 0x102   : > { %15360 = vst [vmem:[#allocation34_spill] sm:$0xff] %v10247_v30  ;;  %vm5340_vm12 = vcmp.gt.f32.partialorder %v5180_v27, 0.5  ;;  %v3754_v15 = vadd.f32 %v3594_v40, %v10139_v59  ;;  %v1358_v20 = vsel %vm1198_vm11, 0.0, %v10217_v19  ;;  %v10256_v22 = vsel %vm6822_vm10, 1.0, %v9391_v10 }
 0x103   : > { %15361 = vst [vmem:[#allocation35_spill] sm:$0xff] %v10256_v22  ;;  %v5500_v4 = vsel %vm5340_vm12, 0.0, %v5180_v27  ;;  %v8848_v34 = vsel %vm5340_vm12, 1.0, %v9391_v10  ;;  %v2416_v51 = vadd.f32 %v2256_v56, %v10174_v61  ;;  %v2296_v54 = vmul.f32 0.2, %v1358_v20 }
 0x104   : > { %v10261_v57 = vadd.f32 %v8848_v34, %v10103_v3  ;;  %v6437_v41 = vmul.f32 0.2, %v5500_v4  ;;  %vm3914_vm13 = vcmp.gt.f32.partialorder %v3754_v15, 0.5  ;;  %v10266_v45 = vadd.f32 %v10164_v48, %v9590_v47 }
 0x105   : > { %v4074_v39 = vsel %vm3914_vm13, 0.0, %v3754_v15  ;;  %v8679_v9 = vsel %vm3914_vm13, 1.0, %v9391_v10  ;;  %vm2576_vm14 = vcmp.gt.f32.partialorder %v2416_v51, 0.5  ;;  %vm6862_vm15 = vcmp.gt.f32.partialorder %v6702_v49, 0.5 }
 0x106   : > { %v6597_v27 = vadd.f32 %v6437_v41, %v10060_v12  ;;  %v10270_v40 = vadd.f32 %v8679_v9, %v10109_v43  ;;  %v5011_v56 = vmul.f32 0.2, %v4074_v39  ;;  %v2736_v3 = vsel %vm2576_vm14, 0.0, %v2416_v51 }
 0x107   : > { %v3673_v4 = vmul.f32 0.2, %v2736_v3  ;;  %v2456_v20 = vadd.f32 %v2296_v54, %v10217_v19  ;;  %vm1093_vm1 = vcmp.gt.f32.partialorder %v10266_v45, 0.5  ;;  %v10279_v48 = vsel %vm1158_vm7, 1.0, %v9391_v10 }
 0x108   : > { %vm6757_vm2 = vcmp.gt.f32.partialorder %v6597_v27, 0.5  ;;  %v5171_v15 = vadd.f32 %v5011_v56, %v10139_v59  ;;  %v8373_v12 = vsel %vm1093_vm1, 1.0, %v9391_v10  ;;  %v1253_v9 = vsel %vm1093_vm1, 0.0, %v10266_v45 }
 0x109   : > { %v9008_v43 = vsel %vm6757_vm2, 1.0, %v9391_v10  ;;  %v3833_v34 = vadd.f32 %v3673_v4, %v10174_v61  ;;  %vm2616_vm3 = vcmp.gt.f32.partialorder %v2456_v20, 0.5  ;;  %v10285_v41 = vadd.f32 %v8373_v12, %v10136_v37 }
 0x10a   : > { %v10288_v54 = vadd.f32 %v9008_v43, %v10146_v55  ;;  %vm5331_vm4 = vcmp.gt.f32.partialorder %v5171_v15, 0.5  ;;  %v2776_v39 = vsel %vm2616_vm3, 0.0, %v2456_v20  ;;  %v10295_v4 = vsel %vm6862_vm15, 1.0, %v9391_v10 }
 0x10b   : > { %v5491_v27 = vsel %vm5331_vm4, 0.0, %v5171_v15  ;;  %v8839_v56 = vsel %vm5331_vm4, 1.0, %v9391_v10  ;;  %vm3993_vm5 = vcmp.gt.f32.partialorder %v3833_v34, 0.5  ;;  %v3713_v3 = vmul.f32 0.2, %v2776_v39  ;;  %15362 = vst [vmem:[#allocation36_spill] sm:$0xff] %v10295_v4 }
 0x10c   : > { %v10298_v37 = vadd.f32 %v8839_v56, %v10150_v6  ;;  %v6428_v12 = vmul.f32 0.2, %v5491_v27  ;;  %v4153_v55 = vsel %vm3993_vm5, 0.0, %v3833_v34  ;;  %v2191_v33 = vmul.f32 0.2, %v1253_v9 }
 0x10d   : > { %v5090_v43 = vmul.f32 0.2, %v4153_v55  ;;  %v3873_v30 = vadd.f32 %v3713_v3, %v10217_v19  ;;  %v10304_v15 = vadd.f32 %v10166_v50, %v9855_v5  ;;  %v10309_v49 = vsel %vm2576_vm14, 1.0, %v9391_v10 }
 0x10e   : > { %v6588_v39 = vadd.f32 %v6428_v12, %v10139_v59  ;;  %15363 = vst [vmem:[#allocation37_spill] sm:$0xff] %v10309_v49  ;;  %v10314_v6 = vsel %vm1198_vm11, 1.0, %v9391_v10  ;;  %v10318_v27 = vsel %vm2616_vm3, 1.0, %v9391_v10  ;;  %v2351_v50 = vadd.f32 %v2191_v33, %v10266_v45  ;;  %v487_v59 = vpop.f32.mrf.mxu0  ;;  %v10332_v33 = vpop.f32.mrf.mxu1 }
 0x10f   : > { %15364 = vst [vmem:[#allocation38_spill] sm:$0xff] %v10314_v6  ;;  %v5250_v9 = vadd.f32 %v5090_v43, %v10174_v61  ;;  %vm4033_vm6 = vcmp.gt.f32.partialorder %v3873_v30, 0.5  ;;  %vm1084_vm7 = vcmp.gt.f32.partialorder %v10304_v15, 0.5  ;;  %v10329_v20 = vadd.f32 %v10176_v2, %v9590_v47 }
 0x110   : > { %15365 = vst [vmem:[#allocation39_spill] sm:$0xff] %v10318_v27  ;;  %vm6748_vm8 = vcmp.gt.f32.partialorder %v6588_v39, 0.5  ;;  %v4193_v51 = vsel %vm4033_vm6, 0.0, %v3873_v30  ;;  %v1244_v56 = vsel %vm1084_vm7, 0.0, %v10304_v15  ;;  %vm2511_vm10 = vcmp.gt.f32.partialorder %v2351_v50, 0.5 }
 0x111   : > { %v8999_v3 = vsel %vm6748_vm8, 1.0, %v9391_v10  ;;  %vm5410_vm9 = vcmp.gt.f32.partialorder %v5250_v9, 0.5  ;;  %v5130_v12 = vmul.f32 0.2, %v4193_v51  ;;  %v10339_v43 = vsel %vm3993_vm5, 1.0, %v9391_v10 }
 0x112   : > { %v10335_v55 = vadd.f32 %v8999_v3, %v10194_v31  ;;  %15366 = vst [vmem:[#allocation40_spill] sm:$0xff] %v10339_v43  ;;  %v5570_v39 = vsel %vm5410_vm9, 0.0, %v5250_v9  ;;  %v2671_v4 = vsel %vm2511_vm10, 0.0, %v2351_v50  ;;  %v8533_v42 = vsel %vm2511_vm10, 1.0, %v9391_v10 }
 0x113   : > { %v6507_v27 = vmul.f32 0.2, %v5570_v39  ;;  %v5290_v2 = vadd.f32 %v5130_v12, %v10217_v19  ;;  %v3608_v6 = vmul.f32 0.2, %v2671_v4  ;;  %v10345_v51 = vadd.f32 %v8533_v42, %v10198_v38 }
 0x114   : > { %v8364_v31 = vsel %vm1084_vm7, 1.0, %v9391_v10  ;;  %v2182_v3 = vmul.f32 0.2, %v1244_v56  ;;  %vm1163_vm11 = vcmp.gt.f32.partialorder %v10329_v20, 0.5  ;;  %v10360_v42 = vadd.f32 %v10183_v26, %v9590_v47 }
 0x115   : > { %v6667_v34 = vadd.f32 %v6507_v27, %v10174_v61  ;;  %vm5450_vm12 = vcmp.gt.f32.partialorder %v5290_v2, 0.5  ;;  %v3768_v50 = vadd.f32 %v3608_v6, %v10266_v45  ;;  %v10354_v12 = vadd.f32 %v8364_v31, %v10191_v58  ;;  %v10376_v27 = vpop.f32.mrf.mxu2 }
 0x116   : > { %v5610_v4 = vsel %vm5450_vm12, 0.0, %v5290_v2  ;;  %v2342_v38 = vadd.f32 %v2182_v3, %v10304_v15  ;;  %v10363_v56 = vadd.f32 %v487_v59, %v9590_v47  ;;  %v10367_v61 = vsel %vm5410_vm9, 1.0, %v9391_v10  ;;  %v10382_v3 = vpop.f32.mrf.mxu0 }
 0x117   : > { %15367 = vst [vmem:[#allocation41_spill] sm:$0xff] %v10367_v61  ;;  %v10371_v58 = vsel %vm4033_vm6, 1.0, %v9391_v10  ;;  %vm3928_vm13 = vcmp.gt.f32.partialorder %v3768_v50, 0.5  ;;  %v1323_v6 = vsel %vm1163_vm11, 0.0, %v10329_v20  ;;  %vm6827_vm14 = vcmp.gt.f32.partialorder %v6667_v34, 0.5 }
 0x118   : > { %15368 = vst [vmem:[#allocation42_spill] sm:$0xff] %v10371_v58  ;;  %v4088_v26 = vsel %vm3928_vm13, 0.0, %v3768_v50  ;;  %v8693_v59 = vsel %vm3928_vm13, 1.0, %v9391_v10  ;;  %vm2502_vm15 = vcmp.gt.f32.partialorder %v2342_v38, 0.5  ;;  %v6547_v39 = vmul.f32 0.2, %v5610_v4 }
 0x119   : > { %v10380_v9 = vadd.f32 %v8693_v59, %v10222_v62  ;;  %v5025_v30 = vmul.f32 0.2, %v4088_v26  ;;  %v2662_v31 = vsel %vm2502_vm15, 0.0, %v2342_v38  ;;  %v9373_v58 = vld [vmem:[%s9478_s30 + $0x48] sm:$0xff]  ;;  %v8524_v22 = vsel %vm2502_vm15, 1.0, %v9391_v10  ;;  %v9374_v26 = vld [vmem:[%s9478_s30 + $0x70] sm:$0xff]  ;;  %v10416_v59 = vpop.f32.mrf.mxu3 }
 0x11a   : > { %8341 = vmatmul.msk.bf16.gmra.mxu0 %vm414_vm0, %v9373_v58  ;;  %v3599_v61 = vmul.f32 0.2, %v2662_v31  ;;  %v2261_v23 = vmul.f32 0.2, %v1323_v6  ;;  %vm1203_vm1 = vcmp.gt.f32.partialorder %v10360_v42, 0.5  ;;  %v10390_v50 = vsel %vm5450_vm12, 1.0, %v9391_v10  ;;  %v10399_v58 = vpop.f32.mrf.mxu1  ;;  %8298 = vmatmul.msk.bf16.gmra.mxu1 %vm414_vm0, %v9374_v26 }
 0x11b   : > { %15369 = vst [vmem:[#allocation43_spill] sm:$0xff] %v10390_v50  ;;  %v5185_v62 = vadd.f32 %v5025_v30, %v10266_v45  ;;  %v10394_v4 = vadd.f32 %v8524_v22, %v10239_v25  ;;  %v1363_v38 = vsel %vm1203_vm1, 0.0, %v10360_v42  ;;  %v10405_v6 = vsel %vm6827_vm14, 1.0, %v9391_v10 }
 0x11c   : > { %15370 = vst [vmem:[#allocation44_spill] sm:$0xff] %v10405_v6  ;;  %v3759_v2 = vadd.f32 %v3599_v61, %v10304_v15  ;;  %v10411_v25 = vsel %vm1163_vm11, 1.0, %v9391_v10  ;;  %v10414_v22 = vadd.f32 %v2261_v23, %v10329_v20  ;;  %v6707_v30 = vadd.f32 %v6547_v39, %v10217_v19 }
 0x11d   : > { %vm5345_vm2 = vcmp.gt.f32.partialorder %v5185_v62, 0.5  ;;  %v2301_v31 = vmul.f32 0.2, %v1363_v38  ;;  %vm1098_vm3 = vcmp.gt.f32.partialorder %v10363_v56, 0.5  ;;  %v10434_v38 = vadd.f32 %v10332_v33, %v9855_v5 }
 0x11e   : > { %v5505_v34 = vsel %vm5345_vm2, 0.0, %v5185_v62  ;;  %v8853_v26 = vsel %vm5345_vm2, 1.0, %v9391_v10  ;;  %vm3919_vm4 = vcmp.gt.f32.partialorder %v3759_v2, 0.5  ;;  %vm2581_vm5 = vcmp.gt.f32.partialorder %v10414_v22, 0.5 }
 0x11f   : > { %v10423_v61 = vadd.f32 %v8853_v26, %v10261_v57  ;;  %v6442_v23 = vmul.f32 0.2, %v5505_v34  ;;  %v4079_v50 = vsel %vm3919_vm4, 0.0, %v3759_v2  ;;  %v8684_v6 = vsel %vm3919_vm4, 1.0, %v9391_v10 }
 0x120   : > { %v10427_v19 = vadd.f32 %v8684_v6, %v10270_v40  ;;  %v5016_v39 = vmul.f32 0.2, %v4079_v50  ;;  %v2741_v62 = vsel %vm2581_vm5, 0.0, %v10414_v22  ;;  %v10438_v34 = vadd.f32 %v2301_v31, %v10360_v42  ;;  %v10443_v6 = vpop.f32.mrf.mxu2  ;;  %v10446_v50 = vld [vmem:[%s9478_s30 + $0x58] sm:$0xff] }
 0x121   : > { %v6602_v43 = vadd.f32 %v6442_v23, %v10266_v45  ;;  %v3678_v57 = vmul.f32 0.2, %v2741_v62  ;;  %v1258_v40 = vsel %vm1098_vm3, 0.0, %v10363_v56  ;;  %8311 = vmatmul.msk.bf16.gmra.mxu2 %vm414_vm0, %v10446_v50  ;;  %vm6867_vm6 = vcmp.gt.f32.partialorder %v6707_v30, 0.5  ;;  %v10476_v32 = vpop.f32.mrf.mxu3  ;;  %8326 = vmatmul.msk.bf16.gmra.mxu3 %vm414_vm0, %v10479_v1 }
 0x122   : > { %v5176_v33 = vadd.f32 %v5016_v39, %v10304_v15  ;;  %v8378_v45 = vsel %vm1098_vm3, 1.0, %v9391_v10  ;;  %v2196_v2 = vmul.f32 0.2, %v1258_v40  ;;  %vm2621_vm8 = vcmp.gt.f32.partialorder %v10438_v34, 0.5 }
 0x123   : > { %vm6762_vm7 = vcmp.gt.f32.partialorder %v6602_v43, 0.5  ;;  %v3838_v31 = vadd.f32 %v3678_v57, %v10329_v20  ;;  %v10457_v26 = vadd.f32 %v8378_v45, %v10285_v41  ;;  %v2781_v39 = vsel %vm2621_vm8, 0.0, %v10438_v34 }
 0x124   : > { %v9013_v23 = vsel %vm6762_vm7, 1.0, %v9391_v10  ;;  %vm5336_vm9 = vcmp.gt.f32.partialorder %v5176_v33, 0.5  ;;  %vm1089_vm10 = vcmp.gt.f32.partialorder %v10434_v38, 0.5  ;;  %v10470_v41 = vsel %vm6867_vm6, 1.0, %v9391_v10 }
 0x125   : > { %v10465_v62 = vadd.f32 %v9013_v23, %v10288_v54  ;;  %v5496_v43 = vsel %vm5336_vm9, 0.0, %v5176_v33  ;;  %v8844_v57 = vsel %vm5336_vm9, 1.0, %v9391_v10  ;;  %vm3998_vm11 = vcmp.gt.f32.partialorder %v3838_v31, 0.5  ;;  %15371 = vst [vmem:[#allocation45_spill] sm:$0xff] %v10470_v41 }
 0x126   : > { %v10473_v40 = vadd.f32 %v8844_v57, %v10298_v37  ;;  %v6433_v45 = vmul.f32 0.2, %v5496_v43  ;;  %v4158_v60 = vsel %vm3998_vm11, 0.0, %v3838_v31  ;;  %v3718_v33 = vmul.f32 0.2, %v2781_v39 }
 0x127   : > { %v5095_v54 = vmul.f32 0.2, %v4158_v60  ;;  %v2356_v23 = vadd.f32 %v2196_v2, %v10363_v56  ;;  %v1249_v30 = vsel %vm1089_vm10, 0.0, %v10434_v38  ;;  %v8369_v43 = vsel %vm1089_vm10, 1.0, %v9391_v10 }
 0x128   : > { %v6593_v37 = vadd.f32 %v6433_v45, %v10304_v15  ;;  %v2187_v57 = vmul.f32 0.2, %v1249_v30  ;;  %v10493_v41 = vadd.f32 %v10376_v27, %v9590_v47  ;;  %v3878_v39 = vadd.f32 %v3718_v33, %v10360_v42 }
 0x129   : > { %v5255_v60 = vadd.f32 %v5095_v54, %v10329_v20  ;;  %vm2516_vm12 = vcmp.gt.f32.partialorder %v2356_v23, 0.5  ;;  %v10498_v2 = vadd.f32 %v8369_v43, %v10354_v12  ;;  %v10513_v12 = vsel %vm1203_vm1, 1.0, %v9391_v10 }
 0x12a   : > { %vm6753_vm13 = vcmp.gt.f32.partialorder %v6593_v37, 0.5  ;;  %v2676_v21 = vsel %vm2516_vm12, 0.0, %v2356_v23  ;;  %v8538_v15 = vsel %vm2516_vm12, 1.0, %v9391_v10  ;;  %v2347_v45 = vadd.f32 %v2187_v57, %v10434_v38  ;;  %15372 = vst [vmem:[#allocation46_spill] sm:$0xff] %v10513_v12 }
 0x12b   : > { %v9004_v30 = vsel %vm6753_vm13, 1.0, %v9391_v10  ;;  %vm5415_vm14 = vcmp.gt.f32.partialorder %v5255_v60, 0.5  ;;  %vm4038_vm15 = vcmp.gt.f32.partialorder %v3878_v39, 0.5  ;;  %v10504_v27 = vadd.f32 %v8538_v15, %v10345_v51 }
 0x12c   : > { %v10507_v54 = vadd.f32 %v9004_v30, %v10335_v55  ;;  %v5575_v33 = vsel %vm5415_vm14, 0.0, %v5255_v60  ;;  %v4198_v23 = vsel %vm4038_vm15, 0.0, %v3878_v39  ;;  %v10519_v37 = vsel %vm2581_vm5, 1.0, %v9391_v10 }
 0x12d   : > { %15373 = vst [vmem:[#allocation47_spill] sm:$0xff] %v10519_v37  ;;  %v6512_v43 = vmul.f32 0.2, %v5575_v33  ;;  %v5135_v51 = vmul.f32 0.2, %v4198_v23  ;;  %vm2507_vm2 = vcmp.gt.f32.partialorder %v2347_v45, 0.5  ;;  %v10549_v34 = vadd.f32 %v10416_v59, %v9590_v47 }
 0x12e   : > { %v3613_v57 = vmul.f32 0.2, %v2676_v21  ;;  %v2667_v55 = vsel %vm2507_vm2, 0.0, %v2347_v45  ;;  %v8529_v15 = vsel %vm2507_vm2, 1.0, %v9391_v10  ;;  %vm1168_vm3 = vcmp.gt.f32.partialorder %v10493_v41, 0.5 }
 0x12f   : > { %v6672_v30 = vadd.f32 %v6512_v43, %v10329_v20  ;;  %v5295_v12 = vadd.f32 %v5135_v51, %v10360_v42  ;;  %v10526_v53 = vadd.f32 %v8529_v15, %v10394_v4  ;;  %v3604_v28 = vmul.f32 0.2, %v2667_v55 }
 0x130   : > { %v10530_v22 = vsel %vm3998_vm11, 1.0, %v9391_v10  ;;  %v10535_v21 = vsel %vm2621_vm8, 1.0, %v9391_v10  ;;  %v3773_v45 = vadd.f32 %v3613_v57, %v10363_v56  ;;  %v1328_v20 = vsel %vm1168_vm3, 0.0, %v10493_v41 }
 0x131   : > { %15374 = vst [vmem:[#allocation48_spill] sm:$0xff] %v10530_v22  ;;  %v10543_v4 = vsel %vm5415_vm14, 1.0, %v9391_v10  ;;  %vm5455_vm1 = vcmp.gt.f32.partialorder %v5295_v12, 0.5  ;;  %v3764_v31 = vadd.f32 %v3604_v28, %v10434_v38  ;;  %v2266_v33 = vmul.f32 0.2, %v1328_v20 }
 0x132   : > { %15375 = vst [vmem:[#allocation49_spill] sm:$0xff] %v10535_v21  ;;  %vm6832_vm4 = vcmp.gt.f32.partialorder %v6672_v30, 0.5  ;;  %v5615_v23 = vsel %vm5455_vm1, 0.0, %v5295_v12  ;;  %vm3933_vm5 = vcmp.gt.f32.partialorder %v3773_v45, 0.5  ;;  %v10558_v20 = vsel %vm4038_vm15, 1.0, %v9391_v10 }
 0x133   : > { %15376 = vst [vmem:[#allocation50_spill] sm:$0xff] %v10543_v4  ;;  %v6552_v43 = vmul.f32 0.2, %v5615_v23  ;;  %v4093_v51 = vsel %vm3933_vm5, 0.0, %v3773_v45  ;;  %v8698_v57 = vsel %vm3933_vm5, 1.0, %v9391_v10  ;;  %vm3924_vm6 = vcmp.gt.f32.partialorder %v3764_v31, 0.5 }
 0x134   : > { %v10553_v60 = vadd.f32 %v8698_v57, %v10380_v9  ;;  %v5030_v55 = vmul.f32 0.2, %v4093_v51  ;;  %v4084_v15 = vsel %vm3924_vm6, 0.0, %v3764_v31  ;;  %v8689_v28 = vsel %vm3924_vm6, 1.0, %v9391_v10  ;;  %15377 = vst [vmem:[#allocation51_spill] sm:$0xff] %v10558_v20 }
 0x135   : > { %v10561_v21 = vadd.f32 %v8689_v28, %v10427_v19  ;;  %v5021_v59 = vmul.f32 0.2, %v4084_v15  ;;  %v2426_v45 = vadd.f32 %v2266_v33, %v10493_v41  ;;  %v10566_v23 = vsel %vm6832_vm4, 1.0, %v9391_v10 }
 0x136   : > { %15378 = vst [vmem:[#allocation52_spill] sm:$0xff] %v10566_v23  ;;  %v5190_v9 = vadd.f32 %v5030_v55, %v10363_v56  ;;  %v10572_v31 = vsel %vm1168_vm3, 1.0, %v9391_v10  ;;  %vm1208_vm7 = vcmp.gt.f32.partialorder %v10549_v34, 0.5  ;;  %v6712_v39 = vadd.f32 %v6552_v43, %v10360_v42 }
 0x137   : > { %v5181_v19 = vadd.f32 %v5021_v59, %v10434_v38  ;;  %vm2586_vm8 = vcmp.gt.f32.partialorder %v2426_v45, 0.5  ;;  %v10579_v33 = vadd.f32 %v10382_v3, %v9590_v47  ;;  %v1368_v51 = vsel %vm1208_vm7, 0.0, %v10549_v34 }
 0x138   : > { %vm5350_vm9 = vcmp.gt.f32.partialorder %v5190_v9, 0.5  ;;  %v2746_v30 = vsel %vm2586_vm8, 0.0, %v2426_v45  ;;  %v10587_v57 = vadd.f32 %v10399_v58, %v9855_v5  ;;  %v10596_v20 = vsel %vm5455_vm1, 1.0, %v9391_v10 }
 0x139   : > { %v5510_v55 = vsel %vm5350_vm9, 0.0, %v5190_v9  ;;  %v8858_v42 = vsel %vm5350_vm9, 1.0, %v9391_v10  ;;  %vm5341_vm10 = vcmp.gt.f32.partialorder %v5181_v19, 0.5  ;;  %v3683_v43 = vmul.f32 0.2, %v2746_v30  ;;  %15379 = vst [vmem:[#allocation53_spill] sm:$0xff] %v10596_v20 }
 0x13a   : > { %v10591_v15 = vadd.f32 %v8858_v42, %v10423_v61  ;;  %v6447_v3 = vmul.f32 0.2, %v5510_v55  ;;  %v5501_v28 = vsel %vm5341_vm10, 0.0, %v5181_v19  ;;  %v8849_v59 = vsel %vm5341_vm10, 1.0, %v9391_v10 }
 0x13b   : > { %v10599_v23 = vadd.f32 %v8849_v59, %v10473_v40  ;;  %v6438_v58 = vmul.f32 0.2, %v5501_v28  ;;  %v3843_v9 = vadd.f32 %v3683_v43, %v10493_v41  ;;  %vm6872_vm11 = vcmp.gt.f32.partialorder %v6712_v39, 0.5 }
 0x13c   : > { %v6607_v30 = vadd.f32 %v6447_v3, %v10363_v56  ;;  %v2306_v4 = vmul.f32 0.2, %v1368_v51  ;;  %vm1103_vm12 = vcmp.gt.f32.partialorder %v10579_v33, 0.5  ;;  %vm1094_vm15 = vcmp.gt.f32.partialorder %v10587_v57, 0.5 }
 0x13d   : > { %v6598_v61 = vadd.f32 %v6438_v58, %v10434_v38  ;;  %vm4003_vm13 = vcmp.gt.f32.partialorder %v3843_v9, 0.5  ;;  %v1263_v19 = vsel %vm1103_vm12, 0.0, %v10579_v33  ;;  %v8383_v12 = vsel %vm1103_vm12, 1.0, %v9391_v10  ;;  %v10614_v38 = vpop.f32.mrf.mxu0 }
 0x13e   : > { %vm6767_vm14 = vcmp.gt.f32.partialorder %v6607_v30, 0.5  ;;  %v4163_v40 = vsel %vm4003_vm13, 0.0, %v3843_v9  ;;  %v2466_v55 = vadd.f32 %v2306_v4, %v10549_v34  ;;  %v10612_v51 = vadd.f32 %v8383_v12, %v10457_v26 }
 0x13f   : > { %v9018_v42 = vsel %vm6767_vm14, 1.0, %v9391_v10  ;;  %vm6758_vm2 = vcmp.gt.f32.partialorder %v6598_v61, 0.5  ;;  %v5100_v56 = vmul.f32 0.2, %v4163_v40  ;;  %v2201_v28 = vmul.f32 0.2, %v1263_v19 }
 0x140   : > { %v10617_v43 = vadd.f32 %v9018_v42, %v10465_v62  ;;  %v9009_v3 = vsel %vm6758_vm2, 1.0, %v9391_v10  ;;  %vm2626_vm3 = vcmp.gt.f32.partialorder %v2466_v55, 0.5  ;;  %v10622_v4 = vsel %vm6872_vm11, 1.0, %v9391_v10 }
 0x141   : > { %15380 = vst [vmem:[#allocation54_spill] sm:$0xff] %v10622_v4  ;;  %v10625_v59 = vadd.f32 %v9009_v3, %v10507_v54  ;;  %v5260_v58 = vadd.f32 %v5100_v56, %v10493_v41  ;;  %v2786_v26 = vsel %vm2626_vm3, 0.0, %v2466_v55  ;;  %v2361_v61 = vadd.f32 %v2201_v28, %v10579_v33 }
 0x142   : > { %v3723_v30 = vmul.f32 0.2, %v2786_v26  ;;  %v1254_v62 = vsel %vm1094_vm15, 0.0, %v10587_v57  ;;  %v8374_v39 = vsel %vm1094_vm15, 1.0, %v9391_v10  ;;  %v10641_v12 = vadd.f32 %v10443_v6, %v9590_v47 }
 0x143   : > { %vm5420_vm1 = vcmp.gt.f32.partialorder %v5260_v58, 0.5  ;;  %v10637_v19 = vadd.f32 %v8374_v39, %v10498_v2  ;;  %v2192_v54 = vmul.f32 0.2, %v1254_v62  ;;  %v10645_v40 = vsel %vm2586_vm8, 1.0, %v9391_v10  ;;  %v10651_v62 = vpop.f32.mrf.mxu1 }
 0x144   : > { %15381 = vst [vmem:[#allocation55_spill] sm:$0xff] %v10645_v40  ;;  %v5580_v42 = vsel %vm5420_vm1, 0.0, %v5260_v58  ;;  %v3883_v56 = vadd.f32 %v3723_v30, %v10549_v34  ;;  %vm2521_vm4 = vcmp.gt.f32.partialorder %v2361_v61, 0.5  ;;  %vm1173_vm6 = vcmp.gt.f32.partialorder %v10641_v12, 0.5 }
 0x145   : > { %v6517_v3 = vmul.f32 0.2, %v5580_v42  ;;  %v2681_v28 = vsel %vm2521_vm4, 0.0, %v2361_v61  ;;  %v8543_v26 = vsel %vm2521_vm4, 1.0, %v9391_v10  ;;  %v2352_v2 = vadd.f32 %v2192_v54, %v10587_v57 }
 0x146   : > { %vm4043_vm5 = vcmp.gt.f32.partialorder %v3883_v56, 0.5  ;;  %v10654_v6 = vadd.f32 %v8543_v26, %v10504_v27  ;;  %v3618_v45 = vmul.f32 0.2, %v2681_v28  ;;  %v10659_v39 = vsel %vm4003_vm13, 1.0, %v9391_v10 }
 0x147   : > { %15382 = vst [vmem:[#allocation56_spill] sm:$0xff] %v10659_v39  ;;  %v10664_v30 = vsel %vm1208_vm7, 1.0, %v9391_v10  ;;  %v4203_v61 = vsel %vm4043_vm5, 0.0, %v3883_v56  ;;  %vm2512_vm8 = vcmp.gt.f32.partialorder %v2352_v2, 0.5  ;;  %v6677_v26 = vadd.f32 %v6517_v3, %v10493_v41 }
 0x148   : > { %15383 = vst [vmem:[#allocation57_spill] sm:$0xff] %v10664_v30  ;;  %v5140_v54 = vmul.f32 0.2, %v4203_v61  ;;  %v3778_v42 = vadd.f32 %v3618_v45, %v10579_v33  ;;  %v2672_v27 = vsel %vm2512_vm8, 0.0, %v2352_v2  ;;  %v8534_v28 = vsel %vm2512_vm8, 1.0, %v9391_v10  ;;  %v10676_v30 = vpop.f32.mrf.mxu0  ;;  %8342 = vmatmul.msk.bf16.gmra.mxu0 %vm414_vm0, %v10479_v1 }
 0x149   : > { %v10671_v9 = vadd.f32 %v8534_v28, %v10526_v53  ;;  %v3609_v4 = vmul.f32 0.2, %v2672_v27  ;;  %v1333_v20 = vsel %vm1173_vm6, 0.0, %v10641_v12  ;;  %v10682_v2 = vsel %vm5420_vm1, 1.0, %v9391_v10 }
 0x14a   : > { %15384 = vst [vmem:[#allocation58_spill] sm:$0xff] %v10682_v2  ;;  %v10686_v41 = vsel %vm2626_vm3, 1.0, %v9391_v10  ;;  %v5300_v53 = vadd.f32 %v5140_v54, %v10549_v34  ;;  %vm3938_vm7 = vcmp.gt.f32.partialorder %v3778_v42, 0.5  ;;  %v2271_v27 = vmul.f32 0.2, %v1333_v20 }
 0x14b   : > { %15385 = vst [vmem:[#allocation59_spill] sm:$0xff] %v10686_v41  ;;  %v4098_v3 = vsel %vm3938_vm7, 0.0, %v3778_v42  ;;  %v8703_v45 = vsel %vm3938_vm7, 1.0, %v9391_v10  ;;  %v3769_v61 = vadd.f32 %v3609_v4, %v10587_v57  ;;  %v10696_v55 = vadd.f32 %v10476_v32, %v9590_v47  ;;  %v10706_v32 = vpop.f32.mrf.mxu1 }
 0x14c   : > { %vm5460_vm9 = vcmp.gt.f32.partialorder %v5300_v53, 0.5  ;;  %v10692_v1 = vadd.f32 %v8703_v45, %v10553_v60  ;;  %v5035_v58 = vmul.f32 0.2, %v4098_v3  ;;  %vm6837_vm10 = vcmp.gt.f32.partialorder %v6677_v26, 0.5  ;;  %v9377_v26 = vld [vmem:[%s9478_s30 + $0x78] sm:$0xff] }
 0x14d   : > { %v5620_v54 = vsel %vm5460_vm9, 0.0, %v5300_v53  ;;  %vm3929_vm11 = vcmp.gt.f32.partialorder %v3769_v61, 0.5  ;;  %v2431_v42 = vadd.f32 %v2271_v27, %v10641_v12  ;;  %vm1213_vm13 = vcmp.gt.f32.partialorder %v10696_v55, 0.5  ;;  %8299 = vmatmul.msk.bf16.gmra.mxu1 %vm414_vm0, %v9377_v26 }
 0x14e   : > { %v6557_v28 = vmul.f32 0.2, %v5620_v54  ;;  %v5195_v4 = vadd.f32 %v5035_v58, %v10579_v33  ;;  %v4089_v20 = vsel %vm3929_vm11, 0.0, %v3769_v61  ;;  %v8694_v41 = vsel %vm3929_vm11, 1.0, %v9391_v10 }
 0x14f   : > { %v10703_v60 = vadd.f32 %v8694_v41, %v10561_v21  ;;  %v5026_v3 = vmul.f32 0.2, %v4089_v20  ;;  %vm2591_vm12 = vcmp.gt.f32.partialorder %v2431_v42, 0.5  ;;  %v10711_v45 = vsel %vm6837_vm10, 1.0, %v9391_v10 }
 0x150   : > { %15386 = vst [vmem:[#allocation60_spill] sm:$0xff] %v10711_v45  ;;  %v10715_v61 = vsel %vm4043_vm5, 1.0, %v9391_v10  ;;  %vm5355_vm14 = vcmp.gt.f32.partialorder %v5195_v4, 0.5  ;;  %v2751_v21 = vsel %vm2591_vm12, 0.0, %v2431_v42  ;;  %v10726_v45 = vsel %vm1173_vm6, 1.0, %v9391_v10 }
 0x151   : > { %15387 = vst [vmem:[#allocation61_spill] sm:$0xff] %v10715_v61  ;;  %v5515_v41 = vsel %vm5355_vm14, 0.0, %v5195_v4  ;;  %v8863_v27 = vsel %vm5355_vm14, 1.0, %v9391_v10  ;;  %v5186_v58 = vadd.f32 %v5026_v3, %v10587_v57  ;;  %v3688_v54 = vmul.f32 0.2, %v2751_v21  ;;  %v547_v61 = vpop.f32.mrf.mxu3  ;;  %v10731_v4 = vpop.f32.mrf.mxu2 }
 0x152   : > { %v10721_v20 = vadd.f32 %v8863_v27, %v10591_v15  ;;  %v6452_v26 = vmul.f32 0.2, %v5515_v41  ;;  %15388 = vst [vmem:[#allocation62_spill] sm:$0xff] %v10726_v45  ;;  %v1373_v56 = vsel %vm1213_vm13, 0.0, %v10696_v55  ;;  %v10735_v3 = vsel %vm5460_vm9, 1.0, %v9391_v10 }
 0x153   : > { %15389 = vst [vmem:[#allocation63_spill] sm:$0xff] %v10735_v3  ;;  %v6717_v15 = vadd.f32 %v6557_v28, %v10549_v34  ;;  %vm5346_vm15 = vcmp.gt.f32.partialorder %v5186_v58, 0.5  ;;  %v10739_v21 = vadd.f32 %v3688_v54, %v10641_v12  ;;  %v2311_v39 = vmul.f32 0.2, %v1373_v56 }
 0x154   : > { %v6612_v41 = vadd.f32 %v6452_v26, %v10579_v33  ;;  %v5506_v27 = vsel %vm5346_vm15, 0.0, %v5186_v58  ;;  %v8854_v2 = vsel %vm5346_vm15, 1.0, %v9391_v10  ;;  %v10749_v53 = vadd.f32 %v10614_v38, %v9590_v47 }
 0x155   : > { %v10744_v22 = vadd.f32 %v8854_v2, %v10599_v23  ;;  %v6443_v40 = vmul.f32 0.2, %v5506_v27  ;;  %vm4008_vm2 = vcmp.gt.f32.partialorder %v10739_v21, 0.5  ;;  %v10753_v34 = vsel %vm2591_vm12, 1.0, %v9391_v10 }
 0x156   : > { %vm6772_vm3 = vcmp.gt.f32.partialorder %v6612_v41, 0.5  ;;  %15390 = vst [vmem:[#allocation64_spill] sm:$0xff] %v10753_v34  ;;  %v4168_v33 = vsel %vm4008_vm2, 0.0, %v10739_v21  ;;  %v2471_v28 = vadd.f32 %v2311_v39, %v10696_v55  ;;  %vm1108_vm1 = vcmp.gt.f32.partialorder %v10749_v53, 0.5 }
 0x157   : > { %v9023_v23 = vsel %vm6772_vm3, 1.0, %v9391_v10  ;;  %v6603_v2 = vadd.f32 %v6443_v40, %v10587_v57  ;;  %v5105_v58 = vmul.f32 0.2, %v4168_v33  ;;  %v1268_v42 = vsel %vm1108_vm1, 0.0, %v10749_v53 }
 0x158   : > { %v10763_v38 = vadd.f32 %v9023_v23, %v10617_v43  ;;  %vm2631_vm4 = vcmp.gt.f32.partialorder %v2471_v28, 0.5  ;;  %v8388_v54 = vsel %vm1108_vm1, 1.0, %v9391_v10  ;;  %vm6877_vm5 = vcmp.gt.f32.partialorder %v6717_v15, 0.5 }
 0x159   : > { %vm6763_vm6 = vcmp.gt.f32.partialorder %v6603_v2, 0.5  ;;  %v5265_v26 = vadd.f32 %v5105_v58, %v10641_v12  ;;  %v2791_v39 = vsel %vm2631_vm4, 0.0, %v2471_v28  ;;  %v10771_v56 = vadd.f32 %v8388_v54, %v10612_v51  ;;  %v549_v58 = vpop.f32.mrf.mxu3  ;;  %8327 = vmatmul.msk.bf16.gmra.mxu3 %vm414_vm0, %v10446_v50 }
 0x15a   : > { %v9014_v57 = vsel %vm6763_vm6, 1.0, %v9391_v10  ;;  %v3728_v40 = vmul.f32 0.2, %v2791_v39  ;;  %v2206_v43 = vmul.f32 0.2, %v1268_v42  ;;  %v10778_v15 = vadd.f32 %v10651_v62, %v9855_v5  ;;  %v10792_v42 = vld [vmem:[%s9478_s30 + $0x60] sm:$0xff] }
 0x15b   : > { %v10774_v41 = vadd.f32 %v9014_v57, %v10625_v59  ;;  %vm5425_vm8 = vcmp.gt.f32.partialorder %v5265_v26, 0.5  ;;  %v10781_v27 = vadd.f32 %v547_v61, %v9590_v47  ;;  %v10784_v33 = vsel %vm6877_vm5, 1.0, %v9391_v10  ;;  %v10789_v59 = vpop.f32.mrf.mxu2  ;;  %8312 = vmatmul.msk.bf16.gmra.mxu2 %vm414_vm0, %v10792_v42 }
 0x15c   : > { %15391 = vst [vmem:[#allocation65_spill] sm:$0xff] %v10784_v33  ;;  %v5585_v23 = vsel %vm5425_vm8, 0.0, %v5265_v26  ;;  %v3888_v51 = vadd.f32 %v3728_v40, %v10696_v55  ;;  %v2366_v2 = vadd.f32 %v2206_v43, %v10749_v53  ;;  %v10801_v61 = vsel %vm1213_vm13, 1.0, %v9391_v10 }
 0x15d   : > { %v6522_v62 = vmul.f32 0.2, %v5585_v23  ;;  %15392 = vst [vmem:[#allocation66_spill] sm:$0xff] %v10801_v61  ;;  %vm1099_vm7 = vcmp.gt.f32.partialorder %v10778_v15, 0.5  ;;  %vm1218_vm9 = vcmp.gt.f32.partialorder %v10781_v27, 0.5  ;;  %v10830_v7 = vsel %vm4008_vm2, 1.0, %v9391_v10 }
 0x15e   : > { %vm4048_vm10 = vcmp.gt.f32.partialorder %v3888_v51, 0.5  ;;  %vm2526_vm11 = vcmp.gt.f32.partialorder %v2366_v2, 0.5  ;;  %v1259_v54 = vsel %vm1099_vm7, 0.0, %v10778_v15  ;;  %v8379_v39 = vsel %vm1099_vm7, 1.0, %v9391_v10  ;;  %v10812_v23 = vld [vmem:[%s15322_s2] sm:$0x1f] }
 0x15f   : > { %v6682_v57 = vadd.f32 %v6522_v62, %v10641_v12  ;;  %v4208_v40 = vsel %vm4048_vm10, 0.0, %v3888_v51  ;;  %v2686_v43 = vsel %vm2526_vm11, 0.0, %v2366_v2  ;;  %v10815_v33 = vperm.slane %v10812_v23, 2  ;;  %15393 = vst [vmem:[#allocation67_spill] sm:$0xff] %v10830_v7 }
 0x160   : > { %v5145_v3 = vmul.f32 0.2, %v4208_v40  ;;  %v8548_v61 = vsel %vm2526_vm11, 1.0, %v9391_v10  ;;  %v3623_v34 = vmul.f32 0.2, %v2686_v43  ;;  %v10819_v37 = vadd.f32 %v8379_v39, %v10637_v19 }
 0x161   : > { %vm6842_vm12 = vcmp.gt.f32.partialorder %v6682_v57, 0.5  ;;  %v10822_v12 = vadd.f32 %v8548_v61, %v10654_v6  ;;  %v2197_v2 = vmul.f32 0.2, %v1259_v54  ;;  %v1378_v62 = vsel %vm1218_vm9, 0.0, %v10781_v27 }
 0x162   : > { %v10834_v40 = vsel %vm2631_vm4, 1.0, %v9391_v10  ;;  %v5305_v19 = vadd.f32 %v5145_v3, %v10696_v55  ;;  %v3783_v39 = vadd.f32 %v3623_v34, %v10749_v53  ;;  %v10840_v6 = vsel %vm5425_vm8, 1.0, %v9391_v10 }
 0x163   : > { %15394 = vst [vmem:[#allocation68_spill] sm:$0xff] %v10834_v40  ;;  %v2357_v61 = vadd.f32 %v2197_v2, %v10778_v15  ;;  %v2316_v54 = vmul.f32 0.2, %v1378_v62  ;;  %v10845_v21 = vadd.f32 %v10731_v4, %v10815_v33  ;;  %v10848_v57 = vsel %vm6842_vm12, 1.0, %v9391_v10 }
 0x164   : > { %15395 = vst [vmem:[#allocation69_spill] sm:$0xff] %v10840_v6  ;;  %v10852_v28 = vsel %vm4048_vm10, 1.0, %v9391_v10  ;;  %vm5465_vm13 = vcmp.gt.f32.partialorder %v5305_v19, 0.5  ;;  %vm3943_vm14 = vcmp.gt.f32.partialorder %v3783_v39, 0.5  ;;  %v10858_v43 = vadd.f32 %v10676_v30, %v9590_v47 }
 0x165   : > { %15396 = vst [vmem:[#allocation70_spill] sm:$0xff] %v10848_v57  ;;  %v5625_v3 = vsel %vm5465_vm13, 0.0, %v5305_v19  ;;  %v4103_v34 = vsel %vm3943_vm14, 0.0, %v3783_v39  ;;  %v8708_v26 = vsel %vm3943_vm14, 1.0, %v9391_v10  ;;  %vm2517_vm15 = vcmp.gt.f32.partialorder %v2357_v61, 0.5 }
 0x166   : > { %15397 = vst [vmem:[#allocation71_spill] sm:$0xff] %v10852_v28  ;;  %v6562_v4 = vmul.f32 0.2, %v5625_v3  ;;  %v10861_v2 = vadd.f32 %v8708_v26, %v10692_v1  ;;  %v5040_v62 = vmul.f32 0.2, %v4103_v34  ;;  %v2677_v51 = vsel %vm2517_vm15, 0.0, %v2357_v61 }
 0x167   : > { %v8539_v28 = vsel %vm2517_vm15, 1.0, %v9391_v10  ;;  %v2476_v40 = vadd.f32 %v2316_v54, %v10781_v27  ;;  %vm1070_vm2 = vcmp.gt.f32.partialorder %v10845_v21, 0.5  ;;  %v3614_v30 = vmul.f32 0.2, %v2677_v51 }
 0x168   : > { %v5200_v39 = vadd.f32 %v5040_v62, %v10749_v53  ;;  %v10868_v57 = vadd.f32 %v8539_v28, %v10671_v9  ;;  %v10873_v1 = vsel %vm1218_vm9, 1.0, %v9391_v10  ;;  %v1230_v61 = vsel %vm1070_vm2, 0.0, %v10845_v21 }
 0x169   : > { %15398 = vst [vmem:[#allocation72_spill] sm:$0xff] %v10873_v1  ;;  %vm2636_vm3 = vcmp.gt.f32.partialorder %v2476_v40, 0.5  ;;  %v10880_v54 = vadd.f32 %v10706_v32, %v9855_v5  ;;  %v10883_v3 = vadd.f32 %v549_v58, %v9590_v47  ;;  %v3774_v9 = vadd.f32 %v3614_v30, %v10778_v15 }
 0x16a   : > { %vm5360_vm1 = vcmp.gt.f32.partialorder %v5200_v39, 0.5  ;;  %v2796_v28 = vsel %vm2636_vm3, 0.0, %v2476_v40  ;;  %vm1113_vm4 = vcmp.gt.f32.partialorder %v10858_v43, 0.5  ;;  %v10890_v34 = vsel %vm5465_vm13, 1.0, %v9391_v10 }
 0x16b   : > { %15399 = vst [vmem:[#allocation73_spill] sm:$0xff] %v10890_v34  ;;  %v6722_v26 = vadd.f32 %v6562_v4, %v10696_v55  ;;  %v5520_v62 = vsel %vm5360_vm1, 0.0, %v5200_v39  ;;  %v8868_v32 = vsel %vm5360_vm1, 1.0, %v9391_v10  ;;  %vm3934_vm5 = vcmp.gt.f32.partialorder %v3774_v9, 0.5 }
 0x16c   : > { %v10895_v51 = vadd.f32 %v8868_v32, %v10721_v20  ;;  %v6457_v58 = vmul.f32 0.2, %v5520_v62  ;;  %v3733_v1 = vmul.f32 0.2, %v2796_v28  ;;  %v4094_v30 = vsel %vm3934_vm5, 0.0, %v3774_v9 }
 0x16d   : > { %v8699_v6 = vsel %vm3934_vm5, 1.0, %v9391_v10  ;;  %v2168_v7 = vmul.f32 0.2, %v1230_v61  ;;  %v1273_v19 = vsel %vm1113_vm4, 0.0, %v10858_v43  ;;  %v5031_v4 = vmul.f32 0.2, %v4094_v30 }
 0x16e   : > { %v6617_v34 = vadd.f32 %v6457_v58, %v10749_v53  ;;  %v10903_v55 = vadd.f32 %v8699_v6, %v10703_v60  ;;  %v3893_v20 = vadd.f32 %v3733_v1, %v10781_v27  ;;  %v10909_v39 = vsel %vm1070_vm2, 1.0, %v9391_v10 }
 0x16f   : > { %v2328_v9 = vadd.f32 %v2168_v7, %v10845_v21  ;;  %v8393_v61 = vsel %vm1113_vm4, 1.0, %v9391_v10  ;;  %v2211_v28 = vmul.f32 0.2, %v1273_v19  ;;  %v5191_v53 = vadd.f32 %v5031_v4, %v10778_v15 }
 0x170   : > { %vm6777_vm6 = vcmp.gt.f32.partialorder %v6617_v34, 0.5  ;;  %vm4053_vm8 = vcmp.gt.f32.partialorder %v3893_v20, 0.5  ;;  %v10917_v60 = vadd.f32 %v8393_v61, %v10771_v56  ;;  %vm6882_vm7 = vcmp.gt.f32.partialorder %v6722_v26, 0.5 }
 0x171   : > { %v9028_v6 = vsel %vm6777_vm6, 1.0, %v9391_v10  ;;  %v4213_v1 = vsel %vm4053_vm8, 0.0, %v3893_v20  ;;  %vm2488_vm9 = vcmp.gt.f32.partialorder %v2328_v9, 0.5  ;;  %vm5351_vm10 = vcmp.gt.f32.partialorder %v5191_v53, 0.5 }
 0x172   : > { %v10922_v7 = vadd.f32 %v9028_v6, %v10763_v38  ;;  %v5150_v62 = vmul.f32 0.2, %v4213_v1  ;;  %v2648_v32 = vsel %vm2488_vm9, 0.0, %v2328_v9  ;;  %v5511_v34 = vsel %vm5351_vm10, 0.0, %v5191_v53 }
 0x173   : > { %v8859_v58 = vsel %vm5351_vm10, 1.0, %v9391_v10  ;;  %v3585_v30 = vmul.f32 0.2, %v2648_v32  ;;  %vm1104_vm11 = vcmp.gt.f32.partialorder %v10880_v54, 0.5  ;;  %v6448_v19 = vmul.f32 0.2, %v5511_v34  ;;  %v497_v32 = vpop.f32.mrf.mxu0 }
 0x174   : > { %v10928_v56 = vadd.f32 %v8859_v58, %v10744_v22  ;;  %v5310_v4 = vadd.f32 %v5150_v62, %v10781_v27  ;;  %v2371_v61 = vadd.f32 %v2211_v28, %v10858_v43  ;;  %v10934_v38 = vsel %vm6882_vm7, 1.0, %v9391_v10 }
 0x175   : > { %15400 = vst [vmem:[#allocation74_spill] sm:$0xff] %v10934_v38  ;;  %v10938_v53 = vsel %vm2636_vm3, 1.0, %v9391_v10  ;;  %v3745_v6 = vadd.f32 %v3585_v30, %v10845_v21  ;;  %v8384_v22 = vsel %vm1104_vm11, 1.0, %v9391_v10  ;;  %v6608_v1 = vadd.f32 %v6448_v19, %v10778_v15 }
 0x176   : > { %15401 = vst [vmem:[#allocation75_spill] sm:$0xff] %v10938_v53  ;;  %vm5470_vm12 = vcmp.gt.f32.partialorder %v5310_v4, 0.5  ;;  %vm2531_vm13 = vcmp.gt.f32.partialorder %v2371_v61, 0.5  ;;  %v10946_v28 = vadd.f32 %v8384_v22, %v10819_v37  ;;  %v1264_v40 = vsel %vm1104_vm11, 0.0, %v10880_v54 }
 0x177   : > { %v5630_v26 = vsel %vm5470_vm12, 0.0, %v5310_v4  ;;  %vm3905_vm14 = vcmp.gt.f32.partialorder %v3745_v6, 0.5  ;;  %v2691_v62 = vsel %vm2531_vm13, 0.0, %v2371_v61  ;;  %vm6768_vm15 = vcmp.gt.f32.partialorder %v6608_v1, 0.5 }
 0x178   : > { %v6567_v34 = vmul.f32 0.2, %v5630_v26  ;;  %v4065_v58 = vsel %vm3905_vm14, 0.0, %v3745_v6  ;;  %vm1223_vm2 = vcmp.gt.f32.partialorder %v10883_v3, 0.5  ;;  %v9019_v15 = vsel %vm6768_vm15, 1.0, %v9391_v10 }
 0x179   : > { %v5002_v30 = vmul.f32 0.2, %v4065_v58  ;;  %v8553_v37 = vsel %vm2531_vm13, 1.0, %v9391_v10  ;;  %v3628_v19 = vmul.f32 0.2, %v2691_v62  ;;  %v10957_v22 = vadd.f32 %v9019_v15, %v10774_v41 }
 0x17a   : > { %v6727_v61 = vadd.f32 %v6567_v34, %v10781_v27  ;;  %v10961_v38 = vadd.f32 %v8553_v37, %v10822_v12  ;;  %v2202_v1 = vmul.f32 0.2, %v1264_v40  ;;  %v10965_v26 = vsel %vm4053_vm8, 1.0, %v9391_v10 }
 0x17b   : > { %15402 = vst [vmem:[#allocation76_spill] sm:$0xff] %v10965_v26  ;;  %v5162_v53 = vadd.f32 %v5002_v30, %v10845_v21  ;;  %v3788_v58 = vadd.f32 %v3628_v19, %v10858_v43  ;;  %v1383_v62 = vsel %vm1223_vm2, 0.0, %v10883_v3  ;;  %v10974_v41 = vsel %vm2488_vm9, 1.0, %v9391_v10 }
 0x17c   : > { %v2362_v27 = vadd.f32 %v2202_v1, %v10880_v54  ;;  %v2321_v12 = vmul.f32 0.2, %v1383_v62  ;;  %v10979_v20 = vadd.f32 %v10789_v59, %v10815_v33  ;;  %v10983_v40 = vsel %vm5470_vm12, 1.0, %v9391_v10 }
 0x17d   : > { %15403 = vst [vmem:[#allocation77_spill] sm:$0xff] %v10983_v40  ;;  %v10987_v34 = vsel %vm3905_vm14, 1.0, %v9391_v10  ;;  %vm3948_vm3 = vcmp.gt.f32.partialorder %v3788_v58, 0.5  ;;  %v10992_v9 = vsel %vm1223_vm2, 1.0, %v9391_v10  ;;  %vm6887_vm1 = vcmp.gt.f32.partialorder %v6727_v61, 0.5 }
 0x17e   : > { %15404 = vst [vmem:[#allocation78_spill] sm:$0xff] %v10992_v9  ;;  %vm5322_vm4 = vcmp.gt.f32.partialorder %v5162_v53, 0.5  ;;  %v4108_v15 = vsel %vm3948_vm3, 0.0, %v3788_v58  ;;  %v8713_v59 = vsel %vm3948_vm3, 1.0, %v9391_v10  ;;  %vm2522_vm5 = vcmp.gt.f32.partialorder %v2362_v27, 0.5 }
 0x17f   : > { %v10996_v30 = vadd.f32 %v8713_v59, %v10861_v2  ;;  %v5045_v4 = vmul.f32 0.2, %v4108_v15  ;;  %v10999_v6 = vadd.f32 %v497_v32, %v9590_v47  ;;  %v2682_v37 = vsel %vm2522_vm5, 0.0, %v2362_v27  ;;  %v11011_v59 = vpop.f32.mrf.mxu0  ;;  %8343 = vmatmul.msk.bf16.gmra.mxu0 %vm414_vm0, %v10446_v50 }
 0x180   : > { %v8544_v19 = vsel %vm2522_vm5, 1.0, %v9391_v10  ;;  %v11003_v1 = vadd.f32 %v2321_v12, %v10883_v3  ;;  %vm1075_vm6 = vcmp.gt.f32.partialorder %v10979_v20, 0.5  ;;  %v5482_v58 = vsel %vm5322_vm4, 0.0, %v5162_v53 }
 0x181   : > { %v5205_v62 = vadd.f32 %v5045_v4, %v10858_v43  ;;  %v11009_v2 = vadd.f32 %v8544_v19, %v10868_v57  ;;  %v3619_v15 = vmul.f32 0.2, %v2682_v37  ;;  %v11017_v32 = vsel %vm6887_vm1, 1.0, %v9391_v10 }
 0x182   : > { %15405 = vst [vmem:[#allocation79_spill] sm:$0xff] %v11017_v32  ;;  %v11021_v27 = vsel %vm5322_vm4, 1.0, %v9391_v10  ;;  %vm2641_vm8 = vcmp.gt.f32.partialorder %v11003_v1, 0.5  ;;  %v1235_v12 = vsel %vm1075_vm6, 0.0, %v10979_v20  ;;  %v8355_v50 = vsel %vm1075_vm6, 1.0, %v9391_v10 }
 0x183   : > { %vm5365_vm7 = vcmp.gt.f32.partialorder %v5205_v62, 0.5  ;;  %v3779_v57 = vadd.f32 %v3619_v15, %v10880_v54  ;;  %v2801_v4 = vsel %vm2641_vm8, 0.0, %v11003_v1  ;;  %v6419_v61 = vmul.f32 0.2, %v5482_v58 }
 0x184   : > { %v5525_v37 = vsel %vm5365_vm7, 0.0, %v5205_v62  ;;  %v8873_v19 = vsel %vm5365_vm7, 1.0, %v9391_v10  ;;  %vm1118_vm9 = vcmp.gt.f32.partialorder %v10999_v6, 0.5  ;;  %v3738_v40 = vmul.f32 0.2, %v2801_v4 }
 0x185   : > { %v11033_v53 = vadd.f32 %v8873_v19, %v10895_v51  ;;  %v6462_v32 = vmul.f32 0.2, %v5525_v37  ;;  %vm3939_vm10 = vcmp.gt.f32.partialorder %v3779_v57, 0.5  ;;  %v11037_v9 = vadd.f32 %v8355_v50, %v10909_v39  ;;  %v581_v51 = vpop.f32.mrf.mxu1  ;;  %v655_v19 = vpop.f32.mrf.mxu2 }
 0x186   : > { %v4099_v26 = vsel %vm3939_vm10, 0.0, %v3779_v57  ;;  %v8704_v15 = vsel %vm3939_vm10, 1.0, %v9391_v10  ;;  %v2173_v46 = vmul.f32 0.2, %v1235_v12  ;;  %v11044_v45 = vadd.f32 %v3738_v40, %v10883_v3 }
 0x187   : > { %v6622_v58 = vadd.f32 %v6462_v32, %v10858_v43  ;;  %v11041_v62 = vadd.f32 %v8704_v15, %v10903_v55  ;;  %v5036_v49 = vmul.f32 0.2, %v4099_v26  ;;  %v6579_v37 = vadd.f32 %v6419_v61, %v10845_v21 }
 0x188   : > { %v2333_v57 = vadd.f32 %v2173_v46, %v10979_v20  ;;  %v1278_v39 = vsel %vm1118_vm9, 0.0, %v10999_v6  ;;  %v8398_v43 = vsel %vm1118_vm9, 1.0, %v9391_v10  ;;  %vm4058_vm12 = vcmp.gt.f32.partialorder %v11044_v45, 0.5 }
 0x189   : > { %vm6782_vm11 = vcmp.gt.f32.partialorder %v6622_v58, 0.5  ;;  %v5196_v55 = vadd.f32 %v5036_v49, %v10880_v54  ;;  %v11057_v26 = vadd.f32 %v8398_v43, %v10917_v60  ;;  %v4218_v46 = vsel %vm4058_vm12, 0.0, %v11044_v45 }
 0x18a   : > { %v9033_v21 = vsel %vm6782_vm11, 1.0, %v9391_v10  ;;  %vm2493_vm13 = vcmp.gt.f32.partialorder %v2333_v57, 0.5  ;;  %v11064_v40 = vadd.f32 %v581_v51, %v9855_v5  ;;  %v5155_v49 = vmul.f32 0.2, %v4218_v46 }
 0x18b   : > { %v11067_v32 = vadd.f32 %v9033_v21, %v10922_v7  ;;  %vm5356_vm14 = vcmp.gt.f32.partialorder %v5196_v55, 0.5  ;;  %v2653_v12 = vsel %vm2493_vm13, 0.0, %v2333_v57  ;;  %v8515_v50 = vsel %vm2493_vm13, 1.0, %v9391_v10 }
 0x18c   : > { %v5516_v4 = vsel %vm5356_vm14, 0.0, %v5196_v55  ;;  %v8864_v60 = vsel %vm5356_vm14, 1.0, %v9391_v10  ;;  %v3590_v61 = vmul.f32 0.2, %v2653_v12  ;;  %v11075_v51 = vadd.f32 %v5155_v49, %v10883_v3 }
 0x18d   : > { %v11072_v15 = vadd.f32 %v8864_v60, %v10928_v56  ;;  %v6453_v58 = vmul.f32 0.2, %v5516_v4  ;;  %v11078_v7 = vadd.f32 %v8515_v50, %v10974_v41  ;;  %vm6739_vm15 = vcmp.gt.f32.partialorder %v6579_v37, 0.5 }
 0x18e   : > { %15406 = vst [vmem:[#allocation80_spill] sm:$0xff] %v11075_v51  ;;  %v3750_v57 = vadd.f32 %v3590_v61, %v10979_v20  ;;  %v2216_v43 = vmul.f32 0.2, %v1278_v39  ;;  %vm1109_vm2 = vcmp.gt.f32.partialorder %v11064_v40, 0.5  ;;  %vm5475_vm3 = vcmp.gt.f32.partialorder %v11075_v51, 0.5  ;;  %v739_v61 = vpop.f32.mrf.mxu3 }
 0x18f   : > { %v6613_v55 = vadd.f32 %v6453_v58, %v10880_v54  ;;  %v1269_v56 = vsel %vm1109_vm2, 0.0, %v11064_v40  ;;  %v11086_v21 = vadd.f32 %v655_v19, %v10815_v33  ;;  %v5635_v41 = vsel %vm5475_vm3, 0.0, %v11075_v51 }
 0x190   : > { %vm3910_vm1 = vcmp.gt.f32.partialorder %v3750_v57, 0.5  ;;  %v2376_v46 = vadd.f32 %v2216_v43, %v10999_v6  ;;  %v8389_v39 = vsel %vm1109_vm2, 1.0, %v9391_v10  ;;  %v6572_v49 = vmul.f32 0.2, %v5635_v41 }
 0x191   : > { %vm6773_vm4 = vcmp.gt.f32.partialorder %v6613_v55, 0.5  ;;  %v4070_v12 = vsel %vm3910_vm1, 0.0, %v3750_v57  ;;  %v8675_v54 = vsel %vm3910_vm1, 1.0, %v9391_v10  ;;  %v8990_v19 = vsel %vm6739_vm15, 1.0, %v9391_v10 }
 0x192   : > { %v9024_v4 = vsel %vm6773_vm4, 1.0, %v9391_v10  ;;  %v11096_v60 = vadd.f32 %v8675_v54, %v10987_v34  ;;  %v5007_v50 = vmul.f32 0.2, %v4070_v12  ;;  %vm2536_vm5 = vcmp.gt.f32.partialorder %v2376_v46, 0.5 }
 0x193   : > { %v11101_v58 = vadd.f32 %v9024_v4, %v10957_v22  ;;  %v2696_v43 = vsel %vm2536_vm5, 0.0, %v2376_v46  ;;  %v8558_v55 = vsel %vm2536_vm5, 1.0, %v9391_v10  ;;  %v11109_v34 = vadd.f32 %v8389_v39, %v10946_v28 }
 0x194   : > { %v5167_v57 = vadd.f32 %v5007_v50, %v10979_v20  ;;  %v11106_v41 = vadd.f32 %v8558_v55, %v10961_v38  ;;  %v3633_v51 = vmul.f32 0.2, %v2696_v43  ;;  %v11114_v37 = vsel %vm2641_vm8, 1.0, %v9391_v10  ;;  %v11135_v55 = vpop.f32.mrf.mxu2 }
 0x195   : > { %15407 = vst [vmem:[#allocation81_spill] sm:$0xff] %v11114_v37  ;;  %v11117_v22 = vadd.f32 %v6572_v49, %v10883_v3  ;;  %v2207_v46 = vmul.f32 0.2, %v1269_v56  ;;  %vm1080_vm6 = vcmp.gt.f32.partialorder %v11086_v21, 0.5  ;;  %v11123_v28 = vperm.slane %v10812_v23, 3 }
 0x196   : > { %vm5327_vm7 = vcmp.gt.f32.partialorder %v5167_v57, 0.5  ;;  %v3793_v12 = vadd.f32 %v3633_v51, %v10999_v6  ;;  %v1240_v38 = vsel %vm1080_vm6, 0.0, %v11086_v21  ;;  %v8360_v3 = vsel %vm1080_vm6, 1.0, %v9391_v10 }
 0x197   : > { %15408 = vst [vmem:[#allocation82_spill] sm:$0xff] %v11117_v22  ;;  %v5487_v39 = vsel %vm5327_vm7, 0.0, %v5167_v57  ;;  %v8835_v1 = vsel %vm5327_vm7, 1.0, %v9391_v10  ;;  %v2367_v54 = vadd.f32 %v2207_v46, %v11064_v40  ;;  %v11132_v51 = vadd.f32 %v8360_v3, %v11037_v9  ;;  %v11138_v57 = vld [vmem:[%s9478_s30 + $0x68] sm:$0xff] }
 0x198   : > { %v11129_v56 = vadd.f32 %v8835_v1, %v11021_v27  ;;  %v6424_v49 = vmul.f32 0.2, %v5487_v39  ;;  %vm3953_vm8 = vcmp.gt.f32.partialorder %v3793_v12, 0.5  ;;  %v2178_v43 = vmul.f32 0.2, %v1240_v38  ;;  %8313 = vmatmul.msk.bf16.gmra.mxu2 %vm414_vm0, %v11138_v57 }
 0x199   : > { %v4113_v4 = vsel %vm3953_vm8, 0.0, %v3793_v12  ;;  %v8718_v50 = vsel %vm3953_vm8, 1.0, %v9391_v10  ;;  %vm2527_vm9 = vcmp.gt.f32.partialorder %v2367_v54, 0.5  ;;  %v11149_v38 = vadd.f32 %v739_v61, %v11123_v28 }
 0x19a   : > { %v6584_v27 = vadd.f32 %v6424_v49, %v10979_v20  ;;  %v11144_v46 = vadd.f32 %v8718_v50, %v10996_v30  ;;  %v5050_v39 = vmul.f32 0.2, %v4113_v4  ;;  %v2687_v9 = vsel %vm2527_vm9, 0.0, %v2367_v54  ;;  %v11159_v30 = vpop.f32.mrf.mxu3  ;;  %8328 = vmatmul.msk.bf16.gmra.mxu3 %vm414_vm0, %v10792_v42 }
 0x19b   : > { %v8549_v12 = vsel %vm2527_vm9, 1.0, %v9391_v10  ;;  %v3624_v1 = vmul.f32 0.2, %v2687_v9  ;;  %v2338_v3 = vadd.f32 %v2178_v43, %v11086_v21  ;;  %v11157_v20 = vadd.f32 %v11011_v59, %v9590_v47 }
 0x19c   : > { %vm6744_vm10 = vcmp.gt.f32.partialorder %v6584_v27, 0.5  ;;  %v5210_v37 = vadd.f32 %v5050_v39, %v10999_v6  ;;  %v11153_v22 = vadd.f32 %v8549_v12, %v11009_v2  ;;  %vm1071_vm13 = vcmp.gt.f32.partialorder %v11149_v38, 0.5 }
 0x19d   : > { %v8995_v54 = vsel %vm6744_vm10, 1.0, %v9391_v10  ;;  %v3784_v61 = vadd.f32 %v3624_v1, %v11064_v40  ;;  %vm2498_vm11 = vcmp.gt.f32.partialorder %v2338_v3, 0.5  ;;  %vm1123_vm2 = vcmp.gt.f32.partialorder %v11157_v20, 0.5 }
 0x19e   : > { %v11166_v49 = vadd.f32 %v8995_v54, %v8990_v19  ;;  %vm5370_vm14 = vcmp.gt.f32.partialorder %v5210_v37, 0.5  ;;  %v2658_v2 = vsel %vm2498_vm11, 0.0, %v2338_v3  ;;  %v8520_v4 = vsel %vm2498_vm11, 1.0, %v9391_v10  ;;  %v583_v54 = vpop.f32.mrf.mxu1 }
 0x19f   : > { %v5530_v47 = vsel %vm5370_vm14, 0.0, %v5210_v37  ;;  %v8878_v59 = vsel %vm5370_vm14, 1.0, %v9391_v10  ;;  %vm3944_vm15 = vcmp.gt.f32.partialorder %v3784_v61, 0.5  ;;  %v11171_v50 = vadd.f32 %v8520_v4, %v11078_v7 }
 0x1a0   : > { %v11174_v43 = vadd.f32 %v8878_v59, %v11033_v53  ;;  %v6467_v27 = vmul.f32 0.2, %v5530_v47  ;;  %v4104_v39 = vsel %vm3944_vm15, 0.0, %v3784_v61  ;;  %v8709_v9 = vsel %vm3944_vm15, 1.0, %v9391_v10 }
 0x1a1   : > { %v11178_v19 = vadd.f32 %v8709_v9, %v11041_v62  ;;  %v5041_v12 = vmul.f32 0.2, %v4104_v39  ;;  %v3595_v1 = vmul.f32 0.2, %v2658_v2  ;;  %v1231_v37 = vsel %vm1071_vm13, 0.0, %v11149_v38 }
 0x1a2   : > { %v6627_v3 = vadd.f32 %v6467_v27, %v10999_v6  ;;  %v11187_v53 = vsel %vm1071_vm13, 1.0, %v9391_v10  ;;  %v2169_v7 = vmul.f32 0.2, %v1231_v37  ;;  %v1283_v2 = vsel %vm1123_vm2, 0.0, %v11157_v20 }
 0x1a3   : > { %v5201_v62 = vadd.f32 %v5041_v12, %v11064_v40  ;;  %v3755_v61 = vadd.f32 %v3595_v1, %v11086_v21  ;;  %v8403_v4 = vsel %vm1123_vm2, 1.0, %v9391_v10  ;;  %v2221_v59 = vmul.f32 0.2, %v1283_v2 }
 0x1a4   : > { %vm6787_vm1 = vcmp.gt.f32.partialorder %v6627_v3, 0.5  ;;  %v2329_v6 = vadd.f32 %v2169_v7, %v11149_v38  ;;  %v1958_v47 = vadd.f32 %v8403_v4, %v11057_v26  ;;  %v11198_v39 = vadd.f32 %v583_v54, %v9855_v5 }
 0x1a5   : > { %v9038_v27 = vsel %vm6787_vm1, 1.0, %v9391_v10  ;;  %vm5361_vm4 = vcmp.gt.f32.partialorder %v5201_v62, 0.5  ;;  %vm3915_vm5 = vcmp.gt.f32.partialorder %v3755_v61, 0.5 }
 0x1a6   : > { %v11201_v9 = vadd.f32 %v9038_v27, %v11067_v32  ;;  %v5521_v12 = vsel %vm5361_vm4, 0.0, %v5201_v62  ;;  %v8869_v1 = vsel %vm5361_vm4, 1.0, %v9391_v10  ;;  %v4075_v37 = vsel %vm3915_vm5, 0.0, %v3755_v61 }
 0x1a7   : > { %v11205_v3 = vadd.f32 %v8869_v1, %v11072_v15  ;;  %v6458_v7 = vmul.f32 0.2, %v5521_v12  ;;  %v8680_v26 = vsel %vm3915_vm5, 1.0, %v9391_v10  ;;  %v5012_v2 = vmul.f32 0.2, %v4075_v37 }
 0x1a8   : > { %v11209_v4 = vadd.f32 %v8680_v26, %v11096_v60  ;;  %vm2489_vm6 = vcmp.gt.f32.partialorder %v2329_v6, 0.5  ;;  %v1959_v54 = vadd.f32 %v9646_v13, %v1958_v47  ;;  %v2381_v32 = vadd.f32 %v2221_v59, %v11157_v20 }
 0x1a9   : > { %v6618_v62 = vadd.f32 %v6458_v7, %v11064_v40  ;;  %v5172_v27 = vadd.f32 %v5012_v2, %v11086_v21  ;;  %v2649_v61 = vsel %vm2489_vm6, 0.0, %v2329_v6  ;;  %v11216_v15 = vsel %vm2489_vm6, 1.0, %v9391_v10 }
 0x1aa   : > { %v3586_v12 = vmul.f32 0.2, %v2649_v61  ;;  %v1960_v1 = vadd.f32 %v9762_v52, %v1959_v54  ;;  %vm2541_vm7 = vcmp.gt.f32.partialorder %v2381_v32, 0.5  ;;  %vm1114_vm8 = vcmp.gt.f32.partialorder %v11198_v39, 0.5 }
 0x1ab   : > { %vm6778_vm9 = vcmp.gt.f32.partialorder %v6618_v62, 0.5  ;;  %vm5332_vm10 = vcmp.gt.f32.partialorder %v5172_v27, 0.5  ;;  %v2701_v60 = vsel %vm2541_vm7, 0.0, %v2381_v32  ;;  %v8563_v13 = vsel %vm2541_vm7, 1.0, %v9391_v10 }
 0x1ac   : > { %v9029_v47 = vsel %vm6778_vm9, 1.0, %v9391_v10  ;;  %v5492_v40 = vsel %vm5332_vm10, 0.0, %v5172_v27  ;;  %v8840_v59 = vsel %vm5332_vm10, 1.0, %v9391_v10  ;;  %v3746_v6 = vadd.f32 %v3586_v12, %v11149_v38 }
 0x1ad   : > { %v11225_v37 = vadd.f32 %v9029_v47, %v11101_v58  ;;  %v11228_v52 = vadd.f32 %v8840_v59, %v11129_v56  ;;  %v6429_v7 = vmul.f32 0.2, %v5492_v40  ;;  %v1961_v26 = vadd.f32 %v9660_v24, %v1960_v1 }
 0x1ae   : > { %vm3906_vm11 = vcmp.gt.f32.partialorder %v3746_v6, 0.5  ;;  %v3376_v2 = vadd.f32 %v8563_v13, %v11106_v41  ;;  %v3638_v54 = vmul.f32 0.2, %v2701_v60  ;;  %v1274_v32 = vsel %vm1114_vm8, 0.0, %v11198_v39 }
 0x1af   : > { %v6589_v62 = vadd.f32 %v6429_v7, %v11086_v21  ;;  %v4066_v27 = vsel %vm3906_vm11, 0.0, %v3746_v6  ;;  %v11237_v58 = vsel %vm3906_vm11, 1.0, %v9391_v10  ;;  %v1962_v56 = vadd.f32 %v9790_v63, %v1961_v26 }
 0x1b0   : > { %v5003_v61 = vmul.f32 0.2, %v4066_v27  ;;  %v3377_v12 = vadd.f32 %v9653_v17, %v3376_v2  ;;  %v3798_v24 = vadd.f32 %v3638_v54, %v11157_v20  ;;  %v8394_v41 = vsel %vm1114_vm8, 1.0, %v9391_v10 }
 0x1b1   : > { %vm6749_vm13 = vcmp.gt.f32.partialorder %v6589_v62, 0.5  ;;  %v1963_v1 = vadd.f32 %v9934_v29, %v1962_v56  ;;  %v11247_v21 = vadd.f32 %v8394_v41, %v11109_v34  ;;  %v2212_v60 = vmul.f32 0.2, %v1274_v32 }
 0x1b2   : > { %v9000_v13 = vsel %vm6749_vm13, 1.0, %v9391_v10  ;;  %v5163_v63 = vadd.f32 %v5003_v61, %v11149_v38  ;;  %v3378_v47 = vadd.f32 %v9834_v0, %v3377_v12  ;;  %vm3958_vm14 = vcmp.gt.f32.partialorder %v3798_v24, 0.5 }
 0x1b3   : > { %v11253_v17 = vadd.f32 %v9000_v13, %v11166_v49  ;;  %v1964_v40 = vadd.f32 %v10119_v44, %v1963_v1  ;;  %v4118_v59 = vsel %vm3958_vm14, 0.0, %v3798_v24  ;;  %v8723_v6 = vsel %vm3958_vm14, 1.0, %v9391_v10  ;;  %v15410_v1 = vld [vmem:[#allocation37_spill] sm:$0xff]  ;;  %v15411_v13 = vld [vmem:[#allocation12_spill] sm:$0xff] }
 0x1b4   : > { %vm5323_vm15 = vcmp.gt.f32.partialorder %v5163_v63, 0.5  ;;  %v3379_v29 = vadd.f32 %v9683_v36, %v3378_v47  ;;  %v4793_v34 = vadd.f32 %v8723_v6, %v11144_v46  ;;  %v5055_v7 = vmul.f32 0.2, %v4118_v59  ;;  %v15412_v47 = vld [vmem:[#allocation4_spill] sm:$0xff] }
 0x1b5   : > { %v5483_v26 = vsel %vm5323_vm15, 0.0, %v5163_v63  ;;  %v11260_v2 = vsel %vm5323_vm15, 1.0, %v9391_v10  ;;  %v1965_v0 = vadd.f32 %v10279_v48, %v1964_v40  ;;  %v2372_v49 = vadd.f32 %v2212_v60, %v11198_v39 }
 0x1b6   : > { %v6420_v54 = vmul.f32 0.2, %v5483_v26  ;;  %v3380_v44 = vadd.f32 %v9846_v11, %v3379_v29  ;;  %v4794_v32 = vadd.f32 %v9680_v35, %v4793_v34  ;;  %v5215_v62 = vadd.f32 %v5055_v7, %v11157_v20  ;;  %v15414_v29 = vld [vmem:[#allocation47_spill] sm:$0xff] }
 0x1b7   : > { %v1966_v36 = vadd.f32 %v10411_v25, %v1965_v0  ;;  %vm2532_vm2 = vcmp.gt.f32.partialorder %v2372_v49, 0.5  ;;  %v11270_v46 = vadd.f32 %v11135_v55, %v10815_v33  ;;  %v11274_v27 = vadd.f32 %v11159_v30, %v11123_v28  ;;  %v15415_v7 = vld [vmem:[#allocation23_spill] sm:$0xff]  ;;  %v15416_v0 = vld [vmem:[#allocation14_spill] sm:$0xff] }
 0x1b8   : > { %v6580_v48 = vadd.f32 %v6420_v54, %v11149_v38  ;;  %v3381_v56 = vadd.f32 %v10001_v18, %v3380_v44  ;;  %v4795_v11 = vadd.f32 %v9850_v14, %v4794_v32  ;;  %vm5375_vm1 = vcmp.gt.f32.partialorder %v5215_v62, 0.5  ;;  %v15409_v18 = vld [vmem:[#allocation62_spill] sm:$0xff]  ;;  %v15417_v44 = vld [vmem:[#allocation11_spill] sm:$0xff] }
 0x1b9   : > { %v1967_v35 = vadd.f32 %v10572_v31, %v1966_v36  ;;  %v5535_v61 = vsel %vm5375_vm1, 0.0, %v5215_v62  ;;  %v8883_v25 = vsel %vm5375_vm1, 1.0, %v9391_v10  ;;  %v2692_v12 = vsel %vm2532_vm2, 0.0, %v2372_v49 }
 0x1ba   : > { %vm6740_vm4 = vcmp.gt.f32.partialorder %v6580_v48, 0.5  ;;  %v3382_v55 = vadd.f32 %v10203_v16, %v3381_v56  ;;  %v4796_v30 = vadd.f32 %v9728_v8, %v4795_v11  ;;  %v6210_v24 = vadd.f32 %v8883_v25, %v11174_v43  ;;  %v15413_v8 = vld [vmem:[#allocation2_spill] sm:$0xff]  ;;  %v15419_v48 = vld [vmem:[#allocation31_spill] sm:$0xff]  ;;  %v11313_v25 = vpop.f32.mrf.mxu0 }
 0x1bb   : > { %v11286_v38 = vsel %vm6740_vm4, 1.0, %v9391_v10  ;;  %v1968_v14 = vadd.f32 %v15409_v18, %v1967_v35  ;;  %v6472_v41 = vmul.f32 0.2, %v5535_v61  ;;  %v8554_v31 = vsel %vm2532_vm2, 1.0, %v9391_v10  ;;  %v15420_v11 = vld [vmem:[#allocation7_spill] sm:$0xff] }
 0x1bc   : > { %v3383_v60 = vadd.f32 %v15410_v1, %v3382_v55  ;;  %v4797_v63 = vadd.f32 %v15411_v13, %v4796_v30  ;;  %v6211_v40 = vadd.f32 %v15412_v47, %v6210_v24  ;;  %v11295_v16 = vadd.f32 %v8554_v31, %v11153_v22  ;;  %v15421_v24 = vld [vmem:[#allocation64_spill] sm:$0xff]  ;;  %v15423_v31 = vld [vmem:[#allocation15_spill] sm:$0xff]  ;;  %v15424_v13 = vld [vmem:[#allocation6_spill] sm:$0xff] }
 0x1bd   : > { %v1969_v43 = vadd.f32 %v15413_v8, %v1968_v14  ;;  %v6632_v59 = vadd.f32 %v6472_v41, %v11157_v20  ;;  %v3629_v6 = vmul.f32 0.2, %v2692_v12  ;;  %vm1085_vm5 = vcmp.gt.f32.partialorder %v11270_v46, 0.5  ;;  %v15418_v20 = vld [vmem:[#allocation55_spill] sm:$0xff]  ;;  %v15422_v14 = vld [vmem:[#allocation40_spill] sm:$0xff] }
 0x1be   : > { %v3384_v34 = vadd.f32 %v15414_v29, %v3383_v60  ;;  %v4798_v26 = vadd.f32 %v15415_v7, %v4797_v63  ;;  %v6212_v49 = vadd.f32 %v15416_v0, %v6211_v40  ;;  %v1245_v54 = vsel %vm1085_vm5, 0.0, %v11270_v46  ;;  %v15428_v7 = vld [vmem:[#allocation16_spill] sm:$0xff] }
 0x1bf   : > { %v11305_v32 = vadd.f32 %v15417_v44, %v1969_v43  ;;  %vm6792_vm6 = vcmp.gt.f32.partialorder %v6632_v59, 0.5  ;;  %v3789_v22 = vadd.f32 %v3629_v6, %v11198_v39  ;;  %v8365_v62 = vsel %vm1085_vm5, 1.0, %v9391_v10  ;;  %v15427_v6 = vld [vmem:[#allocation25_spill] sm:$0xff] }
 0x1c0   : > { %v3385_v36 = vadd.f32 %v15418_v20, %v3384_v34  ;;  %v4799_v56 = vadd.f32 %v15419_v48, %v4798_v26  ;;  %v6213_v35 = vadd.f32 %v15420_v11, %v6212_v49  ;;  %v9043_v61 = vsel %vm6792_vm6, 1.0, %v9391_v10  ;;  %v15429_v49 = vld [vmem:[#allocation56_spill] sm:$0xff]  ;;  %v15430_v44 = vld [vmem:[#allocation33_spill] sm:$0xff]  ;;  %v586_v11 = vpop.f32.mrf.mxu1 }
 0x1c1   : > { %v7467_v12 = vadd.f32 %v9043_v61, %v11201_v9  ;;  %vm3949_vm7 = vcmp.gt.f32.partialorder %v3789_v22, 0.5  ;;  %v11317_v55 = vadd.f32 %v8365_v62, %v11132_v51  ;;  %v2183_v30 = vmul.f32 0.2, %v1245_v54  ;;  %v15425_v9 = vld [vmem:[#allocation3_spill] sm:$0xff]  ;;  %v15426_v51 = vld [vmem:[#allocation48_spill] sm:$0xff] }
 0x1c2   : > { %v3386_v18 = vadd.f32 %v15421_v24, %v3385_v36  ;;  %v4800_v41 = vadd.f32 %v15422_v14, %v4799_v56  ;;  %v6214_v1 = vadd.f32 %v15423_v31, %v6213_v35  ;;  %v4109_v60 = vsel %vm3949_vm7, 0.0, %v3789_v22  ;;  %v15431_v36 = vld [vmem:[#allocation9_spill] sm:$0xff]  ;;  %v15432_v35 = vld [vmem:[#allocation67_spill] sm:$0xff]  ;;  %v15434_v14 = vld [vmem:[#allocation18_spill] sm:$0xff] }
 0x1c3   : > { %v7468_v63 = vadd.f32 %v15424_v13, %v7467_v12  ;;  %v8714_v47 = vsel %vm3949_vm7, 1.0, %v9391_v10  ;;  %v5046_v40 = vmul.f32 0.2, %v4109_v60  ;;  %v2343_v8 = vadd.f32 %v2183_v30, %v11270_v46  ;;  %v15433_v12 = vld [vmem:[#allocation41_spill] sm:$0xff] }
 0x1c4   : > { %v11326_v43 = vadd.f32 %v15425_v9, %v3386_v18  ;;  %v4801_v59 = vadd.f32 %v15426_v51, %v4800_v41  ;;  %v6215_v29 = vadd.f32 %v15427_v6, %v6214_v1  ;;  %v11331_v34 = vadd.f32 %v8714_v47, %v11178_v19  ;;  %v15437_v6 = vld [vmem:[#allocation58_spill] sm:$0xff] }
 0x1c5   : > { %v7469_v26 = vadd.f32 %v15428_v7, %v7468_v63  ;;  %v5206_v0 = vadd.f32 %v5046_v40, %v11198_v39  ;;  %vm2503_vm8 = vcmp.gt.f32.partialorder %v2343_v8, 0.5  ;;  %vm1076_vm9 = vcmp.gt.f32.partialorder %v11274_v27, 0.5 }
 0x1c6   : > { %v4802_v54 = vadd.f32 %v15429_v49, %v4801_v59  ;;  %v6216_v22 = vadd.f32 %v15430_v44, %v6215_v29  ;;  %v2663_v62 = vsel %vm2503_vm8, 0.0, %v2343_v8  ;;  %v8525_v20 = vsel %vm2503_vm8, 1.0, %v9391_v10  ;;  %v11363_v8 = vpop.f32.mrf.mxu0  ;;  %8344 = vmatmul.msk.bf16.gmra.mxu0 %vm414_vm0, %v10792_v42  ;;  %v15438_v49 = vld [vmem:[#allocation35_spill] sm:$0xff] }
 0x1c7   : > { %v7470_v48 = vadd.f32 %v15431_v36, %v7469_v26  ;;  %vm5366_vm10 = vcmp.gt.f32.partialorder %v5206_v0, 0.5  ;;  %v11341_v19 = vadd.f32 %v8525_v20, %v11171_v50  ;;  %v3600_v56 = vmul.f32 0.2, %v2663_v62  ;;  %v15435_v50 = vld [vmem:[#allocation50_spill] sm:$0xff]  ;;  %v660_v20 = vpop.f32.mrf.mxu2  ;;  %v744_v36 = vpop.f32.mrf.mxu3 }
 0x1c8   : > { %v11344_v61 = vadd.f32 %v15432_v35, %v4802_v54  ;;  %v6217_v30 = vadd.f32 %v15433_v12, %v6216_v22  ;;  %v5526_v24 = vsel %vm5366_vm10, 0.0, %v5206_v0  ;;  %v8874_v18 = vsel %vm5366_vm10, 1.0, %v9391_v10  ;;  %v15439_v22 = vld [vmem:[#allocation69_spill] sm:$0xff] }
 0x1c9   : > { %v7471_v41 = vadd.f32 %v15434_v14, %v7470_v48  ;;  %v11350_v31 = vadd.f32 %v8874_v18, %v11205_v3  ;;  %v6463_v1 = vmul.f32 0.2, %v5526_v24  ;;  %v3760_v60 = vadd.f32 %v3600_v56, %v11270_v46  ;;  %v15436_v3 = vld [vmem:[#allocation27_spill] sm:$0xff]  ;;  %v15440_v48 = vld [vmem:[#allocation44_spill] sm:$0xff] }
 0x1ca   : > { %v6218_v13 = vadd.f32 %v15435_v50, %v6217_v30  ;;  %v1236_v63 = vsel %vm1076_vm9, 0.0, %v11274_v27  ;;  %v8356_v47 = vsel %vm1076_vm9, 1.0, %v9391_v10  ;;  %v11361_v40 = vadd.f32 %v586_v11, %v9855_v5  ;;  %v15441_v18 = vld [vmem:[#allocation52_spill] sm:$0xff] }
 0x1cb   : > { %v7472_v9 = vadd.f32 %v15436_v3, %v7471_v41  ;;  %v6623_v51 = vadd.f32 %v6463_v1, %v11198_v39  ;;  %vm3920_vm11 = vcmp.gt.f32.partialorder %v3760_v60, 0.5  ;;  %v11370_v59 = vadd.f32 %v8356_v47, %v11187_v53 }
 0x1cc   : > { %v6219_v29 = vadd.f32 %v15437_v6, %v6218_v13  ;;  %v4080_v7 = vsel %vm3920_vm11, 0.0, %v3760_v60  ;;  %v8685_v26 = vsel %vm3920_vm11, 1.0, %v9391_v10  ;;  %v2174_v0 = vmul.f32 0.2, %v1236_v63  ;;  %v15442_v63 = vld [vmem:[#allocation60_spill] sm:$0xff] }
 0x1cd   : > { %v7473_v54 = vadd.f32 %v15438_v49, %v7472_v9  ;;  %vm6783_vm13 = vcmp.gt.f32.partialorder %v6623_v51, 0.5  ;;  %v11376_v44 = vadd.f32 %v8685_v26, %v11209_v4  ;;  %v5017_v42 = vmul.f32 0.2, %v4080_v7  ;;  %v588_v51 = vpop.f32.mrf.mxu1 }
 0x1ce   : > { %v11379_v62 = vadd.f32 %v15439_v22, %v6219_v29  ;;  %v9034_v39 = vsel %vm6783_vm13, 1.0, %v9391_v10  ;;  %v2334_v53 = vadd.f32 %v2174_v0, %v11274_v27  ;;  %vm1119_vm14 = vcmp.gt.f32.partialorder %v11361_v40, 0.5 }
 0x1cf   : > { %v7474_v56 = vadd.f32 %v15440_v48, %v7473_v54  ;;  %v11386_v11 = vadd.f32 %v9034_v39, %v11225_v37  ;;  %v5177_v4 = vadd.f32 %v5017_v42, %v11270_v46  ;;  %v1279_v35 = vsel %vm1119_vm14, 0.0, %v11361_v40  ;;  %v11438_v48 = vld [vmem:[%s9478_s30 + $0x70] sm:$0xff] }
 0x1d0   : > { %vm2494_vm15 = vcmp.gt.f32.partialorder %v2334_v53, 0.5  ;;  %v8399_v12 = vsel %vm1119_vm14, 1.0, %v9391_v10  ;;  %v2217_v30 = vmul.f32 0.2, %v1279_v35  ;;  %v11392_v24 = vperm.slane %v10812_v23, 4 }
 0x1d1   : > { %v7475_v14 = vadd.f32 %v15441_v18, %v7474_v56  ;;  %vm5337_vm2 = vcmp.gt.f32.partialorder %v5177_v4, 0.5  ;;  %v2654_v41 = vsel %vm2494_vm15, 0.0, %v2334_v53  ;;  %v8516_v1 = vsel %vm2494_vm15, 1.0, %v9391_v10 }
 0x1d2   : > { %v5497_v60 = vsel %vm5337_vm2, 0.0, %v5177_v4  ;;  %v8845_v37 = vsel %vm5337_vm2, 1.0, %v9391_v10  ;;  %v11398_v50 = vadd.f32 %v8516_v1, %v11216_v15  ;;  %v3591_v13 = vmul.f32 0.2, %v2654_v41  ;;  %v15443_v15 = vld [vmem:[#allocation70_spill] sm:$0xff] }
 0x1d3   : > { %v7476_v47 = vadd.f32 %v15442_v63, %v7475_v14  ;;  %v11402_v3 = vadd.f32 %v8845_v37, %v11228_v52  ;;  %v6434_v23 = vmul.f32 0.2, %v5497_v60  ;;  %v11405_v9 = vadd.f32 %v8399_v12, %v11247_v21 }
 0x1d4   : > { %v3751_v6 = vadd.f32 %v3591_v13, %v11274_v27  ;;  %v2377_v29 = vadd.f32 %v2217_v30, %v11361_v40  ;;  %v11411_v7 = vadd.f32 %v11313_v25, %v11392_v24  ;;  %vm2096_vm1 = vcmask 523264  }
 0x1d5   : > { %v11414_v26 = vadd.f32 %v15443_v15, %v7476_v47  ;;  %v6594_v52 = vadd.f32 %v6434_v23, %v11270_v46  ;;  %v11418_v0 = vadd.f32 %v660_v20, %v10815_v33  ;;  %v11421_v21 = vadd.f32 %v744_v36, %v11123_v28  ;;  %v11433_v20 = vpop.f32.mrf.mxu2  ;;  %v11435_v36 = vpop.f32.mrf.mxu3  ;;  %8314 = vmatmul.msk.bf16.gmra.mxu2 %vm414_vm0, %v11438_v48 }
 0x1d6   : > { %vm3911_vm4 = vcmp.gt.f32.partialorder %v3751_v6, 0.5  ;;  %vm2537_vm5 = vcmp.gt.f32.partialorder %v2377_v29, 0.5  ;;  %vm1072_vm6 = vcmp.gt.f32.partialorder %v11411_v7, 0.5  ;;  %v11425_v25 = vadd.f32 %v588_v51, %v9855_v5  ;;  %8329 = vmatmul.msk.bf16.gmra.mxu3 %vm414_vm0, %v11138_v57 }
 0x1d7   : > { %vm6754_vm7 = vcmp.gt.f32.partialorder %v6594_v52, 0.5  ;;  %v4071_v49 = vsel %vm3911_vm4, 0.0, %v3751_v6  ;;  %v8676_v54 = vsel %vm3911_vm4, 1.0, %v9391_v10  ;;  %v2697_v42 = vsel %vm2537_vm5, 0.0, %v2377_v29 }
 0x1d8   : > { %v9005_v46 = vsel %vm6754_vm7, 1.0, %v9391_v10  ;;  %v11430_v22 = vadd.f32 %v8676_v54, %v11237_v58  ;;  %v5008_v39 = vmul.f32 0.2, %v4071_v49  ;;  %v8559_v53 = vsel %vm2537_vm5, 1.0, %v9391_v10 }
 0x1d9   : > { %v11445_v56 = vadd.f32 %v9005_v46, %v11253_v17  ;;  %v11448_v58 = vadd.f32 %v8559_v53, %v11295_v16  ;;  %v3634_v4 = vmul.f32 0.2, %v2697_v42  ;;  %v1232_v35 = vsel %vm1072_vm6, 0.0, %v11411_v7 }
 0x1da   : > { %v5168_v12 = vadd.f32 %v5008_v39, %v11274_v27  ;;  %v8352_v30 = vsel %vm1072_vm6, 1.0, %v9391_v10  ;;  %v2170_v18 = vmul.f32 0.2, %v1232_v35  ;;  %vm1090_vm8 = vcmp.gt.f32.partialorder %v11418_v0, 0.5 }
 0x1db   : > { %v3794_v17 = vadd.f32 %v3634_v4, %v11361_v40  ;;  %v11460_v14 = vsel %vm2096_vm1, %v8352_v30, 0.0  ;;  %v1250_v16 = vsel %vm1090_vm8, 0.0, %v11418_v0  ;;  %v8370_v41 = vsel %vm1090_vm8, 1.0, %v9391_v10 }
 0x1dc   : > { %vm5328_vm9 = vcmp.gt.f32.partialorder %v5168_v12, 0.5  ;;  %v2330_v1 = vadd.f32 %v2170_v18, %v11411_v7  ;;  %v11466_v60 = vadd.f32 %v8370_v41, %v11317_v55  ;;  %v2188_v37 = vmul.f32 0.2, %v1250_v16 }
 0x1dd   : > { %v5488_v13 = vsel %vm5328_vm9, 0.0, %v5168_v12  ;;  %v8836_v63 = vsel %vm5328_vm9, 1.0, %v9391_v10  ;;  %vm3954_vm10 = vcmp.gt.f32.partialorder %v3794_v17, 0.5  ;;  %vm1081_vm11 = vcmp.gt.f32.partialorder %v11421_v21, 0.5 }
 0x1de   : > { %v11471_v47 = vadd.f32 %v8836_v63, %v11260_v2  ;;  %v6425_v23 = vmul.f32 0.2, %v5488_v13  ;;  %v4114_v51 = vsel %vm3954_vm10, 0.0, %v3794_v17  ;;  %v8719_v6 = vsel %vm3954_vm10, 1.0, %v9391_v10 }
 0x1df   : > { %v11475_v29 = vadd.f32 %v8719_v6, %v11331_v34  ;;  %v5051_v15 = vmul.f32 0.2, %v4114_v51  ;;  %vm2490_vm13 = vcmp.gt.f32.partialorder %v2330_v1, 0.5  ;;  %v2348_v55 = vadd.f32 %v2188_v37, %v11418_v0 }
 0x1e0   : > { %v6585_v52 = vadd.f32 %v6425_v23, %v11274_v27  ;;  %v2650_v49 = vsel %vm2490_vm13, 0.0, %v2330_v1  ;;  %v8512_v54 = vsel %vm2490_vm13, 1.0, %v9391_v10  ;;  %v1241_v2 = vsel %vm1081_vm11, 0.0, %v11421_v21 }
 0x1e1   : > { %v5211_v42 = vadd.f32 %v5051_v15, %v11361_v40  ;;  %v11485_v46 = vsel %vm2096_vm1, %v8512_v54, 0.0  ;;  %v3587_v34 = vmul.f32 0.2, %v2650_v49  ;;  %vm2508_vm14 = vcmp.gt.f32.partialorder %v2348_v55, 0.5 }
 0x1e2   : > { %vm6745_vm15 = vcmp.gt.f32.partialorder %v6585_v52, 0.5  ;;  %v2668_v39 = vsel %vm2508_vm14, 0.0, %v2348_v55  ;;  %v8530_v53 = vsel %vm2508_vm14, 1.0, %v9391_v10  ;;  %v8361_v27 = vsel %vm1081_vm11, 1.0, %v9391_v10 }
 0x1e3   : > { %v8996_v4 = vsel %vm6745_vm15, 1.0, %v9391_v10  ;;  %vm5371_vm2 = vcmp.gt.f32.partialorder %v5211_v42, 0.5  ;;  %v3747_v35 = vadd.f32 %v3587_v34, %v11411_v7  ;;  %v11494_v12 = vadd.f32 %v8530_v53, %v11341_v19 }
 0x1e4   : > { %v11497_v30 = vadd.f32 %v8996_v4, %v11286_v38  ;;  %v5531_v18 = vsel %vm5371_vm2, 0.0, %v5211_v42  ;;  %v8879_v17 = vsel %vm5371_vm2, 1.0, %v9391_v10  ;;  %v3605_v16 = vmul.f32 0.2, %v2668_v39 }
 0x1e5   : > { %v11501_v41 = vadd.f32 %v8879_v17, %v11350_v31  ;;  %v6468_v1 = vmul.f32 0.2, %v5531_v18  ;;  %vm3907_vm4 = vcmp.gt.f32.partialorder %v3747_v35, 0.5  ;;  %v11504_v37 = vadd.f32 %v8361_v27, %v11370_v59 }
 0x1e6   : > { %v4067_v13 = vsel %vm3907_vm4, 0.0, %v3747_v35  ;;  %v8672_v63 = vsel %vm3907_vm4, 1.0, %v9391_v10  ;;  %v3765_v19 = vadd.f32 %v3605_v16, %v11418_v0  ;;  %v2179_v23 = vmul.f32 0.2, %v1241_v2 }
 0x1e7   : > { %v6628_v38 = vadd.f32 %v6468_v1, %v11361_v40  ;;  %v11510_v51 = vsel %vm2096_vm1, %v8672_v63, 0.0  ;;  %v5004_v6 = vmul.f32 0.2, %v4067_v13  ;;  %vm1124_vm5 = vcmp.gt.f32.partialorder %v11425_v25, 0.5 }
 0x1e8   : > { %vm3925_vm6 = vcmp.gt.f32.partialorder %v3765_v19, 0.5  ;;  %v2339_v31 = vadd.f32 %v2179_v23, %v11421_v21  ;;  %v1284_v59 = vsel %vm1124_vm5, 0.0, %v11425_v25  ;;  %v8404_v15 = vsel %vm1124_vm5, 1.0, %v9391_v10 }
 0x1e9   : > { %vm6788_vm7 = vcmp.gt.f32.partialorder %v6628_v38, 0.5  ;;  %v5164_v55 = vadd.f32 %v5004_v6, %v11411_v7  ;;  %v4085_v52 = vsel %vm3925_vm6, 0.0, %v3765_v19  ;;  %v8690_v49 = vsel %vm3925_vm6, 1.0, %v9391_v10 }
 0x1ea   : > { %v9039_v40 = vsel %vm6788_vm7, 1.0, %v9391_v10  ;;  %v11520_v54 = vadd.f32 %v8690_v49, %v11376_v44  ;;  %v5022_v2 = vmul.f32 0.2, %v4085_v52  ;;  %vm2499_vm8 = vcmp.gt.f32.partialorder %v2339_v31, 0.5 }
 0x1eb   : > { %v11523_v42 = vadd.f32 %v9039_v40, %v11386_v11  ;;  %vm5324_vm9 = vcmp.gt.f32.partialorder %v5164_v55, 0.5  ;;  %v2659_v34 = vsel %vm2499_vm8, 0.0, %v2339_v31  ;;  %v8521_v39 = vsel %vm2499_vm8, 1.0, %v9391_v10 }
 0x1ec   : > { %v5484_v53 = vsel %vm5324_vm9, 0.0, %v5164_v55  ;;  %v8832_v27 = vsel %vm5324_vm9, 1.0, %v9391_v10  ;;  %v5182_v4 = vadd.f32 %v5022_v2, %v11418_v0  ;;  %v11529_v35 = vadd.f32 %v8521_v39, %v11398_v50 }
 0x1ed   : > { %v11532_v44 = vsel %vm2096_vm1, %v8832_v27, 0.0  ;;  %v6421_v18 = vmul.f32 0.2, %v5484_v53  ;;  %v3596_v17 = vmul.f32 0.2, %v2659_v34  ;;  %v11535_v11 = vadd.f32 %v8404_v15, %v11405_v9 }
 0x1ee   : > { %vm5342_vm10 = vcmp.gt.f32.partialorder %v5182_v4, 0.5  ;;  %v2222_v16 = vmul.f32 0.2, %v1284_v59  ;;  %v11539_v1 = vadd.f32 %v11363_v8, %v11392_v24  ;;  %v11543_v13 = vadd.f32 %v11433_v20, %v10815_v33 }
 0x1ef   : > { %v6581_v50 = vadd.f32 %v6421_v18, %v11411_v7  ;;  %v5502_v63 = vsel %vm5342_vm10, 0.0, %v5182_v4  ;;  %v8850_v19 = vsel %vm5342_vm10, 1.0, %v9391_v10  ;;  %v3756_v23 = vadd.f32 %v3596_v17, %v11421_v21 }
 0x1f0   : > { %v11549_v9 = vadd.f32 %v8850_v19, %v11402_v3  ;;  %v6439_v38 = vmul.f32 0.2, %v5502_v63  ;;  %v2382_v6 = vadd.f32 %v2222_v16, %v11425_v25  ;;  %vm1077_vm11 = vcmp.gt.f32.partialorder %v11539_v1, 0.5 }
 0x1f1   : > { %vm6741_vm13 = vcmp.gt.f32.partialorder %v6581_v50, 0.5  ;;  %vm3916_vm14 = vcmp.gt.f32.partialorder %v3756_v23, 0.5  ;;  %v1237_v8 = vsel %vm1077_vm11, 0.0, %v11539_v1  ;;  %v8357_v20 = vsel %vm1077_vm11, 1.0, %v9391_v10 }
 0x1f2   : > { %v8992_v7 = vsel %vm6741_vm13, 1.0, %v9391_v10  ;;  %v6599_v31 = vadd.f32 %v6439_v38, %v11418_v0  ;;  %v4076_v59 = vsel %vm3916_vm14, 0.0, %v3756_v23  ;;  %v8681_v15 = vsel %vm3916_vm14, 1.0, %v9391_v10 }
 0x1f3   : > { %v11559_v3 = vsel %vm2096_vm1, %v8992_v7, 0.0  ;;  %v11562_v55 = vadd.f32 %v8681_v15, %v11430_v22  ;;  %v5013_v52 = vmul.f32 0.2, %v4076_v59  ;;  %vm2542_vm15 = vcmp.gt.f32.partialorder %v2382_v6, 0.5 }
 0x1f4   : > { %vm6759_vm2 = vcmp.gt.f32.partialorder %v6599_v31, 0.5  ;;  %v2702_v49 = vsel %vm2542_vm15, 0.0, %v2382_v6  ;;  %v8564_v40 = vsel %vm2542_vm15, 1.0, %v9391_v10  ;;  %v2098_v2 = vsel %vm2096_vm1, %v8357_v20, 0.0 }
 0x1f5   : > { %v9010_v34 = vsel %vm6759_vm2, 1.0, %v9391_v10  ;;  %v5173_v0 = vadd.f32 %v5013_v52, %v11421_v21  ;;  %v11569_v39 = vadd.f32 %v8564_v40, %v11448_v58  ;;  %v3639_v53 = vmul.f32 0.2, %v2702_v49 }
 0x1f6   : > { %v11572_v27 = vadd.f32 %v9010_v34, %v11445_v56  ;;  %v11575_v22 = vadd.f32 %v2098_v2, %v11460_v14  ;;  %v2175_v4 = vmul.f32 0.2, %v1237_v8  ;;  %vm1095_vm4 = vcmp.gt.f32.partialorder %v11543_v13, 0.5 }
 0x1f7   : > { %vm5333_vm5 = vcmp.gt.f32.partialorder %v5173_v0, 0.5  ;;  %v3799_v18 = vadd.f32 %v3639_v53, %v11425_v25  ;;  %v1255_v17 = vsel %vm1095_vm4, 0.0, %v11543_v13  ;;  %v8375_v16 = vsel %vm1095_vm4, 1.0, %v9391_v10 }
 0x1f8   : > { %v5493_v50 = vsel %vm5333_vm5, 0.0, %v5173_v0  ;;  %v8841_v58 = vsel %vm5333_vm5, 1.0, %v9391_v10  ;;  %v2335_v63 = vadd.f32 %v2175_v4, %v11539_v1  ;;  %v11584_v56 = vadd.f32 %v8375_v16, %v11466_v60 }
 0x1f9   : > { %v11587_v14 = vadd.f32 %v8841_v58, %v11471_v47  ;;  %v6430_v19 = vmul.f32 0.2, %v5493_v50  ;;  %vm3959_vm6 = vcmp.gt.f32.partialorder %v3799_v18, 0.5  ;;  %v2193_v23 = vmul.f32 0.2, %v1255_v17  ;;  %v833_v47 = vpop.f32.mrf.mxu0 }
 0x1fa   : > { %v4119_v38 = vsel %vm3959_vm6, 0.0, %v3799_v18  ;;  %v8724_v6 = vsel %vm3959_vm6, 1.0, %v9391_v10  ;;  %vm2495_vm7 = vcmp.gt.f32.partialorder %v2335_v63, 0.5  ;;  %v11592_v8 = vadd.f32 %v11435_v36, %v11123_v28 }
 0x1fb   : > { %v6590_v20 = vadd.f32 %v6430_v19, %v11421_v21  ;;  %v11596_v7 = vadd.f32 %v8724_v6, %v11475_v29  ;;  %v5056_v60 = vmul.f32 0.2, %v4119_v38  ;;  %v2655_v31 = vsel %vm2495_vm7, 0.0, %v2335_v63  ;;  %v665_v6 = vpop.f32.mrf.mxu2 }
 0x1fc   : > { %v8517_v59 = vsel %vm2495_vm7, 1.0, %v9391_v10  ;;  %v3592_v15 = vmul.f32 0.2, %v2655_v31  ;;  %v2353_v52 = vadd.f32 %v2193_v23, %v11543_v13  ;;  %vm1086_vm8 = vcmp.gt.f32.partialorder %v11592_v8, 0.5 }
 0x1fd   : > { %vm6750_vm9 = vcmp.gt.f32.partialorder %v6590_v20, 0.5  ;;  %v5216_v49 = vadd.f32 %v5056_v60, %v11425_v25  ;;  %v3515_v36 = vsel %vm2096_vm1, %v8517_v59, 0.0  ;;  %v1246_v21 = vsel %vm1086_vm8, 0.0, %v11592_v8  ;;  %v749_v20 = vpop.f32.mrf.mxu3 }
 0x1fe   : > { %v9001_v29 = vsel %vm6750_vm9, 1.0, %v9391_v10  ;;  %v11608_v40 = vadd.f32 %v3515_v36, %v11485_v46  ;;  %v3752_v2 = vadd.f32 %v3592_v15, %v11539_v1  ;;  %vm2513_vm10 = vcmp.gt.f32.partialorder %v2353_v52, 0.5 }
 0x1ff   : > { %v11612_v34 = vadd.f32 %v9001_v29, %v11497_v30  ;;  %vm5376_vm11 = vcmp.gt.f32.partialorder %v5216_v49, 0.5  ;;  %v2673_v0 = vsel %vm2513_vm10, 0.0, %v2353_v52  ;;  %v8535_v53 = vsel %vm2513_vm10, 1.0, %v9391_v10  ;;  %v591_v30 = vpop.f32.mrf.mxu1 }
 0x200   : > { %v5536_v4 = vsel %vm5376_vm11, 0.0, %v5216_v49  ;;  %v8884_v18 = vsel %vm5376_vm11, 1.0, %v9391_v10  ;;  %vm3912_vm13 = vcmp.gt.f32.partialorder %v3752_v2, 0.5  ;;  %v11617_v17 = vadd.f32 %v8535_v53, %v11494_v12 }
 0x201   : > { %v11620_v46 = vadd.f32 %v8884_v18, %v11501_v41  ;;  %v6473_v16 = vmul.f32 0.2, %v5536_v4  ;;  %v4072_v50 = vsel %vm3912_vm13, 0.0, %v3752_v2  ;;  %v8677_v58 = vsel %vm3912_vm13, 1.0, %v9391_v10  ;;  %v11649_v36 = vpop.f32.mrf.mxu0  ;;  %8345 = vmatmul.msk.bf16.gmra.mxu0 %vm414_vm0, %v11138_v57 }
 0x202   : > { %v4932_v63 = vsel %vm2096_vm1, %v8677_v58, 0.0  ;;  %v5009_v19 = vmul.f32 0.2, %v4072_v50  ;;  %v3610_v23 = vmul.f32 0.2, %v2673_v0  ;;  %v8366_v38 = vsel %vm1086_vm8, 1.0, %v9391_v10 }
 0x203   : > { %v6633_v12 = vadd.f32 %v6473_v16, %v11425_v25  ;;  %v11629_v41 = vadd.f32 %v4932_v63, %v11510_v51  ;;  %v11632_v60 = vadd.f32 %v8366_v38, %v11504_v37  ;;  %v2184_v31 = vmul.f32 0.2, %v1246_v21 }
 0x204   : > { %v5169_v59 = vadd.f32 %v5009_v19, %v11539_v1  ;;  %v3770_v15 = vadd.f32 %v3610_v23, %v11543_v13  ;;  %v11637_v52 = vadd.f32 %v591_v30, %v9855_v5  ;;  %v11640_v49 = vadd.f32 %v833_v47, %v11392_v24 }
 0x205   : > { %vm6793_vm14 = vcmp.gt.f32.partialorder %v6633_v12, 0.5  ;;  %v2344_v25 = vadd.f32 %v2184_v31, %v11592_v8  ;;  %v11644_v51 = vadd.f32 %v665_v6, %v10815_v33  ;;  %v11647_v37 = vadd.f32 %v749_v20, %v11123_v28 }
 0x206   : > { %v9044_v21 = vsel %vm6793_vm14, 1.0, %v9391_v10  ;;  %vm5329_vm15 = vcmp.gt.f32.partialorder %v5169_v59, 0.5  ;;  %vm3930_vm2 = vcmp.gt.f32.partialorder %v3770_v15, 0.5  ;;  %vm1129_vm4 = vcmp.gt.f32.partialorder %v11637_v52, 0.5 }
 0x207   : > { %v11656_v47 = vadd.f32 %v9044_v21, %v11523_v42  ;;  %v5489_v29 = vsel %vm5329_vm15, 0.0, %v5169_v59  ;;  %v8837_v2 = vsel %vm5329_vm15, 1.0, %v9391_v10  ;;  %v4090_v0 = vsel %vm3930_vm2, 0.0, %v3770_v15 }
 0x208   : > { %v6349_v53 = vsel %vm2096_vm1, %v8837_v2, 0.0  ;;  %v6426_v4 = vmul.f32 0.2, %v5489_v29  ;;  %v8695_v18 = vsel %vm3930_vm2, 1.0, %v9391_v10  ;;  %v5027_v16 = vmul.f32 0.2, %v4090_v0 }
 0x209   : > { %v11662_v57 = vadd.f32 %v6349_v53, %v11532_v44  ;;  %v11665_v50 = vadd.f32 %v8695_v18, %v11520_v54  ;;  %vm2504_vm5 = vcmp.gt.f32.partialorder %v2344_v25, 0.5  ;;  %v1289_v42 = vsel %vm1129_vm4, 0.0, %v11637_v52 }
 0x20a   : > { %v6586_v58 = vadd.f32 %v6426_v4, %v11539_v1  ;;  %v5187_v30 = vadd.f32 %v5027_v16, %v11543_v13  ;;  %v2664_v63 = vsel %vm2504_vm5, 0.0, %v2344_v25  ;;  %v8526_v19 = vsel %vm2504_vm5, 1.0, %v9391_v10 }
 0x20b   : > { %v11674_v23 = vadd.f32 %v8526_v19, %v11529_v35  ;;  %v3601_v44 = vmul.f32 0.2, %v2664_v63  ;;  %v8409_v54 = vsel %vm1129_vm4, 1.0, %v9391_v10  ;;  %v2227_v38 = vmul.f32 0.2, %v1289_v42  ;;  %v11705_v42 = vld [vmem:[%s9478_s30 + $0x78] sm:$0xff] }
 0x20c   : > { %vm6746_vm6 = vcmp.gt.f32.partialorder %v6586_v58, 0.5  ;;  %vm5347_vm7 = vcmp.gt.f32.partialorder %v5187_v30, 0.5  ;;  %v11680_v6 = vadd.f32 %v8409_v54, %v11535_v11  ;;  %vm1082_vm8 = vcmp.gt.f32.partialorder %v11640_v49, 0.5 }
 0x20d   : > { %v8997_v1 = vsel %vm6746_vm6, 1.0, %v9391_v10  ;;  %v5507_v20 = vsel %vm5347_vm7, 0.0, %v5187_v30  ;;  %v8855_v12 = vsel %vm5347_vm7, 1.0, %v9391_v10  ;;  %v3761_v35 = vadd.f32 %v3601_v44, %v11592_v8 }
 0x20e   : > { %v7606_v31 = vsel %vm2096_vm1, %v8997_v1, 0.0  ;;  %v11688_v59 = vadd.f32 %v8855_v12, %v11549_v9  ;;  %v6444_v15 = vmul.f32 0.2, %v5507_v20  ;;  %v2387_v25 = vadd.f32 %v2227_v38, %v11637_v52 }
 0x20f   : > { %v11692_v11 = vadd.f32 %v7606_v31, %v11559_v3  ;;  %vm3921_vm9 = vcmp.gt.f32.partialorder %v3761_v35, 0.5  ;;  %v1242_v21 = vsel %vm1082_vm8, 0.0, %v11640_v49  ;;  %v8362_v29 = vsel %vm1082_vm8, 1.0, %v9391_v10  ;;  %v11702_v3 = vpop.f32.mrf.mxu2  ;;  %8315 = vmatmul.msk.bf16.gmra.mxu2 %vm414_vm0, %v11705_v42 }
 0x210   : > { %v6604_v2 = vadd.f32 %v6444_v15, %v11543_v13  ;;  %v4081_v0 = vsel %vm3921_vm9, 0.0, %v3761_v35  ;;  %v8686_v53 = vsel %vm3921_vm9, 1.0, %v9391_v10  ;;  %vm2547_vm10 = vcmp.gt.f32.partialorder %v2387_v25, 0.5 }
 0x211   : > { %v11699_v9 = vadd.f32 %v8686_v53, %v11562_v55  ;;  %v5018_v4 = vmul.f32 0.2, %v4081_v0  ;;  %v2707_v18 = vsel %vm2547_vm10, 0.0, %v2387_v25  ;;  %v8569_v16 = vsel %vm2547_vm10, 1.0, %v9391_v10 }
 0x212   : > { %vm6764_vm11 = vcmp.gt.f32.partialorder %v6604_v2, 0.5  ;;  %v11710_v13 = vadd.f32 %v8569_v16, %v11569_v39  ;;  %v3644_v58 = vmul.f32 0.2, %v2707_v18  ;;  %v2100_v30 = vsel %vm2096_vm1, %v8362_v29, 0.0  ;;  %v11724_v39 = vpop.f32.mrf.mxu3  ;;  %8330 = vmatmul.msk.bf16.gmra.mxu3 %vm414_vm0, %v11438_v48 }
 0x213   : > { %v9015_v55 = vsel %vm6764_vm11, 1.0, %v9391_v10  ;;  %v5178_v63 = vadd.f32 %v5018_v4, %v11592_v8  ;;  %v11716_v19 = vadd.f32 %v2100_v30, %v11575_v22  ;;  %v2180_v44 = vmul.f32 0.2, %v1242_v21 }
 0x214   : > { %v11719_v54 = vadd.f32 %v9015_v55, %v11572_v27  ;;  %v3804_v38 = vadd.f32 %v3644_v58, %v11637_v52  ;;  %vm1100_vm13 = vcmp.gt.f32.partialorder %v11644_v51, 0.5  ;;  %vm1091_vm14 = vcmp.gt.f32.partialorder %v11647_v37, 0.5 }
 0x215   : > { %vm5338_vm15 = vcmp.gt.f32.partialorder %v5178_v63, 0.5  ;;  %v2340_v1 = vadd.f32 %v2180_v44, %v11640_v49  ;;  %v1260_v22 = vsel %vm1100_vm13, 0.0, %v11644_v51  ;;  %v8380_v20 = vsel %vm1100_vm13, 1.0, %v9391_v10 }
 0x216   : > { %v5498_v27 = vsel %vm5338_vm15, 0.0, %v5178_v63  ;;  %v8846_v12 = vsel %vm5338_vm15, 1.0, %v9391_v10  ;;  %vm3964_vm2 = vcmp.gt.f32.partialorder %v3804_v38, 0.5  ;;  %v11733_v35 = vadd.f32 %v8380_v20, %v11584_v56 }
 0x217   : > { %v11736_v31 = vadd.f32 %v8846_v12, %v11587_v14  ;;  %v6435_v15 = vmul.f32 0.2, %v5498_v27  ;;  %v4124_v25 = vsel %vm3964_vm2, 0.0, %v3804_v38  ;;  %v8729_v21 = vsel %vm3964_vm2, 1.0, %v9391_v10 }
 0x218   : > { %v11740_v29 = vadd.f32 %v8729_v21, %v11596_v7  ;;  %v5061_v2 = vmul.f32 0.2, %v4124_v25  ;;  %vm2500_vm4 = vcmp.gt.f32.partialorder %v2340_v1, 0.5  ;;  %v2198_v0 = vmul.f32 0.2, %v1260_v22 }
 0x219   : > { %v6595_v53 = vadd.f32 %v6435_v15, %v11592_v8  ;;  %v2660_v4 = vsel %vm2500_vm4, 0.0, %v2340_v1  ;;  %v8522_v18 = vsel %vm2500_vm4, 1.0, %v9391_v10  ;;  %v1251_v56 = vsel %vm1091_vm14, 0.0, %v11647_v37  ;;  %v593_v15 = vpop.f32.mrf.mxu1 }
 0x21a   : > { %v5221_v14 = vadd.f32 %v5061_v2, %v11637_v52  ;;  %v3517_v16 = vsel %vm2096_vm1, %v8522_v18, 0.0  ;;  %v3597_v58 = vmul.f32 0.2, %v2660_v4  ;;  %v2358_v7 = vadd.f32 %v2198_v0, %v11644_v51 }
 0x21b   : > { %vm6755_vm5 = vcmp.gt.f32.partialorder %v6595_v53, 0.5  ;;  %v11751_v30 = vadd.f32 %v3517_v16, %v11608_v40  ;;  %v8371_v8 = vsel %vm1091_vm14, 1.0, %v9391_v10  ;;  %v2189_v55 = vmul.f32 0.2, %v1251_v56 }
 0x21c   : > { %v9006_v63 = vsel %vm6755_vm5, 1.0, %v9391_v10  ;;  %vm5381_vm6 = vcmp.gt.f32.partialorder %v5221_v14, 0.5  ;;  %v3757_v44 = vadd.f32 %v3597_v58, %v11640_v49  ;;  %vm2518_vm7 = vcmp.gt.f32.partialorder %v2358_v7, 0.5 }
 0x21d   : > { %v11759_v38 = vadd.f32 %v9006_v63, %v11612_v34  ;;  %v5541_v1 = vsel %vm5381_vm6, 0.0, %v5221_v14  ;;  %v8889_v22 = vsel %vm5381_vm6, 1.0, %v9391_v10  ;;  %v2678_v20 = vsel %vm2518_vm7, 0.0, %v2358_v7 }
 0x21e   : > { %v11763_v40 = vadd.f32 %v8889_v22, %v11620_v46  ;;  %v6478_v27 = vmul.f32 0.2, %v5541_v1  ;;  %vm3917_vm8 = vcmp.gt.f32.partialorder %v3757_v44, 0.5  ;;  %v8540_v12 = vsel %vm2518_vm7, 1.0, %v9391_v10 }
 0x21f   : > { %v4077_v25 = vsel %vm3917_vm8, 0.0, %v3757_v44  ;;  %v8682_v21 = vsel %vm3917_vm8, 1.0, %v9391_v10  ;;  %v11768_v2 = vadd.f32 %v8540_v12, %v11617_v17  ;;  %v3615_v34 = vmul.f32 0.2, %v2678_v20 }
 0x220   : > { %v6638_v0 = vadd.f32 %v6478_v27, %v11637_v52  ;;  %v4934_v53 = vsel %vm2096_vm1, %v8682_v21, 0.0  ;;  %v5014_v4 = vmul.f32 0.2, %v4077_v25  ;;  %v11773_v46 = vadd.f32 %v8371_v8, %v11632_v60  ;;  %v9328_v60 = vld [vmem:[%s15323_s3 + $0x38] sm:$0xff] }
 0x221   : > { %v11776_v18 = vadd.f32 %v4934_v53, %v11629_v41  ;;  %v3775_v56 = vadd.f32 %v3615_v34, %v11644_v51  ;;  %v2349_v14 = vadd.f32 %v2189_v55, %v11647_v37  ;;  %v11781_v16 = vadd.f32 %v593_v15, %v9855_v5  ;;  %8003 = vmatpush.bf16.msra.mxu1 %v9328_v60 }
 0x222   : > { %vm6798_vm9 = vcmp.gt.f32.partialorder %v6638_v0, 0.5  ;;  %v5174_v17 = vadd.f32 %v5014_v4, %v11640_v49  ;;  %v11786_v52 = vadd.f32 %v11649_v36, %v11392_v24  ;;  %v11793_v41 = vadd.f32 %v11702_v3, %v10815_v33 }
 0x223   : > { %v9049_v58 = vsel %vm6798_vm9, 1.0, %v9391_v10  ;;  %vm3935_vm10 = vcmp.gt.f32.partialorder %v3775_v56, 0.5  ;;  %vm2509_vm11 = vcmp.gt.f32.partialorder %v2349_v14, 0.5  ;;  %vm1134_vm13 = vcmp.gt.f32.partialorder %v11781_v16, 0.5 }
 0x224   : > { %v11798_v7 = vadd.f32 %v9049_v58, %v11656_v47  ;;  %vm5334_vm14 = vcmp.gt.f32.partialorder %v5174_v17, 0.5  ;;  %v4095_v36 = vsel %vm3935_vm10, 0.0, %v3775_v56  ;;  %v8700_v8 = vsel %vm3935_vm10, 1.0, %v9391_v10 }
 0x225   : > { %v5494_v55 = vsel %vm5334_vm14, 0.0, %v5174_v17  ;;  %v8842_v63 = vsel %vm5334_vm14, 1.0, %v9391_v10  ;;  %v11803_v3 = vadd.f32 %v8700_v8, %v11665_v50  ;;  %v5032_v44 = vmul.f32 0.2, %v4095_v36 }
 0x226   : > { %v6351_v1 = vsel %vm2096_vm1, %v8842_v63, 0.0  ;;  %v6431_v22 = vmul.f32 0.2, %v5494_v55  ;;  %v2669_v20 = vsel %vm2509_vm11, 0.0, %v2349_v14  ;;  %v8531_v27 = vsel %vm2509_vm11, 1.0, %v9391_v10 }
 0x227   : > { %v11808_v47 = vadd.f32 %v6351_v1, %v11662_v57  ;;  %v5192_v12 = vadd.f32 %v5032_v44, %v11644_v51  ;;  %v11812_v15 = vadd.f32 %v8531_v27, %v11674_v23  ;;  %v3606_v25 = vmul.f32 0.2, %v2669_v20 }
 0x228   : > { %v6591_v21 = vadd.f32 %v6431_v22, %v11640_v49  ;;  %v1294_v50 = vsel %vm1134_vm13, 0.0, %v11781_v16  ;;  %v8414_v34 = vsel %vm1134_vm13, 1.0, %v9391_v10  ;;  %vm1087_vm15 = vcmp.gt.f32.partialorder %v11786_v52, 0.5  ;;  %v9336_v49 = vld [vmem:[%s15323_s3 + $0x78] sm:$0xff] }
 0x229   : > { %vm5352_vm2 = vcmp.gt.f32.partialorder %v5192_v12, 0.5  ;;  %v3766_v57 = vadd.f32 %v3606_v25, %v11647_v37  ;;  %v11824_v0 = vadd.f32 %v8414_v34, %v11680_v6  ;;  %v2232_v23 = vmul.f32 0.2, %v1294_v50  ;;  %8016 = vmatpush.bf16.msra.mxu2 %v9336_v49 }
 0x22a   : > { %vm6751_vm4 = vcmp.gt.f32.partialorder %v6591_v21, 0.5  ;;  %v5512_v53 = vsel %vm5352_vm2, 0.0, %v5192_v12  ;;  %v8860_v4 = vsel %vm5352_vm2, 1.0, %v9391_v10  ;;  %v1247_v56 = vsel %vm1087_vm15, 0.0, %v11786_v52 }
 0x22b   : > { %v9002_v14 = vsel %vm6751_vm4, 1.0, %v9391_v10  ;;  %v11835_v17 = vadd.f32 %v8860_v4, %v11688_v59  ;;  %v6449_v6 = vmul.f32 0.2, %v5512_v53  ;;  %vm3926_vm5 = vcmp.gt.f32.partialorder %v3766_v57, 0.5 }
 0x22c   : > { %v7608_v60 = vsel %vm2096_vm1, %v9002_v14, 0.0  ;;  %v4086_v58 = vsel %vm3926_vm5, 0.0, %v3766_v57  ;;  %v8691_v36 = vsel %vm3926_vm5, 1.0, %v9391_v10  ;;  %v2392_v8 = vadd.f32 %v2232_v23, %v11781_v16 }
 0x22d   : > { %v11841_v55 = vadd.f32 %v7608_v60, %v11692_v11  ;;  %v6609_v63 = vadd.f32 %v6449_v6, %v11644_v51  ;;  %v11845_v44 = vadd.f32 %v8691_v36, %v11699_v9  ;;  %v5023_v59 = vmul.f32 0.2, %v4086_v58  ;;  %v596_v6 = vpop.f32.mrf.mxu1 }
 0x22e   : > { %vm2552_vm6 = vcmp.gt.f32.partialorder %v2392_v8, 0.5  ;;  %v8367_v1 = vsel %vm1087_vm15, 1.0, %v9391_v10  ;;  %v2185_v22 = vmul.f32 0.2, %v1247_v56  ;;  %vm1105_vm7 = vcmp.gt.f32.partialorder %v11793_v41, 0.5 }
 0x22f   : > { %vm6769_vm8 = vcmp.gt.f32.partialorder %v6609_v63, 0.5  ;;  %v5183_v20 = vadd.f32 %v5023_v59, %v11647_v37  ;;  %v2712_v27 = vsel %vm2552_vm6, 0.0, %v2392_v8  ;;  %v8574_v11 = vsel %vm2552_vm6, 1.0, %v9391_v10  ;;  %v838_v8 = vpop.f32.mrf.mxu0 }
 0x230   : > { %v9020_v51 = vsel %vm6769_vm8, 1.0, %v9391_v10  ;;  %v11855_v9 = vadd.f32 %v8574_v11, %v11710_v13  ;;  %v3649_v12 = vmul.f32 0.2, %v2712_v27  ;;  %v2102_v25 = vsel %vm2096_vm1, %v8367_v1, 0.0 }
 0x231   : > { %v11859_v21 = vadd.f32 %v9020_v51, %v11719_v54  ;;  %vm5343_vm9 = vcmp.gt.f32.partialorder %v5183_v20, 0.5  ;;  %v11862_v50 = vadd.f32 %v2102_v25, %v11716_v19  ;;  %v2345_v34 = vadd.f32 %v2185_v22, %v11786_v52 }
 0x232   : > { %v5503_v57 = vsel %vm5343_vm9, 0.0, %v5183_v20  ;;  %v8851_v23 = vsel %vm5343_vm9, 1.0, %v9391_v10  ;;  %v3809_v49 = vadd.f32 %v3649_v12, %v11781_v16  ;;  %v1265_v13 = vsel %vm1105_vm7, 0.0, %v11793_v41 }
 0x233   : > { %v11871_v53 = vadd.f32 %v8851_v23, %v11736_v31  ;;  %v6440_v54 = vmul.f32 0.2, %v5503_v57  ;;  %vm2505_vm10 = vcmp.gt.f32.partialorder %v2345_v34, 0.5  ;;  %v8385_v19 = vsel %vm1105_vm7, 1.0, %v9391_v10 }
 0x234   : > { %vm3969_vm11 = vcmp.gt.f32.partialorder %v3809_v49, 0.5  ;;  %v2665_v4 = vsel %vm2505_vm10, 0.0, %v2345_v34  ;;  %v8527_v56 = vsel %vm2505_vm10, 1.0, %v9391_v10  ;;  %v11878_v14 = vadd.f32 %v8385_v19, %v11733_v35 }
 0x235   : > { %v6600_v60 = vadd.f32 %v6440_v54, %v11647_v37  ;;  %v4129_v58 = vsel %vm3969_vm11, 0.0, %v3809_v49  ;;  %v8734_v31 = vsel %vm3969_vm11, 1.0, %v9391_v10  ;;  %v3519_v36 = vsel %vm2096_vm1, %v8527_v56, 0.0 }
 0x236   : > { %v11884_v63 = vadd.f32 %v8734_v31, %v11740_v29  ;;  %v5066_v59 = vmul.f32 0.2, %v4129_v58  ;;  %v11887_v1 = vadd.f32 %v3519_v36, %v11751_v30  ;;  %v3602_v22 = vmul.f32 0.2, %v2665_v4 }
 0x237   : > { %vm6760_vm13 = vcmp.gt.f32.partialorder %v6600_v60, 0.5  ;;  %v2203_v35 = vmul.f32 0.2, %v1265_v13  ;;  %v11891_v20 = vadd.f32 %v11724_v39, %v11123_v28  ;;  %v11894_v37 = vadd.f32 %v596_v6, %v9855_v5 }
 0x238   : > { %v9011_v27 = vsel %vm6760_vm13, 1.0, %v9391_v10  ;;  %v5226_v11 = vadd.f32 %v5066_v59, %v11781_v16  ;;  %v3762_v29 = vadd.f32 %v3602_v22, %v11786_v52  ;;  %v11900_v51 = vadd.f32 %v838_v8, %v11392_v24 }
 0x239   : > { %v11903_v30 = vadd.f32 %v9011_v27, %v11759_v38  ;;  %v2363_v12 = vadd.f32 %v2203_v35, %v11793_v41  ;;  %vm1096_vm14 = vcmp.gt.f32.partialorder %v11891_v20, 0.5  ;;  %vm1139_vm15 = vcmp.gt.f32.partialorder %v11894_v37, 0.5 }
 0x23a   : > { %vm5386_vm2 = vcmp.gt.f32.partialorder %v5226_v11, 0.5  ;;  %vm3922_vm4 = vcmp.gt.f32.partialorder %v3762_v29, 0.5  ;;  %v1256_v39 = vsel %vm1096_vm14, 0.0, %v11891_v20  ;;  %v8376_v25 = vsel %vm1096_vm14, 1.0, %v9391_v10 }
 0x23b   : > { %v5546_v34 = vsel %vm5386_vm2, 0.0, %v5226_v11  ;;  %v8894_v57 = vsel %vm5386_vm2, 1.0, %v9391_v10  ;;  %v4082_v23 = vsel %vm3922_vm4, 0.0, %v3762_v29  ;;  %v8687_v49 = vsel %vm3922_vm4, 1.0, %v9391_v10 }
 0x23c   : > { %v11913_v38 = vadd.f32 %v8894_v57, %v11763_v40  ;;  %v6483_v13 = vmul.f32 0.2, %v5546_v34  ;;  %v4936_v54 = vsel %vm2096_vm1, %v8687_v49, 0.0  ;;  %v5019_v19 = vmul.f32 0.2, %v4082_v23  ;;  %v670_v57 = vpop.f32.mrf.mxu2  ;;  %v754_v23 = vpop.f32.mrf.mxu3 }
 0x23d   : > { %v11917_v4 = vadd.f32 %v4936_v54, %v11776_v18  ;;  %vm2523_vm5 = vcmp.gt.f32.partialorder %v2363_v12, 0.5  ;;  %v11920_v56 = vadd.f32 %v8376_v25, %v11773_v46  ;;  %v2194_v6 = vmul.f32 0.2, %v1256_v39  ;;  %v11932_v46 = vpop.f32.mrf.mxu0  ;;  %8346 = vmatmul.msk.bf16.gmra.mxu0 %vm414_vm0, %v11438_v48 }
 0x23e   : > { %v6643_v60 = vadd.f32 %v6483_v13, %v11781_v16  ;;  %v5179_v58 = vadd.f32 %v5019_v19, %v11786_v52  ;;  %v2683_v31 = vsel %vm2523_vm5, 0.0, %v2363_v12  ;;  %v8545_v40 = vsel %vm2523_vm5, 1.0, %v9391_v10 }
 0x23f   : > { %v11926_v36 = vadd.f32 %v8545_v40, %v11768_v2  ;;  %v3620_v8 = vmul.f32 0.2, %v2683_v31  ;;  %v2354_v59 = vadd.f32 %v2194_v6, %v11891_v20  ;;  %v1299_v18 = vsel %vm1139_vm15, 0.0, %v11894_v37 }
 0x240   : > { %vm6803_vm6 = vcmp.gt.f32.partialorder %v6643_v60, 0.5  ;;  %vm5339_vm7 = vcmp.gt.f32.partialorder %v5179_v58, 0.5  ;;  %v8419_v16 = vsel %vm1139_vm15, 1.0, %v9391_v10  ;;  %v2237_v2 = vmul.f32 0.2, %v1299_v18 }
 0x241   : > { %v9054_v22 = vsel %vm6803_vm6, 1.0, %v9391_v10  ;;  %v5499_v35 = vsel %vm5339_vm7, 0.0, %v5179_v58  ;;  %v8847_v27 = vsel %vm5339_vm7, 1.0, %v9391_v10  ;;  %v3780_v11 = vadd.f32 %v3620_v8, %v11793_v41  ;;  %v9344_v58 = vld [vmem:[%s15323_s3 + $0xb8] sm:$0xff] }
 0x242   : > { %v11943_v29 = vadd.f32 %v9054_v22, %v11798_v7  ;;  %v6353_v12 = vsel %vm2096_vm1, %v8847_v27, 0.0  ;;  %v6436_v48 = vmul.f32 0.2, %v5499_v35  ;;  %vm2514_vm8 = vcmp.gt.f32.partialorder %v2354_v59, 0.5  ;;  %8029 = vmatpush.bf16.msra.mxu3 %v9344_v58 }
 0x243   : > { %v11947_v39 = vadd.f32 %v6353_v12, %v11808_v47  ;;  %vm3940_vm9 = vcmp.gt.f32.partialorder %v3780_v11, 0.5  ;;  %v2674_v25 = vsel %vm2514_vm8, 0.0, %v2354_v59  ;;  %v8536_v34 = vsel %vm2514_vm8, 1.0, %v9391_v10 }
 0x244   : > { %v6596_v49 = vadd.f32 %v6436_v48, %v11786_v52  ;;  %v4100_v13 = vsel %vm3940_vm9, 0.0, %v3780_v11  ;;  %v8705_v54 = vsel %vm3940_vm9, 1.0, %v9391_v10  ;;  %v11953_v7 = vadd.f32 %v8536_v34, %v11812_v15 }
 0x245   : > { %v11956_v19 = vadd.f32 %v8705_v54, %v11803_v3  ;;  %v5037_v6 = vmul.f32 0.2, %v4100_v13  ;;  %v3611_v47 = vmul.f32 0.2, %v2674_v25  ;;  %v11959_v60 = vadd.f32 %v8419_v16, %v11824_v0 }
 0x246   : > { %vm6756_vm10 = vcmp.gt.f32.partialorder %v6596_v49, 0.5  ;;  %v2397_v52 = vadd.f32 %v2237_v2, %v11894_v37  ;;  %vm1092_vm11 = vcmp.gt.f32.partialorder %v11900_v51, 0.5  ;;  %v11967_v15 = vadd.f32 %v670_v57, %v10815_v33 }
 0x247   : > { %v9007_v3 = vsel %vm6756_vm10, 1.0, %v9391_v10  ;;  %v5197_v31 = vadd.f32 %v5037_v6, %v11793_v41  ;;  %v3771_v40 = vadd.f32 %v3611_v47, %v11891_v20  ;;  %v1252_v0 = vsel %vm1092_vm11, 0.0, %v11900_v51 }
 0x248   : > { %v7610_v8 = vsel %vm2096_vm1, %v9007_v3, 0.0  ;;  %vm2557_vm13 = vcmp.gt.f32.partialorder %v2397_v52, 0.5  ;;  %v8372_v59 = vsel %vm1092_vm11, 1.0, %v9391_v10  ;;  %v2190_v18 = vmul.f32 0.2, %v1252_v0 }
 0x249   : > { %v11976_v16 = vadd.f32 %v7610_v8, %v11841_v55  ;;  %vm5357_vm14 = vcmp.gt.f32.partialorder %v5197_v31, 0.5  ;;  %vm3931_vm15 = vcmp.gt.f32.partialorder %v3771_v40, 0.5  ;;  %v2717_v2 = vsel %vm2557_vm13, 0.0, %v2397_v52 }
 0x24a   : > { %v5517_v22 = vsel %vm5357_vm14, 0.0, %v5197_v31  ;;  %v8865_v35 = vsel %vm5357_vm14, 1.0, %v9391_v10  ;;  %v4091_v27 = vsel %vm3931_vm15, 0.0, %v3771_v40  ;;  %v8696_v11 = vsel %vm3931_vm15, 1.0, %v9391_v10 }
 0x24b   : > { %v11981_v12 = vadd.f32 %v8865_v35, %v11835_v17  ;;  %v6454_v48 = vmul.f32 0.2, %v5517_v22  ;;  %v11984_v25 = vadd.f32 %v8696_v11, %v11845_v44  ;;  %v5028_v34 = vmul.f32 0.2, %v4091_v27  ;;  %v11997_v44 = vpop.f32.mrf.mxu3  ;;  %8331 = vmatmul.msk.bf16.gmra.mxu3 %vm414_vm0, %v11705_v42  ;;  %v598_v35 = vpop.f32.mrf.mxu1 }
 0x24c   : > { %v8579_v55 = vsel %vm2557_vm13, 1.0, %v9391_v10  ;;  %v3654_v57 = vmul.f32 0.2, %v2717_v2  ;;  %v2104_v49 = vsel %vm2096_vm1, %v8372_v59, 0.0  ;;  %v2350_v13 = vadd.f32 %v2190_v18, %v11900_v51 }
 0x24d   : > { %v6614_v54 = vadd.f32 %v6454_v48, %v11793_v41  ;;  %v5188_v6 = vadd.f32 %v5028_v34, %v11891_v20  ;;  %v11992_v47 = vadd.f32 %v8579_v55, %v11855_v9  ;;  %v11995_v17 = vadd.f32 %v2104_v49, %v11862_v50 }
 0x24e   : > { %v3814_v58 = vadd.f32 %v3654_v57, %v11894_v37  ;;  %vm2510_vm2 = vcmp.gt.f32.partialorder %v2350_v13, 0.5  ;;  %vm1110_vm4 = vcmp.gt.f32.partialorder %v11967_v15, 0.5  ;;  %v12004_v41 = vadd.f32 %v754_v23, %v11123_v28 }
 0x24f   : > { %vm6774_vm5 = vcmp.gt.f32.partialorder %v6614_v54, 0.5  ;;  %vm5348_vm6 = vcmp.gt.f32.partialorder %v5188_v6, 0.5  ;;  %v2670_v9 = vsel %vm2510_vm2, 0.0, %v2350_v13  ;;  %v8532_v52 = vsel %vm2510_vm2, 1.0, %v9391_v10 }
 0x250   : > { %v9025_v50 = vsel %vm6774_vm5, 1.0, %v9391_v10  ;;  %v5508_v3 = vsel %vm5348_vm6, 0.0, %v5188_v6  ;;  %v8856_v31 = vsel %vm5348_vm6, 1.0, %v9391_v10  ;;  %vm3974_vm7 = vcmp.gt.f32.partialorder %v3814_v58, 0.5 }
 0x251   : > { %v12010_v40 = vadd.f32 %v9025_v50, %v11859_v21  ;;  %v12013_v0 = vadd.f32 %v8856_v31, %v11871_v53  ;;  %v6445_v8 = vmul.f32 0.2, %v5508_v3  ;;  %v4134_v23 = vsel %vm3974_vm7, 0.0, %v3814_v58 }
 0x252   : > { %v8739_v59 = vsel %vm3974_vm7, 1.0, %v9391_v10  ;;  %v5071_v18 = vmul.f32 0.2, %v4134_v23  ;;  %v3521_v2 = vsel %vm2096_vm1, %v8532_v52, 0.0  ;;  %v3607_v22 = vmul.f32 0.2, %v2670_v9 }
 0x253   : > { %v6605_v27 = vadd.f32 %v6445_v8, %v11891_v20  ;;  %v12019_v11 = vadd.f32 %v8739_v59, %v11884_v63  ;;  %v12022_v21 = vadd.f32 %v3521_v2, %v11887_v1  ;;  %v1270_v53 = vsel %vm1110_vm4, 0.0, %v11967_v15 }
 0x254   : > { %v5231_v48 = vadd.f32 %v5071_v18, %v11894_v37  ;;  %v3767_v34 = vadd.f32 %v3607_v22, %v11900_v51  ;;  %v8390_v55 = vsel %vm1110_vm4, 1.0, %v9391_v10  ;;  %v2208_v57 = vmul.f32 0.2, %v1270_v53 }
 0x255   : > { %vm6765_vm8 = vcmp.gt.f32.partialorder %v6605_v27, 0.5  ;;  %v12033_v63 = vadd.f32 %v8390_v55, %v11878_v14  ;;  %vm1101_vm9 = vcmp.gt.f32.partialorder %v12004_v41, 0.5  ;;  %v12037_v1 = vadd.f32 %v598_v35, %v9855_v5 }
 0x256   : > { %v9016_v20 = vsel %vm6765_vm8, 1.0, %v9391_v10  ;;  %vm5391_vm10 = vcmp.gt.f32.partialorder %v5231_v48, 0.5  ;;  %vm3927_vm11 = vcmp.gt.f32.partialorder %v3767_v34, 0.5  ;;  %v2368_v49 = vadd.f32 %v2208_v57, %v11967_v15 }
 0x257   : > { %v12042_v13 = vadd.f32 %v9016_v20, %v11903_v30  ;;  %v5551_v54 = vsel %vm5391_vm10, 0.0, %v5231_v48  ;;  %v8899_v6 = vsel %vm5391_vm10, 1.0, %v9391_v10  ;;  %v4087_v58 = vsel %vm3927_vm11, 0.0, %v3767_v34 }
 0x258   : > { %v12046_v14 = vadd.f32 %v8899_v6, %v11913_v38  ;;  %v6488_v9 = vmul.f32 0.2, %v5551_v54  ;;  %v8692_v52 = vsel %vm3927_vm11, 1.0, %v9391_v10  ;;  %v5024_v50 = vmul.f32 0.2, %v4087_v58 }
 0x259   : > { %v4938_v3 = vsel %vm2096_vm1, %v8692_v52, 0.0  ;;  %vm2528_vm13 = vcmp.gt.f32.partialorder %v2368_v49, 0.5  ;;  %v1261_v31 = vsel %vm1101_vm9, 0.0, %v12004_v41  ;;  %v8381_v30 = vsel %vm1101_vm9, 1.0, %v9391_v10 }
 0x25a   : > { %v6648_v8 = vadd.f32 %v6488_v9, %v11894_v37  ;;  %v12058_v38 = vadd.f32 %v4938_v3, %v11917_v4  ;;  %v5184_v23 = vadd.f32 %v5024_v50, %v11900_v51  ;;  %v2688_v59 = vsel %vm2528_vm13, 0.0, %v2368_v49 }
 0x25b   : > { %v8550_v18 = vsel %vm2528_vm13, 1.0, %v9391_v10  ;;  %v3625_v2 = vmul.f32 0.2, %v2688_v59  ;;  %v12063_v22 = vadd.f32 %v8381_v30, %v11920_v56  ;;  %v2199_v35 = vmul.f32 0.2, %v1261_v31 }
 0x25c   : > { %vm6808_vm14 = vcmp.gt.f32.partialorder %v6648_v8, 0.5  ;;  %vm5344_vm15 = vcmp.gt.f32.partialorder %v5184_v23, 0.5  ;;  %v12066_v27 = vadd.f32 %v8550_v18, %v11926_v36  ;;  %vm1144_vm2 = vcmp.gt.f32.partialorder %v12037_v1, 0.5 }
 0x25d   : > { %v9059_v37 = vsel %vm6808_vm14, 1.0, %v9391_v10  ;;  %v5504_v4 = vsel %vm5344_vm15, 0.0, %v5184_v23  ;;  %v8852_v53 = vsel %vm5344_vm15, 1.0, %v9391_v10  ;;  %v3785_v48 = vadd.f32 %v3625_v2, %v11967_v15 }
 0x25e   : > { %v12073_v34 = vadd.f32 %v9059_v37, %v11943_v29  ;;  %v6355_v56 = vsel %vm2096_vm1, %v8852_v53, 0.0  ;;  %v6441_v55 = vmul.f32 0.2, %v5504_v4  ;;  %v2359_v57 = vadd.f32 %v2199_v35, %v12004_v41 }
 0x25f   : > { %v12078_v36 = vadd.f32 %v6355_v56, %v11947_v39  ;;  %vm3945_vm4 = vcmp.gt.f32.partialorder %v3785_v48, 0.5  ;;  %v1304_v20 = vsel %vm1144_vm2, 0.0, %v12037_v1  ;;  %v8424_v49 = vsel %vm1144_vm2, 1.0, %v9391_v10  ;;  %v672_v39 = vpop.f32.mrf.mxu2 }
 0x260   : > { %v6601_v54 = vadd.f32 %v6441_v55, %v11900_v51  ;;  %v4105_v6 = vsel %vm3945_vm4, 0.0, %v3785_v48  ;;  %v8710_v58 = vsel %vm3945_vm4, 1.0, %v9391_v10  ;;  %vm2519_vm5 = vcmp.gt.f32.partialorder %v2359_v57, 0.5 }
 0x261   : > { %v12085_v29 = vadd.f32 %v8710_v58, %v11956_v19  ;;  %v5042_v9 = vmul.f32 0.2, %v4105_v6  ;;  %v2679_v52 = vsel %vm2519_vm5, 0.0, %v2359_v57  ;;  %v8541_v50 = vsel %vm2519_vm5, 1.0, %v9391_v10 }
 0x262   : > { %vm6761_vm6 = vcmp.gt.f32.partialorder %v6601_v54, 0.5  ;;  %v12089_v3 = vadd.f32 %v8541_v50, %v11953_v7  ;;  %v3616_v31 = vmul.f32 0.2, %v2679_v52  ;;  %v12092_v30 = vadd.f32 %v8424_v49, %v11959_v60 }
 0x263   : > { %v9012_v51 = vsel %vm6761_vm6, 1.0, %v9391_v10  ;;  %v5202_v8 = vadd.f32 %v5042_v9, %v11967_v15  ;;  %v2242_v23 = vmul.f32 0.2, %v1304_v20  ;;  %v12098_v19 = vadd.f32 %v11932_v46, %v11392_v24 }
 0x264   : > { %v7612_v59 = vsel %vm2096_vm1, %v9012_v51, 0.0  ;;  %v3776_v18 = vadd.f32 %v3616_v31, %v12004_v41  ;;  %v12103_v7 = vadd.f32 %v672_v39, %v10815_v33  ;;  %v12107_v60 = vadd.f32 %v11997_v44, %v11123_v28 }
 0x265   : > { %v12110_v2 = vadd.f32 %v7612_v59, %v11976_v16  ;;  %vm5362_vm7 = vcmp.gt.f32.partialorder %v5202_v8, 0.5  ;;  %v2402_v35 = vadd.f32 %v2242_v23, %v12037_v1  ;;  %vm1097_vm8 = vcmp.gt.f32.partialorder %v12098_v19, 0.5  ;;  %v9327_v16 = vld [vmem:[%s15323_s3 + $0x30] sm:$0xff] }
 0x266   : > { %v5522_v46 = vsel %vm5362_vm7, 0.0, %v5202_v8  ;;  %v8870_v37 = vsel %vm5362_vm7, 1.0, %v9391_v10  ;;  %vm3936_vm9 = vcmp.gt.f32.partialorder %v3776_v18, 0.5  ;;  %v1257_v4 = vsel %vm1097_vm8, 0.0, %v12098_v19  ;;  %8004 = vmatpush.bf16.msra.mxu1 %v9327_v16 }
 0x267   : > { %v12117_v53 = vadd.f32 %v8870_v37, %v11981_v12  ;;  %v6459_v48 = vmul.f32 0.2, %v5522_v46  ;;  %v4096_v44 = vsel %vm3936_vm9, 0.0, %v3776_v18  ;;  %v8701_v56 = vsel %vm3936_vm9, 1.0, %v9391_v10 }
 0x268   : > { %v12124_v55 = vadd.f32 %v8701_v56, %v11984_v25  ;;  %v5033_v57 = vmul.f32 0.2, %v4096_v44  ;;  %vm2562_vm10 = vcmp.gt.f32.partialorder %v2402_v35, 0.5  ;;  %v8377_v20 = vsel %vm1097_vm8, 1.0, %v9391_v10 }
 0x269   : > { %v6619_v49 = vadd.f32 %v6459_v48, %v11967_v15  ;;  %v2722_v54 = vsel %vm2562_vm10, 0.0, %v2402_v35  ;;  %v8584_v12 = vsel %vm2562_vm10, 1.0, %v9391_v10  ;;  %v2106_v6 = vsel %vm2096_vm1, %v8377_v20, 0.0 }
 0x26a   : > { %v5193_v58 = vadd.f32 %v5033_v57, %v12004_v41  ;;  %v12132_v9 = vadd.f32 %v8584_v12, %v11992_v47  ;;  %v3659_v52 = vmul.f32 0.2, %v2722_v54  ;;  %v12135_v25 = vadd.f32 %v2106_v6, %v11995_v17 }
 0x26b   : > { %vm6779_vm11 = vcmp.gt.f32.partialorder %v6619_v49, 0.5  ;;  %v2195_v50 = vmul.f32 0.2, %v1257_v4  ;;  %vm1115_vm13 = vcmp.gt.f32.partialorder %v12103_v7, 0.5  ;;  %vm1106_vm14 = vcmp.gt.f32.partialorder %v12107_v60, 0.5 }
 0x26c   : > { %v9030_v15 = vsel %vm6779_vm11, 1.0, %v9391_v10  ;;  %vm5353_vm15 = vcmp.gt.f32.partialorder %v5193_v58, 0.5  ;;  %v3819_v39 = vadd.f32 %v3659_v52, %v12037_v1  ;;  %v1275_v31 = vsel %vm1115_vm13, 0.0, %v12103_v7 }
 0x26d   : > { %v12143_v47 = vadd.f32 %v9030_v15, %v12010_v40  ;;  %v5513_v51 = vsel %vm5353_vm15, 0.0, %v5193_v58  ;;  %v8861_v17 = vsel %vm5353_vm15, 1.0, %v9391_v10  ;;  %v2355_v8 = vadd.f32 %v2195_v50, %v12098_v19  ;;  %v843_v40 = vpop.f32.mrf.mxu0 }
 0x26e   : > { %v12148_v23 = vadd.f32 %v8861_v17, %v12013_v0  ;;  %v6450_v59 = vmul.f32 0.2, %v5513_v51  ;;  %vm3979_vm2 = vcmp.gt.f32.partialorder %v3819_v39, 0.5  ;;  %v8395_v18 = vsel %vm1115_vm13, 1.0, %v9391_v10 }
 0x26f   : > { %v4139_v35 = vsel %vm3979_vm2, 0.0, %v3819_v39  ;;  %v8744_v46 = vsel %vm3979_vm2, 1.0, %v9391_v10  ;;  %vm2515_vm4 = vcmp.gt.f32.partialorder %v2355_v8, 0.5  ;;  %v12153_v37 = vadd.f32 %v8395_v18, %v12033_v63 }
 0x270   : > { %v6610_v4 = vadd.f32 %v6450_v59, %v12004_v41  ;;  %v12157_v48 = vadd.f32 %v8744_v46, %v12019_v11  ;;  %v5076_v44 = vmul.f32 0.2, %v4139_v35  ;;  %v2675_v0 = vsel %vm2515_vm4, 0.0, %v2355_v8  ;;  %v601_v8 = vpop.f32.mrf.mxu1  ;;  %v675_v35 = vpop.f32.mrf.mxu2 }
 0x271   : > { %v8537_v56 = vsel %vm2515_vm4, 1.0, %v9391_v10  ;;  %v3612_v16 = vmul.f32 0.2, %v2675_v0  ;;  %v2213_v57 = vmul.f32 0.2, %v1275_v31  ;;  %v1266_v20 = vsel %vm1106_vm14, 0.0, %v12107_v60  ;;  %v759_v46 = vpop.f32.mrf.mxu3 }
 0x272   : > { %vm6770_vm5 = vcmp.gt.f32.partialorder %v6610_v4, 0.5  ;;  %v5236_v63 = vadd.f32 %v5076_v44, %v12037_v1  ;;  %v3523_v49 = vsel %vm2096_vm1, %v8537_v56, 0.0  ;;  %v8386_v41 = vsel %vm1106_vm14, 1.0, %v9391_v10 }
 0x273   : > { %v9021_v11 = vsel %vm6770_vm5, 1.0, %v9391_v10  ;;  %v12170_v54 = vadd.f32 %v3523_v49, %v12022_v21  ;;  %v3772_v12 = vadd.f32 %v3612_v16, %v12098_v19  ;;  %v2373_v6 = vadd.f32 %v2213_v57, %v12103_v7 }
 0x274   : > { %v12175_v58 = vadd.f32 %v9021_v11, %v12042_v13  ;;  %vm5396_vm6 = vcmp.gt.f32.partialorder %v5236_v63, 0.5  ;;  %v12178_v52 = vadd.f32 %v8386_v41, %v12063_v22  ;;  %v2204_v50 = vmul.f32 0.2, %v1266_v20 }
 0x275   : > { %v5556_v15 = vsel %vm5396_vm6, 0.0, %v5236_v63  ;;  %v8904_v39 = vsel %vm5396_vm6, 1.0, %v9391_v10  ;;  %vm3932_vm7 = vcmp.gt.f32.partialorder %v3772_v12, 0.5  ;;  %vm2533_vm8 = vcmp.gt.f32.partialorder %v2373_v6, 0.5  ;;  %v12202_v63 = vpop.f32.mrf.mxu0  ;;  %8347 = vmatmul.msk.bf16.gmra.mxu0 %vm414_vm0, %v11705_v42 }
 0x276   : > { %v12182_v21 = vadd.f32 %v8904_v39, %v12046_v14  ;;  %v6493_v31 = vmul.f32 0.2, %v5556_v15  ;;  %v4092_v51 = vsel %vm3932_vm7, 0.0, %v3772_v12  ;;  %v8697_v17 = vsel %vm3932_vm7, 1.0, %v9391_v10 }
 0x277   : > { %v4940_v13 = vsel %vm2096_vm1, %v8697_v17, 0.0  ;;  %v5029_v59 = vmul.f32 0.2, %v4092_v51  ;;  %v2693_v18 = vsel %vm2533_vm8, 0.0, %v2373_v6  ;;  %v8555_v22 = vsel %vm2533_vm8, 1.0, %v9391_v10 }
 0x278   : > { %v6653_v4 = vadd.f32 %v6493_v31, %v12037_v1  ;;  %v12189_v44 = vadd.f32 %v4940_v13, %v12058_v38  ;;  %v12192_v14 = vadd.f32 %v8555_v22, %v12066_v27  ;;  %v3630_v0 = vmul.f32 0.2, %v2693_v18 }
 0x279   : > { %v5189_v56 = vadd.f32 %v5029_v59, %v12098_v19  ;;  %v2364_v16 = vadd.f32 %v2204_v50, %v12107_v60  ;;  %v12197_v57 = vadd.f32 %v601_v8, %v9855_v5  ;;  %v12200_v20 = vadd.f32 %v843_v40, %v11392_v24 }
 0x27a   : > { %vm6813_vm9 = vcmp.gt.f32.partialorder %v6653_v4, 0.5  ;;  %v3790_v1 = vadd.f32 %v3630_v0, %v12103_v7  ;;  %v12208_v38 = vadd.f32 %v675_v35, %v10815_v33  ;;  %v12211_v27 = vadd.f32 %v759_v46, %v11123_v28 }
 0x27b   : > { %v9064_v49 = vsel %vm6813_vm9, 1.0, %v9391_v10  ;;  %vm5349_vm10 = vcmp.gt.f32.partialorder %v5189_v56, 0.5  ;;  %vm2524_vm11 = vcmp.gt.f32.partialorder %v2364_v16, 0.5  ;;  %vm1149_vm13 = vcmp.gt.f32.partialorder %v12197_v57, 0.5 }
 0x27c   : > { %v12216_v40 = vadd.f32 %v9064_v49, %v12073_v34  ;;  %v5509_v41 = vsel %vm5349_vm10, 0.0, %v5189_v56  ;;  %v8857_v42 = vsel %vm5349_vm10, 1.0, %v9391_v10  ;;  %vm3950_vm0 = vcmp.gt.f32.partialorder %v3790_v1, 0.5 }
 0x27d   : > { %v6357_v11 = vsel %vm2096_vm1, %v8857_v42, 0.0  ;;  %v6446_v12 = vmul.f32 0.2, %v5509_v41  ;;  %v4110_v6 = vsel %vm3950_vm0, 0.0, %v3790_v1  ;;  %v8715_v50 = vsel %vm3950_vm0, 1.0, %v9391_v10  ;;  %v9325_v42 = vld [vmem:[%s15323_s3 + $0x20] sm:$0xff] }
 0x27e   : > { %v12222_v15 = vadd.f32 %v6357_v11, %v12078_v36  ;;  %v12225_v39 = vadd.f32 %v8715_v50, %v12085_v29  ;;  %v5047_v31 = vmul.f32 0.2, %v4110_v6  ;;  %v2684_v51 = vsel %vm2524_vm11, 0.0, %v2364_v16 }
 0x27f   : > { %v6606_v34 = vadd.f32 %v6446_v12, %v12098_v19  ;;  %v8546_v17 = vsel %vm2524_vm11, 1.0, %v9391_v10  ;;  %v3621_v8 = vmul.f32 0.2, %v2684_v51  ;;  %v1309_v13 = vsel %vm1149_vm13, 0.0, %v12197_v57  ;;  %v9326_v19 = vld [vmem:[%s15323_s3 + $0x28] sm:$0xff] }
 0x280   : > { %v5207_v59 = vadd.f32 %v5047_v31, %v12103_v7  ;;  %v12234_v18 = vadd.f32 %v8546_v17, %v12089_v3  ;;  %v8429_v36 = vsel %vm1149_vm13, 1.0, %v9391_v10  ;;  %v2247_v29 = vmul.f32 0.2, %v1309_v13  ;;  %8005 = vmatpush.bf16.msra.mxu1 %v9326_v19 }
 0x281   : > { %vm6766_vm14 = vcmp.gt.f32.partialorder %v6606_v34, 0.5  ;;  %v3781_v22 = vadd.f32 %v3621_v8, %v12107_v60  ;;  %v12244_v35 = vadd.f32 %v8429_v36, %v12092_v30  ;;  %vm1102_vm15 = vcmp.gt.f32.partialorder %v12200_v20, 0.5 }
 0x282   : > { %v9017_v3 = vsel %vm6766_vm14, 1.0, %v9391_v10  ;;  %vm5367_vm2 = vcmp.gt.f32.partialorder %v5207_v59, 0.5  ;;  %v2407_v46 = vadd.f32 %v2247_v29, %v12197_v57  ;;  %v1262_v4 = vsel %vm1102_vm15, 0.0, %v12200_v20 }
 0x283   : > { %v7614_v0 = vsel %vm2096_vm1, %v9017_v3, 0.0  ;;  %v5527_v56 = vsel %vm5367_vm2, 0.0, %v5207_v59  ;;  %v8875_v16 = vsel %vm5367_vm2, 1.0, %v9391_v10  ;;  %vm3941_vm4 = vcmp.gt.f32.partialorder %v3781_v22, 0.5 }
 0x284   : > { %v12255_v30 = vadd.f32 %v7614_v0, %v12110_v2  ;;  %v12258_v1 = vadd.f32 %v8875_v16, %v12117_v53  ;;  %v6464_v49 = vmul.f32 0.2, %v5527_v56  ;;  %v4101_v41 = vsel %vm3941_vm4, 0.0, %v3781_v22  ;;  %8006 = vmatpush.bf16.msra.mxu1 %v9325_v42 }
 0x285   : > { %v8706_v11 = vsel %vm3941_vm4, 1.0, %v9391_v10  ;;  %v5038_v12 = vmul.f32 0.2, %v4101_v41  ;;  %vm2567_vm5 = vcmp.gt.f32.partialorder %v2407_v46, 0.5  ;;  %v8382_v6 = vsel %vm1102_vm15, 1.0, %v9391_v10 }
 0x286   : > { %v6624_v2 = vadd.f32 %v6464_v49, %v12103_v7  ;;  %v12269_v50 = vadd.f32 %v8706_v11, %v12124_v55  ;;  %v2727_v53 = vsel %vm2567_vm5, 0.0, %v2407_v46  ;;  %v8589_v31 = vsel %vm2567_vm5, 1.0, %v9391_v10 }
 0x287   : > { %v5198_v51 = vadd.f32 %v5038_v12, %v12107_v60  ;;  %v12274_v34 = vadd.f32 %v8589_v31, %v12132_v9  ;;  %v3664_v17 = vmul.f32 0.2, %v2727_v53  ;;  %v2108_v8 = vsel %vm2096_vm1, %v8382_v6, 0.0 }
 0x288   : > { %vm6784_vm6 = vcmp.gt.f32.partialorder %v6624_v2, 0.5  ;;  %v12278_v13 = vadd.f32 %v2108_v8, %v12135_v25  ;;  %v2200_v7 = vmul.f32 0.2, %v1262_v4  ;;  %vm1120_vm7 = vcmp.gt.f32.partialorder %v12208_v38, 0.5 }
 0x289   : > { %v9035_v55 = vsel %vm6784_vm6, 1.0, %v9391_v10  ;;  %vm5358_vm8 = vcmp.gt.f32.partialorder %v5198_v51, 0.5  ;;  %v3824_v59 = vadd.f32 %v3664_v17, %v12197_v57  ;;  %v1280_v36 = vsel %vm1120_vm7, 0.0, %v12208_v38 }
 0x28a   : > { %v12285_v9 = vadd.f32 %v9035_v55, %v12143_v47  ;;  %v5518_v29 = vsel %vm5358_vm8, 0.0, %v5198_v51  ;;  %v8866_v19 = vsel %vm5358_vm8, 1.0, %v9391_v10  ;;  %v2360_v22 = vadd.f32 %v2200_v7, %v12200_v20 }
 0x28b   : > { %v12290_v25 = vadd.f32 %v8866_v19, %v12148_v23  ;;  %v6455_v3 = vmul.f32 0.2, %v5518_v29  ;;  %vm3984_vm9 = vcmp.gt.f32.partialorder %v3824_v59, 0.5  ;;  %v8400_v46 = vsel %vm1120_vm7, 1.0, %v9391_v10  ;;  %v603_v29 = vpop.f32.mrf.mxu1 }
 0x28c   : > { %v4144_v4 = vsel %vm3984_vm9, 0.0, %v3824_v59  ;;  %v8749_v0 = vsel %vm3984_vm9, 1.0, %v9391_v10  ;;  %vm2520_vm10 = vcmp.gt.f32.partialorder %v2360_v22, 0.5  ;;  %v12295_v56 = vadd.f32 %v8400_v46, %v12153_v37  ;;  %v677_v46 = vpop.f32.mrf.mxu2 }
 0x28d   : > { %v6615_v47 = vadd.f32 %v6455_v3, %v12107_v60  ;;  %v12299_v16 = vadd.f32 %v8749_v0, %v12157_v48  ;;  %v5081_v49 = vmul.f32 0.2, %v4144_v4  ;;  %v2680_v41 = vsel %vm2520_vm10, 0.0, %v2360_v22 }
 0x28e   : > { %v8542_v23 = vsel %vm2520_vm10, 1.0, %v9391_v10  ;;  %v3617_v42 = vmul.f32 0.2, %v2680_v41  ;;  %v2218_v11 = vmul.f32 0.2, %v1280_v36  ;;  %vm1111_vm11 = vcmp.gt.f32.partialorder %v12211_v27, 0.5 }
 0x28f   : > { %vm6775_vm13 = vcmp.gt.f32.partialorder %v6615_v47, 0.5  ;;  %v5241_v12 = vadd.f32 %v5081_v49, %v12197_v57  ;;  %v3525_v6 = vsel %vm2096_vm1, %v8542_v23, 0.0  ;;  %v1271_v37 = vsel %vm1111_vm11, 0.0, %v12211_v27 }
 0x290   : > { %v9026_v60 = vsel %vm6775_vm13, 1.0, %v9391_v10  ;;  %v12308_v48 = vadd.f32 %v3525_v6, %v12170_v54  ;;  %v3777_v2 = vadd.f32 %v3617_v42, %v12200_v20  ;;  %v2378_v53 = vadd.f32 %v2218_v11, %v12208_v38 }
 0x291   : > { %v12313_v31 = vadd.f32 %v9026_v60, %v12175_v58  ;;  %vm5401_vm0 = vcmp.gt.f32.partialorder %v5241_v12, 0.5  ;;  %v8391_v51 = vsel %vm1111_vm11, 1.0, %v9391_v10  ;;  %v2209_v17 = vmul.f32 0.2, %v1271_v37 }
 0x292   : > { %v5561_v8 = vsel %vm5401_vm0, 0.0, %v5241_v12  ;;  %v8909_v7 = vsel %vm5401_vm0, 1.0, %v9391_v10  ;;  %vm3937_vm14 = vcmp.gt.f32.partialorder %v3777_v2, 0.5  ;;  %vm2538_vm15 = vcmp.gt.f32.partialorder %v2378_v53, 0.5 }
 0x293   : > { %v12318_v55 = vadd.f32 %v8909_v7, %v12182_v21  ;;  %v6498_v54 = vmul.f32 0.2, %v5561_v8  ;;  %v4097_v59 = vsel %vm3937_vm14, 0.0, %v3777_v2  ;;  %v8702_v36 = vsel %vm3937_vm14, 1.0, %v9391_v10 }
 0x294   : > { %v4942_v58 = vsel %vm2096_vm1, %v8702_v36, 0.0  ;;  %v5034_v19 = vmul.f32 0.2, %v4097_v59  ;;  %v2698_v22 = vsel %vm2538_vm15, 0.0, %v2378_v53  ;;  %v8560_v3 = vsel %vm2538_vm15, 1.0, %v9391_v10 }
 0x295   : > { %v6658_v4 = vadd.f32 %v6498_v54, %v12197_v57  ;;  %v12325_v0 = vadd.f32 %v4942_v58, %v12189_v44  ;;  %v12328_v21 = vadd.f32 %v8560_v3, %v12192_v14  ;;  %v3635_v47 = vmul.f32 0.2, %v2698_v22 }
 0x296   : > { %v5194_v49 = vadd.f32 %v5034_v19, %v12200_v20  ;;  %v12332_v41 = vadd.f32 %v8391_v51, %v12178_v52  ;;  %v2369_v23 = vadd.f32 %v2209_v17, %v12211_v27  ;;  %v12336_v42 = vadd.f32 %v603_v29, %v9855_v5 }
 0x297   : > { %vm6818_vm2 = vcmp.gt.f32.partialorder %v6658_v4, 0.5  ;;  %v3795_v57 = vadd.f32 %v3635_v47, %v12208_v38  ;;  %v12341_v44 = vadd.f32 %v12202_v63, %v11392_v24  ;;  %v12344_v14 = vadd.f32 %v677_v46, %v10815_v33 }
 0x298   : > { %v9069_v11 = vsel %vm6818_vm2, 1.0, %v9391_v10  ;;  %vm5354_vm4 = vcmp.gt.f32.partialorder %v5194_v49, 0.5  ;;  %vm2529_vm5 = vcmp.gt.f32.partialorder %v2369_v23, 0.5  ;;  %vm1154_vm6 = vcmp.gt.f32.partialorder %v12336_v42, 0.5 }
 0x299   : > { %v12349_v52 = vadd.f32 %v9069_v11, %v12216_v40  ;;  %v5514_v12 = vsel %vm5354_vm4, 0.0, %v5194_v49  ;;  %v8862_v6 = vsel %vm5354_vm4, 1.0, %v9391_v10  ;;  %vm3955_vm7 = vcmp.gt.f32.partialorder %v3795_v57, 0.5 }
 0x29a   : > { %v6359_v37 = vsel %vm2096_vm1, %v8862_v6, 0.0  ;;  %v6451_v63 = vmul.f32 0.2, %v5514_v12  ;;  %v4115_v60 = vsel %vm3955_vm7, 0.0, %v3795_v57  ;;  %v8720_v2 = vsel %vm3955_vm7, 1.0, %v9391_v10  ;;  %v9323_v12 = vld [vmem:[%s15323_s3 + $0x10] sm:$0xff] }
 0x29b   : > { %v12355_v53 = vadd.f32 %v6359_v37, %v12222_v15  ;;  %v12358_v51 = vadd.f32 %v8720_v2, %v12225_v39  ;;  %v5052_v17 = vmul.f32 0.2, %v4115_v60  ;;  %v2689_v8 = vsel %vm2529_vm5, 0.0, %v2369_v23 }
 0x29c   : > { %v6611_v40 = vadd.f32 %v6451_v63, %v12200_v20  ;;  %v8551_v7 = vsel %vm2529_vm5, 1.0, %v9391_v10  ;;  %v3626_v54 = vmul.f32 0.2, %v2689_v8  ;;  %v1314_v59 = vsel %vm1154_vm6, 0.0, %v12336_v42  ;;  %v9324_v20 = vld [vmem:[%s15323_s3 + $0x18] sm:$0xff] }
 0x29d   : > { %v5212_v36 = vadd.f32 %v5052_v17, %v12208_v38  ;;  %v12367_v29 = vadd.f32 %v8551_v7, %v12234_v18  ;;  %v8434_v15 = vsel %vm1154_vm6, 1.0, %v9391_v10  ;;  %v2252_v39 = vmul.f32 0.2, %v1314_v59  ;;  %v9335_v18 = vld [vmem:[%s15323_s3 + $0x70] sm:$0xff]  ;;  %8007 = vmatpush.bf16.msra.mxu1 %v9324_v20 }
 0x29e   : > { %vm6771_vm8 = vcmp.gt.f32.partialorder %v6611_v40, 0.5  ;;  %v3786_v58 = vadd.f32 %v3626_v54, %v12211_v27  ;;  %v12377_v19 = vadd.f32 %v8434_v15, %v12244_v35  ;;  %vm1107_vm9 = vcmp.gt.f32.partialorder %v12341_v44, 0.5  ;;  %8017 = vmatpush.bf16.msra.mxu2 %v9335_v18 }
 0x29f   : > { %v9022_v22 = vsel %vm6771_vm8, 1.0, %v9391_v10  ;;  %vm5372_vm10 = vcmp.gt.f32.partialorder %v5212_v36, 0.5  ;;  %v2412_v3 = vadd.f32 %v2252_v39, %v12336_v42  ;;  %v1267_v46 = vsel %vm1107_vm9, 0.0, %v12341_v44 }
 0x2a0   : > { %v7616_v4 = vsel %vm2096_vm1, %v9022_v22, 0.0  ;;  %v5532_v35 = vsel %vm5372_vm10, 0.0, %v5212_v36  ;;  %v8880_v47 = vsel %vm5372_vm10, 1.0, %v9391_v10  ;;  %vm3946_vm11 = vcmp.gt.f32.partialorder %v3786_v58, 0.5  ;;  %v761_v22 = vpop.f32.mrf.mxu3 }
 0x2a1   : > { %v12391_v49 = vadd.f32 %v7616_v4, %v12255_v30  ;;  %v12394_v23 = vadd.f32 %v8880_v47, %v12258_v1  ;;  %v6469_v57 = vmul.f32 0.2, %v5532_v35  ;;  %v4106_v11 = vsel %vm3946_vm11, 0.0, %v3786_v58  ;;  %8008 = vmatpush.bf16.msra.mxu1 %v9323_v12  ;;  %v606_v4 = vpop.f32.mrf.mxu1 }
 0x2a2   : > { %v8711_v6 = vsel %vm3946_vm11, 1.0, %v9391_v10  ;;  %v5043_v37 = vmul.f32 0.2, %v4106_v11  ;;  %vm2572_vm13 = vcmp.gt.f32.partialorder %v2412_v3, 0.5  ;;  %v8387_v63 = vsel %vm1107_vm9, 1.0, %v9391_v10 }
 0x2a3   : > { %v6629_v30 = vadd.f32 %v6469_v57, %v12208_v38  ;;  %v12405_v60 = vadd.f32 %v8711_v6, %v12269_v50  ;;  %v2732_v1 = vsel %vm2572_vm13, 0.0, %v2412_v3  ;;  %v8594_v2 = vsel %vm2572_vm13, 1.0, %v9391_v10 }
 0x2a4   : > { %v5203_v17 = vadd.f32 %v5043_v37, %v12211_v27  ;;  %v12410_v8 = vadd.f32 %v8594_v2, %v12274_v34  ;;  %v3669_v40 = vmul.f32 0.2, %v2732_v1  ;;  %v2110_v7 = vsel %vm2096_vm1, %v8387_v63, 0.0 }
 0x2a5   : > { %vm6789_vm0 = vcmp.gt.f32.partialorder %v6629_v30, 0.5  ;;  %v12414_v54 = vadd.f32 %v2110_v7, %v12278_v13  ;;  %v2205_v38 = vmul.f32 0.2, %v1267_v46  ;;  %vm1125_vm14 = vcmp.gt.f32.partialorder %v12344_v14, 0.5 }
 0x2a6   : > { %v9040_v50 = vsel %vm6789_vm0, 1.0, %v9391_v10  ;;  %vm5363_vm15 = vcmp.gt.f32.partialorder %v5203_v17, 0.5  ;;  %v3829_v59 = vadd.f32 %v3669_v40, %v12336_v42  ;;  %v1285_v36 = vsel %vm1125_vm14, 0.0, %v12344_v14 }
 0x2a7   : > { %v12421_v34 = vadd.f32 %v9040_v50, %v12285_v9  ;;  %v5523_v15 = vsel %vm5363_vm15, 0.0, %v5203_v17  ;;  %v8871_v39 = vsel %vm5363_vm15, 1.0, %v9391_v10  ;;  %v2365_v20 = vadd.f32 %v2205_v38, %v12341_v44 }
 0x2a8   : > { %v12426_v13 = vadd.f32 %v8871_v39, %v12290_v25  ;;  %v6460_v58 = vmul.f32 0.2, %v5523_v15  ;;  %vm3989_vm2 = vcmp.gt.f32.partialorder %v3829_v59, 0.5  ;;  %v8405_v18 = vsel %vm1125_vm14, 1.0, %v9391_v10 }
 0x2a9   : > { %v4149_v3 = vsel %vm3989_vm2, 0.0, %v3829_v59  ;;  %v8754_v46 = vsel %vm3989_vm2, 1.0, %v9391_v10  ;;  %vm2525_vm4 = vcmp.gt.f32.partialorder %v2365_v20, 0.5  ;;  %v12431_v9 = vadd.f32 %v8405_v18, %v12295_v56 }
 0x2aa   : > { %v6620_v35 = vadd.f32 %v6460_v58, %v12211_v27  ;;  %v12435_v47 = vadd.f32 %v8754_v46, %v12299_v16  ;;  %v5086_v25 = vmul.f32 0.2, %v4149_v3  ;;  %v2685_v57 = vsel %vm2525_vm4, 0.0, %v2365_v20 }
 0x2ab   : > { %v8547_v11 = vsel %vm2525_vm4, 1.0, %v9391_v10  ;;  %v3622_v12 = vmul.f32 0.2, %v2685_v57  ;;  %v2223_v6 = vmul.f32 0.2, %v1285_v36  ;;  %v12439_v37 = vadd.f32 %v761_v22, %v11123_v28 }
 0x2ac   : > { %vm6780_vm5 = vcmp.gt.f32.partialorder %v6620_v35, 0.5  ;;  %v5246_v63 = vadd.f32 %v5086_v25, %v12336_v42  ;;  %v3527_v56 = vsel %vm2096_vm1, %v8547_v11, 0.0  ;;  %v12444_v30 = vadd.f32 %v606_v4, %v9855_v5 }
 0x2ad   : > { %v9031_v27 = vsel %vm6780_vm5, 1.0, %v9391_v10  ;;  %v12448_v16 = vadd.f32 %v3527_v56, %v12308_v48  ;;  %v3782_v1 = vadd.f32 %v3622_v12, %v12341_v44  ;;  %v2383_v2 = vadd.f32 %v2223_v6, %v12344_v14 }
 0x2ae   : > { %v12453_v17 = vadd.f32 %v9031_v27, %v12313_v31  ;;  %vm5406_vm6 = vcmp.gt.f32.partialorder %v5246_v63, 0.5  ;;  %vm1116_vm7 = vcmp.gt.f32.partialorder %v12439_v37, 0.5  ;;  %vm1159_vm8 = vcmp.gt.f32.partialorder %v12444_v30, 0.5 }
 0x2af   : > { %v5566_v40 = vsel %vm5406_vm6, 0.0, %v5246_v63  ;;  %v8914_v7 = vsel %vm5406_vm6, 1.0, %v9391_v10  ;;  %vm3942_vm9 = vcmp.gt.f32.partialorder %v3782_v1, 0.5  ;;  %vm2543_vm10 = vcmp.gt.f32.partialorder %v2383_v2, 0.5  ;;  %v848_v63 = vpop.f32.mrf.mxu0 }
 0x2b0   : > { %v12459_v48 = vadd.f32 %v8914_v7, %v12318_v55  ;;  %v6503_v38 = vmul.f32 0.2, %v5566_v40  ;;  %v4102_v50 = vsel %vm3942_vm9, 0.0, %v3782_v1  ;;  %v8707_v59 = vsel %vm3942_vm9, 1.0, %v9391_v10  ;;  %v764_v40 = vpop.f32.mrf.mxu3 }
 0x2b1   : > { %v4944_v31 = vsel %vm2096_vm1, %v8707_v59, 0.0  ;;  %v5039_v36 = vmul.f32 0.2, %v4102_v50  ;;  %v2703_v15 = vsel %vm2543_vm10, 0.0, %v2383_v2  ;;  %v8565_v39 = vsel %vm2543_vm10, 1.0, %v9391_v10  ;;  %v680_v2 = vpop.f32.mrf.mxu2 }
 0x2b2   : > { %v6663_v20 = vadd.f32 %v6503_v38, %v12336_v42  ;;  %v12466_v58 = vadd.f32 %v4944_v31, %v12325_v0  ;;  %v12469_v18 = vadd.f32 %v8565_v39, %v12328_v21  ;;  %v3640_v55 = vmul.f32 0.2, %v2703_v15 }
 0x2b3   : > { %v5199_v22 = vadd.f32 %v5039_v36, %v12341_v44  ;;  %v1276_v3 = vsel %vm1116_vm7, 0.0, %v12439_v37  ;;  %v8396_v46 = vsel %vm1116_vm7, 1.0, %v9391_v10  ;;  %v1319_v42 = vsel %vm1159_vm8, 0.0, %v12444_v30 }
 0x2b4   : > { %vm6823_vm11 = vcmp.gt.f32.partialorder %v6663_v20, 0.5  ;;  %v3800_v0 = vadd.f32 %v3640_v55, %v12344_v14  ;;  %v12483_v21 = vadd.f32 %v8396_v46, %v12332_v41  ;;  %v2214_v4 = vmul.f32 0.2, %v1276_v3  ;;  %v9343_v46 = vld [vmem:[%s15323_s3 + $0xb0] sm:$0xff] }
 0x2b5   : > { %v9074_v35 = vsel %vm6823_vm11, 1.0, %v9391_v10  ;;  %vm5359_vm13 = vcmp.gt.f32.partialorder %v5199_v22, 0.5  ;;  %v8439_v25 = vsel %vm1159_vm8, 1.0, %v9391_v10  ;;  %v2257_v57 = vmul.f32 0.2, %v1319_v42  ;;  %8030 = vmatpush.bf16.msra.mxu3 %v9343_v46 }
 0x2b6   : > { %v12490_v11 = vadd.f32 %v9074_v35, %v12349_v52  ;;  %v5519_v12 = vsel %vm5359_vm13, 0.0, %v5199_v22  ;;  %v8867_v6 = vsel %vm5359_vm13, 1.0, %v9391_v10  ;;  %vm3960_vm0 = vcmp.gt.f32.partialorder %v3800_v0, 0.5 }
 0x2b7   : > { %v6361_v41 = vsel %vm2096_vm1, %v8867_v6, 0.0  ;;  %v6456_v56 = vmul.f32 0.2, %v5519_v12  ;;  %v4120_v27 = vsel %vm3960_vm0, 0.0, %v3800_v0  ;;  %v8725_v1 = vsel %vm3960_vm0, 1.0, %v9391_v10  ;;  %v9321_v6 = vld [vmem:[%s15323_s3] sm:$0xff] }
 0x2b8   : > { %v12496_v7 = vadd.f32 %v6361_v41, %v12355_v53  ;;  %v12499_v38 = vadd.f32 %v8725_v1, %v12358_v51  ;;  %v5057_v52 = vmul.f32 0.2, %v4120_v27  ;;  %v2374_v50 = vadd.f32 %v2214_v4, %v12439_v37 }
 0x2b9   : > { %v6616_v59 = vadd.f32 %v6456_v56, %v12341_v44  ;;  %v12504_v31 = vadd.f32 %v8439_v25, %v12377_v19  ;;  %v2417_v36 = vadd.f32 %v2257_v57, %v12444_v30  ;;  %v12508_v15 = vadd.f32 %v848_v63, %v11392_v24  ;;  %v9322_v44 = vld [vmem:[%s15323_s3 + $0x8] sm:$0xff] }
 0x2ba   : > { %v5217_v39 = vadd.f32 %v5057_v52, %v12344_v14  ;;  %vm2534_vm14 = vcmp.gt.f32.partialorder %v2374_v50, 0.5  ;;  %v12512_v53 = vadd.f32 %v680_v2, %v10815_v33  ;;  %v12515_v51 = vadd.f32 %v764_v40, %v11123_v28  ;;  %8009 = vmatpush.bf16.msra.mxu1 %v9322_v44 }
 0x2bb   : > { %vm6776_vm15 = vcmp.gt.f32.partialorder %v6616_v59, 0.5  ;;  %v2694_v19 = vsel %vm2534_vm14, 0.0, %v2374_v50  ;;  %v8556_v20 = vsel %vm2534_vm14, 1.0, %v9391_v10  ;;  %vm2577_vm2 = vcmp.gt.f32.partialorder %v2417_v36, 0.5 }
 0x2bc   : > { %v9027_v55 = vsel %vm6776_vm15, 1.0, %v9391_v10  ;;  %vm5377_vm4 = vcmp.gt.f32.partialorder %v5217_v39, 0.5  ;;  %v12523_v22 = vadd.f32 %v8556_v20, %v12367_v29  ;;  %v3631_v3 = vmul.f32 0.2, %v2694_v19 }
 0x2bd   : > { %v7618_v42 = vsel %vm2096_vm1, %v9027_v55, 0.0  ;;  %v5537_v0 = vsel %vm5377_vm4, 0.0, %v5217_v39  ;;  %v8885_v4 = vsel %vm5377_vm4, 1.0, %v9391_v10  ;;  %v2737_v35 = vsel %vm2577_vm2, 0.0, %v2417_v36 }
 0x2be   : > { %v12532_v25 = vadd.f32 %v7618_v42, %v12391_v49  ;;  %v12535_v57 = vadd.f32 %v8885_v4, %v12394_v23  ;;  %v6474_v29 = vmul.f32 0.2, %v5537_v0  ;;  %v3791_v12 = vadd.f32 %v3631_v3, %v12439_v37  ;;  %8010 = vmatpush.bf16.msra.mxu1 %v9321_v6 }
 0x2bf   : > { %v8599_v63 = vsel %vm2577_vm2, 1.0, %v9391_v10  ;;  %v3674_v41 = vmul.f32 0.2, %v2737_v35  ;;  %vm1112_vm5 = vcmp.gt.f32.partialorder %v12508_v15, 0.5  ;;  %vm1130_vm6 = vcmp.gt.f32.partialorder %v12512_v53, 0.5 }
 0x2c0   : > { %v6634_v49 = vadd.f32 %v6474_v29, %v12344_v14  ;;  %vm3951_vm7 = vcmp.gt.f32.partialorder %v3791_v12, 0.5  ;;  %v12547_v23 = vadd.f32 %v8599_v63, %v12410_v8  ;;  %v1272_v56 = vsel %vm1112_vm5, 0.0, %v12508_v15 }
 0x2c1   : > { %v4111_v27 = vsel %vm3951_vm7, 0.0, %v3791_v12  ;;  %v8716_v1 = vsel %vm3951_vm7, 1.0, %v9391_v10  ;;  %v3834_v2 = vadd.f32 %v3674_v41, %v12444_v30  ;;  %v8392_v40 = vsel %vm1112_vm5, 1.0, %v9391_v10 }
 0x2c2   : > { %vm6794_vm8 = vcmp.gt.f32.partialorder %v6634_v49, 0.5  ;;  %v12554_v52 = vadd.f32 %v8716_v1, %v12405_v60  ;;  %v5048_v50 = vmul.f32 0.2, %v4111_v27  ;;  %v2112_v14 = vsel %vm2096_vm1, %v8392_v40, 0.0  ;;  %v608_v49 = vpop.f32.mrf.mxu1 }
 0x2c3   : > { %v9045_v8 = vsel %vm6794_vm8, 1.0, %v9391_v10  ;;  %vm3994_vm9 = vcmp.gt.f32.partialorder %v3834_v2, 0.5  ;;  %v12559_v59 = vadd.f32 %v2112_v14, %v12414_v54  ;;  %v2210_v36 = vmul.f32 0.2, %v1272_v56 }
 0x2c4   : > { %v12562_v39 = vadd.f32 %v9045_v8, %v12421_v34  ;;  %v5208_v44 = vadd.f32 %v5048_v50, %v12439_v37  ;;  %v4154_v19 = vsel %vm3994_vm9, 0.0, %v3834_v2  ;;  %v8759_v20 = vsel %vm3994_vm9, 1.0, %v9391_v10 }
 0x2c5   : > { %v12567_v60 = vadd.f32 %v8759_v20, %v12435_v47  ;;  %v5091_v55 = vmul.f32 0.2, %v4154_v19  ;;  %v2370_v3 = vadd.f32 %v2210_v36, %v12508_v15  ;;  %v1290_v54 = vsel %vm1130_vm6, 0.0, %v12512_v53 }
 0x2c6   : > { %vm5368_vm10 = vcmp.gt.f32.partialorder %v5208_v44, 0.5  ;;  %v8410_v34 = vsel %vm1130_vm6, 1.0, %v9391_v10  ;;  %v2228_v46 = vmul.f32 0.2, %v1290_v54  ;;  %vm1121_vm11 = vcmp.gt.f32.partialorder %v12515_v51, 0.5 }
 0x2c7   : > { %v5528_v42 = vsel %vm5368_vm10, 0.0, %v5208_v44  ;;  %v8876_v0 = vsel %vm5368_vm10, 1.0, %v9391_v10  ;;  %v5251_v47 = vadd.f32 %v5091_v55, %v12444_v30  ;;  %vm2530_vm13 = vcmp.gt.f32.partialorder %v2370_v3, 0.5 }
 0x2c8   : > { %v12580_v4 = vadd.f32 %v8876_v0, %v12426_v13  ;;  %v6465_v35 = vmul.f32 0.2, %v5528_v42  ;;  %v2690_v29 = vsel %vm2530_vm13, 0.0, %v2370_v3  ;;  %v8552_v12 = vsel %vm2530_vm13, 1.0, %v9391_v10 }
 0x2c9   : > { %vm5411_vm0 = vcmp.gt.f32.partialorder %v5251_v47, 0.5  ;;  %v3529_v6 = vsel %vm2096_vm1, %v8552_v12, 0.0  ;;  %v3627_v63 = vmul.f32 0.2, %v2690_v29  ;;  %v12585_v41 = vadd.f32 %v8410_v34, %v12431_v9  ;;  %v850_v34 = vpop.f32.mrf.mxu0 }
 0x2ca   : > { %v6625_v56 = vadd.f32 %v6465_v35, %v12439_v37  ;;  %v5571_v27 = vsel %vm5411_vm0, 0.0, %v5251_v47  ;;  %v8919_v1 = vsel %vm5411_vm0, 1.0, %v9391_v10  ;;  %v12590_v13 = vadd.f32 %v3529_v6, %v12448_v16 }
 0x2cb   : > { %v12593_v2 = vadd.f32 %v8919_v1, %v12459_v48  ;;  %v6508_v40 = vmul.f32 0.2, %v5571_v27  ;;  %v3787_v50 = vadd.f32 %v3627_v63, %v12508_v15  ;;  %v2388_v14 = vadd.f32 %v2228_v46, %v12512_v53  ;;  %v682_v46 = vpop.f32.mrf.mxu2 }
 0x2cc   : > { %vm6785_vm14 = vcmp.gt.f32.partialorder %v6625_v56, 0.5  ;;  %v1281_v9 = vsel %vm1121_vm11, 0.0, %v12515_v51  ;;  %v8401_v37 = vsel %vm1121_vm11, 1.0, %v9391_v10  ;;  %v12604_v16 = vadd.f32 %v608_v49, %v9855_v5 }
 0x2cd   : > { %v9036_v48 = vsel %vm6785_vm14, 1.0, %v9391_v10  ;;  %v6668_v8 = vadd.f32 %v6508_v40, %v12444_v30  ;;  %vm3947_vm15 = vcmp.gt.f32.partialorder %v3787_v50, 0.5  ;;  %vm2548_vm2 = vcmp.gt.f32.partialorder %v2388_v14, 0.5 }
 0x2ce   : > { %v12609_v36 = vadd.f32 %v9036_v48, %v12453_v17  ;;  %v4107_v44 = vsel %vm3947_vm15, 0.0, %v3787_v50  ;;  %v8712_v19 = vsel %vm3947_vm15, 1.0, %v9391_v10  ;;  %v2708_v20 = vsel %vm2548_vm2, 0.0, %v2388_v14 }
 0x2cf   : > { %vm6828_vm4 = vcmp.gt.f32.partialorder %v6668_v8, 0.5  ;;  %v4946_v55 = vsel %vm2096_vm1, %v8712_v19, 0.0  ;;  %v5044_v3 = vmul.f32 0.2, %v4107_v44  ;;  %v8570_v54 = vsel %vm2548_vm2, 1.0, %v9391_v10 }
 0x2d0   : > { %v9079_v42 = vsel %vm6828_vm4, 1.0, %v9391_v10  ;;  %v12616_v30 = vadd.f32 %v4946_v55, %v12466_v58  ;;  %v12619_v17 = vadd.f32 %v8570_v54, %v12469_v18  ;;  %v3645_v0 = vmul.f32 0.2, %v2708_v20 }
 0x2d1   : > { %v12622_v47 = vadd.f32 %v9079_v42, %v12490_v11  ;;  %v5204_v35 = vadd.f32 %v5044_v3, %v12508_v15  ;;  %v12626_v29 = vadd.f32 %v8401_v37, %v12483_v21  ;;  %v2219_v12 = vmul.f32 0.2, %v1281_v9 }
 0x2d2   : > { %v3805_v6 = vadd.f32 %v3645_v0, %v12512_v53  ;;  %vm1164_vm5 = vcmp.gt.f32.partialorder %v12604_v16, 0.5  ;;  %v12631_v58 = vadd.f32 %v850_v34, %v11392_v24  ;;  %v12634_v18 = vadd.f32 %v682_v46, %v10815_v33 }
 0x2d3   : > { %vm5364_vm6 = vcmp.gt.f32.partialorder %v5204_v35, 0.5  ;;  %v2379_v11 = vadd.f32 %v2219_v12, %v12515_v51  ;;  %v1324_v63 = vsel %vm1164_vm5, 0.0, %v12604_v16  ;;  %v8444_v49 = vsel %vm1164_vm5, 1.0, %v9391_v10 }
 0x2d4   : > { %v5524_v21 = vsel %vm5364_vm6, 0.0, %v5204_v35  ;;  %v8872_v56 = vsel %vm5364_vm6, 1.0, %v9391_v10  ;;  %vm3965_vm7 = vcmp.gt.f32.partialorder %v3805_v6, 0.5  ;;  %v12641_v27 = vadd.f32 %v8444_v49, %v12504_v31 }
 0x2d5   : > { %v6363_v1 = vsel %vm2096_vm1, %v8872_v56, 0.0  ;;  %v6461_v40 = vmul.f32 0.2, %v5524_v21  ;;  %v4125_v50 = vsel %vm3965_vm7, 0.0, %v3805_v6  ;;  %v8730_v14 = vsel %vm3965_vm7, 1.0, %v9391_v10 }
 0x2d6   : > { %v12646_v9 = vadd.f32 %v6363_v1, %v12496_v7  ;;  %v12649_v37 = vadd.f32 %v8730_v14, %v12499_v38  ;;  %v5062_v48 = vmul.f32 0.2, %v4125_v50  ;;  %vm2539_vm8 = vcmp.gt.f32.partialorder %v2379_v11, 0.5 }
 0x2d7   : > { %v6621_v8 = vadd.f32 %v6461_v40, %v12508_v15  ;;  %v2699_v44 = vsel %vm2539_vm8, 0.0, %v2379_v11  ;;  %v8561_v31 = vsel %vm2539_vm8, 1.0, %v9391_v10  ;;  %v2262_v19 = vmul.f32 0.2, %v1324_v63 }
 0x2d8   : > { %v5222_v20 = vadd.f32 %v5062_v48, %v12512_v53  ;;  %v12655_v55 = vadd.f32 %v8561_v31, %v12523_v22  ;;  %v3636_v3 = vmul.f32 0.2, %v2699_v44  ;;  %vm1117_vm9 = vcmp.gt.f32.partialorder %v12631_v58, 0.5  ;;  %v766_v48 = vpop.f32.mrf.mxu3 }
 0x2d9   : > { %vm6781_vm10 = vcmp.gt.f32.partialorder %v6621_v8, 0.5  ;;  %v2422_v7 = vadd.f32 %v2262_v19, %v12604_v16  ;;  %v1277_v38 = vsel %vm1117_vm9, 0.0, %v12631_v58  ;;  %v8397_v54 = vsel %vm1117_vm9, 1.0, %v9391_v10 }
 0x2da   : > { %v9032_v15 = vsel %vm6781_vm10, 1.0, %v9391_v10  ;;  %vm5382_vm11 = vcmp.gt.f32.partialorder %v5222_v20, 0.5  ;;  %v3796_v34 = vadd.f32 %v3636_v3, %v12515_v51  ;;  %v2114_v46 = vsel %vm2096_vm1, %v8397_v54, 0.0 }
 0x2db   : > { %v7620_v22 = vsel %vm2096_vm1, %v9032_v15, 0.0  ;;  %v5542_v42 = vsel %vm5382_vm11, 0.0, %v5222_v20  ;;  %v8890_v0 = vsel %vm5382_vm11, 1.0, %v9391_v10  ;;  %vm2582_vm13 = vcmp.gt.f32.partialorder %v2422_v7, 0.5 }
 0x2dc   : > { %v12667_v35 = vadd.f32 %v7620_v22, %v12532_v25  ;;  %v12670_v12 = vadd.f32 %v8890_v0, %v12535_v57  ;;  %v6479_v6 = vmul.f32 0.2, %v5542_v42  ;;  %vm3956_vm0 = vcmp.gt.f32.partialorder %v3796_v34, 0.5 }
 0x2dd   : > { %v4116_v11 = vsel %vm3956_vm0, 0.0, %v3796_v34  ;;  %v8721_v63 = vsel %vm3956_vm0, 1.0, %v9391_v10  ;;  %v2742_v49 = vsel %vm2582_vm13, 0.0, %v2422_v7  ;;  %v8604_v21 = vsel %vm2582_vm13, 1.0, %v9391_v10 }
 0x2de   : > { %v6639_v56 = vadd.f32 %v6479_v6, %v12512_v53  ;;  %v12676_v1 = vadd.f32 %v8721_v63, %v12554_v52  ;;  %v5053_v40 = vmul.f32 0.2, %v4116_v11  ;;  %v12679_v25 = vadd.f32 %v8604_v21, %v12547_v23 }
 0x2df   : > { %v3679_v50 = vmul.f32 0.2, %v2742_v49  ;;  %v12682_v57 = vadd.f32 %v2114_v46, %v12559_v59  ;;  %v2215_v14 = vmul.f32 0.2, %v1277_v38  ;;  %vm1135_vm14 = vcmp.gt.f32.partialorder %v12634_v18, 0.5  ;;  %v611_v46 = vpop.f32.mrf.mxu1 }
 0x2e0   : > { %vm6799_vm15 = vcmp.gt.f32.partialorder %v6639_v56, 0.5  ;;  %v5213_v8 = vadd.f32 %v5053_v40, %v12515_v51  ;;  %v1295_v53 = vsel %vm1135_vm14, 0.0, %v12634_v18  ;;  %v8415_v52 = vsel %vm1135_vm14, 1.0, %v9391_v10 }
 0x2e1   : > { %v9050_v44 = vsel %vm6799_vm15, 1.0, %v9391_v10  ;;  %v3839_v23 = vadd.f32 %v3679_v50, %v12604_v16  ;;  %v2375_v31 = vadd.f32 %v2215_v14, %v12631_v58  ;;  %v12692_v59 = vadd.f32 %v8415_v52, %v12585_v41 }
 0x2e2   : > { %v12695_v19 = vadd.f32 %v9050_v44, %v12562_v39  ;;  %vm5373_vm2 = vcmp.gt.f32.partialorder %v5213_v8, 0.5  ;;  %v2233_v20 = vmul.f32 0.2, %v1295_v53  ;;  %v12698_v3 = vadd.f32 %v766_v48, %v11123_v28 }
 0x2e3   : > { %v5533_v7 = vsel %vm5373_vm2, 0.0, %v5213_v8  ;;  %v8881_v38 = vsel %vm5373_vm2, 1.0, %v9391_v10  ;;  %vm3999_vm4 = vcmp.gt.f32.partialorder %v3839_v23, 0.5  ;;  %vm2535_vm5 = vcmp.gt.f32.partialorder %v2375_v31, 0.5 }
 0x2e4   : > { %v12702_v54 = vadd.f32 %v8881_v38, %v12580_v4  ;;  %v6470_v15 = vmul.f32 0.2, %v5533_v7  ;;  %v4159_v34 = vsel %vm3999_vm4, 0.0, %v3839_v23  ;;  %v8764_v41 = vsel %vm3999_vm4, 1.0, %v9391_v10 }
 0x2e5   : > { %v12706_v39 = vadd.f32 %v8764_v41, %v12567_v60  ;;  %v5096_v22 = vmul.f32 0.2, %v4159_v34  ;;  %v2695_v42 = vsel %vm2535_vm5, 0.0, %v2375_v31  ;;  %v8557_v0 = vsel %vm2535_vm5, 1.0, %v9391_v10 }
 0x2e6   : > { %v6630_v6 = vadd.f32 %v6470_v15, %v12515_v51  ;;  %v3531_v11 = vsel %vm2096_vm1, %v8557_v0, 0.0  ;;  %v3632_v63 = vmul.f32 0.2, %v2695_v42  ;;  %v2393_v4 = vadd.f32 %v2233_v20, %v12634_v18 }
 0x2e7   : > { %v5256_v49 = vadd.f32 %v5096_v22, %v12604_v16  ;;  %v12714_v21 = vadd.f32 %v3531_v11, %v12590_v13  ;;  %vm1126_vm6 = vcmp.gt.f32.partialorder %v12698_v3, 0.5  ;;  %v12718_v60 = vadd.f32 %v611_v46, %v9855_v5 }
 0x2e8   : > { %vm6790_vm7 = vcmp.gt.f32.partialorder %v6630_v6, 0.5  ;;  %v3792_v56 = vadd.f32 %v3632_v63, %v12631_v58  ;;  %vm2553_vm8 = vcmp.gt.f32.partialorder %v2393_v4, 0.5  ;;  %v1286_v51 = vsel %vm1126_vm6, 0.0, %v12698_v3 }
 0x2e9   : > { %v9041_v40 = vsel %vm6790_vm7, 1.0, %v9391_v10  ;;  %vm5416_vm9 = vcmp.gt.f32.partialorder %v5256_v49, 0.5  ;;  %v2713_v50 = vsel %vm2553_vm8, 0.0, %v2393_v4  ;;  %v8575_v13 = vsel %vm2553_vm8, 1.0, %v9391_v10 }
 0x2ea   : > { %v12727_v14 = vadd.f32 %v9041_v40, %v12609_v36  ;;  %v5576_v48 = vsel %vm5416_vm9, 0.0, %v5256_v49  ;;  %v8924_v8 = vsel %vm5416_vm9, 1.0, %v9391_v10  ;;  %vm3952_vm10 = vcmp.gt.f32.partialorder %v3792_v56, 0.5  ;;  %v853_v40 = vpop.f32.mrf.mxu0 }
 0x2eb   : > { %v12731_v53 = vadd.f32 %v8924_v8, %v12593_v2  ;;  %v6513_v52 = vmul.f32 0.2, %v5576_v48  ;;  %v4112_v44 = vsel %vm3952_vm10, 0.0, %v3792_v56  ;;  %v8717_v23 = vsel %vm3952_vm10, 1.0, %v9391_v10 }
 0x2ec   : > { %v4948_v31 = vsel %vm2096_vm1, %v8717_v23, 0.0  ;;  %v5049_v20 = vmul.f32 0.2, %v4112_v44  ;;  %v12736_v7 = vadd.f32 %v8575_v13, %v12619_v17  ;;  %v3650_v38 = vmul.f32 0.2, %v2713_v50 }
 0x2ed   : > { %v6673_v36 = vadd.f32 %v6513_v52, %v12604_v16  ;;  %v12740_v15 = vadd.f32 %v4948_v31, %v12616_v30  ;;  %v8406_v2 = vsel %vm1126_vm6, 1.0, %v9391_v10  ;;  %v2224_v34 = vmul.f32 0.2, %v1286_v51 }
 0x2ee   : > { %v5209_v41 = vadd.f32 %v5049_v20, %v12631_v58  ;;  %v3810_v46 = vadd.f32 %v3650_v38, %v12634_v18  ;;  %v12748_v22 = vadd.f32 %v8406_v2, %v12626_v29  ;;  %vm1169_vm11 = vcmp.gt.f32.partialorder %v12718_v60, 0.5 }
 0x2ef   : > { %vm6833_vm13 = vcmp.gt.f32.partialorder %v6673_v36, 0.5  ;;  %v2384_v16 = vadd.f32 %v2224_v34, %v12698_v3  ;;  %v1329_v30 = vsel %vm1169_vm11, 0.0, %v12718_v60  ;;  %v8449_v17 = vsel %vm1169_vm11, 1.0, %v9391_v10 }
 0x2f0   : > { %v9084_v42 = vsel %vm6833_vm13, 1.0, %v9391_v10  ;;  %vm5369_vm0 = vcmp.gt.f32.partialorder %v5209_v41, 0.5  ;;  %vm3970_vm14 = vcmp.gt.f32.partialorder %v3810_v46, 0.5  ;;  %v12756_v0 = vadd.f32 %v8449_v17, %v12641_v27 }
 0x2f1   : > { %v12759_v6 = vadd.f32 %v9084_v42, %v12622_v47  ;;  %v5529_v29 = vsel %vm5369_vm0, 0.0, %v5209_v41  ;;  %v8877_v11 = vsel %vm5369_vm0, 1.0, %v9391_v10  ;;  %v4130_v63 = vsel %vm3970_vm14, 0.0, %v3810_v46 }
 0x2f2   : > { %v6365_v4 = vsel %vm2096_vm1, %v8877_v11, 0.0  ;;  %v6466_v49 = vmul.f32 0.2, %v5529_v29  ;;  %v8735_v56 = vsel %vm3970_vm14, 1.0, %v9391_v10  ;;  %v5067_v51 = vmul.f32 0.2, %v4130_v63 }
 0x2f3   : > { %v12765_v50 = vadd.f32 %v6365_v4, %v12646_v9  ;;  %v12768_v27 = vadd.f32 %v8735_v56, %v12649_v37  ;;  %vm2544_vm15 = vcmp.gt.f32.partialorder %v2384_v16, 0.5  ;;  %v2267_v47 = vmul.f32 0.2, %v1329_v30  ;;  %v15444_v37 = vld [vmem:[#allocation20_spill] sm:$0xff]  ;;  %v15446_v56 = vld [vmem:[#allocation29_spill] sm:$0xff] }
 0x2f4   : > { %v6626_v13 = vadd.f32 %v6466_v49, %v12631_v58  ;;  %v5227_v48 = vadd.f32 %v5067_v51, %v12634_v18  ;;  %v2704_v8 = vsel %vm2544_vm15, 0.0, %v2384_v16  ;;  %v8566_v52 = vsel %vm2544_vm15, 1.0, %v9391_v10  ;;  %v15445_v58 = vld [vmem:[#allocation13_spill] sm:$0xff] }
 0x2f5   : > { %v12774_v44 = vadd.f32 %v8566_v52, %v12655_v55  ;;  %v3641_v23 = vmul.f32 0.2, %v2704_v8  ;;  %v2427_v31 = vadd.f32 %v2267_v47, %v12718_v60  ;;  %v12778_v9 = vadd.f32 %v853_v40, %v11392_v24  ;;  %v15447_v8 = vld [vmem:[#allocation38_spill] sm:$0xff] }
 0x2f6   : > { %vm6786_vm2 = vcmp.gt.f32.partialorder %v6626_v13, 0.5  ;;  %vm5387_vm4 = vcmp.gt.f32.partialorder %v5227_v48, 0.5  ;;  %v1971_v20 = vadd.f32 %v15444_v37, %v11305_v32  ;;  %v3388_v38 = vadd.f32 %v15445_v58, %v11326_v43  ;;  %v15449_v37 = vld [vmem:[#allocation5_spill] sm:$0xff] }
 0x2f7   : > { %v9037_v36 = vsel %vm6786_vm2, 1.0, %v9391_v10  ;;  %v5547_v2 = vsel %vm5387_vm4, 0.0, %v5227_v48  ;;  %v8895_v55 = vsel %vm5387_vm4, 1.0, %v9391_v10  ;;  %v3801_v34 = vadd.f32 %v3641_v23, %v12698_v3  ;;  %v15448_v23 = vld [vmem:[#allocation22_spill] sm:$0xff] }
 0x2f8   : > { %v7622_v41 = vsel %vm2096_vm1, %v9037_v36, 0.0  ;;  %v12789_v46 = vadd.f32 %v8895_v55, %v12670_v12  ;;  %v6484_v16 = vmul.f32 0.2, %v5547_v2  ;;  %vm2587_vm5 = vcmp.gt.f32.partialorder %v2427_v31, 0.5 }
 0x2f9   : > { %v12792_v30 = vadd.f32 %v7622_v41, %v12667_v35  ;;  %vm3961_vm6 = vcmp.gt.f32.partialorder %v3801_v34, 0.5  ;;  %v2747_v32 = vsel %vm2587_vm5, 0.0, %v2427_v31  ;;  %v8609_v43 = vsel %vm2587_vm5, 1.0, %v9391_v10 }
 0x2fa   : > { %v6644_v17 = vadd.f32 %v6484_v16, %v12634_v18  ;;  %v4121_v42 = vsel %vm3961_vm6, 0.0, %v3801_v34  ;;  %v8726_v29 = vsel %vm3961_vm6, 1.0, %v9391_v10  ;;  %v12798_v11 = vadd.f32 %v8609_v43, %v12679_v25  ;;  %v15451_v43 = vld [vmem:[#allocation30_spill] sm:$0xff] }
 0x2fb   : > { %v12801_v12 = vadd.f32 %v8726_v29, %v12676_v1  ;;  %v5058_v63 = vmul.f32 0.2, %v4121_v42  ;;  %v3684_v4 = vmul.f32 0.2, %v2747_v32  ;;  %vm1122_vm7 = vcmp.gt.f32.partialorder %v12778_v9, 0.5 }
 0x2fc   : > { %vm6804_vm8 = vcmp.gt.f32.partialorder %v6644_v17, 0.5  ;;  %v1282_v35 = vsel %vm1122_vm7, 0.0, %v12778_v9  ;;  %v8402_v49 = vsel %vm1122_vm7, 1.0, %v9391_v10  ;;  %v1972_v18 = vadd.f32 %v15446_v56, %v1971_v20  ;;  %v15452_v17 = vld [vmem:[#allocation17_spill] sm:$0xff] }
 0x2fd   : > { %v9055_v51 = vsel %vm6804_vm8, 1.0, %v9391_v10  ;;  %v5218_v40 = vadd.f32 %v5058_v63, %v12698_v3  ;;  %v3844_v25 = vadd.f32 %v3684_v4, %v12718_v60  ;;  %v2116_v1 = vsel %vm2096_vm1, %v8402_v49, 0.0  ;;  %v15455_v49 = vld [vmem:[#allocation57_spill] sm:$0xff] }
 0x2fe   : > { %v12812_v47 = vadd.f32 %v9055_v51, %v12695_v19  ;;  %v12815_v13 = vadd.f32 %v2116_v1, %v12682_v57  ;;  %v2220_v48 = vmul.f32 0.2, %v1282_v35  ;;  %v1973_v52 = vadd.f32 %v15447_v8, %v1972_v18  ;;  %v15454_v35 = vld [vmem:[#allocation10_spill] sm:$0xff]  ;;  %v15456_v18 = vld [vmem:[#allocation39_spill] sm:$0xff] }
 0x2ff   : > { %vm5378_vm9 = vcmp.gt.f32.partialorder %v5218_v40, 0.5  ;;  %vm4004_vm10 = vcmp.gt.f32.partialorder %v3844_v25, 0.5  ;;  %v3389_v31 = vadd.f32 %v15448_v23, %v3388_v38  ;;  %v4804_v20 = vadd.f32 %v15449_v37, %v11344_v61  ;;  %v15450_v38 = vld [vmem:[#allocation46_spill] sm:$0xff] }
 0x300   : > { %v5538_v58 = vsel %vm5378_vm9, 0.0, %v5218_v40  ;;  %v8886_v36 = vsel %vm5378_vm9, 1.0, %v9391_v10  ;;  %v4164_v2 = vsel %vm4004_vm10, 0.0, %v3844_v25  ;;  %v8769_v19 = vsel %vm4004_vm10, 1.0, %v9391_v10  ;;  %v15457_v40 = vld [vmem:[#allocation24_spill] sm:$0xff] }
 0x301   : > { %v12824_v55 = vadd.f32 %v8886_v36, %v12702_v54  ;;  %v6475_v57 = vmul.f32 0.2, %v5538_v58  ;;  %v12827_v34 = vadd.f32 %v8769_v19, %v12706_v39  ;;  %v5101_v41 = vmul.f32 0.2, %v4164_v2  ;;  %v15453_v54 = vld [vmem:[#allocation8_spill] sm:$0xff]  ;;  %v15458_v58 = vld [vmem:[#allocation66_spill] sm:$0xff] }
 0x302   : > { %v2380_v16 = vadd.f32 %v2220_v48, %v12778_v9  ;;  %v1974_v32 = vadd.f32 %v15450_v38, %v1973_v52  ;;  %v3390_v61 = vadd.f32 %v15451_v43, %v3389_v31  ;;  %v4805_v42 = vadd.f32 %v15452_v17, %v4804_v20  ;;  %v15459_v2 = vld [vmem:[#allocation49_spill] sm:$0xff]  ;;  %v15461_v38 = vld [vmem:[#allocation19_spill] sm:$0xff] }
 0x303   : > { %v6635_v29 = vadd.f32 %v6475_v57, %v12698_v3  ;;  %v5261_v63 = vadd.f32 %v5101_v41, %v12718_v60  ;;  %v6221_v4 = vadd.f32 %v15453_v54, %v11379_v62  ;;  %v7478_v39 = vadd.f32 %v15454_v35, %v11414_v26  ;;  %v15460_v57 = vld [vmem:[#allocation32_spill] sm:$0xff]  ;;  %v15466_v35 = vld [vmem:[#allocation82_spill] sm:$0xff] }
 0x304   : > { %vm2540_vm11 = vcmp.gt.f32.partialorder %v2380_v16, 0.5  ;;  %v1975_v56 = vadd.f32 %v15455_v49, %v1974_v32  ;;  %v3391_v51 = vadd.f32 %v15456_v18, %v3390_v61  ;;  %v4806_v25 = vadd.f32 %v15457_v40, %v4805_v42  ;;  %v15462_v32 = vld [vmem:[#allocation21_spill] sm:$0xff]  ;;  %v15463_v61 = vld [vmem:[#allocation72_spill] sm:$0xff]  ;;  %v15464_v42 = vld [vmem:[#allocation59_spill] sm:$0xff] }
 0x305   : > { %vm6795_vm13 = vcmp.gt.f32.partialorder %v6635_v29, 0.5  ;;  %vm5421_vm0 = vcmp.gt.f32.partialorder %v5261_v63, 0.5  ;;  %v2700_v1 = vsel %vm2540_vm11, 0.0, %v2380_v16  ;;  %v8562_v3 = vsel %vm2540_vm11, 1.0, %v9391_v10  ;;  %v15467_v49 = vld [vmem:[#allocation26_spill] sm:$0xff] }
 0x306   : > { %v9046_v48 = vsel %vm6795_vm13, 1.0, %v9391_v10  ;;  %v5581_v8 = vsel %vm5421_vm0, 0.0, %v5261_v63  ;;  %v8929_v62 = vsel %vm5421_vm0, 1.0, %v9391_v10  ;;  %v3533_v52 = vsel %vm2096_vm1, %v8562_v3, 0.0  ;;  %v15465_v63 = vld [vmem:[#allocation42_spill] sm:$0xff] }
 0x307   : > { %v12847_v26 = vadd.f32 %v9046_v48, %v12727_v14  ;;  %v12850_v23 = vadd.f32 %v8929_v62, %v12731_v53  ;;  %v6518_v31 = vmul.f32 0.2, %v5581_v8  ;;  %v12853_v37 = vadd.f32 %v3533_v52, %v12714_v21  ;;  %v15471_v48 = vld [vmem:[#allocation51_spill] sm:$0xff] }
 0x308   : > { %v3637_v20 = vmul.f32 0.2, %v2700_v1  ;;  %v1976_v36 = vadd.f32 %v15458_v58, %v1975_v56  ;;  %v3392_v19 = vadd.f32 %v15459_v2, %v3391_v51  ;;  %v4807_v41 = vadd.f32 %v15460_v57, %v4806_v25  ;;  %v15468_v56 = vld [vmem:[#allocation28_spill] sm:$0xff]  ;;  %v15473_v2 = vld [vmem:[#allocation61_spill] sm:$0xff]  ;;  %v15474_v57 = vld [vmem:[#allocation34_spill] sm:$0xff] }
 0x309   : > { %v8823_v16 = vsel %vm4058_vm12, 1.0, %v9391_v10  ;;  %v6678_v14 = vadd.f32 %v6518_v31, %v12718_v60  ;;  %v6222_v53 = vadd.f32 %v15461_v38, %v6221_v4  ;;  %v7479_v43 = vadd.f32 %v15462_v32, %v7478_v39  ;;  %v15469_v4 = vld [vmem:[#allocation78_spill] sm:$0xff]  ;;  %v15470_v51 = vld [vmem:[#allocation68_spill] sm:$0xff]  ;;  %v15485_v38 = vld [vmem:[#allocation73_spill] sm:$0xff] }
 0x30a   : > { %v3797_v21 = vadd.f32 %v3637_v20, %v12778_v9  ;;  %v1977_v17 = vadd.f32 %v15463_v61, %v1976_v36  ;;  %v3393_v29 = vadd.f32 %v15464_v42, %v3392_v19  ;;  %v4808_v54 = vadd.f32 %v15465_v63, %v4807_v41  ;;  %v15472_v20 = vld [vmem:[#allocation75_spill] sm:$0xff] }
 0x30b   : > { %vm6892_vm14 = vcmp.gt.f32.partialorder %v15466_v35, 0.5  ;;  %vm6838_vm15 = vcmp.gt.f32.partialorder %v6678_v14, 0.5  ;;  %v6223_v45 = vadd.f32 %v15467_v49, %v6222_v53  ;;  %v7480_v18 = vadd.f32 %v15468_v56, %v7479_v43  ;;  %v15478_v42 = vld [vmem:[#allocation71_spill] sm:$0xff]  ;;  %v15480_v49 = vld [vmem:[#allocation45_spill] sm:$0xff] }
 0x30c   : > { %v9089_v60 = vsel %vm6838_vm15, 1.0, %v9391_v10  ;;  %vm3957_vm12 = vcmp.gt.f32.partialorder %v3797_v21, 0.5  ;;  %v1978_v39 = vadd.f32 %v15469_v4, %v1977_v17  ;;  %v3394_v40 = vadd.f32 %v15470_v51, %v3393_v29  ;;  %v685_v17 = vpop.f32.mrf.mxu2  ;;  %v15479_v63 = vld [vmem:[#allocation43_spill] sm:$0xff]  ;;  %v15481_v51 = vld [vmem:[#allocation76_spill] sm:$0xff] }
 0x30d   : > { %v12875_v25 = vadd.f32 %v9089_v60, %v12759_v6  ;;  %v4117_v1 = vsel %vm3957_vm12, 0.0, %v3797_v21  ;;  %v8722_v3 = vsel %vm3957_vm12, 1.0, %v9391_v10  ;;  %v4809_v8 = vadd.f32 %v15471_v48, %v4808_v54  ;;  %v15475_v6 = vld [vmem:[#allocation36_spill] sm:$0xff]  ;;  %v15477_v21 = vld [vmem:[#allocation81_spill] sm:$0xff] }
 0x30e   : > { %v4950_v62 = vsel %vm2096_vm1, %v8722_v3, 0.0  ;;  %v5054_v52 = vmul.f32 0.2, %v4117_v1  ;;  %v1979_v31 = vrot.slane %v1978_v39, 4  ;;  %v3395_v58 = vadd.f32 %v15472_v20, %v3394_v40  ;;  %v15482_v1 = vld [vmem:[#allocation53_spill] sm:$0xff]  ;;  %v15483_v20 = vld [vmem:[#allocation63_spill] sm:$0xff] }
 0x30f   : > { %v12882_v36 = vadd.f32 %v4950_v62, %v12740_v15  ;;  %v4810_v19 = vadd.f32 %v15473_v2, %v4809_v8  ;;  %v6224_v41 = vadd.f32 %v15474_v57, %v6223_v45  ;;  %v7481_v14 = vadd.f32 %v15475_v6, %v7480_v18  ;;  %v15484_v2 = vld [vmem:[#allocation54_spill] sm:$0xff] }
 0x310   : > { %v8983_v53 = vsel %vm5475_vm3, 1.0, %v9391_v10  ;;  %v5214_v32 = vadd.f32 %v5054_v52, %v12778_v9  ;;  %v1980_v43 = vadd.f32 %v1979_v31, %v1978_v39  ;;  %v3396_v61 = vadd.f32 %v15477_v21, %v3395_v58  ;;  %v15486_v21 = vld [vmem:[#allocation65_spill] sm:$0xff] }
 0x311   : > { %v9143_v15 = vsel %vm6892_vm14, 1.0, %v9391_v10  ;;  %v4811_v29 = vadd.f32 %v15478_v42, %v4810_v19  ;;  %v6225_v54 = vadd.f32 %v15479_v63, %v6224_v41  ;;  %v7482_v45 = vadd.f32 %v15480_v49, %v7481_v14 }
 0x312   : > { %vm5374_vm2 = vcmp.gt.f32.partialorder %v5214_v32, 0.5  ;;  %v1981_v56 = vrot.slane %v1980_v43, 2  ;;  %v3397_v18 = vrot.slane %v3396_v61, 4  ;;  %v12899_v60 = vadd.f32 %v685_v17, %v10815_v33 }
 0x313   : > { %v5534_v4 = vsel %vm5374_vm2, 0.0, %v5214_v32  ;;  %v8882_v39 = vsel %vm5374_vm2, 1.0, %v9391_v10  ;;  %v4812_v40 = vadd.f32 %v15481_v51, %v4811_v29  ;;  %v6226_v35 = vadd.f32 %v15482_v1, %v6225_v54  ;;  %v15488_v54 = vld [vmem:[#allocation74_spill] sm:$0xff]  ;;  %v613_v51 = vpop.f32.mrf.mxu1 }
 0x314   : > { %vm7674_vm3 = vcmask 1040384   ;;  %v6367_v3 = vsel %vm2096_vm1, %v8882_v39, 0.0  ;;  %v6471_v48 = vmul.f32 0.2, %v5534_v4  ;;  %v1982_v8 = vadd.f32 %v1981_v56, %v1980_v43 }
 0x315   : > { %v3398_v62 = vadd.f32 %v3397_v18, %v3396_v61  ;;  %v12906_v52 = vadd.f32 %v6367_v3, %v12765_v50  ;;  %v4813_v31 = vadd.f32 %v8823_v16, %v4812_v40  ;;  %v6227_v58 = vadd.f32 %v15483_v20, %v6226_v35  ;;  %v15489_v3 = vld [vmem:[#allocation79_spill] sm:$0xff] }
 0x316   : > { %v7483_v19 = vadd.f32 %v15484_v2, %v7482_v45  ;;  %v6631_v57 = vadd.f32 %v6471_v48, %v12778_v9  ;;  %v1983_v41 = vrot.slane %v1982_v8, 1  ;;  %vm1140_vm4 = vcmp.gt.f32.partialorder %v12899_v60, 0.5  ;;  %v15487_v9 = vld [vmem:[#allocation77_spill] sm:$0xff]  ;;  %v769_v45 = vpop.f32.mrf.mxu3 }
 0x317   : > { %v3399_v6 = vrot.slane %v3398_v62, 2  ;;  %v4814_v14 = vrot.slane %v4813_v31, 4  ;;  %v6228_v32 = vadd.f32 %v15485_v38, %v6227_v58  ;;  %v1300_v61 = vsel %vm1140_vm4, 0.0, %v12899_v60 }
 0x318   : > { %v7484_v43 = vadd.f32 %v15486_v21, %v7483_v19  ;;  %vm6791_vm5 = vcmp.gt.f32.partialorder %v6631_v57, 0.5  ;;  %v1984_v50 = vadd.f32 %v1983_v41, %v1982_v8  ;;  %v8420_v17 = vsel %vm1140_vm4, 1.0, %v9391_v10 }
 0x319   : > { %v3400_v16 = vadd.f32 %v3399_v6, %v3398_v62  ;;  %v9042_v42 = vsel %vm6791_vm5, 1.0, %v9391_v10  ;;  %v4815_v29 = vadd.f32 %v4814_v14, %v4813_v31  ;;  %v6229_v63 = vadd.f32 %v15487_v9, %v6228_v32 }
 0x31a   : > { %v7485_v49 = vadd.f32 %v15488_v54, %v7484_v43  ;;  %v7624_v56 = vsel %vm2096_vm1, %v9042_v42, 0.0  ;;  %v12921_v4 = vadd.f32 %v8420_v17, %v12692_v59  ;;  %v2238_v39 = vmul.f32 0.2, %v1300_v61 }
 0x31b   : > { %v3401_v18 = vrot.slane %v3400_v16, 1  ;;  %v12924_v40 = vadd.f32 %v7624_v56, %v12792_v30  ;;  %v4816_v1 = vrot.slane %v4815_v29, 2  ;;  %v6230_v35 = vadd.f32 %v8983_v53, %v6229_v63 }
 0x31c   : > { %v7486_v48 = vadd.f32 %v15489_v3, %v7485_v49  ;;  %v2398_v62 = vadd.f32 %v2238_v39, %v12899_v60  ;;  %v12929_v31 = vadd.f32 %v769_v45, %v11123_v28  ;;  %v12932_v20 = vadd.f32 %v613_v51, %v9855_v5 }
 0x31d   : > { %v3402_v8 = vadd.f32 %v3401_v18, %v3400_v16  ;;  %v4817_v59 = vadd.f32 %v4816_v1, %v4815_v29  ;;  %v6231_v58 = vrot.slane %v6230_v35, 4  ;;  %vm7680_vm6 = vcmask 1041408  }
 0x31e   : > { %v7487_v2 = vadd.f32 %v9143_v15, %v7486_v48  ;;  %vm7686_vm7 = vcmask 1042432   ;;  %vm2558_vm8 = vcmp.gt.f32.partialorder %v2398_v62, 0.5  ;;  %vm1131_vm9 = vcmp.gt.f32.partialorder %v12929_v31, 0.5 }
 0x31f   : > { %v7675_v30 = vsel %vm7674_vm3, %v1984_v50, %v3402_v8  ;;  %vm1174_vm10 = vcmp.gt.f32.partialorder %v12932_v20, 0.5  ;;  %v4818_v53 = vrot.slane %v4817_v59, 1  ;;  %v6232_v19 = vadd.f32 %v6231_v58, %v6230_v35 }
 0x320   : > { %v7488_v57 = vrot.slane %v7487_v2, 4  ;;  %v2718_v41 = vsel %vm2558_vm8, 0.0, %v2398_v62  ;;  %vm7692_vm11 = vcmask 1043456   ;;  %v8580_v6 = vsel %vm2558_vm8, 1.0, %v9391_v10 }
 0x321   : > { %v3655_v14 = vmul.f32 0.2, %v2718_v41  ;;  %v1291_v38 = vsel %vm1131_vm9, 0.0, %v12929_v31  ;;  %v8411_v15 = vsel %vm1131_vm9, 1.0, %v9391_v10  ;;  %v4819_v32 = vadd.f32 %v4818_v53, %v4817_v59 }
 0x322   : > { %v6233_v21 = vrot.slane %v6232_v19, 2  ;;  %v7489_v43 = vadd.f32 %v7488_v57, %v7487_v2  ;;  %v12941_v61 = vadd.f32 %v8580_v6, %v12736_v7  ;;  %v12945_v16 = vadd.f32 %v8411_v15, %v12748_v22  ;;  %v855_v2 = vpop.f32.mrf.mxu0 }
 0x323   : > { %v3815_v50 = vadd.f32 %v3655_v14, %v12899_v60  ;;  %v2229_v17 = vmul.f32 0.2, %v1291_v38  ;;  %v1334_v42 = vsel %vm1174_vm10, 0.0, %v12932_v20  ;;  %v7681_v63 = vsel %vm7680_vm6, %v7675_v30, %v4819_v32  ;;  %v9334_v32 = vld [vmem:[%s15323_s3 + $0x68] sm:$0xff] }
 0x324   : > { %v6234_v29 = vadd.f32 %v6233_v21, %v6232_v19  ;;  %v7490_v9 = vrot.slane %v7489_v43, 2  ;;  %v8454_v54 = vsel %vm1174_vm10, 1.0, %v9391_v10  ;;  %v2272_v22 = vmul.f32 0.2, %v1334_v42  ;;  %8018 = vmatpush.bf16.msra.mxu2 %v9334_v32 }
 0x325   : > { %vm3975_vm13 = vcmp.gt.f32.partialorder %v3815_v50, 0.5  ;;  %v2389_v7 = vadd.f32 %v2229_v17, %v12929_v31  ;;  %v12956_v49 = vadd.f32 %v8454_v54, %v12756_v0  ;;  %v12977_v15 = vadd.f32 %v855_v2, %v11392_v24 }
 0x326   : > { %v6235_v45 = vrot.slane %v6234_v29, 1  ;;  %v7491_v56 = vadd.f32 %v7490_v9, %v7489_v43  ;;  %v4135_v18 = vsel %vm3975_vm13, 0.0, %v3815_v50  ;;  %v8740_v39 = vsel %vm3975_vm13, 1.0, %v9391_v10 }
 0x327   : > { %v12960_v51 = vadd.f32 %v8740_v39, %v12768_v27  ;;  %v5072_v1 = vmul.f32 0.2, %v4135_v18  ;;  %vm2549_vm0 = vcmp.gt.f32.partialorder %v2389_v7, 0.5  ;;  %v2432_v35 = vadd.f32 %v2272_v22, %v12932_v20 }
 0x328   : > { %v6236_v3 = vadd.f32 %v6235_v45, %v6234_v29  ;;  %v7492_v48 = vrot.slane %v7491_v56, 1  ;;  %v2709_v8 = vsel %vm2549_vm0, 0.0, %v2389_v7  ;;  %v8571_v62 = vsel %vm2549_vm0, 1.0, %v9391_v10 }
 0x329   : > { %v5232_v0 = vadd.f32 %v5072_v1, %v12899_v60  ;;  %v12966_v59 = vadd.f32 %v8571_v62, %v12774_v44  ;;  %v3646_v58 = vmul.f32 0.2, %v2709_v8  ;;  %vm2592_vm14 = vcmp.gt.f32.partialorder %v2432_v35, 0.5  ;;  %v771_v62 = vpop.f32.mrf.mxu3 }
 0x32a   : > { %v7493_v30 = vadd.f32 %v7492_v48, %v7491_v56  ;;  %v7687_v27 = vsel %vm7686_vm7, %v7681_v63, %v6236_v3  ;;  %v2752_v53 = vsel %vm2592_vm14, 0.0, %v2432_v35  ;;  %v8614_v19 = vsel %vm2592_vm14, 1.0, %v9391_v10 }
 0x32b   : > { %vm5392_vm15 = vcmp.gt.f32.partialorder %v5232_v0, 0.5  ;;  %v3806_v57 = vadd.f32 %v3646_v58, %v12929_v31  ;;  %v12972_v41 = vadd.f32 %v8614_v19, %v12798_v11  ;;  %v3689_v6 = vmul.f32 0.2, %v2752_v53  ;;  %v687_v11 = vpop.f32.mrf.mxu2 }
 0x32c   : > { %v7693_v14 = vsel %vm7692_vm11, %v7687_v27, %v7493_v30  ;;  %v5552_v44 = vsel %vm5392_vm15, 0.0, %v5232_v0  ;;  %v8900_v38 = vsel %vm5392_vm15, 1.0, %v9391_v10  ;;  %vm1127_vm2 = vcmp.gt.f32.partialorder %v12977_v15, 0.5 }
 0x32d   : > { %v7698_v21 = vmul.f32 0.00390625, %v7693_v14  ;;  %v12983_v43 = vadd.f32 %v8900_v38, %v12789_v46  ;;  %v6489_v50 = vmul.f32 0.2, %v5552_v44  ;;  %vm3966_vm12 = vcmp.gt.f32.partialorder %v3806_v57, 0.5 }
 0x32e   : > { %v4126_v17 = vsel %vm3966_vm12, 0.0, %v3806_v57  ;;  %v8731_v42 = vsel %vm3966_vm12, 1.0, %v9391_v10  ;;  %v3849_v29 = vadd.f32 %v3689_v6, %v12932_v20  ;;  %v1287_v46 = vsel %vm1127_vm2, 0.0, %v12977_v15 }
 0x32f   : > { %v7703_v9 = vpack.c.bf16 %v7698_v21, %v7698_v21  ;;  %v6649_v63 = vadd.f32 %v6489_v50, %v12899_v60  ;;  %v12990_v54 = vadd.f32 %v8731_v42, %v12801_v12  ;;  %v5063_v7 = vmul.f32 0.2, %v4126_v17  ;;  %v616_v21 = vpop.f32.mrf.mxu1 }
 0x330   : > { %vm4009_vm4 = vcmp.gt.f32.partialorder %v3849_v29, 0.5  ;;  %v8407_v22 = vsel %vm1127_vm2, 1.0, %v9391_v10  ;;  %v12995_v45 = vadd.f32 %v687_v11, %v10815_v33  ;;  %v2225_v8 = vmul.f32 0.2, %v1287_v46 }
 0x331   : > { %8011 = vmatmul.bf16.vlgmr.msra.gmra.mxu1 %v7703_v9  ;;  %vm6809_vm5 = vcmp.gt.f32.partialorder %v6649_v63, 0.5  ;;  %v5223_v56 = vadd.f32 %v5063_v7, %v12929_v31  ;;  %v4169_v18 = vsel %vm4009_vm4, 0.0, %v3849_v29  ;;  %v8774_v39 = vsel %vm4009_vm4, 1.0, %v9391_v10 }
 0x332   : > { %v9060_v60 = vsel %vm6809_vm5, 1.0, %v9391_v10  ;;  %v13001_v12 = vadd.f32 %v8774_v39, %v12827_v34  ;;  %v5106_v1 = vmul.f32 0.2, %v4169_v18  ;;  %v2118_v35 = vsel %vm2096_vm1, %v8407_v22, 0.0  ;;  %v858_v22 = vpop.f32.mrf.mxu0 }
 0x333   : > { %v13005_v3 = vadd.f32 %v9060_v60, %v12812_v47  ;;  %vm5383_vm8 = vcmp.gt.f32.partialorder %v5223_v56, 0.5  ;;  %v13008_v48 = vadd.f32 %v2118_v35, %v12815_v13  ;;  %vm1145_vm9 = vcmp.gt.f32.partialorder %v12995_v45, 0.5 }
 0x334   : > { %v5543_v0 = vsel %vm5383_vm8, 0.0, %v5223_v56  ;;  %v8891_v58 = vsel %vm5383_vm8, 1.0, %v9391_v10  ;;  %v5266_v2 = vadd.f32 %v5106_v1, %v12932_v20  ;;  %v2385_v47 = vadd.f32 %v2225_v8, %v12977_v15 }
 0x335   : > { %v13014_v34 = vadd.f32 %v8891_v58, %v12824_v55  ;;  %v6480_v30 = vmul.f32 0.2, %v5543_v0  ;;  %v1305_v27 = vsel %vm1145_vm9, 0.0, %v12995_v45  ;;  %v8425_v13 = vsel %vm1145_vm9, 1.0, %v9391_v10 }
 0x336   : > { %vm5426_vm10 = vcmp.gt.f32.partialorder %v5266_v2, 0.5  ;;  %v2243_v53 = vmul.f32 0.2, %v1305_v27  ;;  %v13020_v19 = vadd.f32 %v771_v62, %v11123_v28  ;;  %vm2545_vm13 = vcmp.gt.f32.partialorder %v2385_v47, 0.5 }
 0x337   : > { %v6640_v57 = vadd.f32 %v6480_v30, %v12929_v31  ;;  %v5586_v6 = vsel %vm5426_vm10, 0.0, %v5266_v2  ;;  %v8934_v14 = vsel %vm5426_vm10, 1.0, %v9391_v10  ;;  %v2705_v38 = vsel %vm2545_vm13, 0.0, %v2385_v47 }
 0x338   : > { %v13025_v55 = vadd.f32 %v8934_v14, %v12850_v23  ;;  %v6523_v44 = vmul.f32 0.2, %v5586_v6  ;;  %v8567_v32 = vsel %vm2545_vm13, 1.0, %v9391_v10  ;;  %v3642_v11 = vmul.f32 0.2, %v2705_v38 }
 0x339   : > { %vm6800_vm0 = vcmp.gt.f32.partialorder %v6640_v57, 0.5  ;;  %v3535_v50 = vsel %vm2096_vm1, %v8567_v32, 0.0  ;;  %v13030_v17 = vadd.f32 %v8425_v13, %v12921_v4  ;;  %v2403_v23 = vadd.f32 %v2243_v53, %v12995_v45 }
 0x33a   : > { %v9051_v31 = vsel %vm6800_vm0, 1.0, %v9391_v10  ;;  %v6683_v42 = vadd.f32 %v6523_v44, %v12932_v20  ;;  %v13035_v29 = vadd.f32 %v3535_v50, %v12853_v37  ;;  %v3802_v63 = vadd.f32 %v3642_v11, %v12977_v15 }
 0x33b   : > { %v13039_v9 = vadd.f32 %v9051_v31, %v12847_v26  ;;  %vm1136_vm14 = vcmp.gt.f32.partialorder %v13020_v19, 0.5  ;;  %v13044_v7 = vadd.f32 %v616_v21, %v9855_v5  ;;  %vm2563_vm12 = vcmp.gt.f32.partialorder %v2403_v23, 0.5 }
 0x33c   : > { %vm6843_vm15 = vcmp.gt.f32.partialorder %v6683_v42, 0.5  ;;  %v1296_v4 = vsel %vm1136_vm14, 0.0, %v13020_v19  ;;  %v8416_v20 = vsel %vm1136_vm14, 1.0, %v9391_v10  ;;  %vm3962_vm2 = vcmp.gt.f32.partialorder %v3802_v63, 0.5  ;;  %v9342_v42 = vld [vmem:[%s15323_s3 + $0xa8] sm:$0xff] }
 0x33d   : > { %v9094_v37 = vsel %vm6843_vm15, 1.0, %v9391_v10  ;;  %v2723_v46 = vsel %vm2563_vm12, 0.0, %v2403_v23  ;;  %v8585_v26 = vsel %vm2563_vm12, 1.0, %v9391_v10  ;;  %v4122_v18 = vsel %vm3962_vm2, 0.0, %v3802_v63  ;;  %8031 = vmatpush.bf16.msra.mxu3 %v9342_v42 }
 0x33e   : > { %v13051_v56 = vadd.f32 %v9094_v37, %v12875_v25  ;;  %v8727_v39 = vsel %vm3962_vm2, 1.0, %v9391_v10  ;;  %v13055_v60 = vadd.f32 %v8585_v26, %v12941_v61  ;;  %v5059_v35 = vmul.f32 0.2, %v4122_v18 }
 0x33f   : > { %v4952_v1 = vsel %vm2096_vm1, %v8727_v39, 0.0  ;;  %v3660_v8 = vmul.f32 0.2, %v2723_v46  ;;  %v13059_v62 = vadd.f32 %v8416_v20, %v12945_v16  ;;  %v2234_v58 = vmul.f32 0.2, %v1296_v4 }
 0x340   : > { %v13062_v0 = vadd.f32 %v4952_v1, %v12882_v36  ;;  %vm1179_vm4 = vcmp.gt.f32.partialorder %v13044_v7, 0.5  ;;  %v13066_v25 = vadd.f32 %v858_v22, %v11392_v24  ;;  %v5219_v2 = vadd.f32 %v5059_v35, %v12977_v15 }
 0x341   : > { %v3820_v61 = vadd.f32 %v3660_v8, %v12995_v45  ;;  %v1339_v30 = vsel %vm1179_vm4, 0.0, %v13044_v7  ;;  %v8459_v47 = vsel %vm1179_vm4, 1.0, %v9391_v10  ;;  %v2394_v16 = vadd.f32 %v2234_v58, %v13020_v19 }
 0x342   : > { %v13074_v27 = vadd.f32 %v8459_v47, %v12956_v49  ;;  %v2277_v36 = vmul.f32 0.2, %v1339_v30  ;;  %vm1132_vm5 = vcmp.gt.f32.partialorder %v13066_v25, 0.5  ;;  %vm5379_vm8 = vcmp.gt.f32.partialorder %v5219_v2, 0.5  ;;  %v774_v30 = vpop.f32.mrf.mxu3  ;;  %v618_v47 = vpop.f32.mrf.mxu1 }
 0x343   : > { %vm3980_vm9 = vcmp.gt.f32.partialorder %v3820_v61, 0.5  ;;  %v1292_v13 = vsel %vm1132_vm5, 0.0, %v13066_v25  ;;  %v8412_v53 = vsel %vm1132_vm5, 1.0, %v9391_v10  ;;  %v5539_v57 = vsel %vm5379_vm8, 0.0, %v5219_v2 }
 0x344   : > { %v8887_v6 = vsel %vm5379_vm8, 1.0, %v9391_v10  ;;  %v4140_v14 = vsel %vm3980_vm9, 0.0, %v3820_v61  ;;  %v8745_v44 = vsel %vm3980_vm9, 1.0, %v9391_v10  ;;  %v6476_v32 = vmul.f32 0.2, %v5539_v57 }
 0x345   : > { %v6369_v38 = vsel %vm2096_vm1, %v8887_v6, 0.0  ;;  %v13083_v49 = vadd.f32 %v8745_v44, %v12960_v51  ;;  %v5077_v21 = vmul.f32 0.2, %v4140_v14  ;;  %vm2554_vm10 = vcmp.gt.f32.partialorder %v2394_v16, 0.5 }
 0x346   : > { %v13086_v50 = vadd.f32 %v6369_v38, %v12906_v52  ;;  %v2437_v11 = vadd.f32 %v2277_v36, %v13044_v7  ;;  %v2120_v31 = vsel %vm2096_vm1, %v8412_v53, 0.0  ;;  %v6636_v23 = vadd.f32 %v6476_v32, %v12977_v15 }
 0x347   : > { %v5237_v63 = vadd.f32 %v5077_v21, %v12995_v45  ;;  %v2714_v4 = vsel %vm2554_vm10, 0.0, %v2394_v16  ;;  %v8576_v51 = vsel %vm2554_vm10, 1.0, %v9391_v10  ;;  %v13100_v37 = vadd.f32 %v2120_v31, %v13008_v48 }
 0x348   : > { %v13097_v20 = vadd.f32 %v8576_v51, %v12966_v59  ;;  %v3651_v52 = vmul.f32 0.2, %v2714_v4  ;;  %vm2597_vm13 = vcmp.gt.f32.partialorder %v2437_v11, 0.5  ;;  %vm6796_vm0 = vcmp.gt.f32.partialorder %v6636_v23, 0.5  ;;  %v690_v59 = vpop.f32.mrf.mxu2 }
 0x349   : > { %vm5397_vm14 = vcmp.gt.f32.partialorder %v5237_v63, 0.5  ;;  %v2757_v46 = vsel %vm2597_vm13, 0.0, %v2437_v11  ;;  %v8619_v26 = vsel %vm2597_vm13, 1.0, %v9391_v10  ;;  %v9047_v15 = vsel %vm6796_vm0, 1.0, %v9391_v10 }
 0x34a   : > { %v5557_v22 = vsel %vm5397_vm14, 0.0, %v5237_v63  ;;  %v8905_v18 = vsel %vm5397_vm14, 1.0, %v9391_v10  ;;  %v3811_v39 = vadd.f32 %v3651_v52, %v13020_v19  ;;  %v7626_v1 = vsel %vm2096_vm1, %v9047_v15, 0.0 }
 0x34b   : > { %v13108_v35 = vadd.f32 %v8905_v18, %v12983_v43  ;;  %v6494_v48 = vmul.f32 0.2, %v5557_v22  ;;  %v13111_v8 = vadd.f32 %v8619_v26, %v12972_v41  ;;  %v13114_v58 = vadd.f32 %v7626_v1, %v12924_v40 }
 0x34c   : > { %vm3971_vm15 = vcmp.gt.f32.partialorder %v3811_v39, 0.5  ;;  %v3694_v2 = vmul.f32 0.2, %v2757_v46  ;;  %v2230_v61 = vmul.f32 0.2, %v1292_v13  ;;  %v13119_v43 = vadd.f32 %v690_v59, %v10815_v33 }
 0x34d   : > { %v6654_v16 = vadd.f32 %v6494_v48, %v12995_v45  ;;  %v4131_v36 = vsel %vm3971_vm15, 0.0, %v3811_v39  ;;  %v8736_v53 = vsel %vm3971_vm15, 1.0, %v9391_v10  ;;  %v13128_v13 = vadd.f32 %v774_v30, %v11123_v28 }
 0x34e   : > { %v13122_v57 = vadd.f32 %v8736_v53, %v12990_v54  ;;  %v5068_v41 = vmul.f32 0.2, %v4131_v36  ;;  %v3854_v40 = vadd.f32 %v3694_v2, %v13044_v7  ;;  %v2390_v6 = vadd.f32 %v2230_v61, %v13066_v25 }
 0x34f   : > { %vm6814_vm12 = vcmp.gt.f32.partialorder %v6654_v16, 0.5  ;;  %vm1150_vm2 = vcmp.gt.f32.partialorder %v13119_v43, 0.5  ;;  %v13131_v45 = vadd.f32 %v618_v47, %v9855_v5  ;;  %vm1141_vm9 = vcmp.gt.f32.partialorder %v13128_v13, 0.5 }
 0x350   : > { %v9065_v14 = vsel %vm6814_vm12, 1.0, %v9391_v10  ;;  %v5228_v44 = vadd.f32 %v5068_v41, %v13020_v19  ;;  %vm4014_vm4 = vcmp.gt.f32.partialorder %v3854_v40, 0.5  ;;  %vm2550_vm5 = vcmp.gt.f32.partialorder %v2390_v6, 0.5 }
 0x351   : > { %v13136_v54 = vadd.f32 %v9065_v14, %v13005_v3  ;;  %v4174_v38 = vsel %vm4014_vm4, 0.0, %v3854_v40  ;;  %v8779_v32 = vsel %vm4014_vm4, 1.0, %v9391_v10  ;;  %v2710_v21 = vsel %vm2550_vm5, 0.0, %v2390_v6 }
 0x352   : > { %vm5388_vm8 = vcmp.gt.f32.partialorder %v5228_v44, 0.5  ;;  %v13140_v11 = vadd.f32 %v8779_v32, %v13001_v12  ;;  %v5111_v31 = vmul.f32 0.2, %v4174_v38  ;;  %v8572_v42 = vsel %vm2550_vm5, 1.0, %v9391_v10 }
 0x353   : > { %v5548_v23 = vsel %vm5388_vm8, 0.0, %v5228_v44  ;;  %v8896_v63 = vsel %vm5388_vm8, 1.0, %v9391_v10  ;;  %v3537_v4 = vsel %vm2096_vm1, %v8572_v42, 0.0  ;;  %v3647_v51 = vmul.f32 0.2, %v2710_v21 }
 0x354   : > { %v13146_v3 = vadd.f32 %v8896_v63, %v13014_v34  ;;  %v6485_v52 = vmul.f32 0.2, %v5548_v23  ;;  %v5271_v46 = vadd.f32 %v5111_v31, %v13044_v7  ;;  %v13150_v26 = vadd.f32 %v3537_v4, %v13035_v29 }
 0x355   : > { %v3807_v12 = vadd.f32 %v3647_v51, %v13066_v25  ;;  %v1310_v15 = vsel %vm1150_vm2, 0.0, %v13119_v43  ;;  %v8430_v22 = vsel %vm1150_vm2, 1.0, %v9391_v10  ;;  %v1301_v1 = vsel %vm1141_vm9, 0.0, %v13128_v13 }
 0x356   : > { %v6645_v34 = vadd.f32 %v6485_v52, %v13020_v19  ;;  %vm5431_vm10 = vcmp.gt.f32.partialorder %v5271_v46, 0.5  ;;  %v13162_v18 = vadd.f32 %v8430_v22, %v13030_v17  ;;  %v2248_v29 = vmul.f32 0.2, %v1310_v15 }
 0x357   : > { %v5591_v39 = vsel %vm5431_vm10, 0.0, %v5271_v46  ;;  %v8939_v59 = vsel %vm5431_vm10, 1.0, %v9391_v10  ;;  %vm3967_vm13 = vcmp.gt.f32.partialorder %v3807_v12, 0.5  ;;  %vm1184_vm2 = vcmp.gt.f32.partialorder %v13131_v45, 0.5 }
 0x358   : > { %vm6805_vm0 = vcmp.gt.f32.partialorder %v6645_v34, 0.5  ;;  %v13169_v48 = vadd.f32 %v8939_v59, %v13025_v55  ;;  %v6528_v2 = vmul.f32 0.2, %v5591_v39  ;;  %v4127_v61 = vsel %vm3967_vm13, 0.0, %v3807_v12  ;;  %v860_v12 = vpop.f32.mrf.mxu0  ;;  %v776_v39 = vpop.f32.mrf.mxu3 }
 0x359   : > { %v9056_v19 = vsel %vm6805_vm0, 1.0, %v9391_v10  ;;  %v8732_v17 = vsel %vm3967_vm13, 1.0, %v9391_v10  ;;  %v5064_v30 = vmul.f32 0.2, %v4127_v61  ;;  %v2408_v47 = vadd.f32 %v2248_v29, %v13119_v43  ;;  %v692_v29 = vpop.f32.mrf.mxu2 }
 0x35a   : > { %v13175_v16 = vadd.f32 %v9056_v19, %v13039_v9  ;;  %v6688_v36 = vadd.f32 %v6528_v2, %v13044_v7  ;;  %v4954_v53 = vsel %vm2096_vm1, %v8732_v17, 0.0  ;;  %v8421_v55 = vsel %vm1141_vm9, 1.0, %v9391_v10 }
 0x35b   : > { %v13183_v41 = vadd.f32 %v4954_v53, %v13062_v0  ;;  %v5224_v40 = vadd.f32 %v5064_v30, %v13066_v25  ;;  %vm2568_vm14 = vcmp.gt.f32.partialorder %v2408_v47, 0.5  ;;  %v13187_v6 = vadd.f32 %v8421_v55, %v13059_v62 }
 0x35c   : > { %vm6848_vm15 = vcmp.gt.f32.partialorder %v6688_v36, 0.5  ;;  %v2728_v9 = vsel %vm2568_vm14, 0.0, %v2408_v47  ;;  %v8590_v14 = vsel %vm2568_vm14, 1.0, %v9391_v10  ;;  %v2239_v7 = vmul.f32 0.2, %v1301_v1 }
 0x35d   : > { %v9099_v44 = vsel %vm6848_vm15, 1.0, %v9391_v10  ;;  %vm5384_vm12 = vcmp.gt.f32.partialorder %v5224_v40, 0.5  ;;  %v13192_v38 = vadd.f32 %v8590_v14, %v13055_v60  ;;  %v3665_v32 = vmul.f32 0.2, %v2728_v9 }
 0x35e   : > { %v13195_v0 = vadd.f32 %v9099_v44, %v13051_v56  ;;  %v5544_v21 = vsel %vm5384_vm12, 0.0, %v5224_v40  ;;  %v8892_v31 = vsel %vm5384_vm12, 1.0, %v9391_v10  ;;  %v2399_v62 = vadd.f32 %v2239_v7, %v13128_v13 }
 0x35f   : > { %v6371_v42 = vsel %vm2096_vm1, %v8892_v31, 0.0  ;;  %v6481_v23 = vmul.f32 0.2, %v5544_v21  ;;  %v3825_v63 = vadd.f32 %v3665_v32, %v13119_v43  ;;  %v1344_v60 = vsel %vm1184_vm2, 0.0, %v13131_v45 }
 0x360   : > { %v13203_v4 = vadd.f32 %v6371_v42, %v13086_v50  ;;  %vm2559_vm4 = vcmp.gt.f32.partialorder %v2399_v62, 0.5  ;;  %v8464_v56 = vsel %vm1184_vm2, 1.0, %v9391_v10  ;;  %v2282_v19 = vmul.f32 0.2, %v1344_v60 }
 0x361   : > { %v6641_v51 = vadd.f32 %v6481_v23, %v13066_v25  ;;  %vm3985_vm5 = vcmp.gt.f32.partialorder %v3825_v63, 0.5  ;;  %v2719_v52 = vsel %vm2559_vm4, 0.0, %v2399_v62  ;;  %v8581_v46 = vsel %vm2559_vm4, 1.0, %v9391_v10 }
 0x362   : > { %v4145_v15 = vsel %vm3985_vm5, 0.0, %v3825_v63  ;;  %v8750_v22 = vsel %vm3985_vm5, 1.0, %v9391_v10  ;;  %v13211_v34 = vadd.f32 %v8581_v46, %v13097_v20  ;;  %v3656_v50 = vmul.f32 0.2, %v2719_v52 }
 0x363   : > { %vm6801_vm8 = vcmp.gt.f32.partialorder %v6641_v51, 0.5  ;;  %v13214_v59 = vadd.f32 %v8750_v22, %v13083_v49  ;;  %v5082_v1 = vmul.f32 0.2, %v4145_v15  ;;  %v13217_v25 = vadd.f32 %v8464_v56, %v13074_v27 }
 0x364   : > { %v9052_v2 = vsel %vm6801_vm8, 1.0, %v9391_v10  ;;  %v3816_v61 = vadd.f32 %v3656_v50, %v13128_v13  ;;  %v13222_v17 = vadd.f32 %v860_v12, %v11392_v24  ;;  %v13227_v47 = vadd.f32 %v692_v29, %v10815_v33 }
 0x365   : > { %v7628_v20 = vsel %vm2096_vm1, %v9052_v2, 0.0  ;;  %v5242_v30 = vadd.f32 %v5082_v1, %v13119_v43  ;;  %v13230_v49 = vadd.f32 %v776_v39, %v11123_v28  ;;  %v2442_v36 = vadd.f32 %v2282_v19, %v13131_v45 }
 0x366   : > { %v13233_v27 = vadd.f32 %v7628_v20, %v13114_v58  ;;  %vm3976_vm9 = vcmp.gt.f32.partialorder %v3816_v61, 0.5  ;;  %vm1137_vm10 = vcmp.gt.f32.partialorder %v13222_v17, 0.5  ;;  %vm1155_vm15 = vcmp.gt.f32.partialorder %v13227_v47, 0.5 }
 0x367   : > { %vm5402_vm13 = vcmp.gt.f32.partialorder %v5242_v30, 0.5  ;;  %v4136_v53 = vsel %vm3976_vm9, 0.0, %v3816_v61  ;;  %v8741_v55 = vsel %vm3976_vm9, 1.0, %v9391_v10  ;;  %v1297_v40 = vsel %vm1137_vm10, 0.0, %v13222_v17 }
 0x368   : > { %v5562_v9 = vsel %vm5402_vm13, 0.0, %v5242_v30  ;;  %v8910_v14 = vsel %vm5402_vm13, 1.0, %v9391_v10  ;;  %v13241_v7 = vadd.f32 %v8741_v55, %v13122_v57  ;;  %v5073_v44 = vmul.f32 0.2, %v4136_v53  ;;  %v621_v55 = vpop.f32.mrf.mxu1 }
 0x369   : > { %v13244_v58 = vadd.f32 %v8910_v14, %v13108_v35  ;;  %v6499_v32 = vmul.f32 0.2, %v5562_v9  ;;  %vm2602_vm0 = vcmp.gt.f32.partialorder %v2442_v36, 0.5  ;;  %v8417_v21 = vsel %vm1137_vm10, 1.0, %v9391_v10 }
 0x36a   : > { %v5233_v31 = vadd.f32 %v5073_v44, %v13128_v13  ;;  %v2762_v62 = vsel %vm2602_vm0, 0.0, %v2442_v36  ;;  %v8624_v42 = vsel %vm2602_vm0, 1.0, %v9391_v10  ;;  %v2122_v23 = vsel %vm2096_vm1, %v8417_v21, 0.0 }
 0x36b   : > { %v6659_v63 = vadd.f32 %v6499_v32, %v13119_v43  ;;  %v13252_v57 = vadd.f32 %v8624_v42, %v13111_v8  ;;  %v3699_v60 = vmul.f32 0.2, %v2762_v62  ;;  %v13255_v35 = vadd.f32 %v2122_v23, %v13100_v37 }
 0x36c   : > { %vm5393_vm14 = vcmp.gt.f32.partialorder %v5233_v31, 0.5  ;;  %v2235_v56 = vmul.f32 0.2, %v1297_v40  ;;  %vm1146_vm12 = vcmp.gt.f32.partialorder %v13230_v49, 0.5  ;;  %v1315_v22 = vsel %vm1155_vm15, 0.0, %v13227_v47 }
 0x36d   : > { %vm6819_vm2 = vcmp.gt.f32.partialorder %v6659_v63, 0.5  ;;  %v5553_v51 = vsel %vm5393_vm14, 0.0, %v5233_v31  ;;  %v8901_v52 = vsel %vm5393_vm14, 1.0, %v9391_v10  ;;  %v3859_v46 = vadd.f32 %v3699_v60, %v13131_v45 }
 0x36e   : > { %v9070_v43 = vsel %vm6819_vm2, 1.0, %v9391_v10  ;;  %v13263_v8 = vadd.f32 %v8901_v52, %v13146_v3  ;;  %v6490_v12 = vmul.f32 0.2, %v5553_v51  ;;  %v2395_v37 = vadd.f32 %v2235_v56, %v13222_v17 }
 0x36f   : > { %v13267_v15 = vadd.f32 %v9070_v43, %v13136_v54  ;;  %vm4019_vm4 = vcmp.gt.f32.partialorder %v3859_v46, 0.5  ;;  %v8435_v50 = vsel %vm1155_vm15, 1.0, %v9391_v10  ;;  %v1306_v14 = vsel %vm1146_vm12, 0.0, %v13230_v49 }
 0x370   : > { %v6650_v29 = vadd.f32 %v6490_v12, %v13128_v13  ;;  %v4179_v39 = vsel %vm4019_vm4, 0.0, %v3859_v46  ;;  %v8784_v1 = vsel %vm4019_vm4, 1.0, %v9391_v10  ;;  %vm2555_vm5 = vcmp.gt.f32.partialorder %v2395_v37, 0.5 }
 0x371   : > { %v13274_v3 = vadd.f32 %v8784_v1, %v13140_v11  ;;  %v5116_v2 = vmul.f32 0.2, %v4179_v39  ;;  %v2715_v61 = vsel %vm2555_vm5, 0.0, %v2395_v37  ;;  %v8577_v19 = vsel %vm2555_vm5, 1.0, %v9391_v10 }
 0x372   : > { %vm6810_vm8 = vcmp.gt.f32.partialorder %v6650_v29, 0.5  ;;  %v3539_v54 = vsel %vm2096_vm1, %v8577_v19, 0.0  ;;  %v3652_v20 = vmul.f32 0.2, %v2715_v61  ;;  %v13279_v30 = vadd.f32 %v8435_v50, %v13162_v18 }
 0x373   : > { %v9061_v13 = vsel %vm6810_vm8, 1.0, %v9391_v10  ;;  %v5276_v36 = vadd.f32 %v5116_v2, %v13131_v45  ;;  %v13284_v53 = vadd.f32 %v3539_v54, %v13150_v26  ;;  %v2253_v11 = vmul.f32 0.2, %v1315_v22 }
 0x374   : > { %v13287_v40 = vadd.f32 %v9061_v13, %v13175_v16  ;;  %v3812_v9 = vadd.f32 %v3652_v20, %v13222_v17  ;;  %v8426_v18 = vsel %vm1146_vm12, 1.0, %v9391_v10  ;;  %v2244_v32 = vmul.f32 0.2, %v1306_v14  ;;  %v863_v20 = vpop.f32.mrf.mxu0 }
 0x375   : > { %vm5436_vm9 = vcmp.gt.f32.partialorder %v5276_v36, 0.5  ;;  %v2413_v44 = vadd.f32 %v2253_v11, %v13227_v47  ;;  %v13298_v26 = vadd.f32 %v8426_v18, %v13187_v6  ;;  %v13302_v31 = vadd.f32 %v621_v55, %v9855_v5 }
 0x376   : > { %v5596_v21 = vsel %vm5436_vm9, 0.0, %v5276_v36  ;;  %v8944_v16 = vsel %vm5436_vm9, 1.0, %v9391_v10  ;;  %vm3972_vm10 = vcmp.gt.f32.partialorder %v3812_v9, 0.5  ;;  %v2404_v6 = vadd.f32 %v2244_v32, %v13230_v49  ;;  %v695_v32 = vpop.f32.mrf.mxu2 }
 0x377   : > { %v13305_v62 = vadd.f32 %v8944_v16, %v13169_v48  ;;  %v6533_v42 = vmul.f32 0.2, %v5596_v21  ;;  %v4132_v23 = vsel %vm3972_vm10, 0.0, %v3812_v9  ;;  %v8737_v63 = vsel %vm3972_vm10, 1.0, %v9391_v10 }
 0x378   : > { %v4956_v60 = vsel %vm2096_vm1, %v8737_v63, 0.0  ;;  %v5069_v56 = vmul.f32 0.2, %v4132_v23  ;;  %vm2573_vm13 = vcmp.gt.f32.partialorder %v2413_v44, 0.5  ;;  %vm2564_vm0 = vcmp.gt.f32.partialorder %v2404_v6, 0.5 }
 0x379   : > { %v6693_v51 = vadd.f32 %v6533_v42, %v13131_v45  ;;  %v13312_v52 = vadd.f32 %v4956_v60, %v13183_v41  ;;  %v2733_v46 = vsel %vm2573_vm13, 0.0, %v2413_v44  ;;  %v8595_v43 = vsel %vm2573_vm13, 1.0, %v9391_v10 }
 0x37a   : > { %v5229_v48 = vadd.f32 %v5069_v56, %v13222_v17  ;;  %v13317_v12 = vadd.f32 %v8595_v43, %v13192_v38  ;;  %v3670_v37 = vmul.f32 0.2, %v2733_v46  ;;  %v2724_v22 = vsel %vm2564_vm0, 0.0, %v2404_v6 }
 0x37b   : > { %vm6853_vm14 = vcmp.gt.f32.partialorder %v6693_v51, 0.5  ;;  %v8586_v50 = vsel %vm2564_vm0, 1.0, %v9391_v10  ;;  %vm1189_vm15 = vcmp.gt.f32.partialorder %v13302_v31, 0.5  ;;  %v3661_v2 = vmul.f32 0.2, %v2724_v22 }
 0x37c   : > { %v9104_v45 = vsel %vm6853_vm14, 1.0, %v9391_v10  ;;  %vm5389_vm12 = vcmp.gt.f32.partialorder %v5229_v48, 0.5  ;;  %v3830_v41 = vadd.f32 %v3670_v37, %v13227_v47  ;;  %v13324_v29 = vadd.f32 %v8586_v50, %v13211_v34 }
 0x37d   : > { %v13327_v39 = vadd.f32 %v9104_v45, %v13195_v0  ;;  %v5549_v38 = vsel %vm5389_vm12, 0.0, %v5229_v48  ;;  %v8897_v1 = vsel %vm5389_vm12, 1.0, %v9391_v10  ;;  %v1349_v54 = vsel %vm1189_vm15, 0.0, %v13302_v31 }
 0x37e   : > { %v6373_v61 = vsel %vm2096_vm1, %v8897_v1, 0.0  ;;  %v6486_v19 = vmul.f32 0.2, %v5549_v38  ;;  %vm3990_vm2 = vcmp.gt.f32.partialorder %v3830_v41, 0.5  ;;  %v3821_v36 = vadd.f32 %v3661_v2, %v13230_v49 }
 0x37f   : > { %v13335_v13 = vadd.f32 %v6373_v61, %v13203_v4  ;;  %v4150_v34 = vsel %vm3990_vm2, 0.0, %v3830_v41  ;;  %v8755_v0 = vsel %vm3990_vm2, 1.0, %v9391_v10  ;;  %v8469_v14 = vsel %vm1189_vm15, 1.0, %v9391_v10 }
 0x380   : > { %v6646_v11 = vadd.f32 %v6486_v19, %v13222_v17  ;;  %v13341_v55 = vadd.f32 %v8755_v0, %v13214_v59  ;;  %v5087_v9 = vmul.f32 0.2, %v4150_v34  ;;  %vm3981_vm4 = vcmp.gt.f32.partialorder %v3821_v36, 0.5 }
 0x381   : > { %v13347_v18 = vadd.f32 %v8469_v14, %v13217_v25  ;;  %v2287_v4 = vmul.f32 0.2, %v1349_v54  ;;  %v13350_v44 = vadd.f32 %v863_v20, %v11392_v24  ;;  %v4141_v21 = vsel %vm3981_vm4, 0.0, %v3821_v36 }
 0x382   : > { %vm6806_vm5 = vcmp.gt.f32.partialorder %v6646_v11, 0.5  ;;  %v5247_v17 = vadd.f32 %v5087_v9, %v13227_v47  ;;  %v8746_v59 = vsel %vm3981_vm4, 1.0, %v9391_v10  ;;  %v5078_v23 = vmul.f32 0.2, %v4141_v21 }
 0x383   : > { %v9057_v16 = vsel %vm6806_vm5, 1.0, %v9391_v10  ;;  %v13356_v42 = vadd.f32 %v8746_v59, %v13241_v7  ;;  %v2447_v25 = vadd.f32 %v2287_v4, %v13302_v31  ;;  %vm1142_vm9 = vcmp.gt.f32.partialorder %v13350_v44, 0.5 }
 0x384   : > { %v7630_v63 = vsel %vm2096_vm1, %v9057_v16, 0.0  ;;  %vm5407_vm8 = vcmp.gt.f32.partialorder %v5247_v17, 0.5  ;;  %v13362_v60 = vadd.f32 %v695_v32, %v10815_v33  ;;  %v5238_v7 = vadd.f32 %v5078_v23, %v13230_v49 }
 0x385   : > { %v13365_v56 = vadd.f32 %v7630_v63, %v13233_v27  ;;  %v5567_v6 = vsel %vm5407_vm8, 0.0, %v5247_v17  ;;  %v8915_v51 = vsel %vm5407_vm8, 1.0, %v9391_v10  ;;  %vm2607_vm10 = vcmp.gt.f32.partialorder %v2447_v25, 0.5 }
 0x386   : > { %v13370_v46 = vadd.f32 %v8915_v51, %v13244_v58  ;;  %v6504_v43 = vmul.f32 0.2, %v5567_v6  ;;  %v1302_v48 = vsel %vm1142_vm9, 0.0, %v13350_v44  ;;  %vm5398_vm13 = vcmp.gt.f32.partialorder %v5238_v7, 0.5 }
 0x387   : > { %v2767_v37 = vsel %vm2607_vm10, 0.0, %v2447_v25  ;;  %v8629_v22 = vsel %vm2607_vm10, 1.0, %v9391_v10  ;;  %v8422_v50 = vsel %vm1142_vm9, 1.0, %v9391_v10  ;;  %v5558_v45 = vsel %vm5398_vm13, 0.0, %v5238_v7 }
 0x388   : > { %v6664_v27 = vadd.f32 %v6504_v43, %v13227_v47  ;;  %v8906_v41 = vsel %vm5398_vm13, 1.0, %v9391_v10  ;;  %v13378_v38 = vadd.f32 %v8629_v22, %v13252_v57  ;;  %v6495_v1 = vmul.f32 0.2, %v5558_v45  ;;  %v779_v47 = vpop.f32.mrf.mxu3  ;;  %v865_v45 = vpop.f32.mrf.mxu0 }
 0x389   : > { %v13381_v58 = vadd.f32 %v8906_v41, %v13263_v8  ;;  %v3704_v2 = vmul.f32 0.2, %v2767_v37  ;;  %v2124_v61 = vsel %vm2096_vm1, %v8422_v50, 0.0  ;;  %v2240_v54 = vmul.f32 0.2, %v1302_v48 }
 0x38a   : > { %vm6824_vm0 = vcmp.gt.f32.partialorder %v6664_v27, 0.5  ;;  %v13385_v19 = vadd.f32 %v2124_v61, %v13255_v35  ;;  %vm1160_vm14 = vcmp.gt.f32.partialorder %v13362_v60, 0.5  ;;  %v6655_v57 = vadd.f32 %v6495_v1, %v13230_v49  ;;  %v697_v61 = vpop.f32.mrf.mxu2 }
 0x38b   : > { %v9075_v20 = vsel %vm6824_vm0, 1.0, %v9391_v10  ;;  %v3864_v34 = vadd.f32 %v3704_v2, %v13302_v31  ;;  %v1320_v8 = vsel %vm1160_vm14, 0.0, %v13362_v60  ;;  %v2400_v36 = vadd.f32 %v2240_v54, %v13350_v44 }
 0x38c   : > { %v13393_v0 = vadd.f32 %v9075_v20, %v13267_v15  ;;  %v8440_v35 = vsel %vm1160_vm14, 1.0, %v9391_v10  ;;  %v2258_v11 = vmul.f32 0.2, %v1320_v8  ;;  %vm6815_vm15 = vcmp.gt.f32.partialorder %v6655_v57, 0.5 }
 0x38d   : > { %vm4024_vm12 = vcmp.gt.f32.partialorder %v3864_v34, 0.5  ;;  %v13398_v9 = vadd.f32 %v8440_v35, %v13279_v30  ;;  %v13401_v14 = vadd.f32 %v779_v47, %v11123_v28  ;;  %v9066_v49 = vsel %vm6815_vm15, 1.0, %v9391_v10 }
 0x38e   : > { %v4184_v4 = vsel %vm4024_vm12, 0.0, %v3864_v34  ;;  %v8789_v32 = vsel %vm4024_vm12, 1.0, %v9391_v10  ;;  %vm2560_vm2 = vcmp.gt.f32.partialorder %v2400_v36, 0.5  ;;  %v13406_v15 = vadd.f32 %v9066_v49, %v13287_v40 }
 0x38f   : > { %v13409_v17 = vadd.f32 %v8789_v32, %v13274_v3  ;;  %v5121_v21 = vmul.f32 0.2, %v4184_v4  ;;  %v2720_v59 = vsel %vm2560_vm2, 0.0, %v2400_v36  ;;  %v8582_v30 = vsel %vm2560_vm2, 1.0, %v9391_v10 }
 0x390   : > { %v3657_v16 = vmul.f32 0.2, %v2720_v59  ;;  %v2418_v23 = vadd.f32 %v2258_v11, %v13362_v60  ;;  %vm1151_vm4 = vcmp.gt.f32.partialorder %v13401_v14, 0.5  ;;  %v3541_v63 = vsel %vm2096_vm1, %v8582_v30, 0.0 }
 0x391   : > { %v5281_v25 = vadd.f32 %v5121_v21, %v13302_v31  ;;  %v1311_v6 = vsel %vm1151_vm4, 0.0, %v13401_v14  ;;  %v8431_v40 = vsel %vm1151_vm4, 1.0, %v9391_v10  ;;  %v13419_v3 = vadd.f32 %v3541_v63, %v13284_v53  ;;  %v623_v53 = vpop.f32.mrf.mxu1 }
 0x392   : > { %v3817_v51 = vadd.f32 %v3657_v16, %v13350_v44  ;;  %vm2578_vm5 = vcmp.gt.f32.partialorder %v2418_v23, 0.5  ;;  %v13423_v7 = vadd.f32 %v8431_v40, %v13298_v26  ;;  %v2249_v37 = vmul.f32 0.2, %v1311_v6 }
 0x393   : > { %vm5441_vm8 = vcmp.gt.f32.partialorder %v5281_v25, 0.5  ;;  %v2738_v43 = vsel %vm2578_vm5, 0.0, %v2418_v23  ;;  %v8600_v48 = vsel %vm2578_vm5, 1.0, %v9391_v10  ;;  %v13441_v8 = vadd.f32 %v623_v53, %v9855_v5 }
 0x394   : > { %v5601_v22 = vsel %vm5441_vm8, 0.0, %v5281_v25  ;;  %v8949_v50 = vsel %vm5441_vm8, 1.0, %v9391_v10  ;;  %vm3977_vm9 = vcmp.gt.f32.partialorder %v3817_v51, 0.5  ;;  %v13428_v27 = vadd.f32 %v8600_v48, %v13317_v12 }
 0x395   : > { %v13431_v41 = vadd.f32 %v8949_v50, %v13305_v62  ;;  %v6538_v1 = vmul.f32 0.2, %v5601_v22  ;;  %v4137_v26 = vsel %vm3977_vm9, 0.0, %v3817_v51  ;;  %v8742_v2 = vsel %vm3977_vm9, 1.0, %v9391_v10 }
 0x396   : > { %v4958_v54 = vsel %vm2096_vm1, %v8742_v2, 0.0  ;;  %v5074_v47 = vmul.f32 0.2, %v4137_v26  ;;  %v3675_v20 = vmul.f32 0.2, %v2738_v43  ;;  %v2409_v57 = vadd.f32 %v2249_v37, %v13401_v14 }
 0x397   : > { %v6698_v34 = vadd.f32 %v6538_v1, %v13302_v31  ;;  %v13438_v12 = vadd.f32 %v4958_v54, %v13312_v52  ;;  %v13444_v62 = vadd.f32 %v865_v45, %v11392_v24  ;;  %v13449_v11 = vadd.f32 %v697_v61, %v10815_v33 }
 0x398   : > { %v5234_v36 = vadd.f32 %v5074_v47, %v13350_v44  ;;  %v3835_v35 = vadd.f32 %v3675_v20, %v13362_v60  ;;  %vm2569_vm10 = vcmp.gt.f32.partialorder %v2409_v57, 0.5  ;;  %vm1194_vm0 = vcmp.gt.f32.partialorder %v13441_v8, 0.5 }
 0x399   : > { %vm6858_vm13 = vcmp.gt.f32.partialorder %v6698_v34, 0.5  ;;  %v2729_v49 = vsel %vm2569_vm10, 0.0, %v2409_v57  ;;  %v8591_v31 = vsel %vm2569_vm10, 1.0, %v9391_v10  ;;  %v8474_v48 = vsel %vm1194_vm0, 1.0, %v9391_v10 }
 0x39a   : > { %v9109_v52 = vsel %vm6858_vm13, 1.0, %v9391_v10  ;;  %vm5394_vm14 = vcmp.gt.f32.partialorder %v5234_v36, 0.5  ;;  %vm3995_vm15 = vcmp.gt.f32.partialorder %v3835_v35, 0.5  ;;  %v13455_v4 = vadd.f32 %v8591_v31, %v13324_v29 }
 0x39b   : > { %v13458_v32 = vadd.f32 %v9109_v52, %v13327_v39  ;;  %v5554_v21 = vsel %vm5394_vm14, 0.0, %v5234_v36  ;;  %v8902_v59 = vsel %vm5394_vm14, 1.0, %v9391_v10  ;;  %v4155_v30 = vsel %vm3995_vm15, 0.0, %v3835_v35 }
 0x39c   : > { %v6375_v16 = vsel %vm2096_vm1, %v8902_v59, 0.0  ;;  %v6491_v23 = vmul.f32 0.2, %v5554_v21  ;;  %v8760_v25 = vsel %vm3995_vm15, 1.0, %v9391_v10  ;;  %v5092_v63 = vmul.f32 0.2, %v4155_v30 }
 0x39d   : > { %v13464_v6 = vadd.f32 %v6375_v16, %v13335_v13  ;;  %v13467_v40 = vadd.f32 %v8760_v25, %v13341_v55  ;;  %v3666_v29 = vmul.f32 0.2, %v2729_v49  ;;  %v1354_v39 = vsel %vm1194_vm0, 0.0, %v13441_v8  ;;  %v9333_v55 = vld [vmem:[%s15323_s3 + $0x60] sm:$0xff] }
 0x39e   : > { %v6651_v51 = vadd.f32 %v6491_v23, %v13350_v44  ;;  %v5252_v43 = vadd.f32 %v5092_v63, %v13362_v60  ;;  %v2292_v37 = vmul.f32 0.2, %v1354_v39  ;;  %v13479_v22 = vadd.f32 %v8474_v48, %v13347_v18  ;;  %8019 = vmatpush.bf16.msra.mxu2 %v9333_v55  ;;  %v626_v48 = vpop.f32.mrf.mxu1 }
 0x39f   : > { %v3826_v13 = vadd.f32 %v3666_v29, %v13401_v14  ;;  %vm1147_vm12 = vcmp.gt.f32.partialorder %v13444_v62, 0.5  ;;  %vm1165_vm2 = vcmp.gt.f32.partialorder %v13449_v11, 0.5 }
 0x3a0   : > { %vm6811_vm4 = vcmp.gt.f32.partialorder %v6651_v51, 0.5  ;;  %vm5412_vm5 = vcmp.gt.f32.partialorder %v5252_v43, 0.5  ;;  %v2452_v44 = vadd.f32 %v2292_v37, %v13441_v8  ;;  %v1307_v50 = vsel %vm1147_vm12, 0.0, %v13444_v62  ;;  %v781_v51 = vpop.f32.mrf.mxu3 }
 0x3a1   : > { %v9062_v53 = vsel %vm6811_vm4, 1.0, %v9391_v10  ;;  %v5572_v18 = vsel %vm5412_vm5, 0.0, %v5252_v43  ;;  %v8920_v45 = vsel %vm5412_vm5, 1.0, %v9391_v10  ;;  %vm3986_vm8 = vcmp.gt.f32.partialorder %v3826_v13, 0.5 }
 0x3a2   : > { %v7632_v1 = vsel %vm2096_vm1, %v9062_v53, 0.0  ;;  %v13494_v26 = vadd.f32 %v8920_v45, %v13370_v46  ;;  %v6509_v2 = vmul.f32 0.2, %v5572_v18  ;;  %v4146_v61 = vsel %vm3986_vm8, 0.0, %v3826_v13 }
 0x3a3   : > { %v13497_v54 = vadd.f32 %v7632_v1, %v13365_v56  ;;  %v8751_v47 = vsel %vm3986_vm8, 1.0, %v9391_v10  ;;  %v5083_v20 = vmul.f32 0.2, %v4146_v61  ;;  %vm2612_vm9 = vcmp.gt.f32.partialorder %v2452_v44, 0.5 }
 0x3a4   : > { %v6669_v57 = vadd.f32 %v6509_v2, %v13362_v60  ;;  %v13502_v34 = vadd.f32 %v8751_v47, %v13356_v42  ;;  %v2772_v36 = vsel %vm2612_vm9, 0.0, %v2452_v44  ;;  %v8634_v35 = vsel %vm2612_vm9, 1.0, %v9391_v10 }
 0x3a5   : > { %v5243_v46 = vadd.f32 %v5083_v20, %v13401_v14  ;;  %v13507_v49 = vadd.f32 %v8634_v35, %v13378_v38  ;;  %v3709_v31 = vmul.f32 0.2, %v2772_v36  ;;  %v8427_v56 = vsel %vm1147_vm12, 1.0, %v9391_v10 }
 0x3a6   : > { %vm6829_vm10 = vcmp.gt.f32.partialorder %v6669_v57, 0.5  ;;  %v2126_v52 = vsel %vm2096_vm1, %v8427_v56, 0.0  ;;  %v2245_v60 = vmul.f32 0.2, %v1307_v50  ;;  %v1325_v42 = vsel %vm1165_vm2, 0.0, %v13449_v11 }
 0x3a7   : > { %v9080_v21 = vsel %vm6829_vm10, 1.0, %v9391_v10  ;;  %vm5403_vm13 = vcmp.gt.f32.partialorder %v5243_v46, 0.5  ;;  %v3869_v59 = vadd.f32 %v3709_v31, %v13441_v8  ;;  %v13519_v38 = vadd.f32 %v2126_v52, %v13385_v19 }
 0x3a8   : > { %v13522_v30 = vadd.f32 %v9080_v21, %v13393_v0  ;;  %v5563_v16 = vsel %vm5403_vm13, 0.0, %v5243_v46  ;;  %v8911_v23 = vsel %vm5403_vm13, 1.0, %v9391_v10  ;;  %v2405_v25 = vadd.f32 %v2245_v60, %v13444_v62 }
 0x3a9   : > { %v13527_v63 = vadd.f32 %v8911_v23, %v13381_v58  ;;  %v6500_v29 = vmul.f32 0.2, %v5563_v16  ;;  %vm4029_vm0 = vcmp.gt.f32.partialorder %v3869_v59, 0.5  ;;  %v8445_v39 = vsel %vm1165_vm2, 1.0, %v9391_v10 }
 0x3aa   : > { %v4189_v19 = vsel %vm4029_vm0, 0.0, %v3869_v59  ;;  %v8794_v43 = vsel %vm4029_vm0, 1.0, %v9391_v10  ;;  %vm2565_vm14 = vcmp.gt.f32.partialorder %v2405_v25, 0.5  ;;  %v13534_v0 = vadd.f32 %v8445_v39, %v13398_v9 }
 0x3ab   : > { %v6660_v37 = vadd.f32 %v6500_v29, %v13401_v14  ;;  %v13538_v58 = vadd.f32 %v8794_v43, %v13409_v17  ;;  %v5126_v13 = vmul.f32 0.2, %v4189_v19  ;;  %v2725_v55 = vsel %vm2565_vm14, 0.0, %v2405_v25 }
 0x3ac   : > { %v8587_v44 = vsel %vm2565_vm14, 1.0, %v9391_v10  ;;  %v3662_v50 = vmul.f32 0.2, %v2725_v55  ;;  %v2263_v53 = vmul.f32 0.2, %v1325_v42  ;;  %v13542_v18 = vadd.f32 %v781_v51, %v11123_v28 }
 0x3ad   : > { %vm6820_vm15 = vcmp.gt.f32.partialorder %v6660_v37, 0.5  ;;  %v5286_v45 = vadd.f32 %v5126_v13, %v13441_v8  ;;  %v3543_v9 = vsel %vm2096_vm1, %v8587_v44, 0.0  ;;  %v13547_v1 = vadd.f32 %v626_v48, %v9855_v5  ;;  %v868_v37 = vpop.f32.mrf.mxu0 }
 0x3ae   : > { %v9071_v14 = vsel %vm6820_vm15, 1.0, %v9391_v10  ;;  %v13551_v17 = vadd.f32 %v3543_v9, %v13419_v3  ;;  %v3822_v2 = vadd.f32 %v3662_v50, %v13444_v62  ;;  %v2423_v61 = vadd.f32 %v2263_v53, %v13449_v11  ;;  %v700_v50 = vpop.f32.mrf.mxu2  ;;  %v784_v53 = vpop.f32.mrf.mxu3 }
 0x3af   : > { %v13556_v47 = vadd.f32 %v9071_v14, %v13406_v15  ;;  %vm5446_vm12 = vcmp.gt.f32.partialorder %v5286_v45, 0.5  ;;  %vm1156_vm2 = vcmp.gt.f32.partialorder %v13542_v18, 0.5  ;;  %vm1199_vm4 = vcmp.gt.f32.partialorder %v13547_v1, 0.5 }
 0x3b0   : > { %v5606_v20 = vsel %vm5446_vm12, 0.0, %v5286_v45  ;;  %v8954_v57 = vsel %vm5446_vm12, 1.0, %v9391_v10  ;;  %vm3982_vm5 = vcmp.gt.f32.partialorder %v3822_v2, 0.5  ;;  %vm2583_vm8 = vcmp.gt.f32.partialorder %v2423_v61, 0.5 }
 0x3b1   : > { %v13562_v3 = vadd.f32 %v8954_v57, %v13431_v41  ;;  %v6543_v36 = vmul.f32 0.2, %v5606_v20  ;;  %v4142_v35 = vsel %vm3982_vm5, 0.0, %v3822_v2  ;;  %v8747_v46 = vsel %vm3982_vm5, 1.0, %v9391_v10 }
 0x3b2   : > { %v4960_v15 = vsel %vm2096_vm1, %v8747_v46, 0.0  ;;  %v5079_v31 = vmul.f32 0.2, %v4142_v35  ;;  %v2743_v56 = vsel %vm2583_vm8, 0.0, %v2423_v61  ;;  %v8605_v52 = vsel %vm2583_vm8, 1.0, %v9391_v10 }
 0x3b3   : > { %v6703_v60 = vadd.f32 %v6543_v36, %v13441_v8  ;;  %v13569_v42 = vadd.f32 %v4960_v15, %v13438_v12  ;;  %v13572_v21 = vadd.f32 %v8605_v52, %v13428_v27  ;;  %v3680_v41 = vmul.f32 0.2, %v2743_v56 }
 0x3b4   : > { %v5239_v59 = vadd.f32 %v5079_v31, %v13444_v62  ;;  %v1316_v16 = vsel %vm1156_vm2, 0.0, %v13542_v18  ;;  %v8436_v23 = vsel %vm1156_vm2, 1.0, %v9391_v10  ;;  %v1359_v8 = vsel %vm1199_vm4, 0.0, %v13547_v1  ;;  %v9341_v31 = vld [vmem:[%s15323_s3 + $0xa0] sm:$0xff] }
 0x3b5   : > { %vm6863_vm9 = vcmp.gt.f32.partialorder %v6703_v60, 0.5  ;;  %v3840_v12 = vadd.f32 %v3680_v41, %v13449_v11  ;;  %v13586_v27 = vadd.f32 %v8436_v23, %v13423_v7  ;;  %v2254_v25 = vmul.f32 0.2, %v1316_v16  ;;  %8032 = vmatpush.bf16.msra.mxu3 %v9341_v31 }
 0x3b6   : > { %v9114_v29 = vsel %vm6863_vm9, 1.0, %v9391_v10  ;;  %vm5399_vm10 = vcmp.gt.f32.partialorder %v5239_v59, 0.5  ;;  %v8479_v39 = vsel %vm1199_vm4, 1.0, %v9391_v10  ;;  %v2297_v51 = vmul.f32 0.2, %v1359_v8 }
 0x3b7   : > { %v13593_v19 = vadd.f32 %v9114_v29, %v13458_v32  ;;  %v5559_v43 = vsel %vm5399_vm10, 0.0, %v5239_v59  ;;  %v8907_v48 = vsel %vm5399_vm10, 1.0, %v9391_v10  ;;  %vm4000_vm13 = vcmp.gt.f32.partialorder %v3840_v12, 0.5 }
 0x3b8   : > { %v6377_v7 = vsel %vm2096_vm1, %v8907_v48, 0.0  ;;  %v6496_v13 = vmul.f32 0.2, %v5559_v43  ;;  %v4160_v55 = vsel %vm4000_vm13, 0.0, %v3840_v12  ;;  %v8765_v44 = vsel %vm4000_vm13, 1.0, %v9391_v10 }
 0x3b9   : > { %v13599_v45 = vadd.f32 %v6377_v7, %v13464_v6  ;;  %v13602_v9 = vadd.f32 %v8765_v44, %v13467_v40  ;;  %v5097_v32 = vmul.f32 0.2, %v4160_v55  ;;  %v2414_v14 = vadd.f32 %v2254_v25, %v13542_v18 }
 0x3ba   : > { %v6656_v2 = vadd.f32 %v6496_v13, %v13444_v62  ;;  %v13607_v61 = vadd.f32 %v8479_v39, %v13479_v22  ;;  %v2457_v20 = vadd.f32 %v2297_v51, %v13547_v1  ;;  %v13611_v57 = vadd.f32 %v868_v37, %v11392_v24 }
 0x3bb   : > { %v5257_v36 = vadd.f32 %v5097_v32, %v13449_v11  ;;  %vm2574_vm0 = vcmp.gt.f32.partialorder %v2414_v14, 0.5  ;;  %v13615_v6 = vadd.f32 %v700_v50, %v10815_v33  ;;  %v13618_v40 = vadd.f32 %v784_v53, %v11123_v28 }
 0x3bc   : > { %vm6816_vm14 = vcmp.gt.f32.partialorder %v6656_v2, 0.5  ;;  %v2734_v35 = vsel %vm2574_vm0, 0.0, %v2414_v14  ;;  %v8596_v62 = vsel %vm2574_vm0, 1.0, %v9391_v10  ;;  %vm2617_vm15 = vcmp.gt.f32.partialorder %v2457_v20, 0.5 }
 0x3bd   : > { %v9067_v22 = vsel %vm6816_vm14, 1.0, %v9391_v10  ;;  %vm5417_vm12 = vcmp.gt.f32.partialorder %v5257_v36, 0.5  ;;  %v13623_v46 = vadd.f32 %v8596_v62, %v13455_v4  ;;  %v3671_v15 = vmul.f32 0.2, %v2734_v35 }
 0x3be   : > { %v7634_v56 = vsel %vm2096_vm1, %v9067_v22, 0.0  ;;  %v5577_v52 = vsel %vm5417_vm12, 0.0, %v5257_v36  ;;  %v8925_v60 = vsel %vm5417_vm12, 1.0, %v9391_v10  ;;  %v2777_v41 = vsel %vm2617_vm15, 0.0, %v2457_v20 }
 0x3bf   : > { %v13631_v59 = vadd.f32 %v7634_v56, %v13497_v54  ;;  %v13634_v16 = vadd.f32 %v8925_v60, %v13494_v26  ;;  %v6514_v23 = vmul.f32 0.2, %v5577_v52  ;;  %v3831_v4 = vadd.f32 %v3671_v15, %v13542_v18  ;;  %v628_v60 = vpop.f32.mrf.mxu1 }
 0x3c0   : > { %v8639_v8 = vsel %vm2617_vm15, 1.0, %v9391_v10  ;;  %v3714_v12 = vmul.f32 0.2, %v2777_v41  ;;  %vm1152_vm2 = vcmp.gt.f32.partialorder %v13611_v57, 0.5  ;;  %vm1170_vm4 = vcmp.gt.f32.partialorder %v13615_v6, 0.5 }
 0x3c1   : > { %v6674_v25 = vadd.f32 %v6514_v23, %v13449_v11  ;;  %vm3991_vm5 = vcmp.gt.f32.partialorder %v3831_v4, 0.5  ;;  %v13642_v54 = vadd.f32 %v8639_v8, %v13507_v49  ;;  %v1312_v26 = vsel %vm1152_vm2, 0.0, %v13611_v57 }
 0x3c2   : > { %v4151_v29 = vsel %vm3991_vm5, 0.0, %v3831_v4  ;;  %v8756_v39 = vsel %vm3991_vm5, 1.0, %v9391_v10  ;;  %v3874_v51 = vadd.f32 %v3714_v12, %v13547_v1  ;;  %v8432_v43 = vsel %vm1152_vm2, 1.0, %v9391_v10 }
 0x3c3   : > { %vm6834_vm8 = vcmp.gt.f32.partialorder %v6674_v25, 0.5  ;;  %v13649_v48 = vadd.f32 %v8756_v39, %v13502_v34  ;;  %v5088_v37 = vmul.f32 0.2, %v4151_v29  ;;  %v2128_v11 = vsel %vm2096_vm1, %v8432_v43, 0.0 }
 0x3c4   : > { %v9085_v7 = vsel %vm6834_vm8, 1.0, %v9391_v10  ;;  %vm4034_vm9 = vcmp.gt.f32.partialorder %v3874_v51, 0.5  ;;  %v13654_v49 = vadd.f32 %v2128_v11, %v13519_v38  ;;  %v2250_v13 = vmul.f32 0.2, %v1312_v26 }
 0x3c5   : > { %v13657_v55 = vadd.f32 %v9085_v7, %v13522_v30  ;;  %v5248_v44 = vadd.f32 %v5088_v37, %v13542_v18  ;;  %v4194_v50 = vsel %vm4034_vm9, 0.0, %v3874_v51  ;;  %v8799_v53 = vsel %vm4034_vm9, 1.0, %v9391_v10 }
 0x3c6   : > { %v13662_v34 = vadd.f32 %v8799_v53, %v13538_v58  ;;  %v5131_v32 = vmul.f32 0.2, %v4194_v50  ;;  %v2410_v14 = vadd.f32 %v2250_v13, %v13611_v57  ;;  %v1330_v38 = vsel %vm1170_vm4, 0.0, %v13615_v6  ;;  %v702_v50 = vpop.f32.mrf.mxu2 }
 0x3c7   : > { %vm5408_vm10 = vcmp.gt.f32.partialorder %v5248_v44, 0.5  ;;  %v8450_v30 = vsel %vm1170_vm4, 1.0, %v9391_v10  ;;  %v2268_v2 = vmul.f32 0.2, %v1330_v38  ;;  %vm1161_vm13 = vcmp.gt.f32.partialorder %v13618_v40, 0.5 }
 0x3c8   : > { %v5568_v20 = vsel %vm5408_vm10, 0.0, %v5248_v44  ;;  %v8916_v36 = vsel %vm5408_vm10, 1.0, %v9391_v10  ;;  %v5291_v58 = vadd.f32 %v5131_v32, %v13547_v1  ;;  %vm2570_vm0 = vcmp.gt.f32.partialorder %v2410_v14, 0.5  ;;  %v870_v44 = vpop.f32.mrf.mxu0 }
 0x3c9   : > { %v13675_v35 = vadd.f32 %v8916_v36, %v13527_v63  ;;  %v6505_v62 = vmul.f32 0.2, %v5568_v20  ;;  %v2730_v22 = vsel %vm2570_vm0, 0.0, %v2410_v14  ;;  %v8592_v15 = vsel %vm2570_vm0, 1.0, %v9391_v10 }
 0x3ca   : > { %vm5451_vm14 = vcmp.gt.f32.partialorder %v5291_v58, 0.5  ;;  %v3545_v31 = vsel %vm2096_vm1, %v8592_v15, 0.0  ;;  %v3667_v56 = vmul.f32 0.2, %v2730_v22  ;;  %v13680_v52 = vadd.f32 %v8450_v30, %v13534_v0 }
 0x3cb   : > { %v6665_v41 = vadd.f32 %v6505_v62, %v13542_v18  ;;  %v5611_v23 = vsel %vm5451_vm14, 0.0, %v5291_v58  ;;  %v8959_v4 = vsel %vm5451_vm14, 1.0, %v9391_v10  ;;  %v13685_v63 = vadd.f32 %v3545_v31, %v13551_v17 }
 0x3cc   : > { %v13688_v8 = vadd.f32 %v8959_v4, %v13562_v3  ;;  %v6548_v12 = vmul.f32 0.2, %v5611_v23  ;;  %v3827_v25 = vadd.f32 %v3667_v56, %v13611_v57  ;;  %v2428_v26 = vadd.f32 %v2268_v2, %v13615_v6 }
 0x3cd   : > { %vm6825_vm15 = vcmp.gt.f32.partialorder %v6665_v41, 0.5  ;;  %v1321_v0 = vsel %vm1161_vm13, 0.0, %v13618_v40  ;;  %v8441_v18 = vsel %vm1161_vm13, 1.0, %v9391_v10  ;;  %v13699_v17 = vadd.f32 %v628_v60, %v9855_v5 }
 0x3ce   : > { %v9076_v3 = vsel %vm6825_vm15, 1.0, %v9391_v10  ;;  %v6708_v29 = vadd.f32 %v6548_v12, %v13547_v1  ;;  %vm3987_vm12 = vcmp.gt.f32.partialorder %v3827_v25, 0.5  ;;  %vm2588_vm2 = vcmp.gt.f32.partialorder %v2428_v26, 0.5 }
 0x3cf   : > { %v13704_v39 = vadd.f32 %v9076_v3, %v13556_v47  ;;  %v4147_v51 = vsel %vm3987_vm12, 0.0, %v3827_v25  ;;  %v8752_v43 = vsel %vm3987_vm12, 1.0, %v9391_v10  ;;  %v2748_v37 = vsel %vm2588_vm2, 0.0, %v2428_v26 }
 0x3d0   : > { %vm6868_vm4 = vcmp.gt.f32.partialorder %v6708_v29, 0.5  ;;  %v4962_v11 = vsel %vm2096_vm1, %v8752_v43, 0.0  ;;  %v5084_v7 = vmul.f32 0.2, %v4147_v51  ;;  %v8610_v13 = vsel %vm2588_vm2, 1.0, %v9391_v10 }
 0x3d1   : > { %v9119_v53 = vsel %vm6868_vm4, 1.0, %v9391_v10  ;;  %v13711_v1 = vadd.f32 %v4962_v11, %v13569_v42  ;;  %v13714_v47 = vadd.f32 %v8610_v13, %v13572_v21  ;;  %v3685_v32 = vmul.f32 0.2, %v2748_v37 }
 0x3d2   : > { %v13717_v14 = vadd.f32 %v9119_v53, %v13593_v19  ;;  %v5244_v38 = vadd.f32 %v5084_v7, %v13611_v57  ;;  %v13721_v30 = vadd.f32 %v8441_v18, %v13586_v27  ;;  %v2259_v2 = vmul.f32 0.2, %v1321_v0 }
 0x3d3   : > { %v3845_v20 = vadd.f32 %v3685_v32, %v13615_v6  ;;  %vm1204_vm5 = vcmp.gt.f32.partialorder %v13699_v17, 0.5  ;;  %v13726_v42 = vadd.f32 %v870_v44, %v11392_v24  ;;  %v13729_v21 = vadd.f32 %v702_v50, %v10815_v33 }
 0x3d4   : > { %vm5404_vm8 = vcmp.gt.f32.partialorder %v5244_v38, 0.5  ;;  %v2419_v19 = vadd.f32 %v2259_v2, %v13618_v40  ;;  %v1364_v36 = vsel %vm1204_vm5, 0.0, %v13699_v17  ;;  %v8484_v58 = vsel %vm1204_vm5, 1.0, %v9391_v10 }
 0x3d5   : > { %v5564_v27 = vsel %vm5404_vm8, 0.0, %v5244_v38  ;;  %v8912_v62 = vsel %vm5404_vm8, 1.0, %v9391_v10  ;;  %vm4005_vm9 = vcmp.gt.f32.partialorder %v3845_v20, 0.5  ;;  %v13736_v22 = vadd.f32 %v8484_v58, %v13607_v61 }
 0x3d6   : > { %v6379_v15 = vsel %vm2096_vm1, %v8912_v62, 0.0  ;;  %v6501_v31 = vmul.f32 0.2, %v5564_v27  ;;  %v4165_v56 = vsel %vm4005_vm9, 0.0, %v3845_v20  ;;  %v8770_v60 = vsel %vm4005_vm9, 1.0, %v9391_v10  ;;  %v786_v27 = vpop.f32.mrf.mxu3 }
 0x3d7   : > { %v13741_v41 = vadd.f32 %v6379_v15, %v13599_v45  ;;  %v13744_v23 = vadd.f32 %v8770_v60, %v13602_v9  ;;  %v5102_v4 = vmul.f32 0.2, %v4165_v56  ;;  %vm2579_vm10 = vcmp.gt.f32.partialorder %v2419_v19, 0.5 }
 0x3d8   : > { %v6661_v12 = vadd.f32 %v6501_v31, %v13611_v57  ;;  %v2739_v25 = vsel %vm2579_vm10, 0.0, %v2419_v19  ;;  %v8601_v61 = vsel %vm2579_vm10, 1.0, %v9391_v10  ;;  %v2302_v26 = vmul.f32 0.2, %v1364_v36 }
 0x3d9   : > { %v5262_v0 = vadd.f32 %v5102_v4, %v13615_v6  ;;  %v13750_v18 = vadd.f32 %v8601_v61, %v13623_v46  ;;  %v3676_v3 = vmul.f32 0.2, %v2739_v25  ;;  %vm1157_vm13 = vcmp.gt.f32.partialorder %v13726_v42, 0.5 }
 0x3da   : > { %vm6821_vm0 = vcmp.gt.f32.partialorder %v6661_v12, 0.5  ;;  %v2462_v45 = vadd.f32 %v2302_v26, %v13699_v17  ;;  %v1317_v9 = vsel %vm1157_vm13, 0.0, %v13726_v42  ;;  %v8437_v29 = vsel %vm1157_vm13, 1.0, %v9391_v10 }
 0x3db   : > { %v9072_v57 = vsel %vm6821_vm0, 1.0, %v9391_v10  ;;  %vm5422_vm14 = vcmp.gt.f32.partialorder %v5262_v0, 0.5  ;;  %v3836_v51 = vadd.f32 %v3676_v3, %v13618_v40  ;;  %v2130_v43 = vsel %vm2096_vm1, %v8437_v29, 0.0  ;;  %v631_v29 = vpop.f32.mrf.mxu1 }
 0x3dc   : > { %v7636_v46 = vsel %vm2096_vm1, %v9072_v57, 0.0  ;;  %v5582_v37 = vsel %vm5422_vm14, 0.0, %v5262_v0  ;;  %v8930_v11 = vsel %vm5422_vm14, 1.0, %v9391_v10  ;;  %vm2622_vm15 = vcmp.gt.f32.partialorder %v2462_v45, 0.5 }
 0x3dd   : > { %v13762_v7 = vadd.f32 %v7636_v46, %v13631_v59  ;;  %v13765_v13 = vadd.f32 %v8930_v11, %v13634_v16  ;;  %v6519_v44 = vmul.f32 0.2, %v5582_v37  ;;  %vm3996_vm12 = vcmp.gt.f32.partialorder %v3836_v51, 0.5 }
 0x3de   : > { %v4156_v50 = vsel %vm3996_vm12, 0.0, %v3836_v51  ;;  %v8761_v53 = vsel %vm3996_vm12, 1.0, %v9391_v10  ;;  %v2782_v32 = vsel %vm2622_vm15, 0.0, %v2462_v45  ;;  %v8644_v38 = vsel %vm2622_vm15, 1.0, %v9391_v10 }
 0x3df   : > { %v6679_v2 = vadd.f32 %v6519_v44, %v13615_v6  ;;  %v13771_v20 = vadd.f32 %v8761_v53, %v13649_v48  ;;  %v5093_v19 = vmul.f32 0.2, %v4156_v50  ;;  %v13774_v59 = vadd.f32 %v8644_v38, %v13642_v54 }
 0x3e0   : > { %v3719_v36 = vmul.f32 0.2, %v2782_v32  ;;  %v13777_v16 = vadd.f32 %v2130_v43, %v13654_v49  ;;  %v2255_v58 = vmul.f32 0.2, %v1317_v9  ;;  %vm1175_vm2 = vcmp.gt.f32.partialorder %v13729_v21, 0.5 }
 0x3e1   : > { %vm6839_vm4 = vcmp.gt.f32.partialorder %v6679_v2, 0.5  ;;  %v5253_v62 = vadd.f32 %v5093_v19, %v13618_v40  ;;  %v1335_v6 = vsel %vm1175_vm2, 0.0, %v13729_v21  ;;  %v8455_v31 = vsel %vm1175_vm2, 1.0, %v9391_v10 }
 0x3e2   : > { %v9090_v48 = vsel %vm6839_vm4, 1.0, %v9391_v10  ;;  %v3879_v15 = vadd.f32 %v3719_v36, %v13699_v17  ;;  %v2415_v54 = vadd.f32 %v2255_v58, %v13726_v42  ;;  %v2273_v56 = vmul.f32 0.2, %v1335_v6 }
 0x3e3   : > { %v13787_v49 = vadd.f32 %v9090_v48, %v13657_v55  ;;  %vm5413_vm5 = vcmp.gt.f32.partialorder %v5253_v62, 0.5  ;;  %v13790_v60 = vadd.f32 %v786_v27, %v11123_v28 }
 0x3e4   : > { %v5573_v4 = vsel %vm5413_vm5, 0.0, %v5253_v62  ;;  %v8921_v12 = vsel %vm5413_vm5, 1.0, %v9391_v10  ;;  %vm4039_vm8 = vcmp.gt.f32.partialorder %v3879_v15, 0.5  ;;  %vm2575_vm9 = vcmp.gt.f32.partialorder %v2415_v54, 0.5 }
 0x3e5   : > { %v13794_v25 = vadd.f32 %v8921_v12, %v13675_v35  ;;  %v6510_v61 = vmul.f32 0.2, %v5573_v4  ;;  %v4199_v26 = vsel %vm4039_vm8, 0.0, %v3879_v15  ;;  %v8804_v0 = vsel %vm4039_vm8, 1.0, %v9391_v10 }
 0x3e6   : > { %v13798_v55 = vadd.f32 %v8804_v0, %v13662_v34  ;;  %v5136_v3 = vmul.f32 0.2, %v4199_v26  ;;  %v2735_v45 = vsel %vm2575_vm9, 0.0, %v2415_v54  ;;  %v8597_v9 = vsel %vm2575_vm9, 1.0, %v9391_v10 }
 0x3e7   : > { %v6670_v57 = vadd.f32 %v6510_v61, %v13618_v40  ;;  %v3547_v51 = vsel %vm2096_vm1, %v8597_v9, 0.0  ;;  %v3672_v43 = vmul.f32 0.2, %v2735_v45  ;;  %v2433_v35 = vadd.f32 %v2273_v56, %v13729_v21 }
 0x3e8   : > { %v5296_v46 = vadd.f32 %v5136_v3, %v13699_v17  ;;  %v13806_v37 = vadd.f32 %v3547_v51, %v13685_v63  ;;  %v13809_v34 = vadd.f32 %v8455_v31, %v13680_v52  ;;  %vm1166_vm10 = vcmp.gt.f32.partialorder %v13790_v60, 0.5 }
 0x3e9   : > { %vm6830_vm13 = vcmp.gt.f32.partialorder %v6670_v57, 0.5  ;;  %v3832_v11 = vadd.f32 %v3672_v43, %v13726_v42  ;;  %vm2593_vm0 = vcmp.gt.f32.partialorder %v2433_v35, 0.5  ;;  %v13814_v40 = vadd.f32 %v631_v29, %v9855_v5 }
 0x3ea   : > { %v9081_v44 = vsel %vm6830_vm13, 1.0, %v9391_v10  ;;  %vm5456_vm14 = vcmp.gt.f32.partialorder %v5296_v46, 0.5  ;;  %v2753_v50 = vsel %vm2593_vm0, 0.0, %v2433_v35  ;;  %v1326_v63 = vsel %vm1166_vm10, 0.0, %v13790_v60  ;;  %v705_v35 = vpop.f32.mrf.mxu2 }
 0x3eb   : > { %v13822_v52 = vadd.f32 %v9081_v44, %v13704_v39  ;;  %v5616_v53 = vsel %vm5456_vm14, 0.0, %v5296_v46  ;;  %v8964_v32 = vsel %vm5456_vm14, 1.0, %v9391_v10  ;;  %vm3992_vm15 = vcmp.gt.f32.partialorder %v3832_v11, 0.5 }
 0x3ec   : > { %v13826_v38 = vadd.f32 %v8964_v32, %v13688_v8  ;;  %v6553_v2 = vmul.f32 0.2, %v5616_v53  ;;  %v4152_v19 = vsel %vm3992_vm15, 0.0, %v3832_v11  ;;  %v8757_v36 = vsel %vm3992_vm15, 1.0, %v9391_v10 }
 0x3ed   : > { %v4964_v58 = vsel %vm2096_vm1, %v8757_v36, 0.0  ;;  %v5089_v27 = vmul.f32 0.2, %v4152_v19  ;;  %v8615_v62 = vsel %vm2593_vm0, 1.0, %v9391_v10  ;;  %v3690_v6 = vmul.f32 0.2, %v2753_v50 }
 0x3ee   : > { %v6713_v39 = vadd.f32 %v6553_v2, %v13699_v17  ;;  %v13834_v48 = vadd.f32 %v4964_v58, %v13711_v1  ;;  %v8446_v8 = vsel %vm1166_vm10, 1.0, %v9391_v10  ;;  %v2264_v15 = vmul.f32 0.2, %v1326_v63  ;;  %v789_v63 = vpop.f32.mrf.mxu3 }
 0x3ef   : > { %v5249_v54 = vadd.f32 %v5089_v27, %v13726_v42  ;;  %v3850_v31 = vadd.f32 %v3690_v6, %v13729_v21  ;;  %v13842_v56 = vadd.f32 %v8446_v8, %v13721_v30  ;;  %vm1209_vm12 = vcmp.gt.f32.partialorder %v13814_v40, 0.5 }
 0x3f0   : > { %vm6873_vm2 = vcmp.gt.f32.partialorder %v6713_v39, 0.5  ;;  %v2424_v17 = vadd.f32 %v2264_v15, %v13790_v60  ;;  %v1369_v1 = vsel %vm1209_vm12, 0.0, %v13814_v40  ;;  %v8489_v4 = vsel %vm1209_vm12, 1.0, %v9391_v10 }
 0x3f1   : > { %v9124_v12 = vsel %vm6873_vm2, 1.0, %v9391_v10  ;;  %vm5409_vm4 = vcmp.gt.f32.partialorder %v5249_v54, 0.5  ;;  %vm4010_vm5 = vcmp.gt.f32.partialorder %v3850_v31, 0.5  ;;  %v13850_v61 = vadd.f32 %v8489_v4, %v13736_v22 }
 0x3f2   : > { %v13853_v26 = vadd.f32 %v9124_v12, %v13717_v14  ;;  %v5569_v30 = vsel %vm5409_vm4, 0.0, %v5249_v54  ;;  %v8917_v0 = vsel %vm5409_vm4, 1.0, %v9391_v10  ;;  %v4170_v3 = vsel %vm4010_vm5, 0.0, %v3850_v31  ;;  %v873_v14 = vpop.f32.mrf.mxu0 }
 0x3f3   : > { %v6381_v45 = vsel %vm2096_vm1, %v8917_v0, 0.0  ;;  %v6506_v9 = vmul.f32 0.2, %v5569_v30  ;;  %v8775_v29 = vsel %vm4010_vm5, 1.0, %v9391_v10  ;;  %v5107_v57 = vmul.f32 0.2, %v4170_v3 }
 0x3f4   : > { %v13859_v51 = vadd.f32 %v6381_v45, %v13741_v41  ;;  %v13862_v43 = vadd.f32 %v8615_v62, %v13714_v47  ;;  %vm2584_vm8 = vcmp.gt.f32.partialorder %v2424_v17, 0.5  ;;  %v2307_v22 = vmul.f32 0.2, %v1369_v1 }
 0x3f5   : > { %v6666_v46 = vadd.f32 %v6506_v9, %v13726_v42  ;;  %v5267_v11 = vadd.f32 %v5107_v57, %v13729_v21  ;;  %v2744_v44 = vsel %vm2584_vm8, 0.0, %v2424_v17  ;;  %v8606_v50 = vsel %vm2584_vm8, 1.0, %v9391_v10 }
 0x3f6   : > { %v13868_v53 = vadd.f32 %v8775_v29, %v13744_v23  ;;  %v13871_v41 = vadd.f32 %v8606_v50, %v13750_v18  ;;  %v3681_v47 = vmul.f32 0.2, %v2744_v44  ;;  %v2467_v32 = vadd.f32 %v2307_v22, %v13814_v40 }
 0x3f7   : > { %vm6826_vm9 = vcmp.gt.f32.partialorder %v6666_v46, 0.5  ;;  %vm5427_vm10 = vcmp.gt.f32.partialorder %v5267_v11, 0.5  ;;  %v13875_v2 = vadd.f32 %v873_v14, %v11392_v24  ;;  %v13878_v42 = vadd.f32 %v705_v35, %v10815_v33 }
 0x3f8   : > { %v9077_v19 = vsel %vm6826_vm9, 1.0, %v9391_v10  ;;  %v5587_v36 = vsel %vm5427_vm10, 0.0, %v5267_v11  ;;  %v3841_v23 = vadd.f32 %v3681_v47, %v13790_v60  ;;  %v13883_v58 = vadd.f32 %v789_v63, %v11123_v28 }
 0x3f9   : > { %v7638_v18 = vsel %vm2096_vm1, %v9077_v19, 0.0  ;;  %v8935_v27 = vsel %vm5427_vm10, 1.0, %v9391_v10  ;;  %v6524_v62 = vmul.f32 0.2, %v5587_v36  ;;  %vm2627_vm13 = vcmp.gt.f32.partialorder %v2467_v32, 0.5 }
 0x3fa   : > { %v13888_v6 = vadd.f32 %v7638_v18, %v13762_v7  ;;  %vm4001_vm0 = vcmp.gt.f32.partialorder %v3841_v23, 0.5  ;;  %v2787_v39 = vsel %vm2627_vm13, 0.0, %v2467_v32  ;;  %v8649_v8 = vsel %vm2627_vm13, 1.0, %v9391_v10 }
 0x3fb   : > { %v6684_v15 = vadd.f32 %v6524_v62, %v13729_v21  ;;  %v4161_v54 = vsel %vm4001_vm0, 0.0, %v3841_v23  ;;  %v8766_v31 = vsel %vm4001_vm0, 1.0, %v9391_v10  ;;  %v13894_v17 = vadd.f32 %v8649_v8, %v13774_v59 }
 0x3fc   : > { %v13897_v1 = vadd.f32 %v8766_v31, %v13771_v20  ;;  %v5098_v4 = vmul.f32 0.2, %v4161_v54  ;;  %v3724_v12 = vmul.f32 0.2, %v2787_v39  ;;  %vm1162_vm14 = vcmp.gt.f32.partialorder %v13875_v2, 0.5 }
 0x3fd   : > { %vm6844_vm15 = vcmp.gt.f32.partialorder %v6684_v15, 0.5  ;;  %v1322_v7 = vsel %vm1162_vm14, 0.0, %v13875_v2  ;;  %v8442_v30 = vsel %vm1162_vm14, 1.0, %v9391_v10  ;;  %vm1180_vm12 = vcmp.gt.f32.partialorder %v13878_v42, 0.5 }
 0x3fe   : > { %v9095_v21 = vsel %vm6844_vm15, 1.0, %v9391_v10  ;;  %v5258_v0 = vadd.f32 %v5098_v4, %v13790_v60  ;;  %v3884_v59 = vadd.f32 %v3724_v12, %v13814_v40  ;;  %v2132_v20 = vsel %vm2096_vm1, %v8442_v30, 0.0  ;;  %v633_v4 = vpop.f32.mrf.mxu1  ;;  %v875_v12 = vpop.f32.mrf.mxu0 }
 0x3ff   : > { %v13908_v3 = vadd.f32 %v8935_v27, %v13765_v13  ;;  %v13911_v45 = vadd.f32 %v2132_v20, %v13777_v16  ;;  %v2260_v9 = vmul.f32 0.2, %v1322_v7  ;;  %v1340_v29 = vsel %vm1180_vm12, 0.0, %v13878_v42 }
 0x400   : > { %v13917_v57 = vadd.f32 %v9095_v21, %v13787_v49  ;;  %vm5418_vm2 = vcmp.gt.f32.partialorder %v5258_v0, 0.5  ;;  %vm4044_vm4 = vcmp.gt.f32.partialorder %v3884_v59, 0.5  ;;  %v2278_v22 = vmul.f32 0.2, %v1340_v29 }
 0x401   : > { %v5578_v14 = vsel %vm5418_vm2, 0.0, %v5258_v0  ;;  %v8926_v35 = vsel %vm5418_vm2, 1.0, %v9391_v10  ;;  %v4204_v46 = vsel %vm4044_vm4, 0.0, %v3884_v59  ;;  %v8809_v13 = vsel %vm4044_vm4, 1.0, %v9391_v10 }
 0x402   : > { %v13922_v16 = vadd.f32 %v8926_v35, %v13794_v25  ;;  %v6515_v11 = vmul.f32 0.2, %v5578_v14  ;;  %v13925_v44 = vadd.f32 %v8809_v13, %v13798_v55  ;;  %v5141_v50 = vmul.f32 0.2, %v4204_v46  ;;  %v707_v46 = vpop.f32.mrf.mxu2 }
 0x403   : > { %v2420_v49 = vadd.f32 %v2260_v9, %v13875_v2  ;;  %v8460_v63 = vsel %vm1180_vm12, 1.0, %v9391_v10  ;;  %v2438_v47 = vadd.f32 %v2278_v22, %v13878_v42  ;;  %vm1171_vm5 = vcmp.gt.f32.partialorder %v13883_v58, 0.5 }
 0x404   : > { %v6675_v32 = vadd.f32 %v6515_v11, %v13790_v60  ;;  %v5301_v25 = vadd.f32 %v5141_v50, %v13814_v40  ;;  %v1331_v19 = vsel %vm1171_vm5, 0.0, %v13883_v58  ;;  %v8451_v55 = vsel %vm1171_vm5, 1.0, %v9391_v10 }
 0x405   : > { %vm2580_vm8 = vcmp.gt.f32.partialorder %v2420_v49, 0.5  ;;  %vm2598_vm9 = vcmp.gt.f32.partialorder %v2438_v47, 0.5  ;;  %v13938_v36 = vadd.f32 %v8451_v55, %v13842_v56  ;;  %v2269_v23 = vmul.f32 0.2, %v1331_v19 }
 0x406   : > { %vm6835_vm10 = vcmp.gt.f32.partialorder %v6675_v32, 0.5  ;;  %vm5461_vm13 = vcmp.gt.f32.partialorder %v5301_v25, 0.5  ;;  %v2740_v18 = vsel %vm2580_vm8, 0.0, %v2420_v49  ;;  %v8602_v27 = vsel %vm2580_vm8, 1.0, %v9391_v10 }
 0x407   : > { %v9086_v62 = vsel %vm6835_vm10, 1.0, %v9391_v10  ;;  %v5621_v60 = vsel %vm5461_vm13, 0.0, %v5301_v25  ;;  %v8969_v39 = vsel %vm5461_vm13, 1.0, %v9391_v10  ;;  %v3549_v8 = vsel %vm2096_vm1, %v8602_v27, 0.0 }
 0x408   : > { %v13945_v15 = vadd.f32 %v9086_v62, %v13822_v52  ;;  %v13948_v54 = vadd.f32 %v8969_v39, %v13826_v38  ;;  %v6558_v56 = vmul.f32 0.2, %v5621_v60  ;;  %v13951_v31 = vadd.f32 %v3549_v8, %v13806_v37  ;;  %v9332_v62 = vld [vmem:[%s15323_s3 + $0x58] sm:$0xff] }
 0x409   : > { %v3677_v7 = vmul.f32 0.2, %v2740_v18  ;;  %v2758_v30 = vsel %vm2598_vm9, 0.0, %v2438_v47  ;;  %v8620_v21 = vsel %vm2598_vm9, 1.0, %v9391_v10  ;;  %v2429_v0 = vadd.f32 %v2269_v23, %v13883_v58  ;;  %8020 = vmatpush.bf16.msra.mxu2 %v9332_v62 }
 0x40a   : > { %v6718_v52 = vadd.f32 %v6558_v56, %v13814_v40  ;;  %v13959_v59 = vadd.f32 %v8460_v63, %v13809_v34  ;;  %v13962_v38 = vadd.f32 %v8620_v21, %v13862_v43  ;;  %v3695_v37 = vmul.f32 0.2, %v2758_v30 }
 0x40b   : > { %v3837_v20 = vadd.f32 %v3677_v7, %v13875_v2  ;;  %vm2589_vm0 = vcmp.gt.f32.partialorder %v2429_v0, 0.5  ;;  %v13966_v9 = vadd.f32 %v633_v4, %v9855_v5  ;;  %v13969_v29 = vadd.f32 %v875_v12, %v11392_v24 }
 0x40c   : > { %vm6878_vm14 = vcmp.gt.f32.partialorder %v6718_v52, 0.5  ;;  %v3855_v22 = vadd.f32 %v3695_v37, %v13878_v42  ;;  %v2749_v40 = vsel %vm2589_vm0, 0.0, %v2429_v0  ;;  %v8611_v34 = vsel %vm2589_vm0, 1.0, %v9391_v10 }
 0x40d   : > { %v9129_v14 = vsel %vm6878_vm14, 1.0, %v9391_v10  ;;  %vm3997_vm15 = vcmp.gt.f32.partialorder %v3837_v20, 0.5  ;;  %v13975_v43 = vadd.f32 %v8611_v34, %v13871_v41  ;;  %v3686_v35 = vmul.f32 0.2, %v2749_v40 }
 0x40e   : > { %v13978_v13 = vadd.f32 %v9129_v14, %v13853_v26  ;;  %v4157_v11 = vsel %vm3997_vm15, 0.0, %v3837_v20  ;;  %v8762_v50 = vsel %vm3997_vm15, 1.0, %v9391_v10  ;;  %vm4015_vm12 = vcmp.gt.f32.partialorder %v3855_v22, 0.5 }
 0x40f   : > { %v4966_v49 = vsel %vm2096_vm1, %v8762_v50, 0.0  ;;  %v5094_v63 = vmul.f32 0.2, %v4157_v11  ;;  %v4175_v47 = vsel %vm4015_vm12, 0.0, %v3855_v22  ;;  %v8780_v32 = vsel %vm4015_vm12, 1.0, %v9391_v10 }
 0x410   : > { %v13984_v25 = vadd.f32 %v4966_v49, %v13834_v48  ;;  %v5112_v41 = vmul.f32 0.2, %v4175_v47  ;;  %v3846_v19 = vadd.f32 %v3686_v35, %v13883_v58  ;;  %v13988_v55 = vadd.f32 %v707_v46, %v10815_v33 }
 0x411   : > { %v5254_v26 = vadd.f32 %v5094_v63, %v13875_v2  ;;  %v13992_v23 = vadd.f32 %v8780_v32, %v13868_v53  ;;  %vm1214_vm2 = vcmp.gt.f32.partialorder %v13966_v9, 0.5  ;;  %vm1167_vm4 = vcmp.gt.f32.partialorder %v13969_v29, 0.5 }
 0x412   : > { %v5272_v18 = vadd.f32 %v5112_v41, %v13878_v42  ;;  %vm4006_vm5 = vcmp.gt.f32.partialorder %v3846_v19, 0.5  ;;  %v1374_v48 = vsel %vm1214_vm2, 0.0, %v13966_v9  ;;  %v8494_v27 = vsel %vm1214_vm2, 1.0, %v9391_v10 }
 0x413   : > { %vm5414_vm8 = vcmp.gt.f32.partialorder %v5254_v26, 0.5  ;;  %v4166_v60 = vsel %vm4006_vm5, 0.0, %v3846_v19  ;;  %v8771_v53 = vsel %vm4006_vm5, 1.0, %v9391_v10  ;;  %v14004_v39 = vadd.f32 %v8494_v27, %v13850_v61 }
 0x414   : > { %v5574_v8 = vsel %vm5414_vm8, 0.0, %v5254_v26  ;;  %v8922_v56 = vsel %vm5414_vm8, 1.0, %v9391_v10  ;;  %vm5432_vm9 = vcmp.gt.f32.partialorder %v5272_v18, 0.5  ;;  %v14008_v4 = vadd.f32 %v8771_v53, %v13897_v1 }
 0x415   : > { %v6383_v12 = vsel %vm2096_vm1, %v8922_v56, 0.0  ;;  %v6511_v7 = vmul.f32 0.2, %v5574_v8  ;;  %v5592_v30 = vsel %vm5432_vm9, 0.0, %v5272_v18  ;;  %vm1185_vm10 = vcmp.gt.f32.partialorder %v13988_v55, 0.5  ;;  %v791_v8 = vpop.f32.mrf.mxu3  ;;  %v636_v56 = vpop.f32.mrf.mxu1 }
 0x416   : > { %v14013_v21 = vadd.f32 %v6383_v12, %v13859_v51  ;;  %v8940_v61 = vsel %vm5432_vm9, 1.0, %v9391_v10  ;;  %v6529_v0 = vmul.f32 0.2, %v5592_v30  ;;  %v5103_v52 = vmul.f32 0.2, %v4166_v60 }
 0x417   : > { %v6671_v37 = vadd.f32 %v6511_v7, %v13875_v2  ;;  %v2312_v20 = vmul.f32 0.2, %v1374_v48  ;;  %v1327_v1 = vsel %vm1167_vm4, 0.0, %v13969_v29  ;;  %v8447_v22 = vsel %vm1167_vm4, 1.0, %v9391_v10 }
 0x418   : > { %v6689_v40 = vadd.f32 %v6529_v0, %v13878_v42  ;;  %v5263_v51 = vadd.f32 %v5103_v52, %v13883_v58  ;;  %v2134_v34 = vsel %vm2096_vm1, %v8447_v22, 0.0  ;;  %v2265_v14 = vmul.f32 0.2, %v1327_v1 }
 0x419   : > { %vm6831_vm13 = vcmp.gt.f32.partialorder %v6671_v37, 0.5  ;;  %v2472_v35 = vadd.f32 %v2312_v20, %v13966_v9  ;;  %v14028_v2 = vadd.f32 %v2134_v34, %v13911_v45  ;;  %v1345_v46 = vsel %vm1185_vm10, 0.0, %v13988_v55 }
 0x41a   : > { %v9082_v11 = vsel %vm6831_vm13, 1.0, %v9391_v10  ;;  %vm6849_vm0 = vcmp.gt.f32.partialorder %v6689_v40, 0.5  ;;  %vm5423_vm14 = vcmp.gt.f32.partialorder %v5263_v51, 0.5  ;;  %v2425_v42 = vadd.f32 %v2265_v14, %v13969_v29 }
 0x41b   : > { %v7640_v50 = vsel %vm2096_vm1, %v9082_v11, 0.0  ;;  %v9100_v49 = vsel %vm6849_vm0, 1.0, %v9391_v10  ;;  %v5583_v63 = vsel %vm5423_vm14, 0.0, %v5263_v51  ;;  %v8931_v47 = vsel %vm5423_vm14, 1.0, %v9391_v10 }
 0x41c   : > { %v14039_v45 = vadd.f32 %v7640_v50, %v13888_v6  ;;  %v14042_v32 = vadd.f32 %v8940_v61, %v13908_v3  ;;  %v14045_v41 = vadd.f32 %v8931_v47, %v13922_v16  ;;  %v6520_v19 = vmul.f32 0.2, %v5583_v63 }
 0x41d   : > { %v14048_v26 = vadd.f32 %v9100_v49, %v13917_v57  ;;  %vm2632_vm15 = vcmp.gt.f32.partialorder %v2472_v35, 0.5  ;;  %vm2585_vm12 = vcmp.gt.f32.partialorder %v2425_v42, 0.5  ;;  %v2283_v18 = vmul.f32 0.2, %v1345_v46 }
 0x41e   : > { %v6680_v48 = vadd.f32 %v6520_v19, %v13883_v58  ;;  %v2792_v27 = vsel %vm2632_vm15, 0.0, %v2472_v35  ;;  %v8654_v62 = vsel %vm2632_vm15, 1.0, %v9391_v10  ;;  %v2745_v6 = vsel %vm2585_vm12, 0.0, %v2425_v42 }
 0x41f   : > { %v14053_v60 = vadd.f32 %v8654_v62, %v13894_v17  ;;  %v3729_v3 = vmul.f32 0.2, %v2792_v27  ;;  %v8607_v16 = vsel %vm2585_vm12, 1.0, %v9391_v10  ;;  %v3682_v53 = vmul.f32 0.2, %v2745_v6 }
 0x420   : > { %vm6840_vm2 = vcmp.gt.f32.partialorder %v6680_v48, 0.5  ;;  %v3551_v57 = vsel %vm2096_vm1, %v8607_v16, 0.0  ;;  %v8465_v58 = vsel %vm1185_vm10, 1.0, %v9391_v10  ;;  %v2443_v12 = vadd.f32 %v2283_v18, %v13988_v55 }
 0x421   : > { %v9091_v7 = vsel %vm6840_vm2, 1.0, %v9391_v10  ;;  %v3889_v17 = vadd.f32 %v3729_v3, %v13966_v9  ;;  %v14064_v30 = vadd.f32 %v3551_v57, %v13951_v31  ;;  %v3842_v61 = vadd.f32 %v3682_v53, %v13969_v29 }
 0x422   : > { %v14068_v0 = vadd.f32 %v9091_v7, %v13945_v15  ;;  %vm2603_vm4 = vcmp.gt.f32.partialorder %v2443_v12, 0.5  ;;  %v14071_v52 = vadd.f32 %v791_v8, %v11123_v28  ;;  %v14074_v37 = vadd.f32 %v636_v56, %v9855_v5 }
 0x423   : > { %vm4049_vm5 = vcmp.gt.f32.partialorder %v3889_v17, 0.5  ;;  %vm4002_vm8 = vcmp.gt.f32.partialorder %v3842_v61, 0.5  ;;  %v2763_v20 = vsel %vm2603_vm4, 0.0, %v2443_v12  ;;  %v8625_v1 = vsel %vm2603_vm4, 1.0, %v9391_v10 }
 0x424   : > { %v4209_v22 = vsel %vm4049_vm5, 0.0, %v3889_v17  ;;  %v8814_v31 = vsel %vm4049_vm5, 1.0, %v9391_v10  ;;  %v4162_v40 = vsel %vm4002_vm8, 0.0, %v3842_v61  ;;  %v8767_v51 = vsel %vm4002_vm8, 1.0, %v9391_v10 }
 0x425   : > { %v14080_v15 = vadd.f32 %v8814_v31, %v13925_v44  ;;  %v5146_v34 = vmul.f32 0.2, %v4209_v22  ;;  %v4968_v14 = vsel %vm2096_vm1, %v8767_v51, 0.0  ;;  %v5099_v35 = vmul.f32 0.2, %v4162_v40 }
 0x426   : > { %v14084_v46 = vadd.f32 %v4968_v14, %v13984_v25  ;;  %v14087_v11 = vadd.f32 %v8465_v58, %v13959_v59  ;;  %v3700_v42 = vmul.f32 0.2, %v2763_v20  ;;  %vm1176_vm9 = vcmp.gt.f32.partialorder %v14071_v52, 0.5  ;;  %v9340_v14 = vld [vmem:[%s15323_s3 + $0x98] sm:$0xff] }
 0x427   : > { %v5306_v50 = vadd.f32 %v5146_v34, %v13966_v9  ;;  %v5259_v49 = vadd.f32 %v5099_v35, %v13969_v29  ;;  %v14093_v44 = vadd.f32 %v8625_v1, %v13962_v38  ;;  %v1336_v63 = vsel %vm1176_vm9, 0.0, %v14071_v52  ;;  %v710_v35 = vpop.f32.mrf.mxu2  ;;  %8033 = vmatpush.bf16.msra.mxu3 %v9340_v14 }
 0x428   : > { %v3860_v47 = vadd.f32 %v3700_v42, %v13988_v55  ;;  %v8456_v25 = vsel %vm1176_vm9, 1.0, %v9391_v10  ;;  %v2274_v19 = vmul.f32 0.2, %v1336_v63  ;;  %vm1219_vm10 = vcmp.gt.f32.partialorder %v14074_v37, 0.5 }
 0x429   : > { %vm5466_vm13 = vcmp.gt.f32.partialorder %v5306_v50, 0.5  ;;  %vm5419_vm0 = vcmp.gt.f32.partialorder %v5259_v49, 0.5  ;;  %v1379_v59 = vsel %vm1219_vm10, 0.0, %v14074_v37  ;;  %v8499_v18 = vsel %vm1219_vm10, 1.0, %v9391_v10 }
 0x42a   : > { %v5626_v48 = vsel %vm5466_vm13, 0.0, %v5306_v50  ;;  %v8974_v27 = vsel %vm5466_vm13, 1.0, %v9391_v10  ;;  %v5579_v38 = vsel %vm5419_vm0, 0.0, %v5259_v49  ;;  %v8927_v62 = vsel %vm5419_vm0, 1.0, %v9391_v10 }
 0x42b   : > { %v14104_v6 = vadd.f32 %v8974_v27, %v13948_v54  ;;  %v6563_v3 = vmul.f32 0.2, %v5626_v48  ;;  %v6385_v16 = vsel %vm2096_vm1, %v8927_v62, 0.0  ;;  %v6516_v53 = vmul.f32 0.2, %v5579_v38 }
 0x42c   : > { %v14108_v8 = vadd.f32 %v6385_v16, %v14013_v21  ;;  %vm4020_vm14 = vcmp.gt.f32.partialorder %v3860_v47, 0.5  ;;  %v2434_v56 = vadd.f32 %v2274_v19, %v14071_v52  ;;  %v14112_v57 = vadd.f32 %v8499_v18, %v14004_v39  ;;  %v878_v39 = vpop.f32.mrf.mxu0 }
 0x42d   : > { %v6723_v58 = vadd.f32 %v6563_v3, %v13966_v9  ;;  %v6676_v12 = vadd.f32 %v6516_v53, %v13969_v29  ;;  %v4180_v7 = vsel %vm4020_vm14, 0.0, %v3860_v47  ;;  %v8785_v54 = vsel %vm4020_vm14, 1.0, %v9391_v10 }
 0x42e   : > { %v5117_v17 = vmul.f32 0.2, %v4180_v7  ;;  %v14118_v61 = vadd.f32 %v8456_v25, %v13938_v36  ;;  %vm2594_vm15 = vcmp.gt.f32.partialorder %v2434_v56, 0.5  ;;  %v2317_v21 = vmul.f32 0.2, %v1379_v59 }
 0x42f   : > { %vm6883_vm12 = vcmp.gt.f32.partialorder %v6723_v58, 0.5  ;;  %vm6836_vm2 = vcmp.gt.f32.partialorder %v6676_v12, 0.5  ;;  %v2754_v20 = vsel %vm2594_vm15, 0.0, %v2434_v56  ;;  %v8616_v1 = vsel %vm2594_vm15, 1.0, %v9391_v10 }
 0x430   : > { %v9134_v22 = vsel %vm6883_vm12, 1.0, %v9391_v10  ;;  %v9087_v9 = vsel %vm6836_vm2, 1.0, %v9391_v10  ;;  %v14124_v29 = vadd.f32 %v8785_v54, %v13992_v23  ;;  %v5277_v31 = vadd.f32 %v5117_v17, %v13988_v55 }
 0x431   : > { %v14128_v36 = vadd.f32 %v9134_v22, %v13978_v13  ;;  %v7642_v40 = vsel %vm2096_vm1, %v9087_v9, 0.0  ;;  %v3691_v51 = vmul.f32 0.2, %v2754_v20  ;;  %v2477_v34 = vadd.f32 %v2317_v21, %v14074_v37  ;;  %v794_v22 = vpop.f32.mrf.mxu3 }
 0x432   : > { %v14136_v42 = vadd.f32 %v7642_v40, %v14039_v45  ;;  %vm5437_vm4 = vcmp.gt.f32.partialorder %v5277_v31, 0.5  ;;  %v14139_v23 = vadd.f32 %v8616_v1, %v13975_v43  ;;  %v14142_v13 = vadd.f32 %v878_v39, %v11392_v24 }
 0x433   : > { %v5597_v50 = vsel %vm5437_vm4, 0.0, %v5277_v31  ;;  %v8945_v49 = vsel %vm5437_vm4, 1.0, %v9391_v10  ;;  %v3851_v63 = vadd.f32 %v3691_v51, %v14071_v52  ;;  %vm2637_vm5 = vcmp.gt.f32.partialorder %v2477_v34, 0.5 }
 0x434   : > { %v6534_v47 = vmul.f32 0.2, %v5597_v50  ;;  %v2797_v25 = vsel %vm2637_vm5, 0.0, %v2477_v34  ;;  %v8659_v19 = vsel %vm2637_vm5, 1.0, %v9391_v10  ;;  %v14148_v45 = vadd.f32 %v710_v35, %v10815_v33 }
 0x435   : > { %vm4011_vm8 = vcmp.gt.f32.partialorder %v3851_v63, 0.5  ;;  %v14151_v43 = vadd.f32 %v8659_v19, %v14053_v60  ;;  %v3734_v59 = vmul.f32 0.2, %v2797_v25  ;;  %vm1172_vm9 = vcmp.gt.f32.partialorder %v14142_v13, 0.5  ;;  %v638_v19 = vpop.f32.mrf.mxu1 }
 0x436   : > { %v14155_v18 = vadd.f32 %v8945_v49, %v14042_v32  ;;  %v6694_v48 = vadd.f32 %v6534_v47, %v13988_v55  ;;  %v4171_v27 = vsel %vm4011_vm8, 0.0, %v3851_v63  ;;  %v1332_v38 = vsel %vm1172_vm9, 0.0, %v14142_v13 }
 0x437   : > { %v8776_v62 = vsel %vm4011_vm8, 1.0, %v9391_v10  ;;  %v5108_v3 = vmul.f32 0.2, %v4171_v27  ;;  %v3894_v16 = vadd.f32 %v3734_v59, %v14074_v37  ;;  %v8452_v53 = vsel %vm1172_vm9, 1.0, %v9391_v10 }
 0x438   : > { %vm6854_vm10 = vcmp.gt.f32.partialorder %v6694_v48, 0.5  ;;  %v2136_v60 = vsel %vm2096_vm1, %v8452_v53, 0.0  ;;  %v2270_v56 = vmul.f32 0.2, %v1332_v38  ;;  %vm1190_vm13 = vcmp.gt.f32.partialorder %v14148_v45, 0.5 }
 0x439   : > { %v9105_v32 = vsel %vm6854_vm10, 1.0, %v9391_v10  ;;  %v5268_v55 = vadd.f32 %v5108_v3, %v14071_v52  ;;  %vm4054_vm0 = vcmp.gt.f32.partialorder %v3894_v16, 0.5  ;;  %v14167_v58 = vadd.f32 %v2136_v60, %v14028_v2 }
 0x43a   : > { %v14170_v12 = vadd.f32 %v8776_v62, %v14008_v4  ;;  %v4214_v7 = vsel %vm4054_vm0, 0.0, %v3894_v16  ;;  %v8819_v54 = vsel %vm4054_vm0, 1.0, %v9391_v10  ;;  %v2430_v17 = vadd.f32 %v2270_v56, %v14142_v13 }
 0x43b   : > { %vm5428_vm14 = vcmp.gt.f32.partialorder %v5268_v55, 0.5  ;;  %v14175_v21 = vadd.f32 %v8819_v54, %v14080_v15  ;;  %v5151_v20 = vmul.f32 0.2, %v4214_v7  ;;  %v1350_v1 = vsel %vm1190_vm13, 0.0, %v14148_v45 }
 0x43c   : > { %v14181_v2 = vadd.f32 %v9105_v32, %v14048_v26  ;;  %v5588_v39 = vsel %vm5428_vm14, 0.0, %v5268_v55  ;;  %v8936_v4 = vsel %vm5428_vm14, 1.0, %v9391_v10  ;;  %vm2590_vm15 = vcmp.gt.f32.partialorder %v2430_v17, 0.5 }
 0x43d   : > { %v6525_v9 = vmul.f32 0.2, %v5588_v39  ;;  %v5311_v31 = vadd.f32 %v5151_v20, %v14074_v37  ;;  %v2750_v40 = vsel %vm2590_vm15, 0.0, %v2430_v17  ;;  %v8470_v15 = vsel %vm1190_vm13, 1.0, %v9391_v10 }
 0x43e   : > { %v14189_v51 = vadd.f32 %v8936_v4, %v14045_v41  ;;  %v8612_v34 = vsel %vm2590_vm15, 1.0, %v9391_v10  ;;  %v3687_v26 = vmul.f32 0.2, %v2750_v40  ;;  %v2288_v14 = vmul.f32 0.2, %v1350_v1 }
 0x43f   : > { %v6685_v35 = vadd.f32 %v6525_v9, %v14071_v52  ;;  %vm5471_vm12 = vcmp.gt.f32.partialorder %v5311_v31, 0.5  ;;  %v3553_v50 = vsel %vm2096_vm1, %v8612_v34, 0.0  ;;  %v14195_v49 = vadd.f32 %v794_v22, %v11123_v28 }
 0x440   : > { %v5631_v63 = vsel %vm5471_vm12, 0.0, %v5311_v31  ;;  %v8979_v47 = vsel %vm5471_vm12, 1.0, %v9391_v10  ;;  %v14199_v25 = vadd.f32 %v3553_v50, %v14064_v30  ;;  %v3847_v41 = vadd.f32 %v3687_v26, %v14142_v13  ;;  %v880_v26 = vpop.f32.mrf.mxu0 }
 0x441   : > { %vm6845_vm2 = vcmp.gt.f32.partialorder %v6685_v35, 0.5  ;;  %v14203_v59 = vadd.f32 %v8979_v47, %v14104_v6  ;;  %v6568_v52 = vmul.f32 0.2, %v5631_v63  ;;  %v2448_v48 = vadd.f32 %v2288_v14, %v14148_v45 }
 0x442   : > { %v9096_v27 = vsel %vm6845_vm2, 1.0, %v9391_v10  ;;  %vm4007_vm4 = vcmp.gt.f32.partialorder %v3847_v41, 0.5  ;;  %v14208_v38 = vadd.f32 %v8470_v15, %v14087_v11  ;;  %vm1181_vm5 = vcmp.gt.f32.partialorder %v14195_v49, 0.5 }
 0x443   : > { %v6728_v30 = vadd.f32 %v6568_v52, %v14074_v37  ;;  %v4167_v62 = vsel %vm4007_vm4, 0.0, %v3847_v41  ;;  %v8772_v3 = vsel %vm4007_vm4, 1.0, %v9391_v10  ;;  %v14214_v16 = vadd.f32 %v638_v19, %v9855_v5 }
 0x444   : > { %v4970_v6 = vsel %vm2096_vm1, %v8772_v3, 0.0  ;;  %v5104_v53 = vmul.f32 0.2, %v4167_v62  ;;  %vm2608_vm8 = vcmp.gt.f32.partialorder %v2448_v48, 0.5  ;;  %v1341_v60 = vsel %vm1181_vm5, 0.0, %v14195_v49  ;;  %v712_v62 = vpop.f32.mrf.mxu2 }
 0x445   : > { %vm6888_vm9 = vcmp.gt.f32.partialorder %v6728_v30, 0.5  ;;  %v14221_v11 = vadd.f32 %v4970_v6, %v14084_v46  ;;  %v2768_v56 = vsel %vm2608_vm8, 0.0, %v2448_v48  ;;  %v8630_v37 = vsel %vm2608_vm8, 1.0, %v9391_v10 }
 0x446   : > { %v14225_v32 = vadd.f32 %v9096_v27, %v14068_v0  ;;  %v9139_v5 = vsel %vm6888_vm9, 1.0, %v9391_v10  ;;  %v5264_v55 = vadd.f32 %v5104_v53, %v14142_v13  ;;  %v3705_v7 = vmul.f32 0.2, %v2768_v56 }
 0x447   : > { %v14230_v54 = vadd.f32 %v9139_v5, %v14128_v36  ;;  %v14233_v17 = vadd.f32 %v8630_v37, %v14093_v44  ;;  %v2279_v20 = vmul.f32 0.2, %v1341_v60  ;;  %vm1224_vm10 = vcmp.gt.f32.partialorder %v14214_v16, 0.5 }
 0x448   : > { %vm5424_vm13 = vcmp.gt.f32.partialorder %v5264_v55, 0.5  ;;  %v3865_v46 = vadd.f32 %v3705_v7, %v14148_v45  ;;  %v8461_v0 = vsel %vm1181_vm5, 1.0, %v9391_v10  ;;  %v1384_v1 = vsel %vm1224_vm10, 0.0, %v14214_v16 }
 0x449   : > { %v5584_v39 = vsel %vm5424_vm13, 0.0, %v5264_v55  ;;  %v8932_v4 = vsel %vm5424_vm13, 1.0, %v9391_v10  ;;  %v2439_v36 = vadd.f32 %v2279_v20, %v14195_v49  ;;  %v8504_v44 = vsel %vm1224_vm10, 1.0, %v9391_v10 }
 0x44a   : > { %v6387_v22 = vsel %vm2096_vm1, %v8932_v4, 0.0  ;;  %v6521_v9 = vmul.f32 0.2, %v5584_v39  ;;  %vm4025_vm0 = vcmp.gt.f32.partialorder %v3865_v46, 0.5  ;;  %v2015_v31 = vadd.f32 %v8504_v44, %v14112_v57 }
 0x44b   : > { %v14247_v40 = vadd.f32 %v6387_v22, %v14108_v8  ;;  %v4185_v15 = vsel %vm4025_vm0, 0.0, %v3865_v46  ;;  %v8790_v34 = vsel %vm4025_vm0, 1.0, %v9391_v10  ;;  %vm2599_vm14 = vcmp.gt.f32.partialorder %v2439_v36, 0.5 }
 0x44c   : > { %v6681_v14 = vadd.f32 %v6521_v9, %v14142_v13  ;;  %v5122_v35 = vmul.f32 0.2, %v4185_v15  ;;  %v14252_v50 = vadd.f32 %v8461_v0, %v14118_v61  ;;  %v2759_v63 = vsel %vm2599_vm14, 0.0, %v2439_v36 }
 0x44d   : > { %v8621_v47 = vsel %vm2599_vm14, 1.0, %v9391_v10  ;;  %v3696_v41 = vmul.f32 0.2, %v2759_v63  ;;  %v2016_v19 = vrot.slane %v2015_v31, 4  ;;  %v2322_v57 = vmul.f32 0.2, %v1384_v1  ;;  %v796_v63 = vpop.f32.mrf.mxu3 }
 0x44e   : > { %vm6841_vm15 = vcmp.gt.f32.partialorder %v6681_v14, 0.5  ;;  %v14256_v8 = vadd.f32 %v8790_v34, %v14124_v29  ;;  %v5282_v52 = vadd.f32 %v5122_v35, %v14148_v45  ;;  %v14260_v48 = vadd.f32 %v880_v26, %v11392_v24 }
 0x44f   : > { %v9092_v13 = vsel %vm6841_vm15, 1.0, %v9391_v10  ;;  %v3856_v61 = vadd.f32 %v3696_v41, %v14195_v49  ;;  %v2017_v27 = vadd.f32 %v2016_v19, %v2015_v31  ;;  %v2482_v30 = vadd.f32 %v2322_v57, %v14214_v16 }
 0x450   : > { %v7644_v3 = vsel %vm2096_vm1, %v9092_v13, 0.0  ;;  %vm5442_vm12 = vcmp.gt.f32.partialorder %v5282_v52, 0.5  ;;  %v14267_v6 = vadd.f32 %v8621_v47, %v14139_v23  ;;  %vm1177_vm2 = vcmp.gt.f32.partialorder %v14260_v48, 0.5 }
 0x451   : > { %v14271_v29 = vadd.f32 %v7644_v3, %v14136_v42  ;;  %v5602_v53 = vsel %vm5442_vm12, 0.0, %v5282_v52  ;;  %v8950_v60 = vsel %vm5442_vm12, 1.0, %v9391_v10  ;;  %vm4016_vm4 = vcmp.gt.f32.partialorder %v3856_v61, 0.5 }
 0x452   : > { %v6539_v56 = vmul.f32 0.2, %v5602_v53  ;;  %v4176_v37 = vsel %vm4016_vm4, 0.0, %v3856_v61  ;;  %v8781_v5 = vsel %vm4016_vm4, 1.0, %v9391_v10  ;;  %v14276_v55 = vadd.f32 %v712_v62, %v10815_v33 }
 0x453   : > { %v14279_v7 = vadd.f32 %v8950_v60, %v14155_v18  ;;  %v5113_v23 = vmul.f32 0.2, %v4176_v37  ;;  %v2018_v20 = vrot.slane %v2017_v27, 2  ;;  %vm2642_vm5 = vcmp.gt.f32.partialorder %v2482_v30, 0.5 }
 0x454   : > { %v6699_v42 = vadd.f32 %v6539_v56, %v14148_v45  ;;  %v2802_v46 = vsel %vm2642_vm5, 0.0, %v2482_v30  ;;  %v8664_v0 = vsel %vm2642_vm5, 1.0, %v9391_v10  ;;  %v1337_v1 = vsel %vm1177_vm2, 0.0, %v14260_v48 }
 0x455   : > { %v14287_v39 = vadd.f32 %v8781_v5, %v14170_v12  ;;  %v5273_v4 = vadd.f32 %v5113_v23, %v14195_v49  ;;  %v3433_v18 = vadd.f32 %v8664_v0, %v14151_v43  ;;  %v3739_v36 = vmul.f32 0.2, %v2802_v46  ;;  %v883_v23 = vpop.f32.mrf.mxu0 }
 0x456   : > { %vm6859_vm8 = vcmp.gt.f32.partialorder %v6699_v42, 0.5  ;;  %v14291_v44 = vadd.f32 %v2018_v20, %v2017_v27  ;;  %v8457_v45 = vsel %vm1177_vm2, 1.0, %v9391_v10  ;;  %v2275_v22 = vmul.f32 0.2, %v1337_v1 }
 0x457   : > { %v9110_v9 = vsel %vm6859_vm8, 1.0, %v9391_v10  ;;  %vm5433_vm9 = vcmp.gt.f32.partialorder %v5273_v4, 0.5  ;;  %v3434_v31 = vrot.slane %v3433_v18, 4  ;;  %v3899_v12 = vadd.f32 %v3739_v36, %v14214_v16 }
 0x458   : > { %v5593_v15 = vsel %vm5433_vm9, 0.0, %v5273_v4  ;;  %v8941_v34 = vsel %vm5433_vm9, 1.0, %v9391_v10  ;;  %v2138_v43 = vsel %vm2096_vm1, %v8457_v45, 0.0  ;;  %vm1195_vm10 = vcmp.gt.f32.partialorder %v14276_v55, 0.5 }
 0x459   : > { %v14302_v26 = vadd.f32 %v9110_v9, %v14181_v2  ;;  %v6530_v14 = vmul.f32 0.2, %v5593_v15  ;;  %v14304_v35 = vadd.f32 %v3434_v31, %v3433_v18  ;;  %vm4059_vm13 = vcmp.gt.f32.partialorder %v3899_v12, 0.5 }
 0x45a   : > { %v14307_v47 = vadd.f32 %v8941_v34, %v14189_v51  ;;  %v4219_v41 = vsel %vm4059_vm13, 0.0, %v3899_v12  ;;  %v8824_v19 = vsel %vm4059_vm13, 1.0, %v9391_v10  ;;  %v2435_v57 = vadd.f32 %v2275_v22, %v14260_v48 }
 0x45b   : > { %v6690_v52 = vadd.f32 %v6530_v14, %v14195_v49  ;;  %v4850_v13 = vadd.f32 %v8824_v19, %v14175_v21  ;;  %v5156_v61 = vmul.f32 0.2, %v4219_v41  ;;  %v14314_v2 = vadd.f32 %v2138_v43, %v14167_v58 }
 0x45c   : > { %v3436_v27 = vrot.slane %v14304_v35, 2  ;;  %vm2595_vm0 = vcmp.gt.f32.partialorder %v2435_v57, 0.5  ;;  %v8475_v51 = vsel %vm1195_vm10, 1.0, %v9391_v10  ;;  %v14321_v30 = vadd.f32 %v796_v63, %v11123_v28 }
 0x45d   : > { %vm6850_vm14 = vcmp.gt.f32.partialorder %v6690_v52, 0.5  ;;  %v4851_v62 = vrot.slane %v4850_v13, 4  ;;  %v5316_v49 = vadd.f32 %v5156_v61, %v14214_v16  ;;  %v2755_v3 = vsel %vm2595_vm0, 0.0, %v2435_v57 }
 0x45e   : > { %v9101_v21 = vsel %vm6850_vm14, 1.0, %v9391_v10  ;;  %v8617_v58 = vsel %vm2595_vm0, 1.0, %v9391_v10  ;;  %v3692_v53 = vmul.f32 0.2, %v2755_v3  ;;  %v1355_v60 = vsel %vm1195_vm10, 0.0, %v14276_v55 }
 0x45f   : > { %v14330_v56 = vadd.f32 %v9101_v21, %v14225_v32  ;;  %v14332_v37 = vadd.f32 %v4851_v62, %v4850_v13  ;;  %vm5476_vm15 = vcmp.gt.f32.partialorder %v5316_v49, 0.5  ;;  %v14335_v5 = vadd.f32 %v8475_v51, %v14208_v38 }
 0x460   : > { %v5636_v20 = vsel %vm5476_vm15, 0.0, %v5316_v49  ;;  %v8984_v42 = vsel %vm5476_vm15, 1.0, %v9391_v10  ;;  %v3555_v46 = vsel %vm2096_vm1, %v8617_v58, 0.0  ;;  %v3852_v0 = vadd.f32 %v3692_v53, %v14260_v48 }
 0x461   : > { %v14341_v1 = vadd.f32 %v8984_v42, %v14203_v59  ;;  %v6573_v4 = vmul.f32 0.2, %v5636_v20  ;;  %v2293_v32 = vmul.f32 0.2, %v1355_v60  ;;  %vm1186_vm12 = vcmp.gt.f32.partialorder %v14321_v30, 0.5  ;;  %v715_v20 = vpop.f32.mrf.mxu2 }
 0x462   : > { %vm4012_vm2 = vcmp.gt.f32.partialorder %v3852_v0, 0.5  ;;  %v1346_v18 = vsel %vm1186_vm12, 0.0, %v14321_v30  ;;  %v8466_v38 = vsel %vm1186_vm12, 1.0, %v9391_v10  ;;  %v14347_v36 = vadd.f32 %v883_v23, %v11392_v24 }
 0x463   : > { %v6733_v45 = vadd.f32 %v6573_v4, %v14214_v16  ;;  %v14351_v22 = vadd.f32 %v3555_v46, %v14199_v25  ;;  %v4172_v9 = vsel %vm4012_vm2, 0.0, %v3852_v0  ;;  %v8777_v59 = vsel %vm4012_vm2, 1.0, %v9391_v10 }
 0x464   : > { %v6268_v31 = vrot.slane %v14341_v1, 4  ;;  %v4972_v12 = vsel %vm2096_vm1, %v8777_v59, 0.0  ;;  %v5109_v15 = vmul.f32 0.2, %v4172_v9  ;;  %v2453_v34 = vadd.f32 %v2293_v32, %v14276_v55  ;;  %v799_v9 = vpop.f32.mrf.mxu3 }
 0x465   : > { %vm6893_vm4 = vcmp.gt.f32.partialorder %v6733_v45, 0.5  ;;  %v14358_v43 = vadd.f32 %v8466_v38, %v14252_v50  ;;  %v2284_v14 = vmul.f32 0.2, %v1346_v18  ;;  %vm1182_vm5 = vcmp.gt.f32.partialorder %v14347_v36, 0.5 }
 0x466   : > { %v9144_v25 = vsel %vm6893_vm4, 1.0, %v9391_v10  ;;  %v14363_v16 = vadd.f32 %v4972_v12, %v14221_v11  ;;  %v5269_v63 = vadd.f32 %v5109_v15, %v14260_v48  ;;  %vm2613_vm8 = vcmp.gt.f32.partialorder %v2453_v34, 0.5 }
 0x467   : > { %v14367_v41 = vadd.f32 %v9144_v25, %v14230_v54  ;;  %v2773_v19 = vsel %vm2613_vm8, 0.0, %v2453_v34  ;;  %v8635_v57 = vsel %vm2613_vm8, 1.0, %v9391_v10  ;;  %v2444_v50 = vadd.f32 %v2284_v14, %v14321_v30 }
 0x468   : > { %vm5429_vm9 = vcmp.gt.f32.partialorder %v5269_v63, 0.5  ;;  %v3710_v52 = vmul.f32 0.2, %v2773_v19  ;;  %v1342_v13 = vsel %vm1182_vm5, 0.0, %v14347_v36  ;;  %v8462_v61 = vsel %vm1182_vm5, 1.0, %v9391_v10 }
 0x469   : > { %v5589_v51 = vsel %vm5429_vm9, 0.0, %v5269_v63  ;;  %v8937_v11 = vsel %vm5429_vm9, 1.0, %v9391_v10  ;;  %v14375_v62 = vadd.f32 %v8635_v57, %v14233_v17  ;;  %vm2604_vm10 = vcmp.gt.f32.partialorder %v2444_v50, 0.5 }
 0x46a   : > { %v6389_v54 = vsel %vm2096_vm1, %v8937_v11, 0.0  ;;  %v6526_v49 = vmul.f32 0.2, %v5589_v51  ;;  %v3870_v3 = vadd.f32 %v3710_v52, %v14276_v55  ;;  %v2764_v21 = vsel %vm2604_vm10, 0.0, %v2444_v50 }
 0x46b   : > { %v7525_v58 = vrot.slane %v14367_v41, 4  ;;  %v8626_v53 = vsel %vm2604_vm10, 1.0, %v9391_v10  ;;  %v3701_v60 = vmul.f32 0.2, %v2764_v21  ;;  %v2140_v23 = vsel %vm2096_vm1, %v8462_v61, 0.0 }
 0x46c   : > { %v14383_v42 = vadd.f32 %v6389_v54, %v14247_v40  ;;  %v6686_v17 = vadd.f32 %v6526_v49, %v14260_v48  ;;  %vm4030_vm13 = vcmp.gt.f32.partialorder %v3870_v3, 0.5  ;;  %v14387_v46 = vadd.f32 %v8626_v53, %v14267_v6 }
 0x46d   : > { %v4190_v0 = vsel %vm4030_vm13, 0.0, %v3870_v3  ;;  %v8795_v4 = vsel %vm4030_vm13, 1.0, %v9391_v10  ;;  %v3861_v32 = vadd.f32 %v3701_v60, %v14321_v30  ;;  %v2280_v18 = vmul.f32 0.2, %v1342_v13  ;;  %v9331_v13 = vld [vmem:[%s15323_s3 + $0x50] sm:$0xff] }
 0x46e   : > { %vm6846_vm0 = vcmp.gt.f32.partialorder %v6686_v17, 0.5  ;;  %v5127_v38 = vmul.f32 0.2, %v4190_v0  ;;  %v14392_v45 = vadd.f32 %v2140_v23, %v14314_v2  ;;  %v14395_v40 = vadd.f32 %v715_v20, %v10815_v33  ;;  %8021 = vmatpush.bf16.msra.mxu2 %v9331_v13 }
 0x46f   : > { %v9097_v48 = vsel %vm6846_vm0, 1.0, %v9391_v10  ;;  %v14399_v6 = vadd.f32 %v8795_v4, %v14256_v8  ;;  %vm4021_vm14 = vcmp.gt.f32.partialorder %v3861_v32, 0.5  ;;  %v2440_v59 = vadd.f32 %v2280_v18, %v14347_v36 }
 0x470   : > { %v7646_v12 = vsel %vm2096_vm1, %v9097_v48, 0.0  ;;  %v5287_v15 = vadd.f32 %v5127_v38, %v14276_v55  ;;  %v4181_v34 = vsel %vm4021_vm14, 0.0, %v3861_v32  ;;  %v8786_v2 = vsel %vm4021_vm14, 1.0, %v9391_v10  ;;  %v885_v38 = vpop.f32.mrf.mxu0 }
 0x471   : > { %v14406_v14 = vadd.f32 %v7646_v12, %v14271_v29  ;;  %v5118_v25 = vmul.f32 0.2, %v4181_v34  ;;  %vm2600_vm15 = vcmp.gt.f32.partialorder %v2440_v59, 0.5  ;;  %v14409_v63 = vadd.f32 %v799_v9, %v11123_v28 }
 0x472   : > { %vm5447_vm12 = vcmp.gt.f32.partialorder %v5287_v15, 0.5  ;;  %v2760_v8 = vsel %vm2600_vm15, 0.0, %v2440_v59  ;;  %v8622_v19 = vsel %vm2600_vm15, 1.0, %v9391_v10  ;;  %vm1200_vm2 = vcmp.gt.f32.partialorder %v14395_v40, 0.5 }
 0x473   : > { %v5607_v57 = vsel %vm5447_vm12, 0.0, %v5287_v15  ;;  %v8955_v50 = vsel %vm5447_vm12, 1.0, %v9391_v10  ;;  %v14415_v52 = vadd.f32 %v8786_v2, %v14287_v39  ;;  %v5278_v29 = vadd.f32 %v5118_v25, %v14321_v30 }
 0x474   : > { %v14422_v61 = vadd.f32 %v8955_v50, %v14279_v7  ;;  %v6544_v51 = vmul.f32 0.2, %v5607_v57  ;;  %v3557_v11 = vsel %vm2096_vm1, %v8622_v19, 0.0  ;;  %v3697_v54 = vmul.f32 0.2, %v2760_v8 }
 0x475   : > { %vm5438_vm4 = vcmp.gt.f32.partialorder %v5278_v29, 0.5  ;;  %v1360_v49 = vsel %vm1200_vm2, 0.0, %v14395_v40  ;;  %v8480_v3 = vsel %vm1200_vm2, 1.0, %v9391_v10  ;;  %vm1191_vm5 = vcmp.gt.f32.partialorder %v14409_v63, 0.5 }
 0x476   : > { %v6704_v39 = vadd.f32 %v6544_v51, %v14276_v55  ;;  %v5598_v21 = vsel %vm5438_vm4, 0.0, %v5278_v29  ;;  %v8946_v53 = vsel %vm5438_vm4, 1.0, %v9391_v10  ;;  %v3857_v7 = vadd.f32 %v3697_v54, %v14347_v36 }
 0x477   : > { %v14432_v60 = vadd.f32 %v8946_v53, %v14307_v47  ;;  %v6535_v23 = vmul.f32 0.2, %v5598_v21  ;;  %v14435_v20 = vadd.f32 %v3557_v11, %v14351_v22  ;;  %v2298_v17 = vmul.f32 0.2, %v1360_v49 }
 0x478   : > { %vm6864_vm8 = vcmp.gt.f32.partialorder %v6704_v39, 0.5  ;;  %vm4017_vm9 = vcmp.gt.f32.partialorder %v3857_v7, 0.5  ;;  %v14438_v0 = vadd.f32 %v8480_v3, %v14335_v5  ;;  %v1351_v55 = vsel %vm1191_vm5, 0.0, %v14409_v63 }
 0x479   : > { %v9115_v4 = vsel %vm6864_vm8, 1.0, %v9391_v10  ;;  %v6695_v32 = vadd.f32 %v6535_v23, %v14321_v30  ;;  %v4177_v47 = vsel %vm4017_vm9, 0.0, %v3857_v7  ;;  %v8782_v18 = vsel %vm4017_vm9, 1.0, %v9391_v10  ;;  %v717_v7 = vpop.f32.mrf.mxu2  ;;  %v801_v23 = vpop.f32.mrf.mxu3 }
 0x47a   : > { %v4974_v22 = vsel %vm2096_vm1, %v8782_v18, 0.0  ;;  %v5114_v9 = vmul.f32 0.2, %v4177_v47  ;;  %v2458_v48 = vadd.f32 %v2298_v17, %v14395_v40  ;;  %v8471_v5 = vsel %vm1191_vm5, 1.0, %v9391_v10 }
 0x47b   : > { %v14452_v59 = vadd.f32 %v9115_v4, %v14302_v26  ;;  %vm6855_vm10 = vcmp.gt.f32.partialorder %v6695_v32, 0.5  ;;  %v14455_v12 = vadd.f32 %v4974_v22, %v14363_v16  ;;  %v2289_v30 = vmul.f32 0.2, %v1351_v55 }
 0x47c   : > { %v9106_v15 = vsel %vm6855_vm10, 1.0, %v9391_v10  ;;  %v5274_v34 = vadd.f32 %v5114_v9, %v14347_v36  ;;  %vm2618_vm13 = vcmp.gt.f32.partialorder %v2458_v48, 0.5  ;;  %v14460_v2 = vadd.f32 %v885_v38, %v11392_v24 }
 0x47d   : > { %v2778_v25 = vsel %vm2618_vm13, 0.0, %v2458_v48  ;;  %v8640_v8 = vsel %vm2618_vm13, 1.0, %v9391_v10  ;;  %v14464_v19 = vadd.f32 %v8471_v5, %v14358_v43  ;;  %v2449_v26 = vadd.f32 %v2289_v30, %v14409_v63 }
 0x47e   : > { %v14468_v16 = vadd.f32 %v9106_v15, %v14330_v56  ;;  %vm5434_vm0 = vcmp.gt.f32.partialorder %v5274_v34, 0.5  ;;  %v3715_v57 = vmul.f32 0.2, %v2778_v25  ;;  %vm1187_vm14 = vcmp.gt.f32.partialorder %v14460_v2, 0.5  ;;  %v888_v25 = vpop.f32.mrf.mxu0 }
 0x47f   : > { %v5594_v50 = vsel %vm5434_vm0, 0.0, %v5274_v34  ;;  %v8942_v29 = vsel %vm5434_vm0, 1.0, %v9391_v10  ;;  %v14473_v13 = vadd.f32 %v8640_v8, %v14375_v62  ;;  %vm2609_vm15 = vcmp.gt.f32.partialorder %v2449_v26, 0.5 }
 0x480   : > { %v6391_v51 = vsel %vm2096_vm1, %v8942_v29, 0.0  ;;  %v6531_v43 = vmul.f32 0.2, %v5594_v50  ;;  %v3875_v11 = vadd.f32 %v3715_v57, %v14395_v40  ;;  %v2769_v54 = vsel %vm2609_vm15, 0.0, %v2449_v26 }
 0x481   : > { %v8631_v56 = vsel %vm2609_vm15, 1.0, %v9391_v10  ;;  %v3706_v49 = vmul.f32 0.2, %v2769_v54  ;;  %v1347_v3 = vsel %vm1187_vm14, 0.0, %v14460_v2  ;;  %v8467_v39 = vsel %vm1187_vm14, 1.0, %v9391_v10 }
 0x482   : > { %v14481_v21 = vadd.f32 %v6391_v51, %v14383_v42  ;;  %v6691_v62 = vadd.f32 %v6531_v43, %v14347_v36  ;;  %vm4035_vm12 = vcmp.gt.f32.partialorder %v3875_v11, 0.5  ;;  %v2142_v53 = vsel %vm2096_vm1, %v8467_v39, 0.0 }
 0x483   : > { %v4195_v17 = vsel %vm4035_vm12, 0.0, %v3875_v11  ;;  %v8800_v55 = vsel %vm4035_vm12, 1.0, %v9391_v10  ;;  %v14487_v4 = vadd.f32 %v8631_v56, %v14387_v46  ;;  %v3866_v32 = vadd.f32 %v3706_v49, %v14409_v63 }
 0x484   : > { %vm6851_vm2 = vcmp.gt.f32.partialorder %v6691_v62, 0.5  ;;  %v5132_v47 = vmul.f32 0.2, %v4195_v17  ;;  %v14491_v42 = vadd.f32 %v2142_v53, %v14392_v45  ;;  %v2285_v18 = vmul.f32 0.2, %v1347_v3 }
 0x485   : > { %v9102_v36 = vsel %vm6851_vm2, 1.0, %v9391_v10  ;;  %vm4026_vm4 = vcmp.gt.f32.partialorder %v3866_v32, 0.5  ;;  %v14495_v38 = vadd.f32 %v717_v7, %v10815_v33  ;;  %v14498_v22 = vadd.f32 %v801_v23, %v11123_v28 }
 0x486   : > { %v7648_v46 = vsel %vm2096_vm1, %v9102_v36, 0.0  ;;  %v5292_v9 = vadd.f32 %v5132_v47, %v14395_v40  ;;  %v4186_v48 = vsel %vm4026_vm4, 0.0, %v3866_v32  ;;  %v8791_v5 = vsel %vm4026_vm4, 1.0, %v9391_v10 }
 0x487   : > { %v14504_v45 = vadd.f32 %v7648_v46, %v14406_v14  ;;  %v14507_v30 = vadd.f32 %v8800_v55, %v14399_v6  ;;  %v5123_v15 = vmul.f32 0.2, %v4186_v48  ;;  %v2445_v34 = vadd.f32 %v2285_v18, %v14460_v2 }
 0x488   : > { %vm5452_vm5 = vcmp.gt.f32.partialorder %v5292_v9, 0.5  ;;  %v14511_v8 = vadd.f32 %v8791_v5, %v14415_v52  ;;  %vm1205_vm8 = vcmp.gt.f32.partialorder %v14495_v38, 0.5  ;;  %vm1196_vm9 = vcmp.gt.f32.partialorder %v14498_v22, 0.5 }
 0x489   : > { %v5612_v26 = vsel %vm5452_vm5, 0.0, %v5292_v9  ;;  %v8960_v57 = vsel %vm5452_vm5, 1.0, %v9391_v10  ;;  %v5283_v14 = vadd.f32 %v5123_v15, %v14409_v63  ;;  %vm2605_vm10 = vcmp.gt.f32.partialorder %v2445_v34, 0.5  ;;  %v720_v15 = vpop.f32.mrf.mxu2 }
 0x48a   : > { %v6549_v6 = vmul.f32 0.2, %v5612_v26  ;;  %v2765_v50 = vsel %vm2605_vm10, 0.0, %v2445_v34  ;;  %v8627_v29 = vsel %vm2605_vm10, 1.0, %v9391_v10  ;;  %v14519_v51 = vadd.f32 %v888_v25, %v11392_v24  ;;  %v14561_v34 = vpop.f32.mrf.mxu1 }
 0x48b   : > { %vm5443_vm13 = vcmp.gt.f32.partialorder %v5283_v14, 0.5  ;;  %v3559_v52 = vsel %vm2096_vm1, %v8627_v29, 0.0  ;;  %v3702_v43 = vmul.f32 0.2, %v2765_v50  ;;  %v1365_v11 = vsel %vm1205_vm8, 0.0, %v14495_v38 }
 0x48c   : > { %v14526_v54 = vadd.f32 %v8960_v57, %v14422_v61  ;;  %v6709_v56 = vadd.f32 %v6549_v6, %v14395_v40  ;;  %v5603_v49 = vsel %vm5443_vm13, 0.0, %v5283_v14  ;;  %v8951_v3 = vsel %vm5443_vm13, 1.0, %v9391_v10 }
 0x48d   : > { %v6540_v39 = vmul.f32 0.2, %v5603_v49  ;;  %v14531_v62 = vadd.f32 %v3559_v52, %v14435_v20  ;;  %v3862_v53 = vadd.f32 %v3702_v43, %v14460_v2  ;;  %v8485_v7 = vsel %vm1205_vm8, 1.0, %v9391_v10 }
 0x48e   : > { %vm6869_vm0 = vcmp.gt.f32.partialorder %v6709_v56, 0.5  ;;  %v14538_v23 = vadd.f32 %v8951_v3, %v14432_v60  ;;  %v2303_v61 = vmul.f32 0.2, %v1365_v11  ;;  %v1356_v40 = vsel %vm1196_vm9, 0.0, %v14498_v22 }
 0x48f   : > { %v9120_v17 = vsel %vm6869_vm0, 1.0, %v9391_v10  ;;  %v6700_v20 = vadd.f32 %v6540_v39, %v14409_v63  ;;  %vm4022_vm14 = vcmp.gt.f32.partialorder %v3862_v53, 0.5  ;;  %v8476_v55 = vsel %vm1196_vm9, 1.0, %v9391_v10 }
 0x490   : > { %v4182_v32 = vsel %vm4022_vm14, 0.0, %v3862_v53  ;;  %v8787_v47 = vsel %vm4022_vm14, 1.0, %v9391_v10  ;;  %v14550_v60 = vadd.f32 %v8485_v7, %v14438_v0  ;;  %v2463_v18 = vadd.f32 %v2303_v61, %v14495_v38 }
 0x491   : > { %v14554_v36 = vadd.f32 %v9120_v17, %v14452_v59  ;;  %vm6860_vm15 = vcmp.gt.f32.partialorder %v6700_v20, 0.5  ;;  %v4976_v46 = vsel %vm2096_vm1, %v8787_v47, 0.0  ;;  %v5119_v63 = vmul.f32 0.2, %v4182_v32  ;;  %v804_v20 = vpop.f32.mrf.mxu3 }
 0x492   : > { %v9111_v9 = vsel %vm6860_vm15, 1.0, %v9391_v10  ;;  %vm2623_vm12 = vcmp.gt.f32.partialorder %v2463_v18, 0.5  ;;  %v14559_v48 = vadd.f32 %v8476_v55, %v14464_v19  ;;  %v2294_v5 = vmul.f32 0.2, %v1356_v40  ;;  %v9339_v19 = vld [vmem:[%s15323_s3 + $0x90] sm:$0xff] }
 0x493   : > { %v14564_v0 = vadd.f32 %v4976_v46, %v14455_v12  ;;  %v5279_v59 = vadd.f32 %v5119_v63, %v14460_v2  ;;  %v2783_v25 = vsel %vm2623_vm12, 0.0, %v2463_v18  ;;  %v8645_v26 = vsel %vm2623_vm12, 1.0, %v9391_v10  ;;  %8034 = vmatpush.bf16.msra.mxu3 %v9339_v19  ;;  %v8014_v18 = vpop.f32.mrf.mxu1 }
 0x494   : > { %v14569_v57 = vadd.f32 %v9111_v9, %v14468_v16  ;;  %v3720_v14 = vmul.f32 0.2, %v2783_v25  ;;  %v2454_v6 = vadd.f32 %v2294_v5, %v14498_v22  ;;  %vm1192_vm2 = vcmp.gt.f32.partialorder %v14519_v51, 0.5 }
 0x495   : > { %vm5439_vm4 = vcmp.gt.f32.partialorder %v5279_v59, 0.5  ;;  %v14577_v12 = vadd.f32 %v8645_v26, %v14473_v13  ;;  %v8472_v50 = vsel %vm1192_vm2, 1.0, %v9391_v10  ;;  %v14583_v16 = vadd.f32 %v720_v15, %v10815_v33 }
 0x496   : > { %v5599_v29 = vsel %vm5439_vm4, 0.0, %v5279_v59  ;;  %v8947_v52 = vsel %vm5439_vm4, 1.0, %v9391_v10  ;;  %v3880_v43 = vadd.f32 %v3720_v14, %v14495_v38  ;;  %vm2614_vm5 = vcmp.gt.f32.partialorder %v2454_v6, 0.5 }
 0x497   : > { %v6393_v11 = vsel %vm2096_vm1, %v8947_v52, 0.0  ;;  %v6536_v56 = vmul.f32 0.2, %v5599_v29  ;;  %v2774_v49 = vsel %vm2614_vm5, 0.0, %v2454_v6  ;;  %v8636_v13 = vsel %vm2614_vm5, 1.0, %v9391_v10 }
 0x498   : > { %v14590_v3 = vadd.f32 %v6393_v11, %v14481_v21  ;;  %vm4040_vm8 = vcmp.gt.f32.partialorder %v3880_v43, 0.5  ;;  %v3711_v39 = vmul.f32 0.2, %v2774_v49  ;;  %v1352_v53 = vsel %vm1192_vm2, 0.0, %v14519_v51 }
 0x499   : > { %v6696_v7 = vadd.f32 %v6536_v56, %v14460_v2  ;;  %v4200_v61 = vsel %vm4040_vm8, 0.0, %v3880_v43  ;;  %v8805_v40 = vsel %vm4040_vm8, 1.0, %v9391_v10  ;;  %v2144_v17 = vsel %vm2096_vm1, %v8472_v50, 0.0 }
 0x49a   : > { %v14599_v55 = vadd.f32 %v8805_v40, %v14507_v30  ;;  %v5137_v32 = vmul.f32 0.2, %v4200_v61  ;;  %v14602_v21 = vadd.f32 %v8636_v13, %v14487_v4  ;;  %v3871_v47 = vadd.f32 %v3711_v39, %v14498_v22 }
 0x49b   : > { %vm6856_vm9 = vcmp.gt.f32.partialorder %v6696_v7, 0.5  ;;  %v14606_v46 = vadd.f32 %v2144_v17, %v14491_v42  ;;  %v2290_v2 = vmul.f32 0.2, %v1352_v53  ;;  %vm1210_vm10 = vcmp.gt.f32.partialorder %v14583_v16, 0.5  ;;  %v9330_v17 = vld [vmem:[%s15323_s3 + $0x48] sm:$0xff] }
 0x49c   : > { %v9107_v63 = vsel %vm6856_vm9, 1.0, %v9391_v10  ;;  %v5297_v9 = vadd.f32 %v5137_v32, %v14495_v38  ;;  %vm4031_vm13 = vcmp.gt.f32.partialorder %v3871_v47, 0.5  ;;  %v14612_v30 = vadd.f32 %v804_v20, %v11123_v28  ;;  %8022 = vmatpush.bf16.msra.mxu2 %v9330_v17 }
 0x49d   : > { %v7650_v4 = vsel %vm2096_vm1, %v9107_v63, 0.0  ;;  %v4191_v5 = vsel %vm4031_vm13, 0.0, %v3871_v47  ;;  %v8796_v15 = vsel %vm4031_vm13, 1.0, %v9391_v10  ;;  %v2450_v59 = vadd.f32 %v2290_v2, %v14519_v51 }
 0x49e   : > { %v14618_v42 = vadd.f32 %v7650_v4, %v14504_v45  ;;  %vm5457_vm0 = vcmp.gt.f32.partialorder %v5297_v9, 0.5  ;;  %v5128_v25 = vmul.f32 0.2, %v4191_v5  ;;  %v1370_v26 = vsel %vm1210_vm10, 0.0, %v14583_v16  ;;  %v890_v4 = vpop.f32.mrf.mxu0 }
 0x49f   : > { %v5617_v14 = vsel %vm5457_vm0, 0.0, %v5297_v9  ;;  %v8965_v6 = vsel %vm5457_vm0, 1.0, %v9391_v10  ;;  %v14625_v19 = vadd.f32 %v8796_v15, %v14511_v8  ;;  %vm2610_vm14 = vcmp.gt.f32.partialorder %v2450_v59, 0.5 }
 0x4a0   : > { %v6554_v50 = vmul.f32 0.2, %v5617_v14  ;;  %v5288_v29 = vadd.f32 %v5128_v25, %v14498_v22  ;;  %v2770_v52 = vsel %vm2610_vm14, 0.0, %v2450_v59  ;;  %v8490_v45 = vsel %vm1210_vm10, 1.0, %v9391_v10  ;;  %v722_v59 = vpop.f32.mrf.mxu2  ;;  %v806_v25 = vpop.f32.mrf.mxu3 }
 0x4a1   : > { %v14632_v43 = vadd.f32 %v8965_v6, %v14526_v54  ;;  %v8632_v11 = vsel %vm2610_vm14, 1.0, %v9391_v10  ;;  %v3707_v56 = vmul.f32 0.2, %v2770_v52  ;;  %v2308_v49 = vmul.f32 0.2, %v1370_v26  ;;  %v9329_v26 = vld [vmem:[%s15323_s3 + $0x40] sm:$0xff] }
 0x4a2   : > { %v6714_v13 = vadd.f32 %v6554_v50, %v14495_v38  ;;  %vm5448_vm15 = vcmp.gt.f32.partialorder %v5288_v29, 0.5  ;;  %v3561_v8 = vsel %vm2096_vm1, %v8632_v11, 0.0  ;;  %vm1201_vm12 = vcmp.gt.f32.partialorder %v14612_v30, 0.5  ;;  %8023 = vmatpush.bf16.msra.mxu2 %v9329_v26 }
 0x4a3   : > { %v5608_v39 = vsel %vm5448_vm15, 0.0, %v5288_v29  ;;  %v8956_v53 = vsel %vm5448_vm15, 1.0, %v9391_v10  ;;  %v3867_v7 = vadd.f32 %v3707_v56, %v14519_v51  ;;  %v14641_v61 = vadd.f32 %v8490_v45, %v14550_v60 }
 0x4a4   : > { %vm6874_vm2 = vcmp.gt.f32.partialorder %v6714_v13, 0.5  ;;  %v6545_v54 = vmul.f32 0.2, %v5608_v39  ;;  %v14644_v40 = vadd.f32 %v3561_v8, %v14531_v62  ;;  %v2468_v38 = vadd.f32 %v2308_v49, %v14583_v16 }
 0x4a5   : > { %v9125_v20 = vsel %vm6874_vm2, 1.0, %v9391_v10  ;;  %v14652_v32 = vadd.f32 %v8956_v53, %v14538_v23  ;;  %vm4027_vm4 = vcmp.gt.f32.partialorder %v3867_v7, 0.5  ;;  %v8481_v60 = vsel %vm1201_vm12, 1.0, %v9391_v10 }
 0x4a6   : > { %v6705_v47 = vadd.f32 %v6545_v54, %v14498_v22  ;;  %v4187_v62 = vsel %vm4027_vm4, 0.0, %v3867_v7  ;;  %v8792_v18 = vsel %vm4027_vm4, 1.0, %v9391_v10  ;;  %v1361_v2 = vsel %vm1201_vm12, 0.0, %v14612_v30 }
 0x4a7   : > { %v14663_v63 = vadd.f32 %v9125_v20, %v14554_v36  ;;  %v4978_v23 = vsel %vm2096_vm1, %v8792_v18, 0.0  ;;  %v5124_v9 = vmul.f32 0.2, %v4187_v62  ;;  %vm2628_vm5 = vcmp.gt.f32.partialorder %v2468_v38, 0.5 }
 0x4a8   : > { %vm6865_vm8 = vcmp.gt.f32.partialorder %v6705_v47, 0.5  ;;  %v2788_v5 = vsel %vm2628_vm5, 0.0, %v2468_v38  ;;  %v8650_v22 = vsel %vm2628_vm5, 1.0, %v9391_v10  ;;  %v14668_v15 = vadd.f32 %v8481_v60, %v14559_v48 }
 0x4a9   : > { %v9116_v36 = vsel %vm6865_vm8, 1.0, %v9391_v10  ;;  %v14675_v14 = vadd.f32 %v4978_v23, %v14564_v0  ;;  %v5284_v6 = vadd.f32 %v5124_v9, %v14519_v51  ;;  %v3725_v50 = vmul.f32 0.2, %v2788_v5 }
 0x4aa   : > { %v14679_v29 = vadd.f32 %v9116_v36, %v14569_v57  ;;  %v14682_v48 = vadd.f32 %v8650_v22, %v14577_v12  ;;  %v2299_v52 = vmul.f32 0.2, %v1361_v2  ;;  %v14685_v45 = vadd.f32 %v890_v4, %v11392_v24 }
 0x4ab   : > { %vm5444_vm9 = vcmp.gt.f32.partialorder %v5284_v6, 0.5  ;;  %v3885_v11 = vadd.f32 %v3725_v50, %v14583_v16  ;;  %v14689_v0 = vadd.f32 %v722_v59, %v10815_v33  ;;  %v14692_v56 = vadd.f32 %v806_v25, %v11123_v28 }
 0x4ac   : > { %v5604_v49 = vsel %vm5444_vm9, 0.0, %v5284_v6  ;;  %v8952_v57 = vsel %vm5444_vm9, 1.0, %v9391_v10  ;;  %v2459_v12 = vadd.f32 %v2299_v52, %v14612_v30  ;;  %vm1197_vm10 = vcmp.gt.f32.partialorder %v14685_v45, 0.5 }
 0x4ad   : > { %v6395_v13 = vsel %vm2096_vm1, %v8952_v57, 0.0  ;;  %v6541_v8 = vmul.f32 0.2, %v5604_v49  ;;  %vm4045_vm13 = vcmp.gt.f32.partialorder %v3885_v11, 0.5  ;;  %v1357_v39 = vsel %vm1197_vm10, 0.0, %v14685_v45 }
 0x4ae   : > { %v14700_v53 = vadd.f32 %v6395_v13, %v14590_v3  ;;  %v4205_v7 = vsel %vm4045_vm13, 0.0, %v3885_v11  ;;  %v8810_v54 = vsel %vm4045_vm13, 1.0, %v9391_v10  ;;  %vm2619_vm0 = vcmp.gt.f32.partialorder %v2459_v12, 0.5 }
 0x4af   : > { %v6701_v38 = vadd.f32 %v6541_v8, %v14519_v51  ;;  %v14705_v17 = vadd.f32 %v8810_v54, %v14599_v55  ;;  %v5142_v20 = vmul.f32 0.2, %v4205_v7  ;;  %v2779_v60 = vsel %vm2619_vm0, 0.0, %v2459_v12 }
 0x4b0   : > { %v8641_v47 = vsel %vm2619_vm0, 1.0, %v9391_v10  ;;  %v3716_v62 = vmul.f32 0.2, %v2779_v60  ;;  %v8477_v18 = vsel %vm1197_vm10, 1.0, %v9391_v10  ;;  %v2295_v2 = vmul.f32 0.2, %v1357_v39 }
 0x4b1   : > { %vm6861_vm14 = vcmp.gt.f32.partialorder %v6701_v38, 0.5  ;;  %v5302_v3 = vadd.f32 %v5142_v20, %v14583_v16  ;;  %v14711_v23 = vadd.f32 %v8641_v47, %v14602_v21  ;;  %v2146_v9 = vsel %vm2096_vm1, %v8477_v18, 0.0 }
 0x4b2   : > { %v9112_v51 = vsel %vm6861_vm14, 1.0, %v9391_v10  ;;  %v3876_v55 = vadd.f32 %v3716_v62, %v14612_v30  ;;  %v14717_v4 = vadd.f32 %v2146_v9, %v14606_v46  ;;  %v2455_v5 = vadd.f32 %v2295_v2, %v14685_v45 }
 0x4b3   : > { %v7652_v22 = vsel %vm2096_vm1, %v9112_v51, 0.0  ;;  %vm5462_vm15 = vcmp.gt.f32.partialorder %v5302_v3, 0.5  ;;  %vm1215_vm12 = vcmp.gt.f32.partialorder %v14689_v0, 0.5  ;;  %vm1206_vm2 = vcmp.gt.f32.partialorder %v14692_v56, 0.5 }
 0x4b4   : > { %v14724_v21 = vadd.f32 %v7652_v22, %v14618_v42  ;;  %v5622_v59 = vsel %vm5462_vm15, 0.0, %v5302_v3  ;;  %v8970_v25 = vsel %vm5462_vm15, 1.0, %v9391_v10  ;;  %vm4036_vm4 = vcmp.gt.f32.partialorder %v3876_v55, 0.5 }
 0x4b5   : > { %v14728_v26 = vadd.f32 %v8970_v25, %v14632_v43  ;;  %v6559_v46 = vmul.f32 0.2, %v5622_v59  ;;  %v4196_v36 = vsel %vm4036_vm4, 0.0, %v3876_v55  ;;  %v8801_v6 = vsel %vm4036_vm4, 1.0, %v9391_v10  ;;  %v725_v25 = vpop.f32.mrf.mxu2 }
 0x4b6   : > { %v14732_v50 = vadd.f32 %v8801_v6, %v14625_v19  ;;  %v5133_v52 = vmul.f32 0.2, %v4196_v36  ;;  %vm2615_vm5 = vcmp.gt.f32.partialorder %v2455_v5, 0.5  ;;  %v1375_v42 = vsel %vm1215_vm12, 0.0, %v14689_v0 }
 0x4b7   : > { %v6719_v11 = vadd.f32 %v6559_v46, %v14583_v16  ;;  %v2775_v49 = vsel %vm2615_vm5, 0.0, %v2455_v5  ;;  %v8637_v57 = vsel %vm2615_vm5, 1.0, %v9391_v10  ;;  %v8495_v43 = vsel %vm1215_vm12, 1.0, %v9391_v10 }
 0x4b8   : > { %v5293_v12 = vadd.f32 %v5133_v52, %v14612_v30  ;;  %v3563_v19 = vsel %vm2096_vm1, %v8637_v57, 0.0  ;;  %v3712_v13 = vmul.f32 0.2, %v2775_v49  ;;  %v14745_v8 = vadd.f32 %v8495_v43, %v14641_v61 }
 0x4b9   : > { %vm6879_vm8 = vcmp.gt.f32.partialorder %v6719_v11, 0.5  ;;  %v14748_v39 = vadd.f32 %v3563_v19, %v14644_v40  ;;  %v2313_v16 = vmul.f32 0.2, %v1375_v42  ;;  %v1366_v7 = vsel %vm1206_vm2, 0.0, %v14692_v56 }
 0x4ba   : > { %v9130_v54 = vsel %vm6879_vm8, 1.0, %v9391_v10  ;;  %vm5453_vm9 = vcmp.gt.f32.partialorder %v5293_v12, 0.5  ;;  %v3872_v38 = vadd.f32 %v3712_v13, %v14685_v45  ;;  %v8486_v20 = vsel %vm1206_vm2, 1.0, %v9391_v10  ;;  %v809_v13 = vpop.f32.mrf.mxu3 }
 0x4bb   : > { %v14759_v61 = vadd.f32 %v9130_v54, %v14663_v63  ;;  %v5613_v60 = vsel %vm5453_vm9, 0.0, %v5293_v12  ;;  %v8961_v40 = vsel %vm5453_vm9, 1.0, %v9391_v10  ;;  %v2473_v47 = vadd.f32 %v2313_v16, %v14689_v0  ;;  %v893_v63 = vpop.f32.mrf.mxu0 }
 0x4bc   : > { %v14764_v62 = vadd.f32 %v8961_v40, %v14652_v32  ;;  %v6550_v18 = vmul.f32 0.2, %v5613_v60  ;;  %vm4032_vm10 = vcmp.gt.f32.partialorder %v3872_v38, 0.5  ;;  %v14767_v2 = vadd.f32 %v8486_v20, %v14668_v15 }
 0x4bd   : > { %v4192_v3 = vsel %vm4032_vm10, 0.0, %v3872_v38  ;;  %v8797_v9 = vsel %vm4032_vm10, 1.0, %v9391_v10  ;;  %vm2633_vm13 = vcmp.gt.f32.partialorder %v2473_v47, 0.5  ;;  %v2304_v51 = vmul.f32 0.2, %v1366_v7 }
 0x4be   : > { %v6710_v55 = vadd.f32 %v6550_v18, %v14612_v30  ;;  %v4980_v5 = vsel %vm2096_vm1, %v8797_v9, 0.0  ;;  %v5129_v22 = vmul.f32 0.2, %v4192_v3  ;;  %v2793_v59 = vsel %vm2633_vm13, 0.0, %v2473_v47 }
 0x4bf   : > { %v14773_v32 = vadd.f32 %v4980_v5, %v14675_v14  ;;  %v8655_v46 = vsel %vm2633_vm13, 1.0, %v9391_v10  ;;  %v3730_v15 = vmul.f32 0.2, %v2793_v59  ;;  %v2464_v36 = vadd.f32 %v2304_v51, %v14692_v56 }
 0x4c0   : > { %vm6870_vm0 = vcmp.gt.f32.partialorder %v6710_v55, 0.5  ;;  %v5289_v6 = vadd.f32 %v5129_v22, %v14685_v45  ;;  %v14779_v52 = vadd.f32 %v8655_v46, %v14682_v48  ;;  %v14782_v30 = vadd.f32 %v893_v63, %v11392_v24 }
 0x4c1   : > { %v9121_v42 = vsel %vm6870_vm0, 1.0, %v9391_v10  ;;  %v3890_v11 = vadd.f32 %v3730_v15, %v14689_v0  ;;  %vm2624_vm14 = vcmp.gt.f32.partialorder %v2464_v36, 0.5  ;;  %v14787_v14 = vadd.f32 %v725_v25, %v10815_v33 }
 0x4c2   : > { %v14790_v49 = vadd.f32 %v9121_v42, %v14679_v29  ;;  %vm5449_vm15 = vcmp.gt.f32.partialorder %v5289_v6, 0.5  ;;  %v2784_v57 = vsel %vm2624_vm14, 0.0, %v2464_v36  ;;  %v8646_v43 = vsel %vm2624_vm14, 1.0, %v9391_v10 }
 0x4c3   : > { %v5609_v48 = vsel %vm5449_vm15, 0.0, %v5289_v6  ;;  %v8957_v12 = vsel %vm5449_vm15, 1.0, %v9391_v10  ;;  %vm4050_vm12 = vcmp.gt.f32.partialorder %v3890_v11, 0.5  ;;  %v14795_v19 = vadd.f32 %v8646_v43, %v14711_v23 }
 0x4c4   : > { %v6397_v16 = vsel %vm2096_vm1, %v8957_v12, 0.0  ;;  %v6546_v7 = vmul.f32 0.2, %v5609_v48  ;;  %v4210_v54 = vsel %vm4050_vm12, 0.0, %v3890_v11  ;;  %v8815_v38 = vsel %vm4050_vm12, 1.0, %v9391_v10 }
 0x4c5   : > { %v14800_v29 = vadd.f32 %v6397_v16, %v14700_v53  ;;  %v14803_v20 = vadd.f32 %v8815_v38, %v14705_v17  ;;  %v5147_v60 = vmul.f32 0.2, %v4210_v54  ;;  %v3721_v40 = vmul.f32 0.2, %v2784_v57 }
 0x4c6   : > { %v6706_v47 = vadd.f32 %v6546_v7, %v14685_v45  ;;  %vm1202_vm2 = vcmp.gt.f32.partialorder %v14782_v30, 0.5  ;;  %vm1220_vm4 = vcmp.gt.f32.partialorder %v14787_v14, 0.5  ;;  %v14809_v23 = vadd.f32 %v809_v13, %v11123_v28 }
 0x4c7   : > { %v5307_v18 = vadd.f32 %v5147_v60, %v14689_v0  ;;  %v3881_v3 = vadd.f32 %v3721_v40, %v14692_v56  ;;  %v1362_v53 = vsel %vm1202_vm2, 0.0, %v14782_v30  ;;  %v8482_v17 = vsel %vm1202_vm2, 1.0, %v9391_v10 }
 0x4c8   : > { %vm6866_vm5 = vcmp.gt.f32.partialorder %v6706_v47, 0.5  ;;  %v2148_v9 = vsel %vm2096_vm1, %v8482_v17, 0.0  ;;  %v2300_v51 = vmul.f32 0.2, %v1362_v53  ;;  %v1380_v45 = vsel %vm1220_vm4, 0.0, %v14787_v14  ;;  %v895_v17 = vpop.f32.mrf.mxu0 }
 0x4c9   : > { %v9117_v63 = vsel %vm6866_vm5, 1.0, %v9391_v10  ;;  %vm5467_vm8 = vcmp.gt.f32.partialorder %v5307_v18, 0.5  ;;  %vm4041_vm9 = vcmp.gt.f32.partialorder %v3881_v3, 0.5  ;;  %v14821_v55 = vadd.f32 %v2148_v9, %v14717_v4 }
 0x4ca   : > { %v7654_v5 = vsel %vm2096_vm1, %v9117_v63, 0.0  ;;  %v5627_v22 = vsel %vm5467_vm8, 0.0, %v5307_v18  ;;  %v8975_v59 = vsel %vm5467_vm8, 1.0, %v9391_v10  ;;  %v4201_v25 = vsel %vm4041_vm9, 0.0, %v3881_v3 }
 0x4cb   : > { %v14826_v46 = vadd.f32 %v7654_v5, %v14724_v21  ;;  %v14829_v15 = vadd.f32 %v8975_v59, %v14728_v26  ;;  %v6564_v36 = vmul.f32 0.2, %v5627_v22  ;;  %v8806_v6 = vsel %vm4041_vm9, 1.0, %v9391_v10 }
 0x4cc   : > { %v14833_v42 = vadd.f32 %v8806_v6, %v14732_v50  ;;  %v5138_v4 = vmul.f32 0.2, %v4201_v25  ;;  %v2460_v11 = vadd.f32 %v2300_v51, %v14782_v30  ;;  %v8500_v57 = vsel %vm1220_vm4, 1.0, %v9391_v10 }
 0x4cd   : > { %v6724_v43 = vadd.f32 %v6564_v36, %v14689_v0  ;;  %v14841_v21 = vadd.f32 %v8500_v57, %v14745_v8  ;;  %v2318_v26 = vmul.f32 0.2, %v1380_v45  ;;  %vm1211_vm10 = vcmp.gt.f32.partialorder %v14809_v23, 0.5 }
 0x4ce   : > { %v5298_v48 = vadd.f32 %v5138_v4, %v14692_v56  ;;  %vm2620_vm13 = vcmp.gt.f32.partialorder %v2460_v11, 0.5  ;;  %v1371_v50 = vsel %vm1211_vm10, 0.0, %v14809_v23  ;;  %v8491_v12 = vsel %vm1211_vm10, 1.0, %v9391_v10 }
 0x4cf   : > { %vm6884_vm0 = vcmp.gt.f32.partialorder %v6724_v43, 0.5  ;;  %v2780_v13 = vsel %vm2620_vm13, 0.0, %v2460_v11  ;;  %v8642_v16 = vsel %vm2620_vm13, 1.0, %v9391_v10  ;;  %v2478_v7 = vadd.f32 %v2318_v26, %v14787_v14 }
 0x4d0   : > { %v9135_v0 = vsel %vm6884_vm0, 1.0, %v9391_v10  ;;  %vm5458_vm14 = vcmp.gt.f32.partialorder %v5298_v48, 0.5  ;;  %v3565_v8 = vsel %vm2096_vm1, %v8642_v16, 0.0  ;;  %v3717_v54 = vmul.f32 0.2, %v2780_v13 }
 0x4d1   : > { %v14852_v38 = vadd.f32 %v9135_v0, %v14759_v61  ;;  %v5618_v60 = vsel %vm5458_vm14, 0.0, %v5298_v48  ;;  %v8966_v40 = vsel %vm5458_vm14, 1.0, %v9391_v10  ;;  %v14856_v47 = vadd.f32 %v3565_v8, %v14748_v39 }
 0x4d2   : > { %v14859_v18 = vadd.f32 %v8966_v40, %v14764_v62  ;;  %v6555_v3 = vmul.f32 0.2, %v5618_v60  ;;  %v3877_v53 = vadd.f32 %v3717_v54, %v14782_v30  ;;  %vm2638_vm15 = vcmp.gt.f32.partialorder %v2478_v7, 0.5 }
 0x4d3   : > { %v2798_v9 = vsel %vm2638_vm15, 0.0, %v2478_v7  ;;  %v8660_v51 = vsel %vm2638_vm15, 1.0, %v9391_v10  ;;  %v14864_v61 = vadd.f32 %v8491_v12, %v14767_v2  ;;  %v2309_v45 = vmul.f32 0.2, %v1371_v50 }
 0x4d4   : > { %v6715_v63 = vadd.f32 %v6555_v3, %v14692_v56  ;;  %vm4037_vm12 = vcmp.gt.f32.partialorder %v3877_v53, 0.5  ;;  %v14868_v39 = vadd.f32 %v8660_v51, %v14779_v52  ;;  %v3735_v62 = vmul.f32 0.2, %v2798_v9 }
 0x4d5   : > { %v4197_v5 = vsel %vm4037_vm12, 0.0, %v3877_v53  ;;  %v8802_v22 = vsel %vm4037_vm12, 1.0, %v9391_v10  ;;  %v2469_v59 = vadd.f32 %v2309_v45, %v14809_v23  ;;  %v14873_v25 = vadd.f32 %v895_v17, %v11392_v24 }
 0x4d6   : > { %vm6875_vm2 = vcmp.gt.f32.partialorder %v6715_v63, 0.5  ;;  %v4982_v2 = vsel %vm2096_vm1, %v8802_v22, 0.0  ;;  %v5134_v36 = vmul.f32 0.2, %v4197_v5  ;;  %v3895_v6 = vadd.f32 %v3735_v62, %v14787_v14 }
 0x4d7   : > { %v9126_v56 = vsel %vm6875_vm2, 1.0, %v9391_v10  ;;  %v14879_v52 = vadd.f32 %v4982_v2, %v14773_v32  ;;  %vm2629_vm4 = vcmp.gt.f32.partialorder %v2469_v59, 0.5  ;;  %vm1207_vm5 = vcmp.gt.f32.partialorder %v14873_v25, 0.5 }
 0x4d8   : > { %v14883_v4 = vadd.f32 %v9126_v56, %v14790_v49  ;;  %v5294_v11 = vadd.f32 %v5134_v36, %v14782_v30  ;;  %vm4055_vm8 = vcmp.gt.f32.partialorder %v3895_v6, 0.5  ;;  %v2789_v57 = vsel %vm2629_vm4, 0.0, %v2469_v59 }
 0x4d9   : > { %v4215_v43 = vsel %vm4055_vm8, 0.0, %v3895_v6  ;;  %v8820_v26 = vsel %vm4055_vm8, 1.0, %v9391_v10  ;;  %v8651_v48 = vsel %vm2629_vm4, 1.0, %v9391_v10  ;;  %v3726_v50 = vmul.f32 0.2, %v2789_v57 }
 0x4da   : > { %vm5454_vm9 = vcmp.gt.f32.partialorder %v5294_v11, 0.5  ;;  %v14889_v32 = vadd.f32 %v8820_v26, %v14803_v20  ;;  %v5152_v12 = vmul.f32 0.2, %v4215_v43  ;;  %v14892_v13 = vadd.f32 %v8651_v48, %v14795_v19 }
 0x4db   : > { %v5614_v49 = vsel %vm5454_vm9, 0.0, %v5294_v11  ;;  %v8962_v16 = vsel %vm5454_vm9, 1.0, %v9391_v10  ;;  %v3886_v7 = vadd.f32 %v3726_v50, %v14809_v23  ;;  %v1367_v0 = vsel %vm1207_vm5, 0.0, %v14873_v25  ;;  %v727_v50 = vpop.f32.mrf.mxu2 }
 0x4dc   : > { %v6399_v8 = vsel %vm2096_vm1, %v8962_v16, 0.0  ;;  %v6551_v54 = vmul.f32 0.2, %v5614_v49  ;;  %v5312_v60 = vadd.f32 %v5152_v12, %v14787_v14  ;;  %v8487_v20 = vsel %vm1207_vm5, 1.0, %v9391_v10 }
 0x4dd   : > { %v14905_v19 = vadd.f32 %v6399_v8, %v14800_v29  ;;  %vm4046_vm10 = vcmp.gt.f32.partialorder %v3886_v7, 0.5  ;;  %v2150_v40 = vsel %vm2096_vm1, %v8487_v20, 0.0  ;;  %v2305_v3 = vmul.f32 0.2, %v1367_v0 }
 0x4de   : > { %v6711_v53 = vadd.f32 %v6551_v54, %v14782_v30  ;;  %vm5472_vm13 = vcmp.gt.f32.partialorder %v5312_v60, 0.5  ;;  %v4206_v17 = vsel %vm4046_vm10, 0.0, %v3886_v7  ;;  %v8811_v9 = vsel %vm4046_vm10, 1.0, %v9391_v10 }
 0x4df   : > { %v5632_v51 = vsel %vm5472_vm13, 0.0, %v5312_v60  ;;  %v8980_v45 = vsel %vm5472_vm13, 1.0, %v9391_v10  ;;  %v14912_v63 = vadd.f32 %v8811_v9, %v14833_v42  ;;  %v5143_v62 = vmul.f32 0.2, %v4206_v17 }
 0x4e0   : > { %vm6871_vm0 = vcmp.gt.f32.partialorder %v6711_v53, 0.5  ;;  %v14915_v29 = vadd.f32 %v8980_v45, %v14829_v15  ;;  %v6569_v5 = vmul.f32 0.2, %v5632_v51  ;;  %v14918_v22 = vadd.f32 %v2150_v40, %v14821_v55 }
 0x4e1   : > { %v9122_v30 = vsel %vm6871_vm0, 1.0, %v9391_v10  ;;  %v5303_v59 = vadd.f32 %v5143_v62, %v14809_v23  ;;  %v2465_v2 = vadd.f32 %v2305_v3, %v14873_v25  ;;  %v2020_v36 = vrot.slane %v14291_v44, 1 }
 0x4e2   : > { %v7656_v42 = vsel %vm2096_vm1, %v9122_v30, 0.0  ;;  %v6729_v6 = vadd.f32 %v6569_v5, %v14787_v14  ;;  %v3437_v15 = vadd.f32 %v3436_v27, %v14304_v35  ;;  %v4853_v56 = vrot.slane %v14332_v37, 2 }
 0x4e3   : > { %v14931_v55 = vadd.f32 %v7656_v42, %v14826_v46  ;;  %vm5463_vm14 = vcmp.gt.f32.partialorder %v5303_v59, 0.5  ;;  %vm2625_vm15 = vcmp.gt.f32.partialorder %v2465_v2, 0.5  ;;  %v2021_v11 = vadd.f32 %v2020_v36, %v14291_v44 }
 0x4e4   : > { %vm6889_vm12 = vcmp.gt.f32.partialorder %v6729_v6, 0.5  ;;  %v5623_v57 = vsel %vm5463_vm14, 0.0, %v5303_v59  ;;  %v8971_v43 = vsel %vm5463_vm14, 1.0, %v9391_v10  ;;  %v2785_v26 = vsel %vm2625_vm15, 0.0, %v2465_v2  ;;  %v898_v2 = vpop.f32.mrf.mxu0 }
 0x4e5   : > { %v9140_v14 = vsel %vm6889_vm12, 1.0, %v9391_v10  ;;  %v14937_v48 = vadd.f32 %v8971_v43, %v14859_v18  ;;  %v6560_v35 = vmul.f32 0.2, %v5623_v57  ;;  %v8647_v27 = vsel %vm2625_vm15, 1.0, %v9391_v10 }
 0x4e6   : > { %v14941_v46 = vadd.f32 %v9140_v14, %v14852_v38  ;;  %v3567_v12 = vsel %vm2096_vm1, %v8647_v27, 0.0  ;;  %v3722_v44 = vmul.f32 0.2, %v2785_v26  ;;  %v3438_v49 = vrot.slane %v3437_v15, 1 }
 0x4e7   : > { %v6720_v16 = vadd.f32 %v6560_v35, %v14809_v23  ;;  %v14946_v7 = vadd.f32 %v3567_v12, %v14856_v47  ;;  %v4854_v0 = vadd.f32 %v4853_v56, %v14332_v37  ;;  %v6269_v18 = vadd.f32 %v6268_v31, %v14341_v1  ;;  %v811_v23 = vpop.f32.mrf.mxu3 }
 0x4e8   : > { %v3882_v8 = vadd.f32 %v3722_v44, %v14873_v25  ;;  %v3439_v54 = vadd.f32 %v3438_v49, %v3437_v15  ;;  %v7526_v38 = vadd.f32 %v7525_v58, %v14367_v41  ;;  %v14957_v60 = vadd.f32 %v727_v50, %v10815_v33 }
 0x4e9   : > { %vm6880_vm2 = vcmp.gt.f32.partialorder %v6720_v16, 0.5  ;;  %v4855_v47 = vrot.slane %v4854_v0, 1  ;;  %v6270_v20 = vrot.slane %v6269_v18, 2  ;;  %v14960_v37 = vadd.f32 %v811_v23, %v11123_v28 }
 0x4ea   : > { %v9131_v40 = vsel %vm6880_vm2, 1.0, %v9391_v10  ;;  %vm4042_vm4 = vcmp.gt.f32.partialorder %v3882_v8, 0.5  ;;  %v7527_v1 = vrot.slane %v7526_v38, 2  ;;  %v7676_v31 = vsel %vm7674_vm3, %v2021_v11, %v3439_v54 }
 0x4eb   : > { %v14965_v3 = vadd.f32 %v9131_v40, %v14883_v4  ;;  %v4202_v41 = vsel %vm4042_vm4, 0.0, %v3882_v8  ;;  %v8807_v33 = vsel %vm4042_vm4, 1.0, %v9391_v10  ;;  %v4856_v58 = vadd.f32 %v4855_v47, %v4854_v0 }
 0x4ec   : > { %v4984_v53 = vsel %vm2096_vm1, %v8807_v33, 0.0  ;;  %v5139_v17 = vmul.f32 0.2, %v4202_v41  ;;  %v6271_v9 = vadd.f32 %v6270_v20, %v6269_v18  ;;  %v7528_v51 = vadd.f32 %v7527_v1, %v7526_v38 }
 0x4ed   : > { %v14970_v45 = vadd.f32 %v4984_v53, %v14879_v52  ;;  %v7682_v62 = vsel %vm7680_vm6, %v7676_v31, %v4856_v58  ;;  %vm1225_vm5 = vcmp.gt.f32.partialorder %v14957_v60, 0.5  ;;  %vm1216_vm8 = vcmp.gt.f32.partialorder %v14960_v37, 0.5  ;;  %v900_v53 = vpop.f32.mrf.mxu0 }
 0x4ee   : > { %v5299_v4 = vadd.f32 %v5139_v17, %v14873_v25  ;;  %v6272_v5 = vrot.slane %v6271_v9, 1  ;;  %v7529_v30 = vrot.slane %v7528_v51, 1  ;;  %v1385_v59 = vsel %vm1225_vm5, 0.0, %v14957_v60 }
 0x4ef   : > { %v8505_v36 = vsel %vm1225_vm5, 1.0, %v9391_v10  ;;  %v2323_v42 = vmul.f32 0.2, %v1385_v59  ;;  %v1376_v6 = vsel %vm1216_vm8, 0.0, %v14960_v37  ;;  %v8496_v52 = vsel %vm1216_vm8, 1.0, %v9391_v10 }
 0x4f0   : > { %vm5459_vm9 = vcmp.gt.f32.partialorder %v5299_v4, 0.5  ;;  %v6273_v15 = vadd.f32 %v6272_v5, %v6271_v9  ;;  %v7530_v56 = vadd.f32 %v7529_v30, %v7528_v51  ;;  %v2052_v11 = vadd.f32 %v8505_v36, %v14841_v21  ;;  %v814_v51 = vpop.f32.mrf.mxu3 }
 0x4f1   : > { %v5619_v57 = vsel %vm5459_vm9, 0.0, %v5299_v4  ;;  %v8967_v43 = vsel %vm5459_vm9, 1.0, %v9391_v10  ;;  %v2483_v26 = vadd.f32 %v2323_v42, %v14957_v60  ;;  %v14984_v14 = vadd.f32 %v8496_v52, %v14864_v61 }
 0x4f2   : > { %v6401_v35 = vsel %vm2096_vm1, %v8967_v43, 0.0  ;;  %v6556_v27 = vmul.f32 0.2, %v5619_v57  ;;  %v7688_v50 = vsel %vm7686_vm7, %v7682_v62, %v6273_v15  ;;  %v2053_v12 = vrot.slane %v2052_v11, 4 }
 0x4f3   : > { %v14989_v44 = vadd.f32 %v6401_v35, %v14905_v19  ;;  %v7694_v49 = vsel %vm7692_vm11, %v7688_v50, %v7530_v56  ;;  %vm2643_vm10 = vcmp.gt.f32.partialorder %v2483_v26, 0.5  ;;  %v2314_v21 = vmul.f32 0.2, %v1376_v6  ;;  %v9338_v19 = vld [vmem:[%s15323_s3 + $0x88] sm:$0xff] }
 0x4f4   : > { %v6716_v16 = vadd.f32 %v6556_v27, %v14873_v25  ;;  %v7699_v0 = vmul.f32 0.00390625, %v7694_v49  ;;  %v2054_v18 = vadd.f32 %v2053_v12, %v2052_v11  ;;  %v2803_v8 = vsel %vm2643_vm10, 0.0, %v2483_v26  ;;  %8035 = vmatpush.bf16.msra.mxu3 %v9338_v19 }
 0x4f5   : > { %v8665_v61 = vsel %vm2643_vm10, 1.0, %v9391_v10  ;;  %v3740_v54 = vmul.f32 0.2, %v2803_v8  ;;  %v2474_v38 = vadd.f32 %v2314_v21, %v14960_v37  ;;  %v14996_v23 = vadd.f32 %v898_v2, %v11392_v24 }
 0x4f6   : > { %vm6876_vm13 = vcmp.gt.f32.partialorder %v6716_v16, 0.5  ;;  %v7704_v47 = vpack.c.bf16 %v7699_v0, %v7699_v0  ;;  %v2055_v20 = vrot.slane %v2054_v18, 2  ;;  %v3470_v25 = vadd.f32 %v8665_v61, %v14868_v39 }
 0x4f7   : > { %v9127_v40 = vsel %vm6876_vm13, 1.0, %v9391_v10  ;;  %v3900_v1 = vadd.f32 %v3740_v54, %v14957_v60  ;;  %vm2634_vm0 = vcmp.gt.f32.partialorder %v2474_v38, 0.5  ;;  %vm1212_vm14 = vcmp.gt.f32.partialorder %v14996_v23, 0.5  ;;  %v903_v54 = vpop.f32.mrf.mxu0 }
 0x4f8   : > { %v7658_v31 = vsel %vm2096_vm1, %v9127_v40, 0.0  ;;  %8024 = vmatmul.bf16.vlgmr.msra.gmra.mxu2 %v7704_v47  ;;  %v15006_v41 = vadd.f32 %v2055_v20, %v2054_v18  ;;  %v3471_v33 = vrot.slane %v3470_v25, 4  ;;  %v2794_v58 = vsel %vm2634_vm0, 0.0, %v2474_v38 }
 0x4f9   : > { %v15009_v17 = vadd.f32 %v7658_v31, %v14931_v55  ;;  %vm4060_vm15 = vcmp.gt.f32.partialorder %v3900_v1, 0.5  ;;  %v8656_v39 = vsel %vm2634_vm0, 1.0, %v9391_v10  ;;  %v3731_v9 = vmul.f32 0.2, %v2794_v58 }
 0x4fa   : > { %v15012_v62 = vadd.f32 %v3471_v33, %v3470_v25  ;;  %v4220_v4 = vsel %vm4060_vm15, 0.0, %v3900_v1  ;;  %v8825_v5 = vsel %vm4060_vm15, 1.0, %v9391_v10  ;;  %v15016_v30 = vadd.f32 %v8656_v39, %v14892_v13 }
 0x4fb   : > { %v4887_v59 = vadd.f32 %v8825_v5, %v14889_v32  ;;  %v5157_v2 = vmul.f32 0.2, %v4220_v4  ;;  %v3891_v36 = vadd.f32 %v3731_v9, %v14960_v37  ;;  %v1372_v55 = vsel %vm1212_vm14, 0.0, %v14996_v23 }
 0x4fc   : > { %v3473_v42 = vrot.slane %v15012_v62, 2  ;;  %v8492_v6 = vsel %vm1212_vm14, 1.0, %v9391_v10  ;;  %v2310_v52 = vmul.f32 0.2, %v1372_v55  ;;  %v15028_v15 = vadd.f32 %v814_v51, %v11123_v28 }
 0x4fd   : > { %v4888_v13 = vrot.slane %v4887_v59, 4  ;;  %v5317_v32 = vadd.f32 %v5157_v2, %v14957_v60  ;;  %vm4051_vm12 = vcmp.gt.f32.partialorder %v3891_v36, 0.5  ;;  %v2152_v56 = vsel %vm2096_vm1, %v8492_v6, 0.0  ;;  %v816_v6 = vpop.f32.mrf.mxu3 }
 0x4fe   : > { %v4211_v11 = vsel %vm4051_vm12, 0.0, %v3891_v36  ;;  %v8816_v57 = vsel %vm4051_vm12, 1.0, %v9391_v10  ;;  %v2153_v43 = vadd.f32 %v2152_v56, %v14918_v22  ;;  %v2470_v26 = vadd.f32 %v2310_v52, %v14996_v23 }
 0x4ff   : > { %v15035_v35 = vadd.f32 %v4888_v13, %v4887_v59  ;;  %vm5477_vm2 = vcmp.gt.f32.partialorder %v5317_v32, 0.5  ;;  %v15038_v27 = vadd.f32 %v8816_v57, %v14912_v63  ;;  %v5148_v50 = vmul.f32 0.2, %v4211_v11 }
 0x500   : > { %v5637_v12 = vsel %vm5477_vm2, 0.0, %v5317_v32  ;;  %v8985_v49 = vsel %vm5477_vm2, 1.0, %v9391_v10  ;;  %vm2630_vm4 = vcmp.gt.f32.partialorder %v2470_v26, 0.5  ;;  %vm1221_vm5 = vcmp.gt.f32.partialorder %v15028_v15, 0.5 }
 0x501   : > { %v15043_v21 = vadd.f32 %v8985_v49, %v14915_v29  ;;  %v6574_v16 = vmul.f32 0.2, %v5637_v12  ;;  %v5308_v22 = vadd.f32 %v5148_v50, %v14960_v37  ;;  %v2790_v0 = vsel %vm2630_vm4, 0.0, %v2470_v26  ;;  %v905_v26 = vpop.f32.mrf.mxu0 }
 0x502   : > { %v8652_v18 = vsel %vm2630_vm4, 1.0, %v9391_v10  ;;  %v3727_v8 = vmul.f32 0.2, %v2790_v0  ;;  %v1381_v63 = vsel %vm1221_vm5, 0.0, %v15028_v15  ;;  %v8501_v61 = vsel %vm1221_vm5, 1.0, %v9391_v10 }
 0x503   : > { %v6305_v38 = vrot.slane %v15043_v21, 4  ;;  %v6734_v19 = vadd.f32 %v6574_v16, %v14957_v60  ;;  %vm5468_vm8 = vcmp.gt.f32.partialorder %v5308_v22, 0.5  ;;  %v3569_v29 = vsel %vm2096_vm1, %v8652_v18, 0.0  ;;  %v9351_v16 = vld [vmem:[%s15323_s3 + $0xf0] sm:$0xff] }
 0x504   : > { %v5628_v47 = vsel %vm5468_vm8, 0.0, %v5308_v22  ;;  %v8976_v20 = vsel %vm5468_vm8, 1.0, %v9391_v10  ;;  %v15054_v25 = vadd.f32 %v3569_v29, %v14946_v7  ;;  %v3887_v40 = vadd.f32 %v3727_v8, %v14996_v23 }
 0x505   : > { %vm6894_vm9 = vcmp.gt.f32.partialorder %v6734_v19, 0.5  ;;  %v15058_v1 = vadd.f32 %v8976_v20, %v14937_v48  ;;  %v6565_v31 = vmul.f32 0.2, %v5628_v47  ;;  %v2088_v33 = vadd.f32 %v8501_v61, %v14984_v14  ;;  %v9350_v47 = vld [vmem:[%s15323_s3 + $0xe8] sm:$0xff] }
 0x506   : > { %v9145_v60 = vsel %vm6894_vm9, 1.0, %v9391_v10  ;;  %vm4047_vm10 = vcmp.gt.f32.partialorder %v3887_v40, 0.5  ;;  %v2319_v58 = vmul.f32 0.2, %v1381_v63  ;;  %v15063_v39 = vadd.f32 %v900_v53, %v11392_v24 }
 0x507   : > { %v15066_v9 = vadd.f32 %v9145_v60, %v14941_v46  ;;  %v6725_v7 = vadd.f32 %v6565_v31, %v14960_v37  ;;  %v4207_v51 = vsel %vm4047_vm10, 0.0, %v3887_v40  ;;  %v8812_v4 = vsel %vm4047_vm10, 1.0, %v9391_v10  ;;  %v9352_v37 = vld [vmem:[%s15323_s3 + $0xf8] sm:$0xff] }
 0x508   : > { %v4986_v48 = vsel %vm2096_vm1, %v8812_v4, 0.0  ;;  %v5144_v5 = vmul.f32 0.2, %v4207_v51  ;;  %v2479_v14 = vadd.f32 %v2319_v58, %v15028_v15  ;;  %vm1217_vm13 = vcmp.gt.f32.partialorder %v15063_v39, 0.5  ;;  %8042 = vmatpush.bf16.msrb.mxu1 %v9352_v37  ;;  %v9349_v37 = vld [vmem:[%s15323_s3 + $0xe0] sm:$0xff] }
 0x509   : > { %v7562_v59 = vrot.slane %v15066_v9, 4  ;;  %vm6885_vm0 = vcmp.gt.f32.partialorder %v6725_v7, 0.5  ;;  %v15075_v53 = vadd.f32 %v4986_v48, %v14970_v45  ;;  %v1377_v46 = vsel %vm1217_vm13, 0.0, %v15063_v39 }
 0x50a   : > { %v9136_v2 = vsel %vm6885_vm0, 1.0, %v9391_v10  ;;  %v5304_v36 = vadd.f32 %v5144_v5, %v14996_v23  ;;  %vm2639_vm14 = vcmp.gt.f32.partialorder %v2479_v14, 0.5  ;;  %v8497_v55 = vsel %vm1217_vm13, 1.0, %v9391_v10 }
 0x50b   : > { %v15085_v52 = vadd.f32 %v9136_v2, %v14965_v3  ;;  %v2799_v13 = vsel %vm2639_vm14, 0.0, %v2479_v14  ;;  %v8661_v45 = vsel %vm2639_vm14, 1.0, %v9391_v10  ;;  %v2154_v32 = vsel %vm2096_vm1, %v8497_v55, 0.0 }
 0x50c   : > { %vm5464_vm15 = vcmp.gt.f32.partialorder %v5304_v36, 0.5  ;;  %v15090_v56 = vadd.f32 %v8661_v45, %v15016_v30  ;;  %v3736_v11 = vmul.f32 0.2, %v2799_v13  ;;  %v15092_v57 = vadd.f32 %v2154_v32, %v2153_v43  ;;  %8043 = vmatpush.bf16.msrb.mxu1 %v9351_v16 }
 0x50d   : > { %v5624_v50 = vsel %vm5464_vm15, 0.0, %v5304_v36  ;;  %v8972_v12 = vsel %vm5464_vm15, 1.0, %v9391_v10  ;;  %v2315_v49 = vmul.f32 0.2, %v1377_v46  ;;  %v15096_v3 = vadd.f32 %v816_v6, %v11123_v28  ;;  %v9337_v46 = vld [vmem:[%s15323_s3 + $0x80] sm:$0xff] }
 0x50e   : > { %v6403_v22 = vsel %vm2096_vm1, %v8972_v12, 0.0  ;;  %v6561_v0 = vmul.f32 0.2, %v5624_v50  ;;  %v3896_v30 = vadd.f32 %v3736_v11, %v15028_v15  ;;  %v15104_v43 = vadd.f32 %v903_v54, %v11392_v24  ;;  %8036 = vmatpush.bf16.msra.mxu3 %v9337_v46 }
 0x50f   : > { %v15107_v18 = vadd.f32 %v6403_v22, %v14989_v44  ;;  %v2475_v8 = vadd.f32 %v2315_v49, %v15063_v39  ;;  %vm1226_vm12 = vcmp.gt.f32.partialorder %v15096_v3, 0.5  ;;  %v15112_v28 = vadd.f32 %v905_v26, %v11392_v24 }
 0x510   : > { %v6721_v63 = vadd.f32 %v6561_v0, %v14996_v23  ;;  %vm4056_vm2 = vcmp.gt.f32.partialorder %v3896_v30, 0.5  ;;  %v1386_v61 = vsel %vm1226_vm12, 0.0, %v15096_v3  ;;  %v8506_v19 = vsel %vm1226_vm12, 1.0, %v9391_v10  ;;  %8044 = vmatpush.bf16.msrb.mxu1 %v9350_v47 }
 0x511   : > { %v4216_v54 = vsel %vm4056_vm2, 0.0, %v3896_v30  ;;  %v8821_v29 = vsel %vm4056_vm2, 1.0, %v9391_v10  ;;  %vm2635_vm4 = vcmp.gt.f32.partialorder %v2475_v8, 0.5  ;;  %v2089_v44 = vadd.f32 %v8506_v19, %v2088_v33 }
 0x512   : > { %vm6881_vm5 = vcmp.gt.f32.partialorder %v6721_v63, 0.5  ;;  %v15122_v24 = vadd.f32 %v8821_v29, %v15038_v27  ;;  %v5153_v20 = vmul.f32 0.2, %v4216_v54  ;;  %v2795_v23 = vsel %vm2635_vm4, 0.0, %v2475_v8 }
 0x513   : > { %v9132_v40 = vsel %vm6881_vm5, 1.0, %v9391_v10  ;;  %v8657_v31 = vsel %vm2635_vm4, 1.0, %v9391_v10  ;;  %v3732_v60 = vmul.f32 0.2, %v2795_v23  ;;  %v2090_v58 = vrot.slane %v2089_v44, 4 }
 0x514   : > { %v7660_v7 = vsel %vm2096_vm1, %v9132_v40, 0.0  ;;  %v5313_v33 = vadd.f32 %v5153_v20, %v15028_v15  ;;  %v3571_v51 = vsel %vm2096_vm1, %v8657_v31, 0.0  ;;  %v2324_v4 = vmul.f32 0.2, %v1386_v61  ;;  %8045 = vmatpush.bf16.msrb.mxu1 %v9349_v37 }
 0x515   : > { %v15130_v48 = vadd.f32 %v7660_v7, %v15009_v17  ;;  %v15133_v27 = vadd.f32 %v3571_v51, %v15054_v25  ;;  %v3892_v5 = vadd.f32 %v3732_v60, %v15063_v39  ;;  %v2091_v14 = vadd.f32 %v2090_v58, %v2089_v44 }
 0x516   : > { %vm5473_vm8 = vcmp.gt.f32.partialorder %v5313_v33, 0.5  ;;  %v2484_v2 = vadd.f32 %v2324_v4, %v15096_v3  ;;  %vm1222_vm9 = vcmp.gt.f32.partialorder %v15104_v43, 0.5  ;;  %vm1227_vm10 = vcmp.gt.f32.partialorder %v15112_v28, 0.5 }
 0x517   : > { %v5633_v17 = vsel %vm5473_vm8, 0.0, %v5313_v33  ;;  %v8981_v25 = vsel %vm5473_vm8, 1.0, %v9391_v10  ;;  %vm4052_vm13 = vcmp.gt.f32.partialorder %v3892_v5, 0.5  ;;  %v2092_v36 = vrot.slane %v2091_v14, 2 }
 0x518   : > { %v6340_v55 = vadd.f32 %v8981_v25, %v15058_v1  ;;  %v6570_v6 = vmul.f32 0.2, %v5633_v17  ;;  %v4212_v13 = vsel %vm4052_vm13, 0.0, %v3892_v5  ;;  %v8817_v45 = vsel %vm4052_vm13, 1.0, %v9391_v10 }
 0x519   : > { %v4988_v32 = vsel %vm2096_vm1, %v8817_v45, 0.0  ;;  %v5149_v11 = vmul.f32 0.2, %v4212_v13  ;;  %v15149_v26 = vadd.f32 %v2092_v36, %v2091_v14  ;;  %vm2644_vm0 = vcmp.gt.f32.partialorder %v2484_v2, 0.5 }
 0x51a   : > { %v6730_v50 = vadd.f32 %v6570_v6, %v15028_v15  ;;  %v15153_v12 = vadd.f32 %v4988_v32, %v15075_v53  ;;  %v2804_v49 = vsel %vm2644_vm0, 0.0, %v2484_v2  ;;  %v8666_v16 = vsel %vm2644_vm0, 1.0, %v9391_v10 }
 0x51b   : > { %v5309_v1 = vadd.f32 %v5149_v11, %v15063_v39  ;;  %v3507_v22 = vadd.f32 %v8666_v16, %v15090_v56  ;;  %v3741_v0 = vmul.f32 0.2, %v2804_v49  ;;  %v1382_v30 = vsel %vm1222_vm9, 0.0, %v15104_v43 }
 0x51c   : > { %vm6890_vm14 = vcmp.gt.f32.partialorder %v6730_v50, 0.5  ;;  %v8502_v15 = vsel %vm1222_vm9, 1.0, %v9391_v10  ;;  %v2320_v8 = vmul.f32 0.2, %v1382_v30  ;;  %v1387_v53 = vsel %vm1227_vm10, 0.0, %v15112_v28 }
 0x51d   : > { %v9141_v63 = vsel %vm6890_vm14, 1.0, %v9391_v10  ;;  %vm5469_vm15 = vcmp.gt.f32.partialorder %v5309_v1, 0.5  ;;  %v3508_v61 = vrot.slane %v3507_v22, 4  ;;  %v3901_v56 = vadd.f32 %v3741_v0, %v15096_v3 }
 0x51e   : > { %v15170_v19 = vadd.f32 %v9141_v63, %v15085_v52  ;;  %v5629_v54 = vsel %vm5469_vm15, 0.0, %v5309_v1  ;;  %v8977_v29 = vsel %vm5469_vm15, 1.0, %v9391_v10  ;;  %v2156_v44 = vsel %vm2096_vm1, %v8502_v15, 0.0  ;;  %v9348_v1 = vld [vmem:[%s15323_s3 + $0xd8] sm:$0xff] }
 0x51f   : > { %v6405_v47 = vsel %vm2096_vm1, %v8977_v29, 0.0  ;;  %v6566_v20 = vmul.f32 0.2, %v5629_v54  ;;  %v15175_v23 = vadd.f32 %v3508_v61, %v3507_v22  ;;  %vm4061_vm12 = vcmp.gt.f32.partialorder %v3901_v56, 0.5  ;;  %8046 = vmatpush.bf16.msrb.mxu1 %v9348_v1 }
 0x520   : > { %v15178_v40 = vadd.f32 %v6405_v47, %v15107_v18  ;;  %v4221_v31 = vsel %vm4061_vm12, 0.0, %v3901_v56  ;;  %v8826_v60 = vsel %vm4061_vm12, 1.0, %v9391_v10  ;;  %v2157_v52 = vadd.f32 %v2156_v44, %v15092_v57 }
 0x521   : > { %v6726_v58 = vadd.f32 %v6566_v20, %v15063_v39  ;;  %v3510_v7 = vrot.slane %v15175_v23, 2  ;;  %v4924_v33 = vadd.f32 %v8826_v60, %v15122_v24  ;;  %v5158_v51 = vmul.f32 0.2, %v4221_v31 }
 0x522   : > { %v2480_v4 = vadd.f32 %v2320_v8, %v15104_v43  ;;  %v8507_v5 = vsel %vm1227_vm10, 1.0, %v9391_v10  ;;  %v2325_v18 = vmul.f32 0.2, %v1387_v53  ;;  %v2057_v14 = vrot.slane %v15006_v41, 1 }
 0x523   : > { %vm6886_vm2 = vcmp.gt.f32.partialorder %v6726_v58, 0.5  ;;  %v4925_v46 = vrot.slane %v4924_v33, 4  ;;  %v5318_v57 = vadd.f32 %v5158_v51, %v15096_v3  ;;  %v2158_v39 = vsel %vm2096_vm1, %v8507_v5, 0.0  ;;  %v9346_v58 = vld [vmem:[%s15323_s3 + $0xc8] sm:$0xff] }
 0x524   : > { %v9137_v37 = vsel %vm6886_vm2, 1.0, %v9391_v10  ;;  %vm2640_vm4 = vcmp.gt.f32.partialorder %v2480_v4, 0.5  ;;  %v2159_v24 = vadd.f32 %v2158_v39, %v2157_v52  ;;  %v2485_v2 = vadd.f32 %v2325_v18, %v15112_v28 }
 0x525   : > { %v7662_v17 = vsel %vm2096_vm1, %v9137_v37, 0.0  ;;  %v15195_v25 = vadd.f32 %v4925_v46, %v4924_v33  ;;  %vm5478_vm5 = vcmp.gt.f32.partialorder %v5318_v57, 0.5  ;;  %v2800_v36 = vsel %vm2640_vm4, 0.0, %v2480_v4 }
 0x526   : > { %v15198_v6 = vadd.f32 %v7662_v17, %v15130_v48  ;;  %v5638_v13 = vsel %vm5478_vm5, 0.0, %v5318_v57  ;;  %v8986_v45 = vsel %vm5478_vm5, 1.0, %v9391_v10  ;;  %v8662_v32 = vsel %vm2640_vm4, 1.0, %v9391_v10 }
 0x527   : > { %v15202_v11 = vadd.f32 %v8986_v45, %v6340_v55  ;;  %v6575_v50 = vmul.f32 0.2, %v5638_v13  ;;  %v3573_v49 = vsel %vm2096_vm1, %v8662_v32, 0.0  ;;  %v3737_v16 = vmul.f32 0.2, %v2800_v36  ;;  %v9356_v55 = vld [vmem:[%s15323_s3 + $0x118] sm:$0xff] }
 0x528   : > { %v3574_v22 = vadd.f32 %v3573_v49, %v15133_v27  ;;  %v2160_v0 = vrot.slane %v2159_v24, 4  ;;  %vm2645_vm8 = vcmp.gt.f32.partialorder %v2485_v2, 0.5  ;;  %v15210_v48 = vadd.f32 %v2057_v14, %v15006_v41  ;;  %v9347_v27 = vld [vmem:[%s15323_s3 + $0xd0] sm:$0xff]  ;;  %8059 = vmatpush.bf16.msrb.mxu2 %v9356_v55  ;;  %v9345_v36 = vld [vmem:[%s15323_s3 + $0xc0] sm:$0xff] }
 0x529   : > { %v6342_v30 = vrot.slane %v15202_v11, 4  ;;  %v6735_v15 = vadd.f32 %v6575_v50, %v15096_v3  ;;  %v3897_v8 = vadd.f32 %v3737_v16, %v15104_v43  ;;  %v2805_v53 = vsel %vm2645_vm8, 0.0, %v2485_v2  ;;  %v9355_v3 = vld [vmem:[%s15323_s3 + $0x110] sm:$0xff]  ;;  %8047 = vmatpush.bf16.msrb.mxu1 %v9347_v27 }
 0x52a   : > { %v2161_v63 = vadd.f32 %v2160_v0, %v2159_v24  ;;  %v8667_v41 = vsel %vm2645_vm8, 1.0, %v9391_v10  ;;  %v3742_v61 = vmul.f32 0.2, %v2805_v53  ;;  %v3474_v56 = vadd.f32 %v3473_v42, %v15012_v62 }
 0x52b   : > { %vm6895_vm9 = vcmp.gt.f32.partialorder %v6735_v15, 0.5  ;;  %vm4057_vm10 = vcmp.gt.f32.partialorder %v3897_v8, 0.5  ;;  %v3575_v54 = vsel %vm2096_vm1, %v8667_v41, 0.0  ;;  %v4890_v29 = vrot.slane %v15035_v35, 2 }
 0x52c   : > { %v9146_v44 = vsel %vm6895_vm9, 1.0, %v9391_v10  ;;  %v4217_v47 = vsel %vm4057_vm10, 0.0, %v3897_v8  ;;  %v8822_v20 = vsel %vm4057_vm10, 1.0, %v9391_v10  ;;  %v2162_v31 = vrot.slane %v2161_v63, 2  ;;  %8060 = vmatpush.bf16.msrb.mxu2 %v9355_v3 }
 0x52d   : > { %v15233_v60 = vadd.f32 %v9146_v44, %v15170_v19  ;;  %v4990_v62 = vsel %vm2096_vm1, %v8822_v20, 0.0  ;;  %v5154_v42 = vmul.f32 0.2, %v4217_v47  ;;  %v3576_v52 = vadd.f32 %v3575_v54, %v3574_v22  ;;  %v9354_v19 = vld [vmem:[%s15323_s3 + $0x108] sm:$0xff]  ;;  %8048 = vmatpush.bf16.msrb.mxu1 %v9346_v58 }
 0x52e   : > { %v4991_v33 = vadd.f32 %v4990_v62, %v15153_v12  ;;  %v2163_v51 = vadd.f32 %v2162_v31, %v2161_v63  ;;  %v3902_v4 = vadd.f32 %v3742_v61, %v15112_v28  ;;  %v3475_v5 = vrot.slane %v3474_v56, 1 }
 0x52f   : > { %v7599_v18 = vrot.slane %v15233_v60, 4  ;;  %v5314_v14 = vadd.f32 %v5154_v42, %v15104_v43  ;;  %v3577_v46 = vrot.slane %v3576_v52, 4  ;;  %v4891_v57 = vadd.f32 %v4890_v29, %v15035_v35 }
 0x530   : > { %v2164_v39 = vrot.slane %v2163_v51, 1  ;;  %vm4062_vm13 = vcmp.gt.f32.partialorder %v3902_v4, 0.5  ;;  %v3476_v37 = vadd.f32 %v3475_v5, %v3474_v56  ;;  %v6306_v12 = vadd.f32 %v6305_v38, %v15043_v21  ;;  %8061 = vmatpush.bf16.msrb.mxu2 %v9354_v19  ;;  %v9353_v21 = vld [vmem:[%s15323_s3 + $0x100] sm:$0xff] }
 0x531   : > { %vm5474_vm0 = vcmp.gt.f32.partialorder %v5314_v14, 0.5  ;;  %v3578_v24 = vadd.f32 %v3577_v46, %v3576_v52  ;;  %v4222_v2 = vsel %vm4062_vm13, 0.0, %v3902_v4  ;;  %v8827_v17 = vsel %vm4062_vm13, 1.0, %v9391_v10  ;;  %8049 = vmatpush.bf16.msrb.mxu1 %v9345_v36 }
 0x532   : > { %v5634_v13 = vsel %vm5474_vm0, 0.0, %v5314_v14  ;;  %v8982_v35 = vsel %vm5474_vm0, 1.0, %v9391_v10  ;;  %v15255_v45 = vadd.f32 %v2164_v39, %v2163_v51  ;;  %v4992_v32 = vsel %vm2096_vm1, %v8827_v17, 0.0 }
 0x533   : > { %v6407_v38 = vsel %vm2096_vm1, %v8982_v35, 0.0  ;;  %v6571_v50 = vmul.f32 0.2, %v5634_v13  ;;  %v3579_v49 = vrot.slane %v3578_v24, 2  ;;  %v4993_v16 = vadd.f32 %v4992_v32, %v4991_v33 }
 0x534   : > { %v6408_v1 = vadd.f32 %v6407_v38, %v15178_v40  ;;  %v5159_v22 = vmul.f32 0.2, %v4222_v2  ;;  %v4892_v0 = vrot.slane %v4891_v57, 1  ;;  %v6307_v55 = vrot.slane %v6306_v12, 2  ;;  %8062 = vmatpush.bf16.msrb.mxu2 %v9353_v21 }
 0x535   : > { %v6731_v15 = vadd.f32 %v6571_v50, %v15104_v43  ;;  %v3580_v8 = vadd.f32 %v3579_v49, %v3578_v24  ;;  %v4994_v53 = vrot.slane %v4993_v16, 4  ;;  %v7563_v27 = vadd.f32 %v7562_v59, %v15066_v9 }
 0x536   : > { %v5319_v63 = vadd.f32 %v5159_v22, %v15112_v28  ;;  %v4893_v41 = vadd.f32 %v4892_v0, %v4891_v57  ;;  %v6308_v61 = vadd.f32 %v6307_v55, %v6306_v12  ;;  %v7677_v56 = vsel %vm7674_vm3, %v15210_v48, %v3476_v37 }
 0x537   : > { %vm6891_vm14 = vcmp.gt.f32.partialorder %v6731_v15, 0.5  ;;  %v3581_v40 = vrot.slane %v3580_v8, 1  ;;  %v4995_v3 = vadd.f32 %v4994_v53, %v4993_v16  ;;  %v7564_v54 = vrot.slane %v7563_v27, 2 }
 0x538   : > { %v9142_v43 = vsel %vm6891_vm14, 1.0, %v9391_v10  ;;  %vm5479_vm15 = vcmp.gt.f32.partialorder %v5319_v63, 0.5  ;;  %v6309_v29 = vrot.slane %v6308_v61, 1  ;;  %v7683_v44 = vsel %vm7680_vm6, %v7677_v56, %v4893_v41 }
 0x539   : > { %v7664_v9 = vsel %vm2096_vm1, %v9142_v43, 0.0  ;;  %v4996_v59 = vrot.slane %v4995_v3, 2  ;;  %v5639_v47 = vsel %vm5479_vm15, 0.0, %v5319_v63  ;;  %v8987_v20 = vsel %vm5479_vm15, 1.0, %v9391_v10 }
 0x53a   : > { %v7665_v31 = vadd.f32 %v7664_v9, %v15198_v6  ;;  %v6409_v48 = vsel %vm2096_vm1, %v8987_v20, 0.0  ;;  %v6576_v62 = vmul.f32 0.2, %v5639_v47  ;;  %v6310_v42 = vadd.f32 %v6309_v29, %v6308_v61 }
 0x53b   : > { %v4997_v52 = vadd.f32 %v4996_v59, %v4995_v3  ;;  %v6410_v58 = vadd.f32 %v6409_v48, %v6408_v1  ;;  %v7565_v33 = vadd.f32 %v7564_v54, %v7563_v27  ;;  %v2094_v51 = vrot.slane %v15149_v26, 1 }
 0x53c   : > { %v6736_v4 = vadd.f32 %v6576_v62, %v15112_v28  ;;  %v7689_v5 = vsel %vm7686_vm7, %v7683_v44, %v6310_v42  ;;  %v3511_v19 = vadd.f32 %v3510_v7, %v15175_v23  ;;  %v4927_v14 = vrot.slane %v15195_v25, 2 }
 0x53d   : > { %v6411_v6 = vrot.slane %v6410_v58, 4  ;;  %v7566_v46 = vrot.slane %v7565_v33, 1  ;;  %v2095_v57 = vadd.f32 %v2094_v51, %v15149_v26  ;;  %v6343_v39 = vadd.f32 %v6342_v30, %v15202_v11 }
 0x53e   : > { %vm6896_vm12 = vcmp.gt.f32.partialorder %v6736_v4, 0.5  ;;  %v3512_v37 = vrot.slane %v3511_v19, 1  ;;  %v4928_v28 = vadd.f32 %v4927_v14, %v15195_v25  ;;  %v7600_v12 = vadd.f32 %v7599_v18, %v15233_v60 }
 0x53f   : > { %v6412_v24 = vadd.f32 %v6411_v6, %v6410_v58  ;;  %v9147_v23 = vsel %vm6896_vm12, 1.0, %v9391_v10  ;;  %v7567_v7 = vadd.f32 %v7566_v46, %v7565_v33  ;;  %v6344_v2 = vrot.slane %v6343_v39, 2 }
 0x540   : > { %v7666_v17 = vsel %vm2096_vm1, %v9147_v23, 0.0  ;;  %v3513_v26 = vadd.f32 %v3512_v37, %v3511_v19  ;;  %v4929_v36 = vrot.slane %v4928_v28, 1  ;;  %v7601_v13 = vrot.slane %v7600_v12, 2 }
 0x541   : > { %v6413_v35 = vrot.slane %v6412_v24, 2  ;;  %v7667_v11 = vadd.f32 %v7666_v17, %v7665_v31  ;;  %v7695_v30 = vsel %vm7692_vm11, %v7689_v5, %v7567_v7  ;;  %v6345_v32 = vadd.f32 %v6344_v2, %v6343_v39  ;;  %v9372_v31 = vld [vmem:[%s15324_s4] ss:$0 sm:$0xff] }
 0x542   : > { %v7700_v25 = vmul.f32 0.00390625, %v7695_v30  ;;  %v4930_v21 = vadd.f32 %v4929_v36, %v4928_v28  ;;  %v7602_v38 = vadd.f32 %v7601_v13, %v7600_v12  ;;  %v7678_v60 = vsel %vm7674_vm3, %v2095_v57, %v3513_v26 }
 0x543   : > { %v7668_v18 = vrot.slane %v7667_v11, 4  ;;  %v6346_v50 = vrot.slane %v6345_v32, 1  ;;  %v3582_v10 = vadd.f32 %v3581_v40, %v3580_v8  ;;  %v4998_v49 = vrot.slane %v4997_v52, 1 }
 0x544   : > { %v7705_v16 = vpack.c.bf16 %v7700_v25, %v7700_v25  ;;  %v7603_v1 = vrot.slane %v7602_v38, 1  ;;  %v7684_v22 = vsel %vm7680_vm6, %v7678_v60, %v4930_v21  ;;  %v6414_v0 = vadd.f32 %v6413_v35, %v6412_v24 }
 0x545   : > { %v7669_v55 = vadd.f32 %v7668_v18, %v7667_v11  ;;  %v6347_v15 = vadd.f32 %v6346_v50, %v6345_v32  ;;  %v4999_v53 = vadd.f32 %v4998_v49, %v4997_v52  ;;  %v7679_v27 = vsel %vm7674_vm3, %v15255_v45, %v3582_v10 }
 0x546   : > { %8037 = vmatmul.bf16.vlgmr.msra.gmra.mxu3 %v7705_v16  ;;  %v7604_v63 = vadd.f32 %v7603_v1, %v7602_v38  ;;  %v6415_v41 = vrot.slane %v6414_v0, 1  ;;  %v8013_v48 = vadd.f32 %v9372_v31, %v14561_v34 }
 0x547   : > { %v7670_v61 = vrot.slane %v7669_v55, 2  ;;  %v7690_v56 = vsel %vm7686_vm7, %v7684_v22, %v6347_v15  ;;  %v7685_v8 = vsel %vm7680_vm6, %v7679_v27, %v4999_v53 }
 0x548   : > { %v7696_v40 = vsel %vm7692_vm11, %v7690_v56, %v7604_v63  ;;  %v6416_v3 = vadd.f32 %v6415_v41, %v6414_v0 }
 0x549   : > { %v7701_v54 = vmul.f32 0.00390625, %v7696_v40  ;;  %v7671_v43 = vadd.f32 %v7670_v61, %v7669_v55 }
 0x54a   : > { %v7691_v29 = vsel %vm7686_vm7, %v7685_v8, %v6416_v3 }
 0x54b   : > { %v7706_v44 = vpack.c.bf16 %v7701_v54, %v7701_v54  ;;  %v7672_v9 = vrot.slane %v7671_v43, 1 }
 0x54d   : > { %8050 = vmatmul.bf16.vlgmr.msrb.gmra.mxu1 %v7706_v44  ;;  %v7673_v59 = vadd.f32 %v7672_v9, %v7671_v43 }
 0x54f   : > { %v7697_v45 = vsel %vm7692_vm11, %v7691_v29, %v7673_v59 }
 0x550   : > { %v7702_v47 = vmul.f32 0.00390625, %v7697_v45 }
 0x552   : > { %v7707_v20 = vpack.c.bf16 %v7702_v47, %v7702_v47 }
 0x554   : > { %9292 = vmatmul.msk.bf16.vlgmr.msrb.gmra.mxu2 %vm2096_vm1, %v7707_v20 }
 0x57b   : > { %v8025_v62 = vpop.f32.mrf.mxu2 }
 0x57c   : > { %v8026_v42 = vadd.f32 %v8025_v62, %v8013_v48 }
 0x583   : > { %v8027_v52 = vpop.f32.mrf.mxu2 }
 0x5c9   : > { %v8038_v58 = vpop.f32.mrf.mxu3 }
 0x5ca   : > { %v8051_v33 = vpop.f32.mrf.mxu1  ;;  %v8039_v5 = vadd.f32 %v8038_v58, %v8026_v42 }
 0x5cc   : > { %v8052_v19 = vadd.f32 %v8051_v33, %v8039_v5 }
 0x5d1   : > { %v8040_v51 = vpop.f32.mrf.mxu3 }
 0x5d2   : > { %v8053_v4 = vpop.f32.mrf.mxu1 }
 0x5d7   : > { %v8064_v14 = vpop.f32.mrf.mxu2 }
 0x5d8   : > { %v8065_v6 = vadd.f32 %v8064_v14, %v8052_v19 }
 0x5da   : > { %v8069_v46 = vmul.f32 0.2, %v8065_v6  ;;  %v8071_v57 = vrot.slane %v8065_v6, 1  ;;  %v8075_v28 = vrot.slane %v8065_v6, 2  ;;  %v8079_v23 = vrot.slane %v8065_v6, 3 }
 0x5db   : > { %v8083_v26 = vrot.slane %v8065_v6, 4 }
 0x5dc   : > { %v8073_v39 = vadd.f32 %v8071_v57, %v8069_v46 }
 0x5de   : > { %v8074_v37 = vmul.f32 0.2, %v8073_v39  ;;  %v8087_v2 = vrot.slane %v8073_v39, 7 }
 0x5df   : > { %v8066_v34 = vpop.f32.mrf.mxu2 }
 0x5e0   : > { %v8077_v12 = vadd.f32 %v8075_v28, %v8074_v37  ;;  %v8098_v11 = vsel %vm7674_vm3, %v8065_v6, %v8087_v2 }
 0x5e2   : > { %v8078_v24 = vmul.f32 0.2, %v8077_v12  ;;  %v8090_v36 = vrot.slane %v8077_v12, 6 }
 0x5e4   : > { %v8081_v7 = vadd.f32 %v8079_v23, %v8078_v24  ;;  %v8099_v32 = vsel %vm7680_vm6, %v8098_v11, %v8090_v36 }
 0x5e6   : > { %v8082_v17 = vmul.f32 0.2, %v8081_v7  ;;  %v8093_v13 = vrot.slane %v8081_v7, 5 }
 0x5e8   : > { %v8085_v35 = vadd.f32 %v8083_v26, %v8082_v17  ;;  %v8100_v25 = vsel %vm7686_vm7, %v8099_v32, %v8093_v13 }
 0x5ea   : > { %v8096_v30 = vrot.slane %v8085_v35, 4 }
 0x5ec   : > { %v8101_v21 = vsel %vm7692_vm11, %v8100_v25, %v8096_v30 }
 0x5ed   : > { %8102 = vst [vmem:[%s224_s6] sm:$0x1f] %v8101_v21 }
 0x5ee PF: > { %s15_s18 = sadd.s32 1, %s9389_s18  }
 0x5ef   : > { %p12_p5 = scmp.ge.s32.totalorder %s15_s18, 4  }
 0x5f1   :  { %14 = sbr.rel (!%p12_p5) target bundleno = 1 (0x1), region = 70 }

</bundles_post_ra>
